<compile_context>
chip_gen: v5e
topology: v5e:2x2
jax: 0.10.0
libtpu: 0.0.40
codegen_flags: <defaults>
</compile_context>

<pallas_src>
import jax
import jax.numpy as jnp
from jax.experimental import pallas as pl
from jax.experimental.pallas import tpu as pltpu

D_IN = 1538
D_H1 = 1024
D_H2 = 512
D_OUT = 32
D_OUT_PAD = 128     # lane-dense fc3 output; real columns are [:, :32]


def _leaky_relu(x, negative_slope=0.01):
    return jnp.where(x >= 0, x, negative_slope * x)


def textual_mlp_kernel(x_ref, w1_ref, b1_ref, w2_ref, b2_ref, w3_ref, b3_ref,
                       o_ref):
    # x arrives f32; cast to bf16 in VMEM (no extra HBM round trip).
    xb = x_ref[...].astype(jnp.bfloat16)
    # fc1 + leaky_relu  (dropout == identity at inference)
    h1 = jnp.dot(xb, w1_ref[...],
                 preferred_element_type=jnp.float32) + b1_ref[...]
    h1 = _leaky_relu(h1).astype(w2_ref.dtype)
    # fc2 + leaky_relu  (dropout == identity at inference)
    h2 = jnp.dot(h1, w2_ref[...],
                 preferred_element_type=jnp.float32) + b2_ref[...]
    h2 = _leaky_relu(h2).astype(w3_ref.dtype)
    # fc3 (output lane-padded to 128 columns; padded weight/bias cols are zero)
    o_ref[...] = (jnp.dot(h2, w3_ref[...],
                          preferred_element_type=jnp.float32)
                  + b3_ref[...]).astype(o_ref.dtype)


def prepare_params(w1, b1, w2, b2, w3, b3):
    """One-time weight preparation. Call ONCE, outside the per-step hot path."""
    w1p = w1.astype(jnp.bfloat16)                                    # (1538, 1024)
    w2p = w2.astype(jnp.bfloat16)                                    # (1024, 512)
    w3p = jnp.pad(w3, ((0, 0), (0, D_OUT_PAD - D_OUT))).astype(jnp.bfloat16)  # (512, 128)
    b3p = jnp.pad(b3, ((0, 0), (0, D_OUT_PAD - D_OUT)))              # (1, 128) f32
    return w1p, b1, w2p, b2, w3p, b3p


def textual_mlp(x, w1, b1, w2, b2, w3, b3):
    """x: (B, 1538) float32. Weights must come from prepare_params()."""
    B = x.shape[0]

    # Batch tile: whole batch for small B (block dim == full array dim is
    # legal); 512-row tiles for large batches (fewer grid steps).
    TM = B if B <= 512 else 512
    grid = (pl.cdiv(B, TM),)

    # Full last dims on x / w1: Mosaic masks the K=1538 tail internally,
    # so no host-side padding of x is needed.
    x_spec = pl.BlockSpec((TM, D_IN), lambda i: (i, 0))
    out_spec = pl.BlockSpec((TM, D_OUT_PAD), lambda i: (i, 0))
    # Constant block index -> weights/biases DMA'd once, VMEM-resident
    # across all batch-grid steps.
    const = lambda shape: pl.BlockSpec(shape, lambda i: (0,) * len(shape))

    cost = pl.CostEstimate(
        flops=2 * B * (D_IN * D_H1 + D_H1 * D_H2 + D_H2 * D_OUT_PAD),
        transcendentals=0,
        bytes_accessed=(x.size * 4
                        + (w1.size + w2.size + w3.size) * 2
                        + (b1.size + b2.size + b3.size) * 4
                        + B * D_OUT_PAD * 4),
    )

    out = pl.pallas_call(
        textual_mlp_kernel,
        out_shape=jax.ShapeDtypeStruct((B, D_OUT_PAD), jnp.float32),
        grid=grid,
        in_specs=[
            x_spec,
            const(w1.shape), const(b1.shape),
            const(w2.shape), const(b2.shape),
            const(w3.shape), const(b3.shape),
        ],
        out_specs=out_spec,
        compiler_params=pltpu.CompilerParams(
            # Batch axis is fully independent -> shard across v7x's 2 TCs.
            dimension_semantics=("parallel",),
            vmem_limit_bytes=32 << 20,
        ),
        cost_estimate=cost,
    )(x, w1, b1, w2, b2, w3, b3)

    # Drop the lane-padding columns.
    return out[:, :D_OUT]


def init_params(key, input_dim=D_IN):
    # Deterministic synthetic parameters (PyTorch-Linear-like uniform init).
    # Weights stored as (d_in, d_out) (transpose of nn.Linear.weight),
    # biases as (1, d_out).
    dims = [(input_dim, D_H1), (D_H1, D_H2), (D_H2, D_OUT)]
    params = []
    for (d_in, d_out) in dims:
        key, kw, kb = jax.random.split(key, 3)
        bound = 1.0 / jnp.sqrt(d_in)
        w = jax.random.uniform(kw, (d_in, d_out), jnp.float32, -bound, bound)
        b = jax.random.uniform(kb, (1, d_out), jnp.float32, -bound, bound)
        params += [w, b]
    return params


def reference(x, w1, b1, w2, b2, w3, b3):
    # Mirrors the kernel's numerics: bf16 operands, f32 accumulation.
    h1 = _leaky_relu(jnp.dot(x.astype(jnp.bfloat16), w1.astype(jnp.bfloat16),
                             preferred_element_type=jnp.float32) + b1)
    h2 = _leaky_relu(jnp.dot(h1.astype(jnp.bfloat16), w2.astype(jnp.bfloat16),
                             preferred_element_type=jnp.float32) + b2)
    return jnp.dot(h2.astype(jnp.bfloat16), w3.astype(jnp.bfloat16),
                   preferred_element_type=jnp.float32) + b3


if __name__ == "__main__":
    key = jax.random.PRNGKey(0)
    key, kx = jax.random.split(key)
    B = 2
    x = jax.random.normal(kx, (B, D_IN), jnp.float32)
    params = init_params(key, input_dim=D_IN)

    # One-time weight preparation, hoisted out of the jitted hot path.
    prepped = prepare_params(*params)
    prepped = jax.tree_util.tree_map(jax.block_until_ready, prepped)

    out = jax.jit(textual_mlp)(x, *prepped)
    out = jax.block_until_ready(out)

    ref = reference(x, *params)
    assert out.shape == (B, D_OUT), out.shape
    assert jnp.allclose(out, ref, atol=5e-3, rtol=5e-3), "mismatch vs reference"
    print("KERNEL_OK")
</pallas_src>

<mosaic_0001>
module attributes {stable_mosaic.version = 11 : i64} {
  func.func @textual_mlp_kernel(%arg0: i32, %arg1: memref<2x1538xf32, #tpu.memory_space<vmem>>, %arg2: memref<1538x1024xbf16, #tpu.memory_space<vmem>>, %arg3: memref<1x1024xf32, #tpu.memory_space<vmem>>, %arg4: memref<1024x512xbf16, #tpu.memory_space<vmem>>, %arg5: memref<1x512xf32, #tpu.memory_space<vmem>>, %arg6: memref<512x128xbf16, #tpu.memory_space<vmem>>, %arg7: memref<1x128xf32, #tpu.memory_space<vmem>>, %arg8: memref<2x128xf32, #tpu.memory_space<vmem>>) attributes {dimension_semantics = [#tpu.dimension_semantics<parallel>], iteration_bounds = array<i64: 1>, scalar_prefetch = 0 : i64, scratch_operands = 0 : i64, tpu.core_type = #tpu.core_type<tc>, window_params = [{transform_indices = @transform_0, window_bounds = array<i64: 2, 1538>}, {pipeline_mode = #tpu.pipeline_mode<synchronous>, transform_indices = @transform_1, window_bounds = array<i64: 1538, 1024>}, {pipeline_mode = #tpu.pipeline_mode<synchronous>, transform_indices = @transform_2, window_bounds = array<i64: 1, 1024>}, {pipeline_mode = #tpu.pipeline_mode<synchronous>, transform_indices = @transform_3, window_bounds = array<i64: 1024, 512>}, {pipeline_mode = #tpu.pipeline_mode<synchronous>, transform_indices = @transform_4, window_bounds = array<i64: 1, 512>}, {pipeline_mode = #tpu.pipeline_mode<synchronous>, transform_indices = @transform_5, window_bounds = array<i64: 512, 128>}, {pipeline_mode = #tpu.pipeline_mode<synchronous>, transform_indices = @transform_6, window_bounds = array<i64: 1, 128>}, {transform_indices = @transform_7, window_bounds = array<i64: 2, 128>}]} {
    %c0 = arith.constant 0 : index
    %c0_0 = arith.constant 0 : index
    %0 = vector.load %arg1[%c0, %c0_0] : memref<2x1538xf32, #tpu.memory_space<vmem>>, vector<2x1538xf32>
    %1 = arith.truncf %0 : vector<2x1538xf32> to vector<2x1538xbf16>
    %c0_1 = arith.constant 0 : index
    %c0_2 = arith.constant 0 : index
    %2 = vector.load %arg2[%c0_1, %c0_2] : memref<1538x1024xbf16, #tpu.memory_space<vmem>>, vector<1538x1024xbf16>
    %cst = arith.constant dense<0.000000e+00> : vector<2x1024xf32>
    %3 = tpu.matmul %1, %2, %cst {dimension_numbers = #tpu.dot_dimension_numbers<[1], [0], [0], [1], [0, 0, 1, 1], [], []>} : vector<2x1538xbf16>, vector<1538x1024xbf16>, vector<2x1024xf32> -> vector<2x1024xf32>
    %c0_3 = arith.constant 0 : index
    %c0_4 = arith.constant 0 : index
    %4 = vector.load %arg3[%c0_3, %c0_4] : memref<1x1024xf32, #tpu.memory_space<vmem>>, vector<1x1024xf32>
    %5 = vector.broadcast %4 : vector<1x1024xf32> to vector<2x1024xf32>
    %6 = arith.addf %3, %5 : vector<2x1024xf32>
    %cst_5 = arith.constant 0.000000e+00 : f32
    %7 = vector.broadcast %cst_5 : f32 to vector<2x1024xf32>
    %8 = arith.cmpf oge, %6, %7 : vector<2x1024xf32>
    %cst_6 = arith.constant 0.00999999977 : f32
    %9 = vector.broadcast %cst_6 : f32 to vector<2x1024xf32>
    %10 = arith.mulf %9, %6 : vector<2x1024xf32>
    %11 = arith.select %8, %6, %10 : vector<2x1024xi1>, vector<2x1024xf32>
    %12 = arith.truncf %11 : vector<2x1024xf32> to vector<2x1024xbf16>
    %c0_7 = arith.constant 0 : index
    %c0_8 = arith.constant 0 : index
    %13 = vector.load %arg4[%c0_7, %c0_8] : memref<1024x512xbf16, #tpu.memory_space<vmem>>, vector<1024x512xbf16>
    %cst_9 = arith.constant dense<0.000000e+00> : vector<2x512xf32>
    %14 = tpu.matmul %12, %13, %cst_9 {dimension_numbers = #tpu.dot_dimension_numbers<[1], [0], [0], [1], [0, 0, 1, 1], [], []>} : vector<2x1024xbf16>, vector<1024x512xbf16>, vector<2x512xf32> -> vector<2x512xf32>
    %c0_10 = arith.constant 0 : index
    %c0_11 = arith.constant 0 : index
    %15 = vector.load %arg5[%c0_10, %c0_11] : memref<1x512xf32, #tpu.memory_space<vmem>>, vector<1x512xf32>
    %16 = vector.broadcast %15 : vector<1x512xf32> to vector<2x512xf32>
    %17 = arith.addf %14, %16 : vector<2x512xf32>
    %cst_12 = arith.constant 0.000000e+00 : f32
    %18 = vector.broadcast %cst_12 : f32 to vector<2x512xf32>
    %19 = arith.cmpf oge, %17, %18 : vector<2x512xf32>
    %cst_13 = arith.constant 0.00999999977 : f32
    %20 = vector.broadcast %cst_13 : f32 to vector<2x512xf32>
    %21 = arith.mulf %20, %17 : vector<2x512xf32>
    %22 = arith.select %19, %17, %21 : vector<2x512xi1>, vector<2x512xf32>
    %23 = arith.truncf %22 : vector<2x512xf32> to vector<2x512xbf16>
    %c0_14 = arith.constant 0 : index
    %c0_15 = arith.constant 0 : index
    %24 = vector.load %arg6[%c0_14, %c0_15] : memref<512x128xbf16, #tpu.memory_space<vmem>>, vector<512x128xbf16>
    %cst_16 = arith.constant dense<0.000000e+00> : vector<2x128xf32>
    %25 = tpu.matmul %23, %24, %cst_16 {dimension_numbers = #tpu.dot_dimension_numbers<[1], [0], [0], [1], [0, 0, 1, 1], [], []>} : vector<2x512xbf16>, vector<512x128xbf16>, vector<2x128xf32> -> vector<2x128xf32>
    %c0_17 = arith.constant 0 : index
    %c0_18 = arith.constant 0 : index
    %26 = vector.load %arg7[%c0_17, %c0_18] : memref<1x128xf32, #tpu.memory_space<vmem>>, vector<1x128xf32>
    %27 = vector.broadcast %26 : vector<1x128xf32> to vector<2x128xf32>
    %28 = arith.addf %25, %27 : vector<2x128xf32>
    %c0_19 = arith.constant 0 : index
    %c0_20 = arith.constant 0 : index
    %29 = vector.load %arg8[%c0_19, %c0_20] : memref<2x128xf32, #tpu.memory_space<vmem>>, vector<2x128xf32>
    tpu.vector_store %arg8[%c0_19, %c0_20], %28 {strides = array<i32>} : memref<2x128xf32, #tpu.memory_space<vmem>>, vector<2x128xf32>,
    return
  }
  func.func @transform_0(%arg0: i32) -> (i32, i32) {
    %c0_i32 = arith.constant 0 : i32
    %c0_i32_0 = arith.constant 0 : i32
    return %arg0, %c0_i32 : i32, i32
  }
  func.func @transform_1(%arg0: i32) -> (i32, i32) {
    %c0_i32 = arith.constant 0 : i32
    %c0_i32_0 = arith.constant 0 : i32
    %c0_i32_1 = arith.constant 0 : i32
    return %c0_i32, %c0_i32_0 : i32, i32
  }
  func.func @transform_2(%arg0: i32) -> (i32, i32) {
    %c0_i32 = arith.constant 0 : i32
    %c0_i32_0 = arith.constant 0 : i32
    %c0_i32_1 = arith.constant 0 : i32
    return %c0_i32, %c0_i32_0 : i32, i32
  }
  func.func @transform_3(%arg0: i32) -> (i32, i32) {
    %c0_i32 = arith.constant 0 : i32
    %c0_i32_0 = arith.constant 0 : i32
    %c0_i32_1 = arith.constant 0 : i32
    return %c0_i32, %c0_i32_0 : i32, i32
  }
  func.func @transform_4(%arg0: i32) -> (i32, i32) {
    %c0_i32 = arith.constant 0 : i32
    %c0_i32_0 = arith.constant 0 : i32
    %c0_i32_1 = arith.constant 0 : i32
    return %c0_i32, %c0_i32_0 : i32, i32
  }
  func.func @transform_5(%arg0: i32) -> (i32, i32) {
    %c0_i32 = arith.constant 0 : i32
    %c0_i32_0 = arith.constant 0 : i32
    %c0_i32_1 = arith.constant 0 : i32
    return %c0_i32, %c0_i32_0 : i32, i32
  }
  func.func @transform_6(%arg0: i32) -> (i32, i32) {
    %c0_i32 = arith.constant 0 : i32
    %c0_i32_0 = arith.constant 0 : i32
    %c0_i32_1 = arith.constant 0 : i32
    return %c0_i32, %c0_i32_0 : i32, i32
  }
  func.func @transform_7(%arg0: i32) -> (i32, i32) {
    %c0_i32 = arith.constant 0 : i32
    %c0_i32_0 = arith.constant 0 : i32
    return %arg0, %c0_i32 : i32, i32
  }
}

</mosaic_0001>

<bundles_post_ra>
// kernel: textual_mlp.1
= control target key start
LH: loop header
LB: loop body
LE: loop exit
PB: predicated region body
PF: predicated region fallthrough
CT: control target
= control target key end

     0   :  { %12 = vsyncpa [#allocation3], 0  ;;  %s14520_s0 = inlined_call_operand.hbm [shape: f32[2,1538], index: 0, kind: input, shape index: {}]   ;;  %s14521_s1 = inlined_call_operand.hbm [shape: bf16[1538,1024], index: 1, kind: input, shape index: {}]   ;;  %s14522_s2 = inlined_call_operand.hbm [shape: f32[1,1024], index: 2, kind: input, shape index: {}]   ;;  %s14523_s3 = inlined_call_operand.hbm [shape: bf16[1024,512], index: 3, kind: input, shape index: {}]   ;;  %s14524_s4 = inlined_call_operand.hbm [shape: f32[1,512], index: 4, kind: input, shape index: {}]   ;;  %s14525_s5 = inlined_call_operand.hbm [shape: bf16[512,128], index: 5, kind: input, shape index: {}]   ;;  %s14526_s6 = inlined_call_operand.hbm [shape: f32[1,128], index: 6, kind: input, shape index: {}]   ;;  %s14527_s7 = inlined_call_operand.hbm [shape: f32[2,128], index: 7, kind: output, shape index: {}]  }
   0x1   :  { %13 = vsyncpa [#allocation6], 0 }
   0x2   :  { %14 = vsyncpa [#allocation9], 0 }
   0x3   :  { %15 = vsyncpa [#allocation12], 0  ;;  %s32_s26 = sshll.u32 %s14521_s1, 4  ;;  %s33_s26 = int_to_ptr.hbm [resolvable:$true] %s32_s26 }
   0x4   :  { %16 = vsyncpa [#allocation4], 0  ;;  %s14064_s27 = smov [#allocation5]   ;;  %s56_s8 = sshll.u32 %s14523_s3, 4  ;;  %s57_s8 = int_to_ptr.hbm [resolvable:$true] %s56_s8 }
   0x5   :  { %s34_s28 = sshll.u32 %s14064_s27, 4  ;;  %s14065_s9 = smov 512   ;;  %s35_s28 = int_to_ptr.vmem [resolvable:$true] %s34_s28 }
   0x6   :  { %s14066_s10 = smov 32   ;;  %s14067_s11 = smov [#allocation8]  }
   0x7   :  { %40 = dma.hbm_to_vmem [thread:$0]  %s33_s26, 98816, %s35_s28, [#allocation6], %s14065_s9, %s14065_s9, %s14066_s10  }
   0x8   :  { %s58_s12 = sshll.u32 %s14067_s11, 4  ;;  %s14068_s13 = smov 256   ;;  %s59_s12 = int_to_ptr.vmem [resolvable:$true] %s58_s12 }
   0x9   :  { %s14069_s14 = smov 16   ;;  %s80_s16 = sshll.u32 %s14525_s5, 4  ;;  %s81_s16 = int_to_ptr.hbm [resolvable:$true] %s80_s16 }
   0xa   :  { %64 = dma.hbm_to_vmem [thread:$0]  %s57_s8, 32768, %s59_s12, [#allocation9], %s14068_s13, %s14068_s13, %s14069_s14  }
   0xb   :  { %s14070_s17 = smov [#allocation11]   ;;  %s22_s20 = sshll.u32 %s14520_s0, 4  ;;  %s23_s20 = int_to_ptr.hbm [resolvable:$true] %s22_s20 }
   0xc   :  { %s82_s18 = sshll.u32 %s14070_s17, 4  ;;  %s14071_s21 = smov 64   ;;  %s83_s18 = int_to_ptr.vmem [resolvable:$true] %s82_s18 }
   0xd   :  { %s14072_s22 = smov 4   ;;  %s14073_s23 = smov [#allocation2]  }
   0xe   :  { %88 = dma.hbm_to_vmem [thread:$0]  %s81_s16, 4096, %s83_s18, [#allocation12], %s14071_s21, %s14071_s21, %s14072_s22  }
   0xf   :  { %s24_s24 = sshll.u32 %s14073_s23, 4  ;;  %s46_s27 = sshll.u32 %s14522_s2, 4  ;;  %s25_s24 = int_to_ptr.vmem [resolvable:$true] %s24_s24  ;;  %s47_s27 = int_to_ptr.hbm [resolvable:$true] %s46_s27 }
  0x10   :  { %27 = dma.hbm_to_vmem [thread:$0]  %s23_s20, 416, %s25_s24, [#allocation3]  }
  0x11   :  { %s70_s29 = sshll.u32 %s14524_s4, 4  ;;  %s14074_s30 = smov [#allocation7]   ;;  %s71_s29 = int_to_ptr.hbm [resolvable:$true] %s70_s29 }
  0x12   :  { %s48_s8 = sshll.u32 %s14074_s30, 4  ;;  %s14075_s0 = smov [#allocation10]   ;;  %s49_s8 = int_to_ptr.vmem [resolvable:$true] %s48_s8 }
  0x13   :  { %51 = dma.hbm_to_vmem [thread:$0]  %s47_s27, 128, %s49_s8, [#allocation6]  }
  0x14   :  { %s72_s9 = sshll.u32 %s14075_s0, 4  ;;  %s94_s12 = sshll.u32 %s14526_s6, 4  ;;  %s73_s9 = int_to_ptr.vmem [resolvable:$true] %s72_s9  ;;  %s95_s12 = int_to_ptr.hbm [resolvable:$true] %s94_s12 }
  0x15   :  { %75 = dma.hbm_to_vmem [thread:$0]  %s71_s29, 64, %s73_s9, [#allocation9]  }
  0x16   :  { %s14076_s2 = smov [#allocation13]  }
  0x17   :  { %s96_s13 = sshll.u32 %s14076_s2, 4  ;;  %s97_s13 = int_to_ptr.vmem [resolvable:$true] %s96_s13 }
  0x18   :  { %99 = dma.hbm_to_vmem [thread:$0]  %s95_s12, 16, %s97_s13, [#allocation12]  }
  0x19   :  { %14054 = dma.done.wait [#allocation3], 416  }
  0x1a   :  { %14055 = vsyncadd [#allocation3], 4294966880 }
  0x1b   :  { %14056 = dma.done.wait [#allocation6], 98944  }
  0x1c   :  { %14057 = vsyncadd [#allocation6], 4294868352 }
  0x1d   :  { %14058 = dma.done.wait [#allocation9], 32832  }
  0x1e   :  { %14059 = vsyncadd [#allocation9], 4294934464 }
  0x1f   :  { %14060 = dma.done.wait [#allocation12], 4112  }
  0x20   :  { %14061 = vsyncadd [#allocation12], 4294963184  ;;  %v8781_v0 = vld [vmem:[#allocation5 + $0x1c0] sm:$0xf]  ;;  %vm4835_vm0 = vcmask 1040384   ;;  %vm4831_vm1 = vcmask 15360  }
  0x21   :  { %v12847_v1 = vld [vmem:[#allocation5 + $0x1dc] sm:$0xf0]  ;;  %s14077_s4 = smov [#allocation14]   ;;  %s8542_s15 = sshll.u32 %s14527_s7, 4  ;;  %s8543_s15 = int_to_ptr.hbm [resolvable:$true] %s8542_s15 }
  0x22   :  { %v9037_v2 = vld [vmem:[#allocation5 + $0x3c0] sm:$0xf]  ;;  %v8782_v3 = vor.u32 %v12847_v1, %v8781_v0  ;;  %s8540_s6 = sshll.u32 %s14077_s4, 4  ;;  %s8541_s6 = int_to_ptr.vmem [resolvable:$true] %s8540_s6 }
  0x23   :  { %v12911_v4 = vld [vmem:[#allocation5 + $0x3dc] sm:$0xf0] }
  0x24   :  { %v9293_v5 = vld [vmem:[#allocation5 + $0x5c0] sm:$0xf]  ;;  %v9038_v7 = vor.u32 %v12911_v4, %v9037_v2  ;;  %4860 = vmatpush.bf16.msra.mxu0 %v8782_v3 }
  0x25   :  { %v12975_v6 = vld [vmem:[#allocation5 + $0x5dc] sm:$0xf0] }
  0x26   :  { %v9294_v8 = vor.u32 %v12975_v6, %v9293_v5  ;;  %v9549_v9 = vld [vmem:[#allocation5 + $0x7c0] sm:$0xf]  ;;  %4873 = vmatpush.bf16.msra.mxu1 %v9038_v7 }
  0x27   :  { %v13039_v10 = vld [vmem:[#allocation5 + $0x7dc] sm:$0xf0] }
  0x28   :  { %v8749_v11 = vld [vmem:[#allocation5 + $0x180] sm:$0xf]  ;;  %v9550_v12 = vor.u32 %v13039_v10, %v9549_v9  ;;  %4886 = vmatpush.bf16.msra.mxu2 %v9294_v8 }
  0x29   :  { %v12839_v13 = vld [vmem:[#allocation5 + $0x19c] sm:$0xf0] }
  0x2a   :  { %v9005_v14 = vld [vmem:[#allocation5 + $0x380] sm:$0xf]  ;;  %v8750_v16 = vor.u32 %v12839_v13, %v8749_v11  ;;  %4899 = vmatpush.bf16.msra.mxu3 %v9550_v12 }
  0x2b   :  { %v12903_v15 = vld [vmem:[#allocation5 + $0x39c] sm:$0xf0] }
  0x2c   :  { %v9006_v17 = vor.u32 %v12903_v15, %v9005_v14  ;;  %v9261_v18 = vld [vmem:[#allocation5 + $0x580] sm:$0xf]  ;;  %4861 = vmatpush.bf16.msra.mxu0 %v8750_v16 }
  0x2d   :  { %v12967_v19 = vld [vmem:[#allocation5 + $0x59c] sm:$0xf0] }
  0x2e   :  { %v9517_v20 = vld [vmem:[#allocation5 + $0x780] sm:$0xf]  ;;  %v9262_v21 = vor.u32 %v12967_v19, %v9261_v18  ;;  %4874 = vmatpush.bf16.msra.mxu1 %v9006_v17 }
  0x2f   :  { %v13031_v22 = vld [vmem:[#allocation5 + $0x79c] sm:$0xf0] }
  0x30   :  { %v8717_v23 = vld [vmem:[#allocation5 + $0x140] sm:$0xf]  ;;  %v9518_v25 = vor.u32 %v13031_v22, %v9517_v20  ;;  %4887 = vmatpush.bf16.msra.mxu2 %v9262_v21 }
  0x31   :  { %v12831_v24 = vld [vmem:[#allocation5 + $0x15c] sm:$0xf0] }
  0x32   :  { %v8973_v26 = vld [vmem:[#allocation5 + $0x340] sm:$0xf]  ;;  %v8718_v29 = vor.u32 %v12831_v24, %v8717_v23  ;;  %4900 = vmatpush.bf16.msra.mxu3 %v9518_v25 }
  0x33   :  { %v12895_v27 = vld [vmem:[#allocation5 + $0x35c] sm:$0xf0] }
  0x34   :  { %v9229_v28 = vld [vmem:[#allocation5 + $0x540] sm:$0xf]  ;;  %v8974_v33 = vor.u32 %v12895_v27, %v8973_v26  ;;  %4862 = vmatpush.bf16.msra.mxu0 %v8718_v29 }
  0x35   :  { %v12959_v30 = vld [vmem:[#allocation5 + $0x55c] sm:$0xf0] }
  0x36   :  { %v9485_v31 = vld [vmem:[#allocation5 + $0x740] sm:$0xf]  ;;  %v9230_v34 = vor.u32 %v12959_v30, %v9229_v28  ;;  %4875 = vmatpush.bf16.msra.mxu1 %v8974_v33 }
  0x37   :  { %v13023_v32 = vld [vmem:[#allocation5 + $0x75c] sm:$0xf0] }
  0x38   :  { %v8685_v35 = vld [vmem:[#allocation5 + $0x100] sm:$0xf]  ;;  %v9486_v38 = vor.u32 %v13023_v32, %v9485_v31  ;;  %4888 = vmatpush.bf16.msra.mxu2 %v9230_v34 }
  0x39   :  { %v12823_v36 = vld [vmem:[#allocation5 + $0x11c] sm:$0xf0] }
  0x3a   :  { %v8941_v37 = vld [vmem:[#allocation5 + $0x300] sm:$0xf]  ;;  %v8686_v44 = vor.u32 %v12823_v36, %v8685_v35  ;;  %4901 = vmatpush.bf16.msra.mxu3 %v9486_v38 }
  0x3b   :  { %v12887_v39 = vld [vmem:[#allocation5 + $0x31c] sm:$0xf0] }
  0x3c   :  { %v9197_v40 = vld [vmem:[#allocation5 + $0x500] sm:$0xf]  ;;  %v8942_v45 = vor.u32 %v12887_v39, %v8941_v37  ;;  %4863 = vmatpush.bf16.msra.mxu0 %v8686_v44 }
  0x3d   :  { %v12951_v41 = vld [vmem:[#allocation5 + $0x51c] sm:$0xf0] }
  0x3e   :  { %v9453_v42 = vld [vmem:[#allocation5 + $0x700] sm:$0xf]  ;;  %v9198_v46 = vor.u32 %v12951_v41, %v9197_v40  ;;  %4876 = vmatpush.bf16.msra.mxu1 %v8942_v45 }
  0x3f   :  { %v13015_v43 = vld [vmem:[#allocation5 + $0x71c] sm:$0xf0] }
  0x40   :  { %v8653_v47 = vld [vmem:[#allocation5 + $0xc0] sm:$0xf]  ;;  %v9454_v50 = vor.u32 %v13015_v43, %v9453_v42  ;;  %4889 = vmatpush.bf16.msra.mxu2 %v9198_v46 }
  0x41   :  { %v12815_v48 = vld [vmem:[#allocation5 + $0xdc] sm:$0xf0] }
  0x42   :  { %v8909_v49 = vld [vmem:[#allocation5 + $0x2c0] sm:$0xf]  ;;  %v8654_v56 = vor.u32 %v12815_v48, %v8653_v47  ;;  %4902 = vmatpush.bf16.msra.mxu3 %v9454_v50 }
  0x43   :  { %v12879_v51 = vld [vmem:[#allocation5 + $0x2dc] sm:$0xf0] }
  0x44   :  { %v9165_v52 = vld [vmem:[#allocation5 + $0x4c0] sm:$0xf]  ;;  %v8910_v57 = vor.u32 %v12879_v51, %v8909_v49  ;;  %4864 = vmatpush.bf16.msra.mxu0 %v8654_v56 }
  0x45   :  { %v12943_v53 = vld [vmem:[#allocation5 + $0x4dc] sm:$0xf0] }
  0x46   :  { %v9421_v54 = vld [vmem:[#allocation5 + $0x6c0] sm:$0xf]  ;;  %v9166_v58 = vor.u32 %v12943_v53, %v9165_v52  ;;  %4877 = vmatpush.bf16.msra.mxu1 %v8910_v57 }
  0x47   :  { %v13007_v55 = vld [vmem:[#allocation5 + $0x6dc] sm:$0xf0] }
  0x48   :  { %v8621_v59 = vld [vmem:[#allocation5 + $0x80] sm:$0xf]  ;;  %v9422_v62 = vor.u32 %v13007_v55, %v9421_v54  ;;  %4890 = vmatpush.bf16.msra.mxu2 %v9166_v58 }
  0x49   :  { %v12807_v60 = vld [vmem:[#allocation5 + $0x9c] sm:$0xf0] }
  0x4a   :  { %v8877_v61 = vld [vmem:[#allocation5 + $0x280] sm:$0xf]  ;;  %v8622_v4 = vor.u32 %v12807_v60, %v8621_v59  ;;  %4903 = vmatpush.bf16.msra.mxu3 %v9422_v62  ;;  %v129_v59 = vld [vmem:[#allocation2] sm:$0xff] }
  0x4b   :  { %v12871_v63 = vld [vmem:[#allocation5 + $0x29c] sm:$0xf0]  ;;  %137 = vst [vmem:[#allocation1] ss:$4 sm:$0xff] %v129_v59 }
  0x4c   :  { %v9133_v0 = vld [vmem:[#allocation5 + $0x480] sm:$0xf]  ;;  %v8878_v5 = vor.u32 %v12871_v63, %v8877_v61  ;;  %4865 = vmatpush.bf16.msra.mxu0 %v8622_v4 }
  0x4d   :  { %v12935_v1 = vld [vmem:[#allocation5 + $0x49c] sm:$0xf0] }
  0x4e   :  { %v9389_v2 = vld [vmem:[#allocation5 + $0x680] sm:$0xf]  ;;  %v9134_v6 = vor.u32 %v12935_v1, %v9133_v0  ;;  %4878 = vmatpush.bf16.msra.mxu1 %v8878_v5 }
  0x4f   :  { %v12999_v3 = vld [vmem:[#allocation5 + $0x69c] sm:$0xf0] }
  0x50   :  { %v8589_v7 = vld [vmem:[#allocation5 + $0x40] sm:$0xf]  ;;  %v9390_v10 = vor.u32 %v12999_v3, %v9389_v2  ;;  %4891 = vmatpush.bf16.msra.mxu2 %v9134_v6 }
  0x51   :  { %v12799_v8 = vld [vmem:[#allocation5 + $0x5c] sm:$0xf0] }
  0x52   :  { %v8845_v9 = vld [vmem:[#allocation5 + $0x240] sm:$0xf]  ;;  %v8590_v16 = vor.u32 %v12799_v8, %v8589_v7  ;;  %4904 = vmatpush.bf16.msra.mxu3 %v9390_v10 }
  0x53   :  { %v12863_v11 = vld [vmem:[#allocation5 + $0x25c] sm:$0xf0] }
  0x54   :  { %v9101_v12 = vld [vmem:[#allocation5 + $0x440] sm:$0xf]  ;;  %v8846_v19 = vor.u32 %v12863_v11, %v8845_v9  ;;  %4866 = vmatpush.bf16.msra.mxu0 %v8590_v16 }
  0x55   :  { %v12927_v13 = vld [vmem:[#allocation5 + $0x45c] sm:$0xf0] }
  0x56   :  { %v9357_v14 = vld [vmem:[#allocation5 + $0x640] sm:$0xf]  ;;  %v9102_v20 = vor.u32 %v12927_v13, %v9101_v12  ;;  %4879 = vmatpush.bf16.msra.mxu1 %v8846_v19 }
  0x57   :  { %v12991_v15 = vld [vmem:[#allocation5 + $0x65c] sm:$0xf0] }
  0x58   :  { %v8557_v17 = vld [vmem:[#allocation5] sm:$0xf]  ;;  %v9358_v24 = vor.u32 %v12991_v15, %v9357_v14  ;;  %4892 = vmatpush.bf16.msra.mxu2 %v9102_v20  ;;  %v131_v20 = vld [vmem:[#allocation2 + $0x10] sm:$0xff] }
  0x59   :  { %v12791_v18 = vld [vmem:[#allocation5 + $0x1c] sm:$0xf0] }
  0x5a   :  { %v8813_v21 = vld [vmem:[#allocation5 + $0x200] sm:$0xf]  ;;  %v8558_v31 = vor.u32 %v12791_v18, %v8557_v17  ;;  %4905 = vmatpush.bf16.msra.mxu3 %v9358_v24 }
  0x5b   :  { %v12855_v22 = vld [vmem:[#allocation5 + $0x21c] sm:$0xf0] }
  0x5c   :  { %v9069_v23 = vld [vmem:[#allocation5 + $0x400] sm:$0xf]  ;;  %v8814_v35 = vor.u32 %v12855_v22, %v8813_v21  ;;  %4867 = vmatpush.bf16.msra.mxu0 %v8558_v31 }
  0x5d   :  { %v12919_v25 = vld [vmem:[#allocation5 + $0x41c] sm:$0xf0] }
  0x5e   :  { %v9325_v26 = vld [vmem:[#allocation5 + $0x600] sm:$0xf]  ;;  %v9070_v36 = vor.u32 %v12919_v25, %v9069_v23  ;;  %4880 = vmatpush.bf16.msra.mxu1 %v8814_v35  ;;  %v142_v23 = vld.sshfl [vmem:[#allocation1 + $0x10] sm:$0xff pattern:$0x73625140] }
  0x5f   :  { %v12983_v27 = vld [vmem:[#allocation5 + $0x61c] sm:$0xf0] }
  0x60   :  { %v9805_v28 = vld [vmem:[#allocation5 + $0x9c0] sm:$0xf]  ;;  %v9326_v39 = vor.u32 %v12983_v27, %v9325_v26  ;;  %4893 = vmatpush.bf16.msra.mxu2 %v9070_v36  ;;  %v14139_v26 = vpack.c.bf16 %v142_v23, %v142_v23 }
  0x61   :  { %v13103_v29 = vld [vmem:[#allocation5 + $0x9dc] sm:$0xf0] }
  0x62   :  { %v10061_v30 = vld [vmem:[#allocation5 + $0xbc0] sm:$0xf]  ;;  %v9806_v40 = vor.u32 %v13103_v29, %v9805_v28  ;;  %4906 = vmatpush.bf16.msra.mxu3 %v9326_v39  ;;  %v143_v28 = vld.sshfl [vmem:[#allocation1 + $0x18] sm:$0xff pattern:$0x73625140] }
  0x63   :  { %v13167_v32 = vld [vmem:[#allocation5 + $0xbdc] sm:$0xf0]  ;;  %v141_v29 = vld.sshfl [vmem:[#allocation1 + $0x8] sm:$0xff pattern:$0x73625140]  ;;  %4894 = vmatmul.bf16.vlgmr.msra.gmra.mxu2 %v14139_v26 }
  0x64   :  { %v10317_v33 = vld [vmem:[#allocation5 + $0xdc0] sm:$0xf]  ;;  %v10062_v41 = vor.u32 %v13167_v32, %v10061_v30  ;;  %4912 = vmatpush.bf16.msrb.mxu0 %v9806_v40  ;;  %v14143_v32 = vpack.c.bf16 %v143_v28, %v143_v28 }
  0x65   :  { %v13231_v34 = vld [vmem:[#allocation5 + $0xddc] sm:$0xf0] }
  0x66   :  { %v10573_v37 = vld [vmem:[#allocation5 + $0xfc0] sm:$0xf]  ;;  %v10318_v42 = vor.u32 %v13231_v34, %v10317_v33  ;;  %4925 = vmatpush.bf16.msrb.mxu1 %v10062_v41  ;;  %v14145_v33 = vpack.c.bf16 %v141_v29, %v141_v29  ;;  %4907 = vmatmul.bf16.vlgmr.msra.gmra.mxu3 %v14143_v32 }
  0x67   :  { %v13295_v38 = vld [vmem:[#allocation5 + $0xfdc] sm:$0xf0] }
  0x68   :  { %v9773_v43 = vld [vmem:[#allocation5 + $0x980] sm:$0xf]  ;;  %v10574_v46 = vor.u32 %v13295_v38, %v10573_v37  ;;  %4938 = vmatpush.bf16.msrb.mxu2 %v10318_v42  ;;  %4881 = vmatmul.bf16.vlgmr.msra.gmra.mxu1 %v14145_v33 }
  0x69   :  { %v13095_v44 = vld [vmem:[#allocation5 + $0x99c] sm:$0xf0] }
  0x6a   :  { %v10029_v45 = vld [vmem:[#allocation5 + $0xb80] sm:$0xf]  ;;  %v9774_v52 = vor.u32 %v13095_v44, %v9773_v43  ;;  %4951 = vmatpush.bf16.msrb.mxu3 %v10574_v46 }
  0x6b   :  { %v13159_v47 = vld [vmem:[#allocation5 + $0xb9c] sm:$0xf0] }
  0x6c   :  { %v10285_v48 = vld [vmem:[#allocation5 + $0xd80] sm:$0xf]  ;;  %v10030_v55 = vor.u32 %v13159_v47, %v10029_v45  ;;  %4913 = vmatpush.bf16.msrb.mxu0 %v9774_v52 }
  0x6d   :  { %v13223_v49 = vld [vmem:[#allocation5 + $0xd9c] sm:$0xf0] }
  0x6e   :  { %v10541_v50 = vld [vmem:[#allocation5 + $0xf80] sm:$0xf]  ;;  %v10286_v56 = vor.u32 %v13223_v49, %v10285_v48  ;;  %4926 = vmatpush.bf16.msrb.mxu1 %v10030_v55 }
  0x6f   :  { %v13287_v51 = vld [vmem:[#allocation5 + $0xf9c] sm:$0xf0] }
  0x70   :  { %v9741_v53 = vld [vmem:[#allocation5 + $0x940] sm:$0xf]  ;;  %v10542_v60 = vor.u32 %v13287_v51, %v10541_v50  ;;  %4939 = vmatpush.bf16.msrb.mxu2 %v10286_v56 }
  0x71   :  { %v13087_v54 = vld [vmem:[#allocation5 + $0x95c] sm:$0xf0] }
  0x72   :  { %v9997_v57 = vld [vmem:[#allocation5 + $0xb40] sm:$0xf]  ;;  %v9742_v1 = vor.u32 %v13087_v54, %v9741_v53  ;;  %4952 = vmatpush.bf16.msrb.mxu3 %v10542_v60 }
  0x73   :  { %v13151_v58 = vld [vmem:[#allocation5 + $0xb5c] sm:$0xf0] }
  0x74   :  { %v10253_v61 = vld [vmem:[#allocation5 + $0xd40] sm:$0xf]  ;;  %v9998_v3 = vor.u32 %v13151_v58, %v9997_v57  ;;  %4914 = vmatpush.bf16.msrb.mxu0 %v9742_v1  ;;  %v130_v57 = vld [vmem:[#allocation2 + $0x8] sm:$0xff] }
  0x75   :  { %v13215_v62 = vld [vmem:[#allocation5 + $0xd5c] sm:$0xf0]  ;;  %139 = vst [vmem:[#allocation1 + $0x20] ss:$4 sm:$0xff] %v130_v57 }
  0x76   :  { %v10509_v63 = vld [vmem:[#allocation5 + $0xf40] sm:$0xf]  ;;  %v10254_v4 = vor.u32 %v13215_v62, %v10253_v61  ;;  %4927 = vmatpush.bf16.msrb.mxu1 %v9998_v3 }
  0x77   :  { %v13279_v0 = vld [vmem:[#allocation5 + $0xf5c] sm:$0xf0] }
  0x78   :  { %v9709_v2 = vld [vmem:[#allocation5 + $0x900] sm:$0xf]  ;;  %v10510_v8 = vor.u32 %v13279_v0, %v10509_v63  ;;  %4940 = vmatpush.bf16.msrb.mxu2 %v10254_v4 }
  0x79   :  { %v13079_v5 = vld [vmem:[#allocation5 + $0x91c] sm:$0xf0] }
  0x7a   :  { %v9965_v6 = vld [vmem:[#allocation5 + $0xb00] sm:$0xf]  ;;  %v9710_v15 = vor.u32 %v13079_v5, %v9709_v2  ;;  %4953 = vmatpush.bf16.msrb.mxu3 %v10510_v8 }
  0x7b   :  { %v13143_v7 = vld [vmem:[#allocation5 + $0xb1c] sm:$0xf0] }
  0x7c   :  { %v10221_v9 = vld [vmem:[#allocation5 + $0xd00] sm:$0xf]  ;;  %v9966_v21 = vor.u32 %v13143_v7, %v9965_v6  ;;  %4915 = vmatpush.bf16.msrb.mxu0 %v9710_v15 }
  0x7d   :  { %v13207_v10 = vld [vmem:[#allocation5 + $0xd1c] sm:$0xf0] }
  0x7e   :  { %v10477_v11 = vld [vmem:[#allocation5 + $0xf00] sm:$0xf]  ;;  %v10222_v22 = vor.u32 %v13207_v10, %v10221_v9  ;;  %4928 = vmatpush.bf16.msrb.mxu1 %v9966_v21 }
  0x7f   :  { %v13271_v12 = vld [vmem:[#allocation5 + $0xf1c] sm:$0xf0] }
  0x80   :  { %v9677_v13 = vld [vmem:[#allocation5 + $0x8c0] sm:$0xf]  ;;  %v10478_v25 = vor.u32 %v13271_v12, %v10477_v11  ;;  %4941 = vmatpush.bf16.msrb.mxu2 %v10222_v22 }
  0x81   :  { %v13071_v14 = vld [vmem:[#allocation5 + $0x8dc] sm:$0xf0] }
  0x82   :  { %v9933_v16 = vld [vmem:[#allocation5 + $0xac0] sm:$0xf]  ;;  %v9678_v34 = vor.u32 %v13071_v14, %v9677_v13  ;;  %4954 = vmatpush.bf16.msrb.mxu3 %v10478_v25  ;;  %v146_v25 = vld.sshfl [vmem:[#allocation1 + $0x30] sm:$0xff pattern:$0x73625140] }
  0x83   :  { %v13135_v17 = vld [vmem:[#allocation5 + $0xadc] sm:$0xf0] }
  0x84   :  { %v10189_v18 = vld [vmem:[#allocation5 + $0xcc0] sm:$0xf]  ;;  %v9934_v35 = vor.u32 %v13135_v17, %v9933_v16  ;;  %4916 = vmatpush.bf16.msrb.mxu0 %v9678_v34  ;;  %v145_v34 = vld.sshfl [vmem:[#allocation1 + $0x28] sm:$0xff pattern:$0x73625140] }
  0x85   :  { %v13199_v19 = vld [vmem:[#allocation5 + $0xcdc] sm:$0xf0] }
  0x86   :  { %v140_v24 = vld.sshfl [vmem:[#allocation1] sm:$0xff pattern:$0x73625140]  ;;  %v10190_v36 = vor.u32 %v13199_v19, %v10189_v18  ;;  %4929 = vmatpush.bf16.msrb.mxu1 %v9934_v35 }
  0x87   :  { %v14141_v27 = vpack.c.bf16 %v140_v24, %v140_v24  ;;  %v10445_v30 = vld [vmem:[#allocation5 + $0xec0] sm:$0xf]  ;;  %148 = vst [vmem:[#allocation1] ss:$4 sm:$0xff] %v131_v20  ;;  %v132_v20 = vld [vmem:[#allocation2 + $0x18] sm:$0x3] }
  0x88   :  { %v13263_v31 = vld [vmem:[#allocation5 + $0xedc] sm:$0xf0]  ;;  %4942 = vmatpush.bf16.msrb.mxu2 %v10190_v36 }
  0x89   :  { %v9645_v37 = vld [vmem:[#allocation5 + $0x880] sm:$0xf]  ;;  %v10446_v40 = vor.u32 %v13263_v31, %v10445_v30  ;;  %4868 = vmatmul.bf16.vlgmr.msra.gmra.mxu0 %v14141_v27  ;;  %v147_v31 = vld.sshfl [vmem:[#allocation1 + $0x38] sm:$0xff pattern:$0x73625140] }
  0x8a   :  { %v13063_v38 = vld [vmem:[#allocation5 + $0x89c] sm:$0xf0] }
  0x8b   :  { %v9901_v39 = vld [vmem:[#allocation5 + $0xa80] sm:$0xf]  ;;  %v9646_v46 = vor.u32 %v13063_v38, %v9645_v37  ;;  %4955 = vmatpush.bf16.msrb.mxu3 %v10446_v40  ;;  %v14151_v38 = vpack.c.bf16 %v146_v25, %v146_v25 }
  0x8c   :  { %v13127_v41 = vld [vmem:[#allocation5 + $0xa9c] sm:$0xf0] }
  0x8d   :  { %v10157_v42 = vld [vmem:[#allocation5 + $0xc80] sm:$0xf]  ;;  %v9902_v49 = vor.u32 %v13127_v41, %v9901_v39  ;;  %4917 = vmatpush.bf16.msrb.mxu0 %v9646_v46 }
  0x8e   :  { %v13191_v43 = vld [vmem:[#allocation5 + $0xc9c] sm:$0xf0] }
  0x8f   :  { %v10413_v44 = vld [vmem:[#allocation5 + $0xe80] sm:$0xf]  ;;  %v10158_v50 = vor.u32 %v13191_v43, %v10157_v42  ;;  %4930 = vmatpush.bf16.msrb.mxu1 %v9902_v49  ;;  %v14155_v42 = vpack.c.bf16 %v147_v31, %v147_v31 }
  0x90   :  { %v13255_v45 = vld [vmem:[#allocation5 + $0xe9c] sm:$0xf0] }
  0x91   :  { %v9613_v47 = vld [vmem:[#allocation5 + $0x840] sm:$0xf]  ;;  %v10414_v54 = vor.u32 %v13255_v45, %v10413_v44  ;;  %4943 = vmatpush.bf16.msrb.mxu2 %v10158_v50  ;;  %v14157_v44 = vpack.c.bf16 %v145_v34, %v145_v34 }
  0x92   :  { %v13055_v48 = vld [vmem:[#allocation5 + $0x85c] sm:$0xf0] }
  0x93   :  { %v9869_v51 = vld [vmem:[#allocation5 + $0xa40] sm:$0xf]  ;;  %v9614_v60 = vor.u32 %v13055_v48, %v9613_v47  ;;  %4956 = vmatpush.bf16.msrb.mxu3 %v10414_v54 }
  0x94   :  { %v13119_v52 = vld [vmem:[#allocation5 + $0xa5c] sm:$0xf0] }
  0x95   :  { %v10125_v53 = vld [vmem:[#allocation5 + $0xc40] sm:$0xf]  ;;  %v9870_v0 = vor.u32 %v13119_v52, %v9869_v51  ;;  %4918 = vmatpush.bf16.msrb.mxu0 %v9614_v60 }
  0x96   :  { %v13183_v55 = vld [vmem:[#allocation5 + $0xc5c] sm:$0xf0] }
  0x97   :  { %v10381_v56 = vld [vmem:[#allocation5 + $0xe40] sm:$0xf]  ;;  %v10126_v1 = vor.u32 %v13183_v55, %v10125_v53  ;;  %4931 = vmatpush.bf16.msrb.mxu1 %v9870_v0 }
  0x98   :  { %v13247_v58 = vld [vmem:[#allocation5 + $0xe5c] sm:$0xf0] }
  0x99   :  { %v9581_v59 = vld [vmem:[#allocation5 + $0x800] sm:$0xf]  ;;  %v10382_v5 = vor.u32 %v13247_v58, %v10381_v56  ;;  %4944 = vmatpush.bf16.msrb.mxu2 %v10126_v1 }
  0x9a   :  { %v13047_v61 = vld [vmem:[#allocation5 + $0x81c] sm:$0xf0] }
  0x9b   :  { %v9837_v62 = vld [vmem:[#allocation5 + $0xa00] sm:$0xf]  ;;  %v9582_v12 = vor.u32 %v13047_v61, %v9581_v59  ;;  %4957 = vmatpush.bf16.msrb.mxu3 %v10382_v5 }
  0x9c   :  { %v13111_v63 = vld [vmem:[#allocation5 + $0xa1c] sm:$0xf0] }
  0x9d   :  { %v10093_v2 = vld [vmem:[#allocation5 + $0xc00] sm:$0xf]  ;;  %v9838_v16 = vor.u32 %v13111_v63, %v9837_v62  ;;  %4919 = vmatpush.bf16.msrb.mxu0 %v9582_v12 }
  0x9e   :  { %v13175_v3 = vld [vmem:[#allocation5 + $0xc1c] sm:$0xf0] }
  0x9f   :  { %v10349_v4 = vld [vmem:[#allocation5 + $0xe00] sm:$0xf]  ;;  %v10094_v17 = vor.u32 %v13175_v3, %v10093_v2  ;;  %4932 = vmatpush.bf16.msrb.mxu1 %v9838_v16 }
  0xa0   :  { %v13239_v6 = vld [vmem:[#allocation5 + $0xe1c] sm:$0xf0] }
  0xa1   :  { %v10829_v7 = vld [vmem:[#allocation5 + $0x11c0] sm:$0xf]  ;;  %v10350_v21 = vor.u32 %v13239_v6, %v10349_v4  ;;  %4945 = vmatpush.bf16.msrb.mxu2 %v10094_v17 }
  0xa2   :  { %v13359_v8 = vld [vmem:[#allocation5 + $0x11dc] sm:$0xf0]  ;;  %4933 = vmatmul.bf16.vlgmr.msrb.gmra.mxu1 %v14157_v44 }
  0xa3   :  { %v11085_v9 = vld [vmem:[#allocation5 + $0x13c0] sm:$0xf]  ;;  %v10830_v22 = vor.u32 %v13359_v8, %v10829_v7  ;;  %4958 = vmatpush.bf16.msrb.mxu3 %v10350_v21 }
  0xa4   :  { %v13423_v10 = vld [vmem:[#allocation5 + $0x13dc] sm:$0xf0]  ;;  %4946 = vmatmul.bf16.vlgmr.msrb.gmra.mxu2 %v14151_v38 }
  0xa5   :  { %v11341_v11 = vld [vmem:[#allocation5 + $0x15c0] sm:$0xf]  ;;  %v11086_v29 = vor.u32 %v13423_v10, %v11085_v9  ;;  %4964 = vmatpush.bf16.msra.mxu0 %v10830_v22 }
  0xa6   :  { %v13487_v13 = vld [vmem:[#allocation5 + $0x15dc] sm:$0xf0]  ;;  %4959 = vmatmul.bf16.vlgmr.msrb.gmra.mxu3 %v14155_v42 }
  0xa7   :  { %v11597_v14 = vld [vmem:[#allocation5 + $0x17c0] sm:$0xf]  ;;  %v11342_v30 = vor.u32 %v13487_v13, %v11341_v11  ;;  %4977 = vmatpush.bf16.msra.mxu1 %v11086_v29 }
  0xa8   :  { %v13551_v15 = vld [vmem:[#allocation5 + $0x17dc] sm:$0xf0] }
  0xa9   :  { %v10797_v18 = vld [vmem:[#allocation5 + $0x1180] sm:$0xf]  ;;  %v11598_v35 = vor.u32 %v13551_v15, %v11597_v14  ;;  %4990 = vmatpush.bf16.msra.mxu2 %v11342_v30 }
  0xaa   :  { %v13351_v19 = vld [vmem:[#allocation5 + $0x119c] sm:$0xf0] }
  0xab   :  { %v11053_v23 = vld [vmem:[#allocation5 + $0x1380] sm:$0xf]  ;;  %v10798_v43 = vor.u32 %v13351_v19, %v10797_v18  ;;  %5003 = vmatpush.bf16.msra.mxu3 %v11598_v35 }
  0xac   :  { %v13415_v24 = vld [vmem:[#allocation5 + $0x139c] sm:$0xf0] }
  0xad   :  { %v144_v28 = vld.sshfl [vmem:[#allocation1 + $0x20] sm:$0xff pattern:$0x73625140]  ;;  %v11054_v45 = vor.u32 %v13415_v24, %v11053_v23  ;;  %4965 = vmatpush.bf16.msra.mxu0 %v10798_v43 }
  0xae   :  { %v11309_v36 = vld [vmem:[#allocation5 + $0x1580] sm:$0xf]  ;;  %149 = vst [vmem:[#allocation1 + $0x20] ss:$4 sm:$0xff] %v132_v20  ;;  %v14153_v41 = vpack.c.bf16 %v144_v28, %v144_v28 }
  0xaf   :  { %v13479_v37 = vld [vmem:[#allocation5 + $0x159c] sm:$0xf0]  ;;  %4978 = vmatpush.bf16.msra.mxu1 %v11054_v45 }
  0xb0   :  { %v11565_v39 = vld [vmem:[#allocation5 + $0x1780] sm:$0xf]  ;;  %v11310_v46 = vor.u32 %v13479_v37, %v11309_v36  ;;  %4920 = vmatmul.bf16.vlgmr.msrb.gmra.mxu0 %v14153_v41 }
  0xb1   :  { %v13543_v40 = vld [vmem:[#allocation5 + $0x179c] sm:$0xf0] }
  0xb2   :  { %v10765_v47 = vld [vmem:[#allocation5 + $0x1140] sm:$0xf]  ;;  %v11566_v50 = vor.u32 %v13543_v40, %v11565_v39  ;;  %4991 = vmatpush.bf16.msra.mxu2 %v11310_v46 }
  0xb3   :  { %v13343_v48 = vld [vmem:[#allocation5 + $0x115c] sm:$0xf0] }
  0xb4   :  { %v11021_v49 = vld [vmem:[#allocation5 + $0x1340] sm:$0xf]  ;;  %v10766_v56 = vor.u32 %v13343_v48, %v10765_v47  ;;  %5004 = vmatpush.bf16.msra.mxu3 %v11566_v50 }
  0xb5   :  { %v13407_v51 = vld [vmem:[#allocation5 + $0x135c] sm:$0xf0] }
  0xb6   :  { %v11277_v52 = vld [vmem:[#allocation5 + $0x1540] sm:$0xf]  ;;  %v11022_v57 = vor.u32 %v13407_v51, %v11021_v49  ;;  %4966 = vmatpush.bf16.msra.mxu0 %v10766_v56 }
  0xb7   :  { %v13471_v53 = vld [vmem:[#allocation5 + $0x155c] sm:$0xf0] }
  0xb8   :  { %v11533_v54 = vld [vmem:[#allocation5 + $0x1740] sm:$0xf]  ;;  %v11278_v58 = vor.u32 %v13471_v53, %v11277_v52  ;;  %4979 = vmatpush.bf16.msra.mxu1 %v11022_v57 }
  0xb9   :  { %v13535_v55 = vld [vmem:[#allocation5 + $0x175c] sm:$0xf0] }
  0xba   :  { %v10733_v59 = vld [vmem:[#allocation5 + $0x1100] sm:$0xf]  ;;  %v11534_v62 = vor.u32 %v13535_v55, %v11533_v54  ;;  %4992 = vmatpush.bf16.msra.mxu2 %v11278_v58 }
  0xbb   :  { %v13335_v60 = vld [vmem:[#allocation5 + $0x111c] sm:$0xf0] }
  0xbc   :  { %v10989_v61 = vld [vmem:[#allocation5 + $0x1300] sm:$0xf]  ;;  %v10734_v4 = vor.u32 %v13335_v60, %v10733_v59  ;;  %5005 = vmatpush.bf16.msra.mxu3 %v11534_v62  ;;  %v8783_v62 = vld [vmem:[#allocation5 + $0x1e0] sm:$0xf0] }
  0xbd   :  { %v13399_v63 = vld [vmem:[#allocation5 + $0x131c] sm:$0xf0] }
  0xbe   :  { %v11245_v0 = vld [vmem:[#allocation5 + $0x1500] sm:$0xf]  ;;  %v10990_v5 = vor.u32 %v13399_v63, %v10989_v61  ;;  %4967 = vmatpush.bf16.msra.mxu0 %v10734_v4  ;;  %v12843_v61 = vld [vmem:[#allocation5 + $0x1c4] sm:$0xf] }
  0xbf   :  { %v13463_v1 = vld [vmem:[#allocation5 + $0x151c] sm:$0xf0]  ;;  %v9295_v4 = vld [vmem:[#allocation5 + $0x5e0] sm:$0xf0] }
  0xc0   :  { %v11501_v2 = vld [vmem:[#allocation5 + $0x1700] sm:$0xf]  ;;  %v11246_v6 = vor.u32 %v13463_v1, %v11245_v0  ;;  %4980 = vmatpush.bf16.msra.mxu1 %v10990_v5  ;;  %v12907_v0 = vld [vmem:[#allocation5 + $0x3c4] sm:$0xf] }
  0xc1   :  { %v13527_v3 = vld [vmem:[#allocation5 + $0x171c] sm:$0xf0]  ;;  %v9039_v1 = vld [vmem:[#allocation5 + $0x3e0] sm:$0xf0] }
  0xc2   :  { %v10701_v7 = vld [vmem:[#allocation5 + $0x10c0] sm:$0xf]  ;;  %v11502_v10 = vor.u32 %v13527_v3, %v11501_v2  ;;  %4993 = vmatpush.bf16.msra.mxu2 %v11246_v6  ;;  %v12971_v2 = vld [vmem:[#allocation5 + $0x5c4] sm:$0xf] }
  0xc3   :  { %v13327_v8 = vld [vmem:[#allocation5 + $0x10dc] sm:$0xf0] }
  0xc4   :  { %v10957_v9 = vld [vmem:[#allocation5 + $0x12c0] sm:$0xf]  ;;  %v10702_v16 = vor.u32 %v13327_v8, %v10701_v7  ;;  %5006 = vmatpush.bf16.msra.mxu3 %v11502_v10  ;;  %v152_v8 = vld.sshfl [vmem:[#allocation1 + $0x10] sm:$0xff pattern:$0x73625140] }
  0xc5   :  { %v13391_v11 = vld [vmem:[#allocation5 + $0x12dc] sm:$0xf0] }
  0xc6   :  { %v11213_v12 = vld [vmem:[#allocation5 + $0x14c0] sm:$0xf]  ;;  %v10958_v17 = vor.u32 %v13391_v11, %v10957_v9  ;;  %4968 = vmatpush.bf16.msra.mxu0 %v10702_v16  ;;  %v13035_v9 = vld [vmem:[#allocation5 + $0x7c4] sm:$0xf]  ;;  %v8786_v11 = vor.u32 %v12843_v61, %v8783_v62  ;;  %v9298_v16 = vor.u32 %v12971_v2, %v9295_v4 }
  0xc7   :  { %v13455_v13 = vld [vmem:[#allocation5 + $0x14dc] sm:$0xf0]  ;;  %v9199_v61 = vld [vmem:[#allocation5 + $0x520] sm:$0xf0] }
  0xc8   :  { %v11469_v14 = vld [vmem:[#allocation5 + $0x16c0] sm:$0xf]  ;;  %v11214_v18 = vor.u32 %v13455_v13, %v11213_v12  ;;  %4981 = vmatpush.bf16.msra.mxu1 %v10958_v17  ;;  %v9551_v13 = vld [vmem:[#allocation5 + $0x7e0] sm:$0xf0] }
  0xc9   :  { %v13519_v15 = vld [vmem:[#allocation5 + $0x16dc] sm:$0xf0]  ;;  %v153_v17 = vld.sshfl [vmem:[#allocation1 + $0x18] sm:$0xff pattern:$0x73625140] }
  0xca   :  { %v10669_v19 = vld [vmem:[#allocation5 + $0x1080] sm:$0xf]  ;;  %v11470_v22 = vor.u32 %v13519_v15, %v11469_v14  ;;  %4994 = vmatpush.bf16.msra.mxu2 %v11214_v18  ;;  %v151_v14 = vld.sshfl [vmem:[#allocation1 + $0x8] sm:$0xff pattern:$0x73625140]  ;;  %v9042_v15 = vor.u32 %v12907_v0, %v9039_v1 }
  0xcb   :  { %v13319_v20 = vld [vmem:[#allocation5 + $0x109c] sm:$0xf0]  ;;  %v12835_v18 = vld [vmem:[#allocation5 + $0x184] sm:$0xf] }
  0xcc   :  { %v10925_v21 = vld [vmem:[#allocation5 + $0x1280] sm:$0xf]  ;;  %v10670_v30 = vor.u32 %v13319_v20, %v10669_v19  ;;  %5007 = vmatpush.bf16.msra.mxu3 %v11470_v22  ;;  %v14168_v20 = vpack.c.bf16 %v152_v8, %v152_v8  ;;  %v12899_v22 = vld [vmem:[#allocation5 + $0x384] sm:$0xf] }
  0xcd   :  { %v13383_v23 = vld [vmem:[#allocation5 + $0x129c] sm:$0xf0]  ;;  %v9455_v2 = vld [vmem:[#allocation5 + $0x720] sm:$0xf0] }
  0xce   :  { %v11181_v24 = vld [vmem:[#allocation5 + $0x1480] sm:$0xf]  ;;  %v10926_v34 = vor.u32 %v13383_v23, %v10925_v21  ;;  %4969 = vmatpush.bf16.msra.mxu0 %v10670_v30  ;;  %v8751_v21 = vld [vmem:[#allocation5 + $0x1a0] sm:$0xf0]  ;;  %v9554_v30 = vor.u32 %v13035_v9, %v9551_v13 }
  0xcf   :  { %v13447_v25 = vld [vmem:[#allocation5 + $0x149c] sm:$0xf0]  ;;  %v9007_v23 = vld [vmem:[#allocation5 + $0x3a0] sm:$0xf0] }
  0xd0   :  { %v11437_v28 = vld [vmem:[#allocation5 + $0x1680] sm:$0xf]  ;;  %v11182_v35 = vor.u32 %v13447_v25, %v11181_v24  ;;  %4982 = vmatpush.bf16.msra.mxu1 %v10926_v34  ;;  %v14170_v24 = vpack.c.bf16 %v151_v14, %v151_v14  ;;  %v12963_v25 = vld [vmem:[#allocation5 + $0x584] sm:$0xf]  ;;  %v8754_v34 = vor.u32 %v12835_v18, %v8751_v21 }
  0xd1   :  { %v13511_v29 = vld [vmem:[#allocation5 + $0x169c] sm:$0xf0]  ;;  %v8655_v4 = vld [vmem:[#allocation5 + $0xe0] sm:$0xf0] }
  0xd2   :  { %v10637_v31 = vld [vmem:[#allocation5 + $0x1040] sm:$0xf]  ;;  %v11438_v40 = vor.u32 %v13511_v29, %v11437_v28  ;;  %4995 = vmatpush.bf16.msra.mxu2 %v11182_v35  ;;  %v9263_v28 = vld [vmem:[#allocation5 + $0x5a0] sm:$0xf0]  ;;  %v9010_v35 = vor.u32 %v12899_v22, %v9007_v23 }
  0xd3   :  { %v13311_v36 = vld [vmem:[#allocation5 + $0x105c] sm:$0xf0]  ;;  %v12939_v8 = vld [vmem:[#allocation5 + $0x4c4] sm:$0xf] }
  0xd4   :  { %v10893_v37 = vld [vmem:[#allocation5 + $0x1240] sm:$0xf]  ;;  %v10638_v50 = vor.u32 %v13311_v36, %v10637_v31  ;;  %5008 = vmatpush.bf16.msra.mxu3 %v11438_v40  ;;  %v14173_v31 = vpack.c.bf16 %v153_v17, %v153_v17  ;;  %v13027_v36 = vld [vmem:[#allocation5 + $0x784] sm:$0xf]  ;;  %v9266_v40 = vor.u32 %v12963_v25, %v9263_v28 }
  0xd5   :  { %v13375_v39 = vld [vmem:[#allocation5 + $0x125c] sm:$0xf0]  ;;  %v9167_v9 = vld [vmem:[#allocation5 + $0x4e0] sm:$0xf0] }
  0xd6   :  { %v11149_v43 = vld [vmem:[#allocation5 + $0x1440] sm:$0xf]  ;;  %v10894_v54 = vor.u32 %v13375_v39, %v10893_v37  ;;  %4970 = vmatpush.bf16.msra.mxu0 %v10638_v50  ;;  %v9519_v37 = vld [vmem:[#allocation5 + $0x7a0] sm:$0xf0]  ;;  %v9170_v17 = vor.u32 %v12939_v8, %v9167_v9 }
  0xd7   :  { %v13439_v45 = vld [vmem:[#allocation5 + $0x145c] sm:$0xf0]  ;;  %v12827_v39 = vld [vmem:[#allocation5 + $0x144] sm:$0xf]  ;;  %v9522_v50 = vor.u32 %v13027_v36, %v9519_v37 }
  0xd8   :  { %v11405_v46 = vld [vmem:[#allocation5 + $0x1640] sm:$0xf]  ;;  %v11150_v55 = vor.u32 %v13439_v45, %v11149_v43  ;;  %4983 = vmatpush.bf16.msra.mxu1 %v10894_v54  ;;  %v8719_v43 = vld [vmem:[#allocation5 + $0x160] sm:$0xf0] }
  0xd9   :  { %v13503_v47 = vld [vmem:[#allocation5 + $0x165c] sm:$0xf0]  ;;  %v12891_v45 = vld [vmem:[#allocation5 + $0x344] sm:$0xf] }
  0xda   :  { %v10605_v48 = vld [vmem:[#allocation5 + $0x1000] sm:$0xf]  ;;  %v11406_v59 = vor.u32 %v13503_v47, %v11405_v46  ;;  %4996 = vmatpush.bf16.msra.mxu2 %v11150_v55  ;;  %v8975_v46 = vld [vmem:[#allocation5 + $0x360] sm:$0xf0] }
  0xdb   :  { %v14163_v49 = vld [vmem:[#allocation5 + $0x1800] sm:$0x11] }
  0xdc   :  { %v13303_v51 = vld [vmem:[#allocation5 + $0x101c] sm:$0xf0]  ;;  %v3279_v63 = vunpack.c.l.b16 %v14163_v49  ;;  %5009 = vmatpush.bf16.msra.mxu3 %v11406_v59  ;;  %v12955_v47 = vld [vmem:[#allocation5 + $0x544] sm:$0xf] }
  0xdd   :  { %v10861_v52 = vld [vmem:[#allocation5 + $0x1200] sm:$0xf]  ;;  %v10606_v3 = vor.u32 %v13303_v51, %v10605_v48  ;;  %v9231_v48 = vld [vmem:[#allocation5 + $0x560] sm:$0xf0]  ;;  %v8722_v51 = vor.u32 %v12827_v39, %v8719_v43 }
  0xde   :  { %v13367_v53 = vld [vmem:[#allocation5 + $0x121c] sm:$0xf0]  ;;  %v4055_v12 = vpack.c.b16 %v3279_v63, %v3279_v63  ;;  %v9487_v54 = vld [vmem:[#allocation5 + $0x760] sm:$0xf0] }
  0xdf   :  { %v11117_v56 = vld [vmem:[#allocation5 + $0x1400] sm:$0xf]  ;;  %v10862_v6 = vor.u32 %v13367_v53, %v10861_v52  ;;  %4971 = vmatpush.bf16.msra.mxu0 %v10606_v3  ;;  %v8978_v52 = vor.u32 %v12891_v45, %v8975_v46  ;;  %v13019_v53 = vld [vmem:[#allocation5 + $0x744] sm:$0xf] }
  0xe0   :  { %v13431_v57 = vld [vmem:[#allocation5 + $0x141c] sm:$0xf0]  ;;  %v4837_v29 = vsel %vm4835_vm0, %v4055_v12, 0  ;;  %v12819_v55 = vld [vmem:[#allocation5 + $0x104] sm:$0xf]  ;;  %v9490_v62 = vor.u32 %v13019_v53, %v9487_v54 }
  0xe1   :  { %v11373_v58 = vld [vmem:[#allocation5 + $0x1600] sm:$0xf]  ;;  %v11118_v7 = vor.u32 %v13431_v57, %v11117_v56  ;;  %4984 = vmatpush.bf16.msra.mxu1 %v10862_v6  ;;  %v9234_v56 = vor.u32 %v12955_v47, %v9231_v48  ;;  %v8687_v57 = vld [vmem:[#allocation5 + $0x120] sm:$0xf0] }
  0xe2   :  { %v13495_v60 = vld [vmem:[#allocation5 + $0x161c] sm:$0xf0]  ;;  %v8943_v59 = vld [vmem:[#allocation5 + $0x320] sm:$0xf0]  ;;  %v8690_v0 = vor.u32 %v12819_v55, %v8687_v57 }
  0xe3   :  { %v150_v5 = vld.sshfl [vmem:[#allocation1] sm:$0xff pattern:$0x73625140]  ;;  %v11374_v10 = vor.u32 %v13495_v60, %v11373_v58  ;;  %4997 = vmatpush.bf16.msra.mxu2 %v11118_v7  ;;  %5023 = vmatpush.bf16.msrb.mxu0 %v4837_v29 }
  0xe4   :  { %v14166_v19 = vpack.c.bf16 %v150_v5, %v150_v5  ;;  %4985 = vmatmul.bf16.vlgmr.msra.gmra.mxu1 %v14170_v24  ;;  %v12883_v58 = vld [vmem:[#allocation5 + $0x304] sm:$0xf] }
  0xe5   :  { %5010 = vmatpush.bf16.msra.mxu3 %v11374_v10  ;;  %5029 = vmatpush.bf16.msrb.mxu1 %v8786_v11  ;;  %v12947_v60 = vld [vmem:[#allocation5 + $0x504] sm:$0xf]  ;;  %v8946_v1 = vor.u32 %v12883_v58, %v8943_v59 }
  0xe6   :  { %4972 = vmatmul.bf16.vlgmr.msra.gmra.mxu0 %v14166_v19  ;;  %4998 = vmatmul.bf16.vlgmr.msra.gmra.mxu2 %v14168_v20  ;;  %v13011_v63 = vld [vmem:[#allocation5 + $0x704] sm:$0xf]  ;;  %v9202_v5 = vor.u32 %v12947_v60, %v9199_v61 }
  0xe7   :  { %5042 = vmatpush.bf16.msrb.mxu2 %v9042_v15  ;;  %5068 = vmatpush.bf16.msra.mxu0 %v9554_v30  ;;  %v12811_v3 = vld [vmem:[#allocation5 + $0xc4] sm:$0xf]  ;;  %v9458_v11 = vor.u32 %v13011_v63, %v9455_v2 }
  0xe8   :  { %5011 = vmatmul.bf16.vlgmr.msra.gmra.mxu3 %v14173_v31  ;;  %v12875_v6 = vld [vmem:[#allocation5 + $0x2c4] sm:$0xf]  ;;  %v8658_v12 = vor.u32 %v12811_v3, %v8655_v4 }
  0xe9   :  { %5055 = vmatpush.bf16.msrb.mxu3 %v9298_v16  ;;  %5030 = vmatpush.bf16.msrb.mxu1 %v8754_v34  ;;  %v8911_v7 = vld [vmem:[#allocation5 + $0x2e0] sm:$0xf0] }
  0xea   :  { %v154_v10 = vld.sshfl [vmem:[#allocation1 + $0x20] sm:$0xff pattern:$0x73625140]  ;;  %v8914_v13 = vor.u32 %v12875_v6, %v8911_v7 }
  0xeb   :  { %5043 = vmatpush.bf16.msrb.mxu2 %v9010_v35  ;;  %5069 = vmatpush.bf16.msra.mxu0 %v9522_v50  ;;  %v13003_v14 = vld [vmem:[#allocation5 + $0x6c4] sm:$0xf]  ;;  %v14179_v18 = vpack.c.bf16 %v154_v10, %v154_v10 }
  0xec   :  { %v9423_v15 = vld [vmem:[#allocation5 + $0x6e0] sm:$0xf0] }
  0xed   :  { %5056 = vmatpush.bf16.msrb.mxu3 %v9266_v40  ;;  %5031 = vmatpush.bf16.msrb.mxu1 %v8722_v51  ;;  %v12803_v16 = vld [vmem:[#allocation5 + $0x84] sm:$0xf]  ;;  %v9426_v29 = vor.u32 %v13003_v14, %v9423_v15 }
  0xee   :  { %v8623_v21 = vld [vmem:[#allocation5 + $0xa0] sm:$0xf0] }
  0xef   :  { %5044 = vmatpush.bf16.msrb.mxu2 %v8978_v52  ;;  %5070 = vmatpush.bf16.msra.mxu0 %v9490_v62  ;;  %v12867_v22 = vld [vmem:[#allocation5 + $0x284] sm:$0xf]  ;;  %v8626_v34 = vor.u32 %v12803_v16, %v8623_v21 }
  0xf0   :  { %v8879_v23 = vld [vmem:[#allocation5 + $0x2a0] sm:$0xf0] }
  0xf1   :  { %5057 = vmatpush.bf16.msrb.mxu3 %v9234_v56  ;;  %5032 = vmatpush.bf16.msrb.mxu1 %v8690_v0  ;;  %v12931_v25 = vld [vmem:[#allocation5 + $0x484] sm:$0xf]  ;;  %v8882_v35 = vor.u32 %v12867_v22, %v8879_v23 }
  0xf2   :  { %v9135_v28 = vld [vmem:[#allocation5 + $0x4a0] sm:$0xf0] }
  0xf3   :  { %5045 = vmatpush.bf16.msrb.mxu2 %v8946_v1  ;;  %5071 = vmatpush.bf16.msra.mxu0 %v9458_v11  ;;  %v12995_v30 = vld [vmem:[#allocation5 + $0x684] sm:$0xf]  ;;  %v9138_v40 = vor.u32 %v12931_v25, %v9135_v28 }
  0xf4   :  { %v9391_v36 = vld [vmem:[#allocation5 + $0x6a0] sm:$0xf0] }
  0xf5   :  { %5058 = vmatpush.bf16.msrb.mxu3 %v9202_v5  ;;  %5033 = vmatpush.bf16.msrb.mxu1 %v8658_v12  ;;  %v12795_v37 = vld [vmem:[#allocation5 + $0x44] sm:$0xf]  ;;  %v9394_v48 = vor.u32 %v12995_v30, %v9391_v36 }
  0xf6   :  { %v8591_v39 = vld [vmem:[#allocation5 + $0x60] sm:$0xf0]  ;;  %11627 = vmatmul.msk.bf16.vlgmr.msrb.gmra.mxu0 %vm4831_vm1, %v14179_v18 }
  0xf7   :  { %5046 = vmatpush.bf16.msrb.mxu2 %v8914_v13  ;;  %v12859_v43 = vld [vmem:[#allocation5 + $0x244] sm:$0xf]  ;;  %5072 = vmatpush.bf16.msra.mxu0 %v9426_v29  ;;  %v8594_v52 = vor.u32 %v12795_v37, %v8591_v39 }
  0xf8   :  { %v8847_v45 = vld [vmem:[#allocation5 + $0x260] sm:$0xf0] }
  0xf9   :  { %5059 = vmatpush.bf16.msrb.mxu3 %v9170_v17  ;;  %v12923_v46 = vld [vmem:[#allocation5 + $0x444] sm:$0xf]  ;;  %5034 = vmatpush.bf16.msrb.mxu1 %v8626_v34  ;;  %v8850_v53 = vor.u32 %v12859_v43, %v8847_v45 }
  0xfa   :  { %v9103_v47 = vld [vmem:[#allocation5 + $0x460] sm:$0xf0] }
  0xfb   :  { %v12987_v50 = vld [vmem:[#allocation5 + $0x644] sm:$0xf]  ;;  %5047 = vmatpush.bf16.msrb.mxu2 %v8882_v35  ;;  %v9106_v57 = vor.u32 %v12923_v46, %v9103_v47  ;;  %5073 = vmatpush.bf16.msra.mxu0 %v9394_v48 }
  0xfc   :  { %v9359_v51 = vld [vmem:[#allocation5 + $0x660] sm:$0xf0] }
  0xfd   :  { %v12787_v54 = vld [vmem:[#allocation5 + $0x4] sm:$0xf]  ;;  %5060 = vmatpush.bf16.msrb.mxu3 %v9138_v40  ;;  %v9362_v0 = vor.u32 %v12987_v50, %v9359_v51  ;;  %5035 = vmatpush.bf16.msrb.mxu1 %v8594_v52 }
  0xfe   :  { %v8559_v55 = vld [vmem:[#allocation5 + $0x20] sm:$0xf0] }
  0xff   :  { %v12851_v56 = vld [vmem:[#allocation5 + $0x204] sm:$0xf]  ;;  %5048 = vmatpush.bf16.msrb.mxu2 %v8850_v53  ;;  %v8562_v4 = vor.u32 %v12787_v54, %v8559_v55  ;;  %5074 = vmatpush.bf16.msra.mxu0 %v9362_v0 }
 0x100   :  { %v8815_v58 = vld [vmem:[#allocation5 + $0x220] sm:$0xf0] }
 0x101   :  { %v12915_v59 = vld [vmem:[#allocation5 + $0x404] sm:$0xf]  ;;  %v8818_v5 = vor.u32 %v12851_v56, %v8815_v58  ;;  %5061 = vmatpush.bf16.msrb.mxu3 %v9106_v57  ;;  %5036 = vmatpush.bf16.msrb.mxu1 %v8562_v4 }
 0x102   :  { %v9071_v60 = vld [vmem:[#allocation5 + $0x420] sm:$0xf0] }
 0x103   :  { %v13099_v61 = vld [vmem:[#allocation5 + $0x9c4] sm:$0xf]  ;;  %v9074_v8 = vor.u32 %v12915_v59, %v9071_v60  ;;  %5049 = vmatpush.bf16.msrb.mxu2 %v8818_v5 }
 0x104   :  { %v9807_v62 = vld [vmem:[#allocation5 + $0x9e0] sm:$0xf0]  ;;  %5037 = vmatmul.bf16.vlgmr.msrb.gmra.mxu1 %v14141_v27 }
 0x105   :  { %v13163_v63 = vld [vmem:[#allocation5 + $0xbc4] sm:$0xf]  ;;  %v9810_v9 = vor.u32 %v13099_v61, %v9807_v62  ;;  %5062 = vmatpush.bf16.msrb.mxu3 %v9074_v8 }
 0x106   :  { %v10063_v1 = vld [vmem:[#allocation5 + $0xbe0] sm:$0xf0]  ;;  %5050 = vmatmul.bf16.vlgmr.msrb.gmra.mxu2 %v14145_v33 }
 0x107   :  { %v13227_v2 = vld [vmem:[#allocation5 + $0xdc4] sm:$0xf]  ;;  %v10066_v12 = vor.u32 %v13163_v63, %v10063_v1  ;;  %5081 = vmatpush.bf16.msra.mxu1 %v9810_v9 }
 0x108   :  { %v10319_v3 = vld [vmem:[#allocation5 + $0xde0] sm:$0xf0]  ;;  %5063 = vmatmul.bf16.vlgmr.msrb.gmra.mxu3 %v14139_v26 }
 0x109   :  { %v12979_v6 = vld [vmem:[#allocation5 + $0x604] sm:$0xf]  ;;  %v10322_v13 = vor.u32 %v13227_v2, %v10319_v3  ;;  %5094 = vmatpush.bf16.msra.mxu2 %v10066_v12 }
 0x10a   :  { %v9327_v7 = vld [vmem:[#allocation5 + $0x620] sm:$0xf0] }
 0x10b   :  { %v13291_v10 = vld [vmem:[#allocation5 + $0xfc4] sm:$0xf]  ;;  %v9330_v17 = vor.u32 %v12979_v6, %v9327_v7  ;;  %5107 = vmatpush.bf16.msra.mxu3 %v10322_v13 }
 0x10c   :  { %v10575_v11 = vld [vmem:[#allocation5 + $0xfe0] sm:$0xf0] }
 0x10d   :  { %v13091_v14 = vld [vmem:[#allocation5 + $0x984] sm:$0xf]  ;;  %v10578_v25 = vor.u32 %v13291_v10, %v10575_v11  ;;  %5075 = vmatpush.bf16.msra.mxu0 %v9330_v17 }
 0x10e   :  { %v9775_v15 = vld [vmem:[#allocation5 + $0x9a0] sm:$0xf0] }
 0x10f   :  { %v13155_v16 = vld [vmem:[#allocation5 + $0xb84] sm:$0xf]  ;;  %v9778_v28 = vor.u32 %v13091_v14, %v9775_v15 }
 0x110   :  { %v10031_v21 = vld [vmem:[#allocation5 + $0xba0] sm:$0xf0]  ;;  %5076 = vmatmul.bf16.vlgmr.msra.gmra.mxu0 %v14143_v32 }
 0x111   :  { %v13219_v22 = vld [vmem:[#allocation5 + $0xd84] sm:$0xf]  ;;  %v10034_v34 = vor.u32 %v13155_v16, %v10031_v21  ;;  %5120 = vmatpush.bf16.msrb.mxu0 %v10578_v25  ;;  %5082 = vmatpush.bf16.msra.mxu1 %v9778_v28 }
 0x112   :  { %v10287_v23 = vld [vmem:[#allocation5 + $0xda0] sm:$0xf0] }
 0x113   :  { %v13283_v29 = vld [vmem:[#allocation5 + $0xf84] sm:$0xf]  ;;  %v10290_v35 = vor.u32 %v13219_v22, %v10287_v23  ;;  %5095 = vmatpush.bf16.msra.mxu2 %v10034_v34 }
 0x114   :  { %v10543_v30 = vld [vmem:[#allocation5 + $0xfa0] sm:$0xf0] }
 0x115   :  { %v13083_v36 = vld [vmem:[#allocation5 + $0x944] sm:$0xf]  ;;  %v10546_v46 = vor.u32 %v13283_v29, %v10543_v30  ;;  %5108 = vmatpush.bf16.msra.mxu3 %v10290_v35 }
 0x116   :  { %v9743_v37 = vld [vmem:[#allocation5 + $0x960] sm:$0xf0] }
 0x117   :  { %v13147_v39 = vld [vmem:[#allocation5 + $0xb44] sm:$0xf]  ;;  %v9746_v47 = vor.u32 %v13083_v36, %v9743_v37  ;;  %5121 = vmatpush.bf16.msrb.mxu0 %v10546_v46 }
 0x118   :  { %v9999_v40 = vld [vmem:[#allocation5 + $0xb60] sm:$0xf0] }
 0x119   :  { %v13211_v43 = vld [vmem:[#allocation5 + $0xd44] sm:$0xf]  ;;  %v10002_v51 = vor.u32 %v13147_v39, %v9999_v40  ;;  %5083 = vmatpush.bf16.msra.mxu1 %v9746_v47 }
 0x11a   :  { %v10255_v45 = vld [vmem:[#allocation5 + $0xd60] sm:$0xf0] }
 0x11b   :  { %v13275_v48 = vld [vmem:[#allocation5 + $0xf44] sm:$0xf]  ;;  %v10258_v52 = vor.u32 %v13211_v43, %v10255_v45  ;;  %5096 = vmatpush.bf16.msra.mxu2 %v10002_v51 }
 0x11c   :  { %v10511_v50 = vld [vmem:[#allocation5 + $0xf60] sm:$0xf0] }
 0x11d   :  { %v13075_v53 = vld [vmem:[#allocation5 + $0x904] sm:$0xf]  ;;  %v10514_v59 = vor.u32 %v13275_v48, %v10511_v50  ;;  %5109 = vmatpush.bf16.msra.mxu3 %v10258_v52 }
 0x11e   :  { %v9711_v54 = vld [vmem:[#allocation5 + $0x920] sm:$0xf0] }
 0x11f   :  { %v13139_v55 = vld [vmem:[#allocation5 + $0xb04] sm:$0xf]  ;;  %v9714_v60 = vor.u32 %v13075_v53, %v9711_v54  ;;  %5122 = vmatpush.bf16.msrb.mxu0 %v10514_v59 }
 0x120   :  { %v9967_v56 = vld [vmem:[#allocation5 + $0xb20] sm:$0xf0] }
 0x121   :  { %v13203_v57 = vld [vmem:[#allocation5 + $0xd04] sm:$0xf]  ;;  %v9970_v63 = vor.u32 %v13139_v55, %v9967_v56  ;;  %5084 = vmatpush.bf16.msra.mxu1 %v9714_v60 }
 0x122   :  { %v10223_v58 = vld [vmem:[#allocation5 + $0xd20] sm:$0xf0] }
 0x123   :  { %v13267_v61 = vld [vmem:[#allocation5 + $0xf04] sm:$0xf]  ;;  %v10226_v0 = vor.u32 %v13203_v57, %v10223_v58  ;;  %5097 = vmatpush.bf16.msra.mxu2 %v9970_v63 }
 0x124   :  { %v10479_v62 = vld [vmem:[#allocation5 + $0xf20] sm:$0xf0] }
 0x125   :  { %v13067_v1 = vld [vmem:[#allocation5 + $0x8c4] sm:$0xf]  ;;  %v10482_v7 = vor.u32 %v13267_v61, %v10479_v62  ;;  %5110 = vmatpush.bf16.msra.mxu3 %v10226_v0 }
 0x126   :  { %v9679_v2 = vld [vmem:[#allocation5 + $0x8e0] sm:$0xf0] }
 0x127   :  { %v13131_v3 = vld [vmem:[#allocation5 + $0xac4] sm:$0xf]  ;;  %v9682_v8 = vor.u32 %v13067_v1, %v9679_v2  ;;  %5123 = vmatpush.bf16.msrb.mxu0 %v10482_v7 }
 0x128   :  { %v9935_v4 = vld [vmem:[#allocation5 + $0xae0] sm:$0xf0] }
 0x129   :  { %v13195_v5 = vld [vmem:[#allocation5 + $0xcc4] sm:$0xf]  ;;  %v9938_v11 = vor.u32 %v13131_v3, %v9935_v4  ;;  %5085 = vmatpush.bf16.msra.mxu1 %v9682_v8 }
 0x12a   :  { %v10191_v6 = vld [vmem:[#allocation5 + $0xce0] sm:$0xf0] }
 0x12b   :  { %v13259_v9 = vld [vmem:[#allocation5 + $0xec4] sm:$0xf]  ;;  %v10194_v12 = vor.u32 %v13195_v5, %v10191_v6  ;;  %5098 = vmatpush.bf16.msra.mxu2 %v9938_v11 }
 0x12c   :  { %v10447_v10 = vld [vmem:[#allocation5 + $0xee0] sm:$0xf0] }
 0x12d   :  { %v13059_v13 = vld [vmem:[#allocation5 + $0x884] sm:$0xf]  ;;  %v10450_v22 = vor.u32 %v13259_v9, %v10447_v10  ;;  %5111 = vmatpush.bf16.msra.mxu3 %v10194_v12 }
 0x12e   :  { %v9647_v14 = vld [vmem:[#allocation5 + $0x8a0] sm:$0xf0] }
 0x12f   :  { %v13123_v15 = vld [vmem:[#allocation5 + $0xa84] sm:$0xf]  ;;  %v9650_v23 = vor.u32 %v13059_v13, %v9647_v14  ;;  %5124 = vmatpush.bf16.msrb.mxu0 %v10450_v22 }
 0x130   :  { %v9903_v16 = vld [vmem:[#allocation5 + $0xaa0] sm:$0xf0] }
 0x131   :  { %v13187_v17 = vld [vmem:[#allocation5 + $0xc84] sm:$0xf]  ;;  %v9906_v29 = vor.u32 %v13123_v15, %v9903_v16  ;;  %5086 = vmatpush.bf16.msra.mxu1 %v9650_v23 }
 0x132   :  { %v10159_v21 = vld [vmem:[#allocation5 + $0xca0] sm:$0xf0] }
 0x133   :  { %v13251_v25 = vld [vmem:[#allocation5 + $0xe84] sm:$0xf]  ;;  %v10162_v30 = vor.u32 %v13187_v17, %v10159_v21  ;;  %5099 = vmatpush.bf16.msra.mxu2 %v9906_v29 }
 0x134   :  { %v10415_v28 = vld [vmem:[#allocation5 + $0xea0] sm:$0xf0] }
 0x135   :  { %v13051_v34 = vld [vmem:[#allocation5 + $0x844] sm:$0xf]  ;;  %v10418_v43 = vor.u32 %v13251_v25, %v10415_v28  ;;  %5112 = vmatpush.bf16.msra.mxu3 %v10162_v30 }
 0x136   :  { %v9615_v35 = vld [vmem:[#allocation5 + $0x860] sm:$0xf0] }
 0x137   :  { %v13115_v36 = vld [vmem:[#allocation5 + $0xa44] sm:$0xf]  ;;  %v9618_v46 = vor.u32 %v13051_v34, %v9615_v35  ;;  %5125 = vmatpush.bf16.msrb.mxu0 %v10418_v43 }
 0x138   :  { %v9871_v37 = vld [vmem:[#allocation5 + $0xa60] sm:$0xf0] }
 0x139   :  { %v13179_v39 = vld [vmem:[#allocation5 + $0xc44] sm:$0xf]  ;;  %v9874_v51 = vor.u32 %v13115_v36, %v9871_v37  ;;  %5087 = vmatpush.bf16.msra.mxu1 %v9618_v46 }
 0x13a   :  { %v10127_v40 = vld [vmem:[#allocation5 + $0xc60] sm:$0xf0] }
 0x13b   :  { %v13243_v45 = vld [vmem:[#allocation5 + $0xe44] sm:$0xf]  ;;  %v10130_v52 = vor.u32 %v13179_v39, %v10127_v40  ;;  %5100 = vmatpush.bf16.msra.mxu2 %v9874_v51 }
 0x13c   :  { %v10383_v47 = vld [vmem:[#allocation5 + $0xe60] sm:$0xf0] }
 0x13d   :  { %v13043_v48 = vld [vmem:[#allocation5 + $0x804] sm:$0xf]  ;;  %v10386_v59 = vor.u32 %v13243_v45, %v10383_v47  ;;  %5113 = vmatpush.bf16.msra.mxu3 %v10130_v52 }
 0x13e   :  { %v9583_v50 = vld [vmem:[#allocation5 + $0x820] sm:$0xf0] }
 0x13f   :  { %v13107_v53 = vld [vmem:[#allocation5 + $0xa04] sm:$0xf]  ;;  %v9586_v63 = vor.u32 %v13043_v48, %v9583_v50  ;;  %5126 = vmatpush.bf16.msrb.mxu0 %v10386_v59 }
 0x140   :  { %v9839_v54 = vld [vmem:[#allocation5 + $0xa20] sm:$0xf0] }
 0x141   :  { %v13171_v55 = vld [vmem:[#allocation5 + $0xc04] sm:$0xf]  ;;  %v9842_v3 = vor.u32 %v13107_v53, %v9839_v54  ;;  %5088 = vmatpush.bf16.msra.mxu1 %v9586_v63 }
 0x142   :  { %v10095_v56 = vld [vmem:[#allocation5 + $0xc20] sm:$0xf0] }
 0x143   :  { %v13355_v57 = vld [vmem:[#allocation5 + $0x11c4] sm:$0xf]  ;;  %v10098_v4 = vor.u32 %v13171_v55, %v10095_v56  ;;  %5101 = vmatpush.bf16.msra.mxu2 %v9842_v3 }
 0x144   :  { %v10831_v58 = vld [vmem:[#allocation5 + $0x11e0] sm:$0xf0]  ;;  %5089 = vmatmul.bf16.vlgmr.msra.gmra.mxu1 %v14153_v41 }
 0x145   :  { %v13419_v60 = vld [vmem:[#allocation5 + $0x13c4] sm:$0xf]  ;;  %v10834_v7 = vor.u32 %v13355_v57, %v10831_v58  ;;  %5114 = vmatpush.bf16.msra.mxu3 %v10098_v4 }
 0x146   :  { %v11087_v61 = vld [vmem:[#allocation5 + $0x13e0] sm:$0xf0]  ;;  %5102 = vmatmul.bf16.vlgmr.msra.gmra.mxu2 %v14157_v44 }
 0x147   :  { %v13483_v62 = vld [vmem:[#allocation5 + $0x15c4] sm:$0xf]  ;;  %v11090_v8 = vor.u32 %v13419_v60, %v11087_v61  ;;  %5133 = vmatpush.bf16.msrb.mxu1 %v10834_v7 }
 0x148   :  { %v11343_v0 = vld [vmem:[#allocation5 + $0x15e0] sm:$0xf0]  ;;  %5115 = vmatmul.bf16.vlgmr.msra.gmra.mxu3 %v14151_v38 }
 0x149   :  { %v13235_v1 = vld [vmem:[#allocation5 + $0xe04] sm:$0xf]  ;;  %v11346_v10 = vor.u32 %v13483_v62, %v11343_v0  ;;  %5146 = vmatpush.bf16.msrb.mxu2 %v11090_v8 }
 0x14a   :  { %v10351_v2 = vld [vmem:[#allocation5 + $0xe20] sm:$0xf0] }
 0x14b   :  { %v13547_v5 = vld [vmem:[#allocation5 + $0x17c4] sm:$0xf]  ;;  %v10354_v11 = vor.u32 %v13235_v1, %v10351_v2  ;;  %5159 = vmatpush.bf16.msrb.mxu3 %v11346_v10 }
 0x14c   :  { %v11599_v6 = vld [vmem:[#allocation5 + $0x17e0] sm:$0xf0] }
 0x14d   :  { %v13347_v9 = vld [vmem:[#allocation5 + $0x1184] sm:$0xf]  ;;  %v11602_v15 = vor.u32 %v13547_v5, %v11599_v6  ;;  %5127 = vmatpush.bf16.msrb.mxu0 %v10354_v11 }
 0x14e   :  { %v10799_v12 = vld [vmem:[#allocation5 + $0x11a0] sm:$0xf0] }
 0x14f   :  { %v13411_v13 = vld [vmem:[#allocation5 + $0x1384] sm:$0xf]  ;;  %v10802_v23 = vor.u32 %v13347_v9, %v10799_v12 }
 0x150   :  { %v11055_v14 = vld [vmem:[#allocation5 + $0x13a0] sm:$0xf0]  ;;  %5128 = vmatmul.bf16.vlgmr.msrb.gmra.mxu0 %v14155_v42 }
 0x151   :  { %v13475_v16 = vld [vmem:[#allocation5 + $0x1584] sm:$0xf]  ;;  %v11058_v25 = vor.u32 %v13411_v13, %v11055_v14  ;;  %5172 = vmatpush.bf16.msra.mxu0 %v11602_v15  ;;  %5134 = vmatpush.bf16.msrb.mxu1 %v10802_v23 }
 0x152   :  { %v11311_v17 = vld [vmem:[#allocation5 + $0x15a0] sm:$0xf0] }
 0x153   :  { %v13539_v21 = vld [vmem:[#allocation5 + $0x1784] sm:$0xf]  ;;  %v11314_v29 = vor.u32 %v13475_v16, %v11311_v17  ;;  %5147 = vmatpush.bf16.msrb.mxu2 %v11058_v25 }
 0x154   :  { %v11567_v22 = vld [vmem:[#allocation5 + $0x17a0] sm:$0xf0] }
 0x155   :  { %v13339_v28 = vld [vmem:[#allocation5 + $0x1144] sm:$0xf]  ;;  %v11570_v36 = vor.u32 %v13539_v21, %v11567_v22  ;;  %5160 = vmatpush.bf16.msrb.mxu3 %v11314_v29 }
 0x156   :  { %v10767_v30 = vld [vmem:[#allocation5 + $0x1160] sm:$0xf0] }
 0x157   :  { %v13403_v34 = vld [vmem:[#allocation5 + $0x1344] sm:$0xf]  ;;  %v10770_v45 = vor.u32 %v13339_v28, %v10767_v30  ;;  %5173 = vmatpush.bf16.msra.mxu0 %v11570_v36 }
 0x158   :  { %v11023_v35 = vld [vmem:[#allocation5 + $0x1360] sm:$0xf0] }
 0x159   :  { %v13467_v37 = vld [vmem:[#allocation5 + $0x1544] sm:$0xf]  ;;  %v11026_v46 = vor.u32 %v13403_v34, %v11023_v35  ;;  %5135 = vmatpush.bf16.msrb.mxu1 %v10770_v45  ;;  %v4869_v45 = vpop.f32.mrf.mxu0 }
 0x15a   :  { %v11279_v39 = vld [vmem:[#allocation5 + $0x1560] sm:$0xf0] }
 0x15b   :  { %v13531_v40 = vld [vmem:[#allocation5 + $0x1744] sm:$0xf]  ;;  %v11282_v48 = vor.u32 %v13467_v37, %v11279_v39  ;;  %5148 = vmatpush.bf16.msrb.mxu2 %v11026_v46 }
 0x15c   :  { %v11535_v43 = vld [vmem:[#allocation5 + $0x1760] sm:$0xf0] }
 0x15d   :  { %v13331_v47 = vld [vmem:[#allocation5 + $0x1104] sm:$0xf]  ;;  %v11538_v53 = vor.u32 %v13531_v40, %v11535_v43  ;;  %5161 = vmatpush.bf16.msrb.mxu3 %v11282_v48 }
 0x15e   :  { %v10735_v50 = vld [vmem:[#allocation5 + $0x1120] sm:$0xf0] }
 0x15f   :  { %v13395_v51 = vld [vmem:[#allocation5 + $0x1304] sm:$0xf]  ;;  %v10738_v58 = vor.u32 %v13331_v47, %v10735_v50  ;;  %5174 = vmatpush.bf16.msra.mxu0 %v11538_v53  ;;  %v4882_v53 = vpop.f32.mrf.mxu1 }
 0x160   :  { %v10991_v52 = vld [vmem:[#allocation5 + $0x1320] sm:$0xf0] }
 0x161   :  { %v13459_v54 = vld [vmem:[#allocation5 + $0x1504] sm:$0xf]  ;;  %v10994_v59 = vor.u32 %v13395_v51, %v10991_v52  ;;  %5136 = vmatpush.bf16.msrb.mxu1 %v10738_v58  ;;  %v3280_v58 = vunpack.c.h.b16 %v14163_v49  ;;  %v9301_v49 = vld [vmem:[#allocation5 + $0x5c8] sm:$0xf] }
 0x162   :  { %v11247_v55 = vld [vmem:[#allocation5 + $0x1520] sm:$0xf0] }
 0x163   :  { %v13523_v56 = vld [vmem:[#allocation5 + $0x1704] sm:$0xf]  ;;  %v11250_v61 = vor.u32 %v13459_v54, %v11247_v55  ;;  %5149 = vmatpush.bf16.msrb.mxu2 %v10994_v59 }
 0x164   :  { %v11503_v57 = vld [vmem:[#allocation5 + $0x1720] sm:$0xf0] }
 0x165   :  { %v13323_v60 = vld [vmem:[#allocation5 + $0x10c4] sm:$0xf]  ;;  %v11506_v1 = vor.u32 %v13523_v56, %v11503_v57  ;;  %5162 = vmatpush.bf16.msrb.mxu3 %v11250_v61  ;;  %v12848_v61 = vld [vmem:[#allocation5 + $0x1e4] sm:$0xf0] }
 0x166   :  { %v10703_v62 = vld [vmem:[#allocation5 + $0x10e0] sm:$0xf0] }
 0x167   :  { %v13387_v63 = vld [vmem:[#allocation5 + $0x12c4] sm:$0xf]  ;;  %v10706_v6 = vor.u32 %v13323_v60, %v10703_v62  ;;  %5175 = vmatpush.bf16.msra.mxu0 %v11506_v1  ;;  %v8789_v60 = vld [vmem:[#allocation5 + $0x1c8] sm:$0xf] }
 0x168   :  { %v10959_v0 = vld [vmem:[#allocation5 + $0x12e0] sm:$0xf0]  ;;  %v9045_v62 = vld [vmem:[#allocation5 + $0x3c8] sm:$0xf] }
 0x169   :  { %v13451_v2 = vld [vmem:[#allocation5 + $0x14c4] sm:$0xf]  ;;  %v10962_v7 = vor.u32 %v13387_v63, %v10959_v0  ;;  %5137 = vmatpush.bf16.msrb.mxu1 %v10706_v6  ;;  %v12912_v0 = vld [vmem:[#allocation5 + $0x3e4] sm:$0xf0] }
 0x16a   :  { %v11215_v3 = vld [vmem:[#allocation5 + $0x14e0] sm:$0xf0] }
 0x16b   :  { %v13515_v4 = vld [vmem:[#allocation5 + $0x16c4] sm:$0xf]  ;;  %v11218_v10 = vor.u32 %v13451_v2, %v11215_v3  ;;  %5150 = vmatpush.bf16.msrb.mxu2 %v10962_v7  ;;  %v4895_v3 = vpop.f32.mrf.mxu2 }
 0x16c   :  { %v11471_v5 = vld [vmem:[#allocation5 + $0x16e0] sm:$0xf0] }
 0x16d   :  { %v13315_v8 = vld [vmem:[#allocation5 + $0x1084] sm:$0xf]  ;;  %v11474_v14 = vor.u32 %v13515_v4, %v11471_v5  ;;  %5163 = vmatpush.bf16.msrb.mxu3 %v11218_v10  ;;  %v12976_v10 = vld [vmem:[#allocation5 + $0x5e4] sm:$0xf0] }
 0x16e   :  { %v10671_v9 = vld [vmem:[#allocation5 + $0x10a0] sm:$0xf0] }
 0x16f   :  { %v13379_v11 = vld [vmem:[#allocation5 + $0x1284] sm:$0xf]  ;;  %v10674_v22 = vor.u32 %v13315_v8, %v10671_v9  ;;  %5176 = vmatpush.bf16.msra.mxu0 %v11474_v14  ;;  %v8790_v8 = vor.u32 %v12848_v61, %v8789_v60  ;;  %v4056_v9 = vpack.c.b16 %v3280_v58, %v3280_v58  ;;  %v9557_v14 = vld [vmem:[#allocation5 + $0x7c8] sm:$0xf] }
 0x170   :  { %v10927_v12 = vld [vmem:[#allocation5 + $0x12a0] sm:$0xf0]  ;;  %v9493_v58 = vld [vmem:[#allocation5 + $0x748] sm:$0xf] }
 0x171   :  { %v14191_v13 = vld [vmem:[#allocation7] sm:$0xff]  ;;  %v10930_v23 = vor.u32 %v13379_v11, %v10927_v12  ;;  %5138 = vmatpush.bf16.msrb.mxu1 %v10674_v22  ;;  %v9046_v11 = vor.u32 %v12912_v0, %v9045_v62  ;;  %v9013_v22 = vld [vmem:[#allocation5 + $0x388] sm:$0xf] }
 0x172   :  { %v13443_v15 = vld [vmem:[#allocation5 + $0x1484] sm:$0xf]  ;;  %v955_v28 = vperm.slane %v14191_v13, 0  ;;  %v8693_v60 = vld [vmem:[#allocation5 + $0x108] sm:$0xf] }
 0x173   :  { %v11183_v16 = vld [vmem:[#allocation5 + $0x14a0] sm:$0xf0]  ;;  %5151 = vmatpush.bf16.msrb.mxu2 %v10930_v23  ;;  %v12904_v23 = vld [vmem:[#allocation5 + $0x3a4] sm:$0xf0] }
 0x174   :  { %v13507_v17 = vld [vmem:[#allocation5 + $0x1684] sm:$0xf]  ;;  %v11186_v29 = vor.u32 %v13443_v15, %v11183_v16  ;;  %v4870_v52 = vadd.f32 %v4869_v45, %v955_v28  ;;  %v13040_v15 = vld [vmem:[#allocation5 + $0x7e4] sm:$0xf0]  ;;  %v4871_v28 = vpop.f32.mrf.mxu0 }
 0x175   :  { %v11439_v21 = vld [vmem:[#allocation5 + $0x16a0] sm:$0xf0]  ;;  %v8757_v16 = vld [vmem:[#allocation5 + $0x188] sm:$0xf] }
 0x176   :  { %v13307_v25 = vld [vmem:[#allocation5 + $0x1044] sm:$0xf]  ;;  %v11442_v36 = vor.u32 %v13507_v17, %v11439_v21  ;;  %5164 = vmatpush.bf16.msrb.mxu3 %v11186_v29  ;;  %v4883_v63 = vadd.f32 %v4882_v53, %v4870_v52  ;;  %v4908_v17 = vpop.f32.mrf.mxu3  ;;  %v12840_v21 = vld [vmem:[#allocation5 + $0x1a4] sm:$0xf0]  ;;  %v9302_v29 = vor.u32 %v12976_v10, %v9301_v49 }
 0x177   :  { %v10639_v30 = vld [vmem:[#allocation5 + $0x1060] sm:$0xf0]  ;;  %v13032_v45 = vld [vmem:[#allocation5 + $0x7a4] sm:$0xf0] }
 0x178   :  { %v13371_v34 = vld [vmem:[#allocation5 + $0x1244] sm:$0xf]  ;;  %v10642_v46 = vor.u32 %v13307_v25, %v10639_v30  ;;  %5177 = vmatpush.bf16.msra.mxu0 %v11442_v36  ;;  %v4896_v6 = vadd.f32 %v4895_v3, %v4883_v63  ;;  %v4884_v30 = vpop.f32.mrf.mxu1  ;;  %v9269_v36 = vld [vmem:[#allocation5 + $0x588] sm:$0xf] }
 0x179   :  { %v10895_v35 = vld [vmem:[#allocation5 + $0x1260] sm:$0xf0]  ;;  %v12824_v62 = vld [vmem:[#allocation5 + $0x124] sm:$0xf0] }
 0x17a   :  { %v13435_v37 = vld [vmem:[#allocation5 + $0x1444] sm:$0xf]  ;;  %v10898_v47 = vor.u32 %v13371_v34, %v10895_v35  ;;  %5139 = vmatpush.bf16.msrb.mxu1 %v10642_v46  ;;  %v4909_v25 = vadd.f32 %v4908_v17, %v4896_v6  ;;  %v4840_v34 = vsel %vm4835_vm0, %v4056_v9, 0  ;;  %v9558_v35 = vor.u32 %v13040_v15, %v9557_v14  ;;  %v8725_v46 = vld [vmem:[#allocation5 + $0x148] sm:$0xf] }
 0x17b   :  { %v11151_v39 = vld [vmem:[#allocation5 + $0x1460] sm:$0xf0]  ;;  %v8949_v63 = vld [vmem:[#allocation5 + $0x308] sm:$0xf] }
 0x17c   :  { %v13499_v40 = vld [vmem:[#allocation5 + $0x1644] sm:$0xf]  ;;  %v11154_v54 = vor.u32 %v13435_v37, %v11151_v39  ;;  %5152 = vmatpush.bf16.msrb.mxu2 %v10898_v47  ;;  %v12968_v37 = vld [vmem:[#allocation5 + $0x5a4] sm:$0xf0]  ;;  %v8758_v39 = vor.u32 %v12840_v21, %v8757_v16  ;;  %v4921_v49 = vpop.f32.mrf.mxu0 }
 0x17d   :  { %v11407_v43 = vld [vmem:[#allocation5 + $0x1660] sm:$0xf0]  ;;  %v12832_v47 = vld [vmem:[#allocation5 + $0x164] sm:$0xf0]  ;;  %v9270_v52 = vor.u32 %v12968_v37, %v9269_v36  ;;  %v4922_v14 = vadd.f32 %v4921_v49, %v4909_v25 }
 0x17e   :  { %v13299_v48 = vld [vmem:[#allocation5 + $0x1004] sm:$0xf]  ;;  %v11410_v59 = vor.u32 %v13499_v40, %v11407_v43  ;;  %5165 = vmatpush.bf16.msrb.mxu3 %v11154_v54  ;;  %v9014_v40 = vor.u32 %v12904_v23, %v9013_v22  ;;  %v9525_v43 = vld [vmem:[#allocation5 + $0x788] sm:$0xf]  ;;  %v4910_v61 = vpop.f32.mrf.mxu3 }
 0x17f   :  { %v10607_v50 = vld [vmem:[#allocation5 + $0x1020] sm:$0xf0]  ;;  %v9526_v53 = vor.u32 %v13032_v45, %v9525_v43  ;;  %v9237_v54 = vld [vmem:[#allocation5 + $0x548] sm:$0xf] }
 0x180   :  { %v13363_v51 = vld [vmem:[#allocation5 + $0x1204] sm:$0xf]  ;;  %v10610_v4 = vor.u32 %v13299_v48, %v10607_v50  ;;  %5178 = vmatpush.bf16.msra.mxu0 %v11410_v59  ;;  %v8981_v48 = vld [vmem:[#allocation5 + $0x348] sm:$0xf]  ;;  %v4934_v15 = vpop.f32.mrf.mxu1 }
 0x181   :  { %v10863_v55 = vld [vmem:[#allocation5 + $0x1220] sm:$0xf0]  ;;  %v12896_v50 = vld [vmem:[#allocation5 + $0x364] sm:$0xf0]  ;;  %v4935_v21 = vadd.f32 %v4934_v15, %v4922_v14 }
 0x182   :  { %v13427_v56 = vld [vmem:[#allocation5 + $0x1404] sm:$0xf]  ;;  %v10866_v5 = vor.u32 %v13363_v51, %v10863_v55  ;;  %5140 = vmatpush.bf16.msrb.mxu1 %v10610_v4  ;;  %v4897_v51 = vpop.f32.mrf.mxu2  ;;  %v12960_v55 = vld [vmem:[#allocation5 + $0x564] sm:$0xf0] }
 0x183   :  { %v11119_v57 = vld [vmem:[#allocation5 + $0x1420] sm:$0xf0]  ;;  %v13024_v59 = vld [vmem:[#allocation5 + $0x764] sm:$0xf0] }
 0x184   :  { %v13491_v1 = vld [vmem:[#allocation5 + $0x1604] sm:$0xf]  ;;  %v11122_v7 = vor.u32 %v13427_v56, %v11119_v57  ;;  %5153 = vmatpush.bf16.msrb.mxu2 %v10866_v5  ;;  %v8726_v56 = vor.u32 %v12832_v47, %v8725_v46  ;;  %v8982_v57 = vor.u32 %v12896_v50, %v8981_v48  ;;  %v12888_v0 = vld [vmem:[#allocation5 + $0x324] sm:$0xf0]  ;;  %v8694_v5 = vor.u32 %v12824_v62, %v8693_v60 }
 0x185   :  { %v11375_v2 = vld [vmem:[#allocation5 + $0x1620] sm:$0xf0]  ;;  %5141 = vmatmul.bf16.vlgmr.msrb.gmra.mxu1 %v14166_v19  ;;  %v9205_v3 = vld [vmem:[#allocation5 + $0x508] sm:$0xf]  ;;  %v8950_v6 = vor.u32 %v12888_v0, %v8949_v63 }
 0x186   :  { %v11378_v12 = vor.u32 %v13491_v1, %v11375_v2  ;;  %5166 = vmatpush.bf16.msrb.mxu3 %v11122_v7  ;;  %5192 = vmatpush.bf16.msra.mxu1 %v4840_v34  ;;  %v9238_v1 = vor.u32 %v12960_v55, %v9237_v54  ;;  %v9494_v2 = vor.u32 %v13024_v59, %v9493_v58  ;;  %v12952_v4 = vld [vmem:[#allocation5 + $0x524] sm:$0xf0]  ;;  %v4960_v45 = vpop.f32.mrf.mxu3 }
 0x187   :  { %5154 = vmatmul.bf16.vlgmr.msrb.gmra.mxu2 %v14170_v24  ;;  %v9461_v7 = vld [vmem:[#allocation5 + $0x708] sm:$0xf]  ;;  %v9206_v16 = vor.u32 %v12952_v4, %v9205_v3 }
 0x188   :  { %5198 = vmatpush.bf16.msra.mxu2 %v8790_v8  ;;  %5179 = vmatpush.bf16.msra.mxu0 %v11378_v12  ;;  %v13016_v8 = vld [vmem:[#allocation5 + $0x724] sm:$0xf0]  ;;  %v4936_v60 = vpop.f32.mrf.mxu1 }
 0x189   :  { %5167 = vmatmul.bf16.vlgmr.msrb.gmra.mxu3 %v14168_v20  ;;  %v8661_v9 = vld [vmem:[#allocation5 + $0xc8] sm:$0xf]  ;;  %v9462_v17 = vor.u32 %v13016_v8, %v9461_v7 }
 0x18a   :  { %5211 = vmatpush.bf16.msra.mxu3 %v9046_v11  ;;  %5237 = vmatpush.bf16.msrb.mxu1 %v9558_v35  ;;  %v12816_v10 = vld [vmem:[#allocation5 + $0xe4] sm:$0xf0] }
 0x18b   :  { %5180 = vmatmul.bf16.vlgmr.msra.gmra.mxu0 %v14173_v31  ;;  %v8917_v11 = vld [vmem:[#allocation5 + $0x2c8] sm:$0xf]  ;;  %v8662_v28 = vor.u32 %v12816_v10, %v8661_v9 }
 0x18c   :  { %5224 = vmatpush.bf16.msrb.mxu0 %v9302_v29  ;;  %5199 = vmatpush.bf16.msra.mxu2 %v8758_v39  ;;  %v12880_v12 = vld [vmem:[#allocation5 + $0x2e4] sm:$0xf0] }
 0x18d   :  { %v9173_v22 = vld [vmem:[#allocation5 + $0x4c8] sm:$0xf]  ;;  %v8918_v29 = vor.u32 %v12880_v12, %v8917_v11 }
 0x18e   :  { %5212 = vmatpush.bf16.msra.mxu3 %v9014_v40  ;;  %5238 = vmatpush.bf16.msrb.mxu1 %v9526_v53  ;;  %v12944_v23 = vld [vmem:[#allocation5 + $0x4e4] sm:$0xf0]  ;;  %v4947_v40 = vpop.f32.mrf.mxu2  ;;  %v4962_v15 = vpop.f32.mrf.mxu3 }
 0x18f   :  { %v9429_v30 = vld [vmem:[#allocation5 + $0x6c8] sm:$0xf]  ;;  %v9174_v25 = vor.u32 %v12944_v23, %v9173_v22  ;;  %v4948_v43 = vadd.f32 %v4947_v40, %v4935_v21 }
 0x190   :  { %5225 = vmatpush.bf16.msrb.mxu0 %v9270_v52  ;;  %5200 = vmatpush.bf16.msra.mxu2 %v8726_v56  ;;  %v13008_v34 = vld [vmem:[#allocation5 + $0x6e4] sm:$0xf0]  ;;  %v4923_v56 = vpop.f32.mrf.mxu0 }
 0x191   :  { %v8629_v35 = vld [vmem:[#allocation5 + $0x88] sm:$0xf]  ;;  %v9430_v46 = vor.u32 %v13008_v34, %v9429_v30  ;;  %v14200_v52 = vadd.f32 %v4960_v45, %v4948_v43 }
 0x192   :  { %5213 = vmatpush.bf16.msra.mxu3 %v8982_v57  ;;  %5239 = vmatpush.bf16.msrb.mxu1 %v9494_v2  ;;  %v12808_v36 = vld [vmem:[#allocation5 + $0xa4] sm:$0xf0] }
 0x193   :  { %v8885_v37 = vld [vmem:[#allocation5 + $0x288] sm:$0xf]  ;;  %v8630_v50 = vor.u32 %v12808_v36, %v8629_v35 }
 0x194   :  { %5226 = vmatpush.bf16.msrb.mxu0 %v9238_v1  ;;  %5201 = vmatpush.bf16.msra.mxu2 %v8694_v5  ;;  %v12872_v39 = vld [vmem:[#allocation5 + $0x2a4] sm:$0xf0] }
 0x195   :  { %v9141_v47 = vld [vmem:[#allocation5 + $0x488] sm:$0xf]  ;;  %v8886_v51 = vor.u32 %v12872_v39, %v8885_v37  ;;  %11628 = vmatmul.msk.bf16.vlgmr.msra.gmra.mxu1 %vm4831_vm1, %v14179_v18 }
 0x196   :  { %5214 = vmatpush.bf16.msra.mxu3 %v8950_v6  ;;  %5240 = vmatpush.bf16.msrb.mxu1 %v9462_v17  ;;  %v12936_v48 = vld [vmem:[#allocation5 + $0x4a4] sm:$0xf0]  ;;  %v4949_v49 = vpop.f32.mrf.mxu2 }
 0x197   :  { %v9397_v53 = vld [vmem:[#allocation5 + $0x688] sm:$0xf]  ;;  %v9142_v61 = vor.u32 %v12936_v48, %v9141_v47 }
 0x198   :  { %5227 = vmatpush.bf16.msrb.mxu0 %v9206_v16  ;;  %5202 = vmatpush.bf16.msra.mxu2 %v8662_v28  ;;  %v13000_v54 = vld [vmem:[#allocation5 + $0x6a4] sm:$0xf0] }
 0x199   :  { %v8597_v55 = vld [vmem:[#allocation5 + $0x48] sm:$0xf]  ;;  %v9398_v62 = vor.u32 %v13000_v54, %v9397_v53 }
 0x19a   :  { %5215 = vmatpush.bf16.msra.mxu3 %v8918_v29  ;;  %v12800_v57 = vld [vmem:[#allocation5 + $0x64] sm:$0xf0]  ;;  %5241 = vmatpush.bf16.msrb.mxu1 %v9430_v46 }
 0x19b   :  { %v8853_v58 = vld [vmem:[#allocation5 + $0x248] sm:$0xf]  ;;  %v8598_v2 = vor.u32 %v12800_v57, %v8597_v55 }
 0x19c   :  { %v12864_v59 = vld [vmem:[#allocation5 + $0x264] sm:$0xf0]  ;;  %5228 = vmatpush.bf16.msrb.mxu0 %v9174_v25  ;;  %5203 = vmatpush.bf16.msra.mxu2 %v8630_v50 }
 0x19d   :  { %v9109_v63 = vld [vmem:[#allocation5 + $0x448] sm:$0xf]  ;;  %v8854_v3 = vor.u32 %v12864_v59, %v8853_v58 }
 0x19e   :  { %v12928_v0 = vld [vmem:[#allocation5 + $0x464] sm:$0xf0]  ;;  %5216 = vmatpush.bf16.msra.mxu3 %v8886_v51  ;;  %5242 = vmatpush.bf16.msrb.mxu1 %v9398_v62 }
 0x19f   :  { %v9365_v1 = vld [vmem:[#allocation5 + $0x648] sm:$0xf]  ;;  %v9110_v10 = vor.u32 %v12928_v0, %v9109_v63 }
 0x1a0   :  { %v12992_v4 = vld [vmem:[#allocation5 + $0x664] sm:$0xf0]  ;;  %5229 = vmatpush.bf16.msrb.mxu0 %v9142_v61  ;;  %5204 = vmatpush.bf16.msra.mxu2 %v8598_v2 }
 0x1a1   :  { %v8565_v5 = vld [vmem:[#allocation5 + $0x8] sm:$0xf]  ;;  %v9366_v16 = vor.u32 %v12992_v4, %v9365_v1 }
 0x1a2   :  { %v12792_v6 = vld [vmem:[#allocation5 + $0x24] sm:$0xf0]  ;;  %5217 = vmatpush.bf16.msra.mxu3 %v8854_v3 }
 0x1a3   :  { %v8821_v7 = vld [vmem:[#allocation5 + $0x208] sm:$0xf]  ;;  %v8566_v23 = vor.u32 %v12792_v6, %v8565_v5  ;;  %5243 = vmatpush.bf16.msrb.mxu1 %v9366_v16 }
 0x1a4   :  { %v12856_v8 = vld [vmem:[#allocation5 + $0x224] sm:$0xf0]  ;;  %5230 = vmatpush.bf16.msrb.mxu0 %v9110_v10 }
 0x1a5   :  { %v9813_v9 = vld [vmem:[#allocation5 + $0x9c8] sm:$0xf]  ;;  %v8822_v28 = vor.u32 %v12856_v8, %v8821_v7  ;;  %5205 = vmatpush.bf16.msra.mxu2 %v8566_v23 }
 0x1a6   :  { %v13104_v11 = vld [vmem:[#allocation5 + $0x9e4] sm:$0xf0] }
 0x1a7   :  { %v10069_v12 = vld [vmem:[#allocation5 + $0xbc8] sm:$0xf]  ;;  %v9814_v35 = vor.u32 %v13104_v11, %v9813_v9  ;;  %5218 = vmatpush.bf16.msra.mxu3 %v8822_v28  ;;  %v4986_v28 = vpop.f32.mrf.mxu1 }
 0x1a8   :  { %v13168_v14 = vld [vmem:[#allocation5 + $0xbe4] sm:$0xf0]  ;;  %5206 = vmatmul.bf16.vlgmr.msra.gmra.mxu2 %v14141_v27 }
 0x1a9   :  { %v9077_v17 = vld [vmem:[#allocation5 + $0x408] sm:$0xf]  ;;  %v10070_v36 = vor.u32 %v13168_v14, %v10069_v12  ;;  %5250 = vmatpush.bf16.msrb.mxu2 %v9814_v35  ;;  %v4973_v14 = vpop.f32.mrf.mxu0 }
 0x1aa   :  { %v12920_v21 = vld [vmem:[#allocation5 + $0x424] sm:$0xf0]  ;;  %5219 = vmatmul.bf16.vlgmr.msra.gmra.mxu3 %v14145_v33  ;;  %v4974_v23 = vadd.f32 %v4973_v14, %v14200_v52 }
 0x1ab   :  { %v9333_v22 = vld [vmem:[#allocation5 + $0x608] sm:$0xf]  ;;  %v9078_v25 = vor.u32 %v12920_v21, %v9077_v17  ;;  %5263 = vmatpush.bf16.msrb.mxu3 %v10070_v36 }
 0x1ac   :  { %v12984_v29 = vld [vmem:[#allocation5 + $0x624] sm:$0xf0]  ;;  %v4987_v36 = vadd.f32 %v4986_v28, %v4974_v23 }
 0x1ad   :  { %v10325_v30 = vld [vmem:[#allocation5 + $0xdc8] sm:$0xf]  ;;  %v9334_v47 = vor.u32 %v12984_v29, %v9333_v22  ;;  %5231 = vmatpush.bf16.msrb.mxu0 %v9078_v25 }
 0x1ae   :  { %v13232_v34 = vld [vmem:[#allocation5 + $0xde4] sm:$0xf0] }
 0x1af   :  { %v10581_v37 = vld [vmem:[#allocation5 + $0xfc8] sm:$0xf]  ;;  %v10326_v48 = vor.u32 %v13232_v34, %v10325_v30  ;;  %5244 = vmatpush.bf16.msrb.mxu1 %v9334_v47 }
 0x1b0   :  { %v13296_v39 = vld [vmem:[#allocation5 + $0xfe4] sm:$0xf0]  ;;  %5232 = vmatmul.bf16.vlgmr.msrb.gmra.mxu0 %v14139_v26 }
 0x1b1   :  { %v9781_v40 = vld [vmem:[#allocation5 + $0x988] sm:$0xf]  ;;  %v10582_v50 = vor.u32 %v13296_v39, %v10581_v37  ;;  %5276 = vmatpush.bf16.msra.mxu0 %v10326_v48 }
 0x1b2   :  { %v13096_v43 = vld [vmem:[#allocation5 + $0x9a4] sm:$0xf0]  ;;  %5245 = vmatmul.bf16.vlgmr.msrb.gmra.mxu1 %v14143_v32 }
 0x1b3   :  { %v10037_v45 = vld [vmem:[#allocation5 + $0xb88] sm:$0xf]  ;;  %v9782_v54 = vor.u32 %v13096_v43, %v9781_v40  ;;  %5289 = vmatpush.bf16.msra.mxu1 %v10582_v50 }
 0x1b4   :  { %v13160_v46 = vld [vmem:[#allocation5 + $0xba4] sm:$0xf0] }
 0x1b5   :  { %v10293_v51 = vld [vmem:[#allocation5 + $0xd88] sm:$0xf]  ;;  %v10038_v55 = vor.u32 %v13160_v46, %v10037_v45  ;;  %5251 = vmatpush.bf16.msrb.mxu2 %v9782_v54 }
 0x1b6   :  { %v13224_v53 = vld [vmem:[#allocation5 + $0xda4] sm:$0xf0] }
 0x1b7   :  { %v10549_v56 = vld [vmem:[#allocation5 + $0xf88] sm:$0xf]  ;;  %v10294_v62 = vor.u32 %v13224_v53, %v10293_v51  ;;  %5264 = vmatpush.bf16.msrb.mxu3 %v10038_v55  ;;  %v4999_v51 = vpop.f32.mrf.mxu2 }
 0x1b8   :  { %v13288_v57 = vld [vmem:[#allocation5 + $0xfa4] sm:$0xf0]  ;;  %v5000_v54 = vadd.f32 %v4999_v51, %v4987_v36 }
 0x1b9   :  { %v9749_v58 = vld [vmem:[#allocation5 + $0x948] sm:$0xf]  ;;  %v10550_v63 = vor.u32 %v13288_v57, %v10549_v56  ;;  %5277 = vmatpush.bf16.msra.mxu0 %v10294_v62 }
 0x1ba   :  { %v13088_v59 = vld [vmem:[#allocation5 + $0x964] sm:$0xf0] }
 0x1bb   :  { %v10005_v60 = vld [vmem:[#allocation5 + $0xb48] sm:$0xf]  ;;  %v9750_v2 = vor.u32 %v13088_v59, %v9749_v58  ;;  %5290 = vmatpush.bf16.msra.mxu1 %v10550_v63  ;;  %v4975_v58 = vpop.f32.mrf.mxu0  ;;  %v5012_v59 = vpop.f32.mrf.mxu3 }
 0x1bc   :  { %v13152_v61 = vld [vmem:[#allocation5 + $0xb64] sm:$0xf0] }
 0x1bd   :  { %v10261_v0 = vld [vmem:[#allocation5 + $0xd48] sm:$0xf]  ;;  %v10006_v3 = vor.u32 %v13152_v61, %v10005_v60  ;;  %5252 = vmatpush.bf16.msrb.mxu2 %v9750_v2 }
 0x1be   :  { %v13216_v1 = vld [vmem:[#allocation5 + $0xd64] sm:$0xf0] }
 0x1bf   :  { %v10517_v4 = vld [vmem:[#allocation5 + $0xf48] sm:$0xf]  ;;  %v10262_v49 = vor.u32 %v13216_v1, %v10261_v0  ;;  %5265 = vmatpush.bf16.msrb.mxu3 %v10006_v3  ;;  %v5013_v1 = vadd.f32 %v5012_v59, %v5000_v54 }
 0x1c0   :  { %v13280_v5 = vld [vmem:[#allocation5 + $0xf64] sm:$0xf0] }
 0x1c1   :  { %v9717_v6 = vld [vmem:[#allocation5 + $0x908] sm:$0xf]  ;;  %v10518_v10 = vor.u32 %v13280_v5, %v10517_v4  ;;  %5278 = vmatpush.bf16.msra.mxu0 %v10262_v49  ;;  %v4988_v5 = vpop.f32.mrf.mxu1 }
 0x1c2   :  { %v13080_v7 = vld [vmem:[#allocation5 + $0x924] sm:$0xf0] }
 0x1c3   :  { %v9973_v8 = vld [vmem:[#allocation5 + $0xb08] sm:$0xf]  ;;  %v9718_v15 = vor.u32 %v13080_v7, %v9717_v6  ;;  %5291 = vmatpush.bf16.msra.mxu1 %v10518_v10 }
 0x1c4   :  { %v13144_v9 = vld [vmem:[#allocation5 + $0xb24] sm:$0xf0] }
 0x1c5   :  { %v10229_v11 = vld [vmem:[#allocation5 + $0xd08] sm:$0xf]  ;;  %v9974_v16 = vor.u32 %v13144_v9, %v9973_v8  ;;  %5253 = vmatpush.bf16.msrb.mxu2 %v9718_v15 }
 0x1c6   :  { %v13208_v12 = vld [vmem:[#allocation5 + $0xd24] sm:$0xf0] }
 0x1c7   :  { %v10485_v17 = vld [vmem:[#allocation5 + $0xf08] sm:$0xf]  ;;  %v10230_v35 = vor.u32 %v13208_v12, %v10229_v11  ;;  %5266 = vmatpush.bf16.msrb.mxu3 %v9974_v16 }
 0x1c8   :  { %v13272_v21 = vld [vmem:[#allocation5 + $0xf24] sm:$0xf0] }
 0x1c9   :  { %v9685_v22 = vld [vmem:[#allocation5 + $0x8c8] sm:$0xf]  ;;  %v10486_v37 = vor.u32 %v13272_v21, %v10485_v17  ;;  %5279 = vmatpush.bf16.msra.mxu0 %v10230_v35 }
 0x1ca   :  { %v13072_v29 = vld [vmem:[#allocation5 + $0x8e4] sm:$0xf0] }
 0x1cb   :  { %v9941_v30 = vld [vmem:[#allocation5 + $0xac8] sm:$0xf]  ;;  %v9686_v25 = vor.u32 %v13072_v29, %v9685_v22  ;;  %5292 = vmatpush.bf16.msra.mxu1 %v10486_v37 }
 0x1cc   :  { %v13136_v34 = vld [vmem:[#allocation5 + $0xae4] sm:$0xf0] }
 0x1cd   :  { %v10197_v39 = vld [vmem:[#allocation5 + $0xcc8] sm:$0xf]  ;;  %v9942_v43 = vor.u32 %v13136_v34, %v9941_v30  ;;  %5254 = vmatpush.bf16.msrb.mxu2 %v9686_v25  ;;  %v5001_v30 = vpop.f32.mrf.mxu2 }
 0x1ce   :  { %v13200_v40 = vld [vmem:[#allocation5 + $0xce4] sm:$0xf0] }
 0x1cf   :  { %v10453_v45 = vld [vmem:[#allocation5 + $0xec8] sm:$0xf]  ;;  %v10198_v53 = vor.u32 %v13200_v40, %v10197_v39  ;;  %5267 = vmatpush.bf16.msrb.mxu3 %v9942_v43  ;;  %v5025_v39 = vpop.f32.mrf.mxu0 }
 0x1d0   :  { %v13264_v46 = vld [vmem:[#allocation5 + $0xee4] sm:$0xf0] }
 0x1d1   :  { %v9653_v47 = vld [vmem:[#allocation5 + $0x888] sm:$0xf]  ;;  %v10454_v55 = vor.u32 %v13264_v46, %v10453_v45  ;;  %5280 = vmatpush.bf16.msra.mxu0 %v10198_v53 }
 0x1d2   :  { %v13064_v48 = vld [vmem:[#allocation5 + $0x8a4] sm:$0xf0] }
 0x1d3   :  { %v9909_v52 = vld [vmem:[#allocation5 + $0xa88] sm:$0xf]  ;;  %v9654_v60 = vor.u32 %v13064_v48, %v9653_v47  ;;  %5293 = vmatpush.bf16.msra.mxu1 %v10454_v55  ;;  %v5014_v47 = vpop.f32.mrf.mxu3  ;;  %v14209_v48 = vadd.f32 %v5025_v39, %v5013_v1 }
 0x1d4   :  { %v13128_v50 = vld [vmem:[#allocation5 + $0xaa4] sm:$0xf0]  ;;  %v956_v47 = vperm.slane %v14191_v13, 1 }
 0x1d5   :  { %v10165_v56 = vld [vmem:[#allocation5 + $0xc88] sm:$0xf]  ;;  %v9910_v61 = vor.u32 %v13128_v50, %v9909_v52  ;;  %5255 = vmatpush.bf16.msrb.mxu2 %v9654_v60  ;;  %vm6212_vm2 = vcmp.ge.f32.partialorder %v14209_v48, 0.0 }
 0x1d6   :  { %v13192_v57 = vld [vmem:[#allocation5 + $0xca4] sm:$0xf0] }
 0x1d7   :  { %v10421_v62 = vld [vmem:[#allocation5 + $0xe88] sm:$0xf]  ;;  %v10166_v6 = vor.u32 %v13192_v57, %v10165_v56  ;;  %5268 = vmatpush.bf16.msrb.mxu3 %v9910_v61 }
 0x1d8   :  { %v13256_v63 = vld [vmem:[#allocation5 + $0xea4] sm:$0xf0] }
 0x1d9   :  { %v9621_v0 = vld [vmem:[#allocation5 + $0x848] sm:$0xf]  ;;  %v10422_v7 = vor.u32 %v13256_v63, %v10421_v62  ;;  %5281 = vmatpush.bf16.msra.mxu0 %v10166_v6 }
 0x1da   :  { %v13056_v2 = vld [vmem:[#allocation5 + $0x864] sm:$0xf0] }
 0x1db   :  { %v9877_v3 = vld [vmem:[#allocation5 + $0xa48] sm:$0xf]  ;;  %v9622_v10 = vor.u32 %v13056_v2, %v9621_v0  ;;  %5294 = vmatpush.bf16.msra.mxu1 %v10422_v7 }
 0x1dc   :  { %v13120_v4 = vld [vmem:[#allocation5 + $0xa64] sm:$0xf0] }
 0x1dd   :  { %v10133_v8 = vld [vmem:[#allocation5 + $0xc48] sm:$0xf]  ;;  %v9878_v11 = vor.u32 %v13120_v4, %v9877_v3  ;;  %5256 = vmatpush.bf16.msrb.mxu2 %v9622_v10 }
 0x1de   :  { %v13184_v9 = vld [vmem:[#allocation5 + $0xc64] sm:$0xf0] }
 0x1df   :  { %v10389_v49 = vld [vmem:[#allocation5 + $0xe48] sm:$0xf]  ;;  %v10134_v22 = vor.u32 %v13184_v9, %v10133_v8  ;;  %5269 = vmatpush.bf16.msrb.mxu3 %v9878_v11  ;;  %v5027_v11 = vpop.f32.mrf.mxu0 }
 0x1e0   :  { %v13248_v12 = vld [vmem:[#allocation5 + $0xe64] sm:$0xf0] }
 0x1e1   :  { %v9589_v14 = vld [vmem:[#allocation5 + $0x808] sm:$0xf]  ;;  %v10390_v34 = vor.u32 %v13248_v12, %v10389_v49  ;;  %5282 = vmatpush.bf16.msra.mxu0 %v10134_v22 }
 0x1e2   :  { %v13048_v15 = vld [vmem:[#allocation5 + $0x824] sm:$0xf0] }
 0x1e3   :  { %v9845_v16 = vld [vmem:[#allocation5 + $0xa08] sm:$0xf]  ;;  %v9590_v40 = vor.u32 %v13048_v15, %v9589_v14  ;;  %5295 = vmatpush.bf16.msra.mxu1 %v10390_v34 }
 0x1e4   :  { %v13112_v17 = vld [vmem:[#allocation5 + $0xa24] sm:$0xf0] }
 0x1e5   :  { %v10837_v21 = vld [vmem:[#allocation5 + $0x11c8] sm:$0xf]  ;;  %v9846_v25 = vor.u32 %v13112_v17, %v9845_v16  ;;  %5257 = vmatpush.bf16.msrb.mxu2 %v9590_v40 }
 0x1e6   :  { %v13360_v23 = vld [vmem:[#allocation5 + $0x11e4] sm:$0xf0] }
 0x1e7   :  { %v11093_v28 = vld [vmem:[#allocation5 + $0x13c8] sm:$0xf]  ;;  %v10838_v52 = vor.u32 %v13360_v23, %v10837_v21  ;;  %5270 = vmatpush.bf16.msrb.mxu3 %v9846_v25 }
 0x1e8   :  { %v13424_v29 = vld [vmem:[#allocation5 + $0x13e4] sm:$0xf0]  ;;  %5258 = vmatmul.bf16.vlgmr.msrb.gmra.mxu2 %v14153_v41 }
 0x1e9   :  { %v10101_v35 = vld [vmem:[#allocation5 + $0xc08] sm:$0xf]  ;;  %v11094_v50 = vor.u32 %v13424_v29, %v11093_v28  ;;  %5302 = vmatpush.bf16.msra.mxu2 %v10838_v52 }
 0x1ea   :  { %v13176_v36 = vld [vmem:[#allocation5 + $0xc24] sm:$0xf0]  ;;  %5271 = vmatmul.bf16.vlgmr.msrb.gmra.mxu3 %v14157_v44 }
 0x1eb   :  { %v10357_v37 = vld [vmem:[#allocation5 + $0xe08] sm:$0xf]  ;;  %v10102_v55 = vor.u32 %v13176_v36, %v10101_v35  ;;  %5315 = vmatpush.bf16.msra.mxu3 %v11094_v50 }
 0x1ec   :  { %v13240_v43 = vld [vmem:[#allocation5 + $0xe24] sm:$0xf0] }
 0x1ed   :  { %v11349_v45 = vld [vmem:[#allocation5 + $0x15c8] sm:$0xf]  ;;  %v10358_v59 = vor.u32 %v13240_v43, %v10357_v37  ;;  %5283 = vmatpush.bf16.msra.mxu0 %v10102_v55 }
 0x1ee   :  { %v13488_v46 = vld [vmem:[#allocation5 + $0x15e4] sm:$0xf0] }
 0x1ef   :  { %v11605_v51 = vld [vmem:[#allocation5 + $0x17c8] sm:$0xf]  ;;  %v11350_v60 = vor.u32 %v13488_v46, %v11349_v45  ;;  %5296 = vmatpush.bf16.msra.mxu1 %v10358_v59 }
 0x1f0   :  { %v13552_v53 = vld [vmem:[#allocation5 + $0x17e4] sm:$0xf0]  ;;  %5284 = vmatmul.bf16.vlgmr.msra.gmra.mxu0 %v14151_v38 }
 0x1f1   :  { %v10805_v54 = vld [vmem:[#allocation5 + $0x1188] sm:$0xf]  ;;  %v11606_v61 = vor.u32 %v13552_v53, %v11605_v51  ;;  %5328 = vmatpush.bf16.msrb.mxu0 %v11350_v60 }
 0x1f2   :  { %v13352_v56 = vld [vmem:[#allocation5 + $0x11a4] sm:$0xf0]  ;;  %5297 = vmatmul.bf16.vlgmr.msra.gmra.mxu1 %v14155_v42 }
 0x1f3   :  { %v11061_v57 = vld [vmem:[#allocation5 + $0x1388] sm:$0xf]  ;;  %v10806_v0 = vor.u32 %v13352_v56, %v10805_v54  ;;  %5341 = vmatpush.bf16.msrb.mxu1 %v11606_v61  ;;  %v5038_v61 = vpop.f32.mrf.mxu1 }
 0x1f4   :  { %v13416_v58 = vld [vmem:[#allocation5 + $0x13a4] sm:$0xf0] }
 0x1f5   :  { %v11317_v62 = vld [vmem:[#allocation5 + $0x1588] sm:$0xf]  ;;  %v11062_v1 = vor.u32 %v13416_v58, %v11061_v57  ;;  %5303 = vmatpush.bf16.msra.mxu2 %v10806_v0  ;;  %v5039_v0 = vadd.f32 %v5038_v61, %v956_v47  ;;  %v8791_v47 = vld [vmem:[#allocation5 + $0x1e8] sm:$0xf0] }
 0x1f6   :  { %v13480_v63 = vld [vmem:[#allocation5 + $0x15a4] sm:$0xf0] }
 0x1f7   :  { %v11573_v2 = vld [vmem:[#allocation5 + $0x1788] sm:$0xf]  ;;  %v11318_v8 = vor.u32 %v13480_v63, %v11317_v62  ;;  %5316 = vmatpush.bf16.msra.mxu3 %v11062_v1  ;;  %v5077_v62 = vpop.f32.mrf.mxu0 }
 0x1f8   :  { %v13544_v3 = vld [vmem:[#allocation5 + $0x17a4] sm:$0xf0] }
 0x1f9   :  { %v10773_v4 = vld [vmem:[#allocation5 + $0x1148] sm:$0xf]  ;;  %v11574_v9 = vor.u32 %v13544_v3, %v11573_v2  ;;  %5329 = vmatpush.bf16.msrb.mxu0 %v11318_v8 }
 0x1fa   :  { %v13344_v5 = vld [vmem:[#allocation5 + $0x1164] sm:$0xf0] }
 0x1fb   :  { %v11029_v6 = vld [vmem:[#allocation5 + $0x1348] sm:$0xf]  ;;  %v10774_v12 = vor.u32 %v13344_v5, %v10773_v4  ;;  %5342 = vmatpush.bf16.msrb.mxu1 %v11574_v9  ;;  %v5051_v4 = vpop.f32.mrf.mxu2 }
 0x1fc   :  { %v13408_v7 = vld [vmem:[#allocation5 + $0x1364] sm:$0xf0] }
 0x1fd   :  { %v11285_v49 = vld [vmem:[#allocation5 + $0x1548] sm:$0xf]  ;;  %v11030_v14 = vor.u32 %v13408_v7, %v11029_v6  ;;  %5304 = vmatpush.bf16.msra.mxu2 %v10774_v12 }
 0x1fe   :  { %v13472_v10 = vld [vmem:[#allocation5 + $0x1564] sm:$0xf0] }
 0x1ff   :  { %v11541_v15 = vld [vmem:[#allocation5 + $0x1748] sm:$0xf]  ;;  %v11286_v28 = vor.u32 %v13472_v10, %v11285_v49  ;;  %5317 = vmatpush.bf16.msra.mxu3 %v11030_v14  ;;  %v5052_v49 = vadd.f32 %v5051_v4, %v5039_v0  ;;  %v5064_v10 = vpop.f32.mrf.mxu3  ;;  %v9303_v0 = vld [vmem:[#allocation5 + $0x5e8] sm:$0xf0] }
 0x200   :  { %v13536_v16 = vld [vmem:[#allocation5 + $0x1764] sm:$0xf0]  ;;  %v9559_v4 = vld [vmem:[#allocation5 + $0x7e8] sm:$0xf0] }
 0x201   :  { %v10741_v17 = vld [vmem:[#allocation5 + $0x1108] sm:$0xf]  ;;  %v11542_v29 = vor.u32 %v13536_v16, %v11541_v15  ;;  %5330 = vmatpush.bf16.msrb.mxu0 %v11286_v28 }
 0x202   :  { %v13336_v21 = vld [vmem:[#allocation5 + $0x1124] sm:$0xf0] }
 0x203   :  { %v10997_v22 = vld [vmem:[#allocation5 + $0x1308] sm:$0xf]  ;;  %v10742_v35 = vor.u32 %v13336_v21, %v10741_v17  ;;  %5343 = vmatpush.bf16.msrb.mxu1 %v11542_v29  ;;  %v5065_v17 = vadd.f32 %v5064_v10, %v5052_v49  ;;  %v12900_v49 = vld [vmem:[#allocation5 + $0x38c] sm:$0xf] }
 0x204   :  { %v13400_v23 = vld [vmem:[#allocation5 + $0x1324] sm:$0xf0] }
 0x205   :  { %v11253_v30 = vld [vmem:[#allocation5 + $0x1508] sm:$0xf]  ;;  %v10998_v36 = vor.u32 %v13400_v23, %v10997_v22  ;;  %5305 = vmatpush.bf16.msra.mxu2 %v10742_v35 }
 0x206   :  { %v13464_v34 = vld [vmem:[#allocation5 + $0x1524] sm:$0xf0] }
 0x207   :  { %v11509_v37 = vld [vmem:[#allocation5 + $0x1708] sm:$0xf]  ;;  %v11254_v46 = vor.u32 %v13464_v34, %v11253_v30  ;;  %5318 = vmatpush.bf16.msra.mxu3 %v10998_v36  ;;  %v14219_v36 = vadd.f32 %v5077_v62, %v5065_v17  ;;  %v9047_v62 = vld [vmem:[#allocation5 + $0x3e8] sm:$0xf0] }
 0x208   :  { %v13528_v39 = vld [vmem:[#allocation5 + $0x1724] sm:$0xf0]  ;;  %v9527_v17 = vld [vmem:[#allocation5 + $0x7a8] sm:$0xf0] }
 0x209   :  { %v10709_v40 = vld [vmem:[#allocation5 + $0x10c8] sm:$0xf]  ;;  %v11510_v52 = vor.u32 %v13528_v39, %v11509_v37  ;;  %5331 = vmatpush.bf16.msrb.mxu0 %v11254_v46  ;;  %v12844_v46 = vld [vmem:[#allocation5 + $0x1cc] sm:$0xf] }
 0x20a   :  { %v13328_v25 = vld [vmem:[#allocation5 + $0x10e4] sm:$0xf0]  ;;  %v8794_v61 = vor.u32 %v12844_v46, %v8791_v47 }
 0x20b   :  { %v10965_v43 = vld [vmem:[#allocation5 + $0x12c8] sm:$0xf]  ;;  %v10710_v53 = vor.u32 %v13328_v25, %v10709_v40  ;;  %5344 = vmatpush.bf16.msrb.mxu1 %v11510_v52  ;;  %v5040_v25 = vpop.f32.mrf.mxu1 }
 0x20c   :  { %v13392_v45 = vld [vmem:[#allocation5 + $0x12e4] sm:$0xf0]  ;;  %v9495_v25 = vld [vmem:[#allocation5 + $0x768] sm:$0xf0] }
 0x20d   :  { %v11221_v50 = vld [vmem:[#allocation5 + $0x14c8] sm:$0xf]  ;;  %v10966_v54 = vor.u32 %v13392_v45, %v10965_v43  ;;  %5306 = vmatpush.bf16.msra.mxu2 %v10710_v53  ;;  %v5079_v43 = vpop.f32.mrf.mxu0 }
 0x20e   :  { %v13456_v51 = vld [vmem:[#allocation5 + $0x14e4] sm:$0xf0]  ;;  %v12820_v43 = vld [vmem:[#allocation5 + $0x10c] sm:$0xf] }
 0x20f   :  { %v11477_v55 = vld [vmem:[#allocation5 + $0x16c8] sm:$0xf]  ;;  %v11222_v63 = vor.u32 %v13456_v51, %v11221_v50  ;;  %5319 = vmatpush.bf16.msra.mxu3 %v10966_v54  ;;  %v5053_v54 = vpop.f32.mrf.mxu2 }
 0x210   :  { %v13520_v56 = vld [vmem:[#allocation5 + $0x16e4] sm:$0xf0]  ;;  %v9207_v54 = vld [vmem:[#allocation5 + $0x528] sm:$0xf0] }
 0x211   :  { %v10677_v57 = vld [vmem:[#allocation5 + $0x1088] sm:$0xf]  ;;  %v11478_v13 = vor.u32 %v13520_v56, %v11477_v55  ;;  %5332 = vmatpush.bf16.msrb.mxu0 %v11222_v63  ;;  %v12972_v63 = vld [vmem:[#allocation5 + $0x5cc] sm:$0xf] }
 0x212   :  { %v13320_v58 = vld [vmem:[#allocation5 + $0x10a4] sm:$0xf0] }
 0x213   :  { %v10933_v59 = vld [vmem:[#allocation5 + $0x1288] sm:$0xf]  ;;  %v10678_v5 = vor.u32 %v13320_v58, %v10677_v57  ;;  %5345 = vmatpush.bf16.msrb.mxu1 %v11478_v13 }
 0x214   :  { %v13384_v60 = vld [vmem:[#allocation5 + $0x12a4] sm:$0xf0] }
 0x215   :  { %v11189_v1 = vld [vmem:[#allocation5 + $0x1488] sm:$0xf]  ;;  %v10934_v6 = vor.u32 %v13384_v60, %v10933_v59  ;;  %5307 = vmatpush.bf16.msra.mxu2 %v10678_v5  ;;  %v12908_v59 = vld [vmem:[#allocation5 + $0x3cc] sm:$0xf]  ;;  %v5066_v60 = vpop.f32.mrf.mxu3 }
 0x216   :  { %v13448_v2 = vld [vmem:[#allocation5 + $0x14a4] sm:$0xf0] }
 0x217   :  { %v14216_v3 = vld [vmem:[#allocation5 + $0x1808] sm:$0x11]  ;;  %v11190_v15 = vor.u32 %v13448_v2, %v11189_v1  ;;  %5320 = vmatpush.bf16.msra.mxu3 %v10934_v6 }
 0x218   :  { %v11445_v7 = vld [vmem:[#allocation5 + $0x1688] sm:$0xf]  ;;  %v3281_v16 = vunpack.c.l.b16 %v14216_v3  ;;  %v13036_v2 = vld [vmem:[#allocation5 + $0x7cc] sm:$0xf] }
 0x219   :  { %v13512_v8 = vld [vmem:[#allocation5 + $0x16a4] sm:$0xf0]  ;;  %5333 = vmatpush.bf16.msrb.mxu0 %v11190_v15  ;;  %v12836_v6 = vld [vmem:[#allocation5 + $0x18c] sm:$0xf]  ;;  %v9562_v10 = vor.u32 %v13036_v2, %v9559_v4 }
 0x21a   :  { %v10645_v9 = vld [vmem:[#allocation5 + $0x1048] sm:$0xf]  ;;  %v11446_v21 = vor.u32 %v13512_v8, %v11445_v7  ;;  %v4057_v52 = vpack.c.b16 %v3281_v16, %v3281_v16  ;;  %v8759_v7 = vld [vmem:[#allocation5 + $0x1a8] sm:$0xf0]  ;;  %v9050_v8 = vor.u32 %v12908_v59, %v9047_v62  ;;  %v5090_v62 = vpop.f32.mrf.mxu1 }
 0x21b   :  { %v13312_v11 = vld [vmem:[#allocation5 + $0x1064] sm:$0xf0]  ;;  %v8762_v15 = vor.u32 %v12836_v6, %v8759_v7  ;;  %v13028_v16 = vld [vmem:[#allocation5 + $0x78c] sm:$0xf] }
 0x21c   :  { %v10901_v12 = vld [vmem:[#allocation5 + $0x1248] sm:$0xf]  ;;  %v10646_v28 = vor.u32 %v13312_v11, %v10645_v9  ;;  %5346 = vmatpush.bf16.msrb.mxu1 %v11446_v21  ;;  %v4843_v1 = vsel %vm4835_vm0, %v4057_v52, 0  ;;  %v9306_v9 = vor.u32 %v12972_v63, %v9303_v0  ;;  %v9015_v11 = vld [vmem:[#allocation5 + $0x3a8] sm:$0xf0] }
 0x21d   :  { %v13376_v14 = vld [vmem:[#allocation5 + $0x1264] sm:$0xf0]  ;;  %v12828_v21 = vld [vmem:[#allocation5 + $0x14c] sm:$0xf] }
 0x21e   :  { %v11157_v22 = vld [vmem:[#allocation5 + $0x1448] sm:$0xf]  ;;  %v10902_v29 = vor.u32 %v13376_v14, %v10901_v12  ;;  %5308 = vmatpush.bf16.msra.mxu2 %v10646_v28  ;;  %v12964_v12 = vld [vmem:[#allocation5 + $0x58c] sm:$0xf] }
 0x21f   :  { %v13440_v23 = vld [vmem:[#allocation5 + $0x1464] sm:$0xf0]  ;;  %v9271_v14 = vld [vmem:[#allocation5 + $0x5a8] sm:$0xf0] }
 0x220   :  { %v11413_v30 = vld [vmem:[#allocation5 + $0x1648] sm:$0xf]  ;;  %v11158_v45 = vor.u32 %v13440_v23, %v11157_v22  ;;  %5321 = vmatpush.bf16.msra.mxu3 %v10902_v29  ;;  %v8727_v22 = vld [vmem:[#allocation5 + $0x168] sm:$0xf0]  ;;  %v9018_v23 = vor.u32 %v12900_v49, %v9015_v11  ;;  %v9274_v28 = vor.u32 %v12964_v12, %v9271_v14 }
 0x221   :  { %v13504_v34 = vld [vmem:[#allocation5 + $0x1664] sm:$0xf0]  ;;  %v12892_v29 = vld [vmem:[#allocation5 + $0x34c] sm:$0xf] }
 0x222   :  { %v10613_v35 = vld [vmem:[#allocation5 + $0x1008] sm:$0xf]  ;;  %v11414_v50 = vor.u32 %v13504_v34, %v11413_v30  ;;  %5334 = vmatpush.bf16.msrb.mxu0 %v11158_v45  ;;  %v9530_v30 = vor.u32 %v13028_v16, %v9527_v17  ;;  %v8983_v34 = vld [vmem:[#allocation5 + $0x368] sm:$0xf0] }
 0x223   :  { %v13304_v37 = vld [vmem:[#allocation5 + $0x1024] sm:$0xf0]  ;;  %v8695_v45 = vld [vmem:[#allocation5 + $0x128] sm:$0xf0]  ;;  %v8986_v46 = vor.u32 %v12892_v29, %v8983_v34 }
 0x224   :  { %v10869_v39 = vld [vmem:[#allocation5 + $0x1208] sm:$0xf]  ;;  %v10614_v55 = vor.u32 %v13304_v37, %v10613_v35  ;;  %5347 = vmatpush.bf16.msrb.mxu1 %v11414_v50  ;;  %v12956_v35 = vld [vmem:[#allocation5 + $0x54c] sm:$0xf] }
 0x225   :  { %v13368_v40 = vld [vmem:[#allocation5 + $0x1224] sm:$0xf0]  ;;  %v9239_v37 = vld [vmem:[#allocation5 + $0x568] sm:$0xf0] }
 0x226   :  { %v11125_v51 = vld [vmem:[#allocation5 + $0x1408] sm:$0xf]  ;;  %v10870_v56 = vor.u32 %v13368_v40, %v10869_v39  ;;  %5309 = vmatpush.bf16.msra.mxu2 %v10614_v55  ;;  %v8730_v39 = vor.u32 %v12828_v21, %v8727_v22  ;;  %v13020_v40 = vld [vmem:[#allocation5 + $0x74c] sm:$0xf]  ;;  %v9242_v47 = vor.u32 %v12956_v35, %v9239_v37  ;;  %v8698_v55 = vor.u32 %v12820_v43, %v8695_v45 }
 0x227   :  { %v13432_v53 = vld [vmem:[#allocation5 + $0x1424] sm:$0xf0]  ;;  %v12884_v52 = vld [vmem:[#allocation5 + $0x30c] sm:$0xf]  ;;  %v9498_v50 = vor.u32 %v13020_v40, %v9495_v25  ;;  %v5092_v25 = vpop.f32.mrf.mxu1 }
 0x228   :  { %v11381_v57 = vld [vmem:[#allocation5 + $0x1608] sm:$0xf]  ;;  %v11126_v13 = vor.u32 %v13432_v53, %v11125_v51  ;;  %5322 = vmatpush.bf16.msra.mxu3 %v10870_v56  ;;  %v8951_v51 = vld [vmem:[#allocation5 + $0x328] sm:$0xf0] }
 0x229   :  { %v13496_v58 = vld [vmem:[#allocation5 + $0x1624] sm:$0xf0]  ;;  %5310 = vmatmul.bf16.vlgmr.msra.gmra.mxu2 %v14166_v19  ;;  %v12948_v53 = vld [vmem:[#allocation5 + $0x50c] sm:$0xf]  ;;  %v8954_v60 = vor.u32 %v12884_v52, %v8951_v51 }
 0x22a   :  { %v11382_v5 = vor.u32 %v13496_v58, %v11381_v57  ;;  %5361 = vmatpush.bf16.msrb.mxu2 %v4843_v1  ;;  %5335 = vmatpush.bf16.msrb.mxu0 %v11126_v13  ;;  %v13012_v56 = vld [vmem:[#allocation5 + $0x70c] sm:$0xf]  ;;  %v5091_v13 = vadd.f32 %v5090_v62, %v14219_v36 }
 0x22b   :  { %5323 = vmatmul.bf16.vlgmr.msra.gmra.mxu3 %v14170_v24  ;;  %v9463_v57 = vld [vmem:[#allocation5 + $0x728] sm:$0xf0] }
 0x22c   :  { %5367 = vmatpush.bf16.msrb.mxu3 %v8794_v61  ;;  %5348 = vmatpush.bf16.msrb.mxu1 %v11382_v5  ;;  %v12812_v58 = vld [vmem:[#allocation5 + $0xcc] sm:$0xf]  ;;  %v9210_v61 = vor.u32 %v12948_v53, %v9207_v54  ;;  %v9466_v0 = vor.u32 %v13012_v56, %v9463_v57 }
 0x22d   :  { %5336 = vmatmul.bf16.vlgmr.msrb.gmra.mxu0 %v14168_v20  ;;  %v8663_v59 = vld [vmem:[#allocation5 + $0xe8] sm:$0xf0] }
 0x22e   :  { %5380 = vmatpush.bf16.msra.mxu0 %v9050_v8  ;;  %5406 = vmatpush.bf16.msra.mxu2 %v9562_v10  ;;  %v12876_v63 = vld [vmem:[#allocation5 + $0x2cc] sm:$0xf]  ;;  %v8666_v5 = vor.u32 %v12812_v58, %v8663_v59  ;;  %v5129_v8 = vpop.f32.mrf.mxu0 }
 0x22f   :  { %5349 = vmatmul.bf16.vlgmr.msrb.gmra.mxu1 %v14173_v31  ;;  %v8919_v1 = vld [vmem:[#allocation5 + $0x2e8] sm:$0xf0] }
 0x230   :  { %5393 = vmatpush.bf16.msra.mxu1 %v9306_v9  ;;  %5368 = vmatpush.bf16.msrb.mxu3 %v8762_v15  ;;  %v12940_v2 = vld [vmem:[#allocation5 + $0x4cc] sm:$0xf]  ;;  %v8922_v10 = vor.u32 %v12876_v63, %v8919_v1  ;;  %v5103_v15 = vpop.f32.mrf.mxu2 }
 0x231   :  { %v9175_v4 = vld [vmem:[#allocation5 + $0x4e8] sm:$0xf0]  ;;  %v5104_v22 = vadd.f32 %v5103_v15, %v5091_v13 }
 0x232   :  { %5381 = vmatpush.bf16.msra.mxu0 %v9018_v23  ;;  %5407 = vmatpush.bf16.msra.mxu2 %v9530_v30  ;;  %v13004_v6 = vld [vmem:[#allocation5 + $0x6cc] sm:$0xf]  ;;  %v9178_v11 = vor.u32 %v12940_v2, %v9175_v4  ;;  %v5116_v23 = vpop.f32.mrf.mxu3 }
 0x233   :  { %v9431_v7 = vld [vmem:[#allocation5 + $0x6e8] sm:$0xf0]  ;;  %v5117_v35 = vadd.f32 %v5116_v23, %v5104_v22 }
 0x234   :  { %5394 = vmatpush.bf16.msra.mxu1 %v9274_v28  ;;  %5369 = vmatpush.bf16.msrb.mxu3 %v8730_v39  ;;  %v12804_v9 = vld [vmem:[#allocation5 + $0x8c] sm:$0xf]  ;;  %v9434_v14 = vor.u32 %v13004_v6, %v9431_v7 }
 0x235   :  { %v8631_v49 = vld [vmem:[#allocation5 + $0xa8] sm:$0xf0] }
 0x236   :  { %5382 = vmatpush.bf16.msra.mxu0 %v8986_v46  ;;  %5408 = vmatpush.bf16.msra.mxu2 %v9498_v50  ;;  %v12868_v12 = vld [vmem:[#allocation5 + $0x28c] sm:$0xf]  ;;  %v8634_v21 = vor.u32 %v12804_v9, %v8631_v49  ;;  %v14229_v50 = vadd.f32 %v5129_v8, %v5117_v35 }
 0x237   :  { %v8887_v16 = vld [vmem:[#allocation5 + $0x2a8] sm:$0xf0] }
 0x238   :  { %5395 = vmatpush.bf16.msra.mxu1 %v9242_v47  ;;  %5370 = vmatpush.bf16.msrb.mxu3 %v8698_v55  ;;  %v12932_v36 = vld [vmem:[#allocation5 + $0x48c] sm:$0xf]  ;;  %v8890_v37 = vor.u32 %v12868_v12, %v8887_v16  ;;  %v5131_v55 = vpop.f32.mrf.mxu0  ;;  %v5105_v4 = vpop.f32.mrf.mxu2 }
 0x239   :  { %v9143_v17 = vld [vmem:[#allocation5 + $0x4a8] sm:$0xf0]  ;;  %11629 = vmatmul.msk.bf16.vlgmr.msrb.gmra.mxu2 %vm4831_vm1, %v14179_v18 }
 0x23a   :  { %5383 = vmatpush.bf16.msra.mxu0 %v8954_v60  ;;  %5409 = vmatpush.bf16.msra.mxu2 %v9466_v0  ;;  %v12996_v28 = vld [vmem:[#allocation5 + $0x68c] sm:$0xf]  ;;  %v9146_v39 = vor.u32 %v12932_v36, %v9143_v17  ;;  %v5118_v9 = vpop.f32.mrf.mxu3 }
 0x23b   :  { %v9399_v29 = vld [vmem:[#allocation5 + $0x6a8] sm:$0xf0] }
 0x23c   :  { %5396 = vmatpush.bf16.msra.mxu1 %v9210_v61  ;;  %5371 = vmatpush.bf16.msrb.mxu3 %v8666_v5  ;;  %v12796_v30 = vld [vmem:[#allocation5 + $0x4c] sm:$0xf]  ;;  %v9402_v43 = vor.u32 %v12996_v28, %v9399_v29 }
 0x23d   :  { %v8599_v34 = vld [vmem:[#allocation5 + $0x68] sm:$0xf0] }
 0x23e   :  { %5384 = vmatpush.bf16.msra.mxu0 %v8922_v10  ;;  %v12860_v40 = vld [vmem:[#allocation5 + $0x24c] sm:$0xf]  ;;  %5410 = vmatpush.bf16.msra.mxu2 %v9434_v14  ;;  %v8602_v52 = vor.u32 %v12796_v30, %v8599_v34 }
 0x23f   :  { %v8855_v45 = vld [vmem:[#allocation5 + $0x268] sm:$0xf0] }
 0x240   :  { %5397 = vmatpush.bf16.msra.mxu1 %v9178_v11  ;;  %v12924_v46 = vld [vmem:[#allocation5 + $0x44c] sm:$0xf]  ;;  %5372 = vmatpush.bf16.msrb.mxu3 %v8634_v21  ;;  %v8858_v59 = vor.u32 %v12860_v40, %v8855_v45 }
 0x241   :  { %v9111_v47 = vld [vmem:[#allocation5 + $0x468] sm:$0xf0] }
 0x242   :  { %v12988_v51 = vld [vmem:[#allocation5 + $0x64c] sm:$0xf]  ;;  %5385 = vmatpush.bf16.msra.mxu0 %v8890_v37  ;;  %v9114_v60 = vor.u32 %v12924_v46, %v9111_v47  ;;  %5411 = vmatpush.bf16.msra.mxu2 %v9402_v43 }
 0x243   :  { %v9367_v53 = vld [vmem:[#allocation5 + $0x668] sm:$0xf0] }
 0x244   :  { %v12788_v54 = vld [vmem:[#allocation5 + $0xc] sm:$0xf]  ;;  %5398 = vmatpush.bf16.msra.mxu1 %v9146_v39  ;;  %v9370_v0 = vor.u32 %v12988_v51, %v9367_v53  ;;  %5373 = vmatpush.bf16.msrb.mxu3 %v8602_v52 }
 0x245   :  { %v8567_v56 = vld [vmem:[#allocation5 + $0x28] sm:$0xf0] }
 0x246   :  { %v13100_v57 = vld [vmem:[#allocation5 + $0x9cc] sm:$0xf]  ;;  %v8570_v5 = vor.u32 %v12788_v54, %v8567_v56  ;;  %5386 = vmatpush.bf16.msra.mxu0 %v8858_v59  ;;  %5412 = vmatpush.bf16.msra.mxu2 %v9370_v0 }
 0x247   :  { %v9815_v58 = vld [vmem:[#allocation5 + $0x9e8] sm:$0xf0] }
 0x248   :  { %v12852_v61 = vld [vmem:[#allocation5 + $0x20c] sm:$0xf]  ;;  %v9818_v49 = vor.u32 %v13100_v57, %v9815_v58  ;;  %5399 = vmatpush.bf16.msra.mxu1 %v9114_v60  ;;  %5374 = vmatpush.bf16.msrb.mxu3 %v8570_v5  ;;  %v5142_v5 = vpop.f32.mrf.mxu1 }
 0x249   :  { %v8823_v62 = vld [vmem:[#allocation5 + $0x228] sm:$0xf0] }
 0x24a   :  { %v12916_v63 = vld [vmem:[#allocation5 + $0x40c] sm:$0xf]  ;;  %v8826_v14 = vor.u32 %v12852_v61, %v8823_v62 }
 0x24b   :  { %v9079_v13 = vld [vmem:[#allocation5 + $0x428] sm:$0xf0]  ;;  %5375 = vmatmul.bf16.vlgmr.msrb.gmra.mxu3 %v14141_v27 }
 0x24c   :  { %v12980_v1 = vld [vmem:[#allocation5 + $0x60c] sm:$0xf]  ;;  %v9082_v15 = vor.u32 %v12916_v63, %v9079_v13  ;;  %5419 = vmatpush.bf16.msra.mxu3 %v9818_v49  ;;  %5387 = vmatpush.bf16.msra.mxu0 %v8826_v14 }
 0x24d   :  { %v9335_v2 = vld [vmem:[#allocation5 + $0x628] sm:$0xf0] }
 0x24e   :  { %v13164_v6 = vld [vmem:[#allocation5 + $0xbcc] sm:$0xf]  ;;  %v9338_v17 = vor.u32 %v12980_v1, %v9335_v2  ;;  %5400 = vmatpush.bf16.msra.mxu1 %v9082_v15 }
 0x24f   :  { %v10071_v7 = vld [vmem:[#allocation5 + $0xbe8] sm:$0xf0]  ;;  %5388 = vmatmul.bf16.vlgmr.msra.gmra.mxu0 %v14145_v33 }
 0x250   :  { %v13228_v8 = vld [vmem:[#allocation5 + $0xdcc] sm:$0xf]  ;;  %v10074_v21 = vor.u32 %v13164_v6, %v10071_v7  ;;  %5413 = vmatpush.bf16.msra.mxu2 %v9338_v17 }
 0x251   :  { %v10327_v10 = vld [vmem:[#allocation5 + $0xde8] sm:$0xf0]  ;;  %5401 = vmatmul.bf16.vlgmr.msra.gmra.mxu1 %v14139_v26 }
 0x252   :  { %v13292_v11 = vld [vmem:[#allocation5 + $0xfcc] sm:$0xf]  ;;  %v10330_v22 = vor.u32 %v13228_v8, %v10327_v10  ;;  %5432 = vmatpush.bf16.msrb.mxu0 %v10074_v21  ;;  %v5143_v8 = vadd.f32 %v5142_v5, %v14229_v50  ;;  %v5155_v50 = vpop.f32.mrf.mxu2 }
 0x253   :  { %v10583_v12 = vld [vmem:[#allocation5 + $0xfe8] sm:$0xf0]  ;;  %5414 = vmatmul.bf16.vlgmr.msra.gmra.mxu2 %v14143_v32 }
 0x254   :  { %v13092_v16 = vld [vmem:[#allocation5 + $0x98c] sm:$0xf]  ;;  %v10586_v23 = vor.u32 %v13292_v11, %v10583_v12  ;;  %5445 = vmatpush.bf16.msrb.mxu1 %v10330_v22 }
 0x255   :  { %v9783_v36 = vld [vmem:[#allocation5 + $0x9a8] sm:$0xf0] }
 0x256   :  { %v13156_v28 = vld [vmem:[#allocation5 + $0xb8c] sm:$0xf]  ;;  %v9786_v34 = vor.u32 %v13092_v16, %v9783_v36  ;;  %5458 = vmatpush.bf16.msrb.mxu2 %v10586_v23  ;;  %v5181_v23 = vpop.f32.mrf.mxu0 }
 0x257   :  { %v10039_v29 = vld [vmem:[#allocation5 + $0xba8] sm:$0xf0] }
 0x258   :  { %v13220_v30 = vld [vmem:[#allocation5 + $0xd8c] sm:$0xf]  ;;  %v10042_v43 = vor.u32 %v13156_v28, %v10039_v29  ;;  %5420 = vmatpush.bf16.msra.mxu3 %v9786_v34 }
 0x259   :  { %v10295_v35 = vld [vmem:[#allocation5 + $0xda8] sm:$0xf0] }
 0x25a   :  { %v13284_v37 = vld [vmem:[#allocation5 + $0xf8c] sm:$0xf]  ;;  %v10298_v45 = vor.u32 %v13220_v30, %v10295_v35  ;;  %5433 = vmatpush.bf16.msrb.mxu0 %v10042_v43 }
 0x25b   :  { %v10551_v39 = vld [vmem:[#allocation5 + $0xfa8] sm:$0xf0] }
 0x25c   :  { %v13084_v40 = vld [vmem:[#allocation5 + $0x94c] sm:$0xf]  ;;  %v10554_v46 = vor.u32 %v13284_v37, %v10551_v39  ;;  %5446 = vmatpush.bf16.msrb.mxu1 %v10298_v45  ;;  %v5156_v39 = vadd.f32 %v5155_v50, %v5143_v8 }
 0x25d   :  { %v9751_v25 = vld [vmem:[#allocation5 + $0x968] sm:$0xf0] }
 0x25e   :  { %v13148_v47 = vld [vmem:[#allocation5 + $0xb4c] sm:$0xf]  ;;  %v9754_v53 = vor.u32 %v13084_v40, %v9751_v25  ;;  %5459 = vmatpush.bf16.msrb.mxu2 %v10554_v46  ;;  %v5144_v46 = vpop.f32.mrf.mxu1 }
 0x25f   :  { %v10007_v52 = vld [vmem:[#allocation5 + $0xb68] sm:$0xf0] }
 0x260   :  { %v13212_v51 = vld [vmem:[#allocation5 + $0xd4c] sm:$0xf]  ;;  %v10010_v59 = vor.u32 %v13148_v47, %v10007_v52  ;;  %5421 = vmatpush.bf16.msra.mxu3 %v9754_v53  ;;  %v5168_v47 = vpop.f32.mrf.mxu3 }
 0x261   :  { %v10263_v54 = vld [vmem:[#allocation5 + $0xd68] sm:$0xf0]  ;;  %v5169_v53 = vadd.f32 %v5168_v47, %v5156_v39 }
 0x262   :  { %v13276_v55 = vld [vmem:[#allocation5 + $0xf4c] sm:$0xf]  ;;  %v10266_v60 = vor.u32 %v13212_v51, %v10263_v54  ;;  %5434 = vmatpush.bf16.msrb.mxu0 %v10010_v59 }
 0x263   :  { %v10519_v56 = vld [vmem:[#allocation5 + $0xf68] sm:$0xf0] }
 0x264   :  { %v13076_v57 = vld [vmem:[#allocation5 + $0x90c] sm:$0xf]  ;;  %v10522_v61 = vor.u32 %v13276_v55, %v10519_v56  ;;  %5447 = vmatpush.bf16.msrb.mxu1 %v10266_v60  ;;  %v5182_v60 = vadd.f32 %v5181_v23, %v5169_v53 }
 0x265   :  { %v9719_v58 = vld [vmem:[#allocation5 + $0x928] sm:$0xf0] }
 0x266   :  { %v13140_v62 = vld [vmem:[#allocation5 + $0xb0c] sm:$0xf]  ;;  %v9722_v13 = vor.u32 %v13076_v57, %v9719_v58  ;;  %5460 = vmatpush.bf16.msrb.mxu2 %v10522_v61 }
 0x267   :  { %v9975_v63 = vld [vmem:[#allocation5 + $0xb28] sm:$0xf0] }
 0x268   :  { %v13204_v0 = vld [vmem:[#allocation5 + $0xd0c] sm:$0xf]  ;;  %v9978_v9 = vor.u32 %v13140_v62, %v9975_v63  ;;  %5422 = vmatpush.bf16.msra.mxu3 %v9722_v13 }
 0x269   :  { %v10231_v1 = vld [vmem:[#allocation5 + $0xd28] sm:$0xf0] }
 0x26a   :  { %v13268_v2 = vld [vmem:[#allocation5 + $0xf0c] sm:$0xf]  ;;  %v10234_v49 = vor.u32 %v13204_v0, %v10231_v1  ;;  %5435 = vmatpush.bf16.msrb.mxu0 %v9978_v9 }
 0x26b   :  { %v10487_v4 = vld [vmem:[#allocation5 + $0xf28] sm:$0xf0] }
 0x26c   :  { %v13068_v6 = vld [vmem:[#allocation5 + $0x8cc] sm:$0xf]  ;;  %v10490_v10 = vor.u32 %v13268_v2, %v10487_v4  ;;  %5448 = vmatpush.bf16.msrb.mxu1 %v10234_v49  ;;  %v5183_v4 = vpop.f32.mrf.mxu0 }
 0x26d   :  { %v9687_v7 = vld [vmem:[#allocation5 + $0x8e8] sm:$0xf0] }
 0x26e   :  { %v13132_v11 = vld [vmem:[#allocation5 + $0xacc] sm:$0xf]  ;;  %v9690_v15 = vor.u32 %v13068_v6, %v9687_v7  ;;  %5461 = vmatpush.bf16.msrb.mxu2 %v10490_v10 }
 0x26f   :  { %v9943_v12 = vld [vmem:[#allocation5 + $0xae8] sm:$0xf0] }
 0x270   :  { %v13196_v14 = vld [vmem:[#allocation5 + $0xccc] sm:$0xf]  ;;  %v9946_v28 = vor.u32 %v13132_v11, %v9943_v12  ;;  %5423 = vmatpush.bf16.msra.mxu3 %v9690_v15 }
 0x271   :  { %v10199_v16 = vld [vmem:[#allocation5 + $0xce8] sm:$0xf0] }
 0x272   :  { %v13260_v36 = vld [vmem:[#allocation5 + $0xecc] sm:$0xf]  ;;  %v10202_v29 = vor.u32 %v13196_v14, %v10199_v16  ;;  %5436 = vmatpush.bf16.msrb.mxu0 %v9946_v28  ;;  %v5157_v14 = vpop.f32.mrf.mxu2 }
 0x273   :  { %v10455_v17 = vld [vmem:[#allocation5 + $0xee8] sm:$0xf0] }
 0x274   :  { %v13060_v21 = vld [vmem:[#allocation5 + $0x88c] sm:$0xf]  ;;  %v10458_v30 = vor.u32 %v13260_v36, %v10455_v17  ;;  %5449 = vmatpush.bf16.msrb.mxu1 %v10202_v29  ;;  %v5170_v29 = vpop.f32.mrf.mxu3 }
 0x275   :  { %v9655_v22 = vld [vmem:[#allocation5 + $0x8a8] sm:$0xf0] }
 0x276   :  { %v13124_v34 = vld [vmem:[#allocation5 + $0xa8c] sm:$0xf]  ;;  %v9658_v40 = vor.u32 %v13060_v21, %v9655_v22  ;;  %5462 = vmatpush.bf16.msrb.mxu2 %v10458_v30  ;;  %v5194_v21 = vpop.f32.mrf.mxu1 }
 0x277   :  { %v9911_v35 = vld [vmem:[#allocation5 + $0xaa8] sm:$0xf0]  ;;  %v14236_v30 = vadd.f32 %v5194_v21, %v5182_v60 }
 0x278   :  { %v13188_v37 = vld [vmem:[#allocation5 + $0xc8c] sm:$0xf]  ;;  %v9914_v54 = vor.u32 %v13124_v34, %v9911_v35  ;;  %5424 = vmatpush.bf16.msra.mxu3 %v9658_v40 }
 0x279   :  { %v10167_v25 = vld [vmem:[#allocation5 + $0xca8] sm:$0xf0]  ;;  %vm6213_vm3 = vcmp.ge.f32.partialorder %v14236_v30, 0.0 }
 0x27a   :  { %v13252_v43 = vld [vmem:[#allocation5 + $0xe8c] sm:$0xf]  ;;  %v10170_v55 = vor.u32 %v13188_v37, %v10167_v25  ;;  %5437 = vmatpush.bf16.msrb.mxu0 %v9914_v54 }
 0x27b   :  { %v10423_v45 = vld [vmem:[#allocation5 + $0xea8] sm:$0xf0] }
 0x27c   :  { %v13052_v52 = vld [vmem:[#allocation5 + $0x84c] sm:$0xf]  ;;  %v10426_v56 = vor.u32 %v13252_v43, %v10423_v45  ;;  %5450 = vmatpush.bf16.msrb.mxu1 %v10170_v55 }
 0x27d   :  { %v9623_v51 = vld [vmem:[#allocation5 + $0x868] sm:$0xf0] }
 0x27e   :  { %v13116_v57 = vld [vmem:[#allocation5 + $0xa4c] sm:$0xf]  ;;  %v9626_v61 = vor.u32 %v13052_v52, %v9623_v51  ;;  %5463 = vmatpush.bf16.msrb.mxu2 %v10426_v56  ;;  %v5196_v4 = vpop.f32.mrf.mxu1 }
 0x27f   :  { %v9879_v58 = vld [vmem:[#allocation5 + $0xa68] sm:$0xf0] }
 0x280   :  { %v13180_v59 = vld [vmem:[#allocation5 + $0xc4c] sm:$0xf]  ;;  %v9882_v5 = vor.u32 %v13116_v57, %v9879_v58  ;;  %5425 = vmatpush.bf16.msra.mxu3 %v9626_v61 }
 0x281   :  { %v10135_v62 = vld [vmem:[#allocation5 + $0xc68] sm:$0xf0] }
 0x282   :  { %v13244_v63 = vld [vmem:[#allocation5 + $0xe4c] sm:$0xf]  ;;  %v10138_v9 = vor.u32 %v13180_v59, %v10135_v62  ;;  %5438 = vmatpush.bf16.msrb.mxu0 %v9882_v5 }
 0x283   :  { %v10391_v0 = vld [vmem:[#allocation5 + $0xe68] sm:$0xf0] }
 0x284   :  { %v13044_v13 = vld [vmem:[#allocation5 + $0x80c] sm:$0xf]  ;;  %v10394_v49 = vor.u32 %v13244_v63, %v10391_v0  ;;  %5451 = vmatpush.bf16.msrb.mxu1 %v10138_v9 }
 0x285   :  { %v9591_v1 = vld [vmem:[#allocation5 + $0x828] sm:$0xf0] }
 0x286   :  { %v13356_v2 = vld [vmem:[#allocation5 + $0x11cc] sm:$0xf]  ;;  %v9594_v15 = vor.u32 %v13044_v13, %v9591_v1  ;;  %5464 = vmatpush.bf16.msrb.mxu2 %v10394_v49 }
 0x287   :  { %v10839_v6 = vld [vmem:[#allocation5 + $0x11e8] sm:$0xf0] }
 0x288   :  { %v13108_v7 = vld [vmem:[#allocation5 + $0xa0c] sm:$0xf]  ;;  %v10842_v22 = vor.u32 %v13356_v2, %v10839_v6  ;;  %5426 = vmatpush.bf16.msra.mxu3 %v9594_v15 }
 0x289   :  { %v9847_v8 = vld [vmem:[#allocation5 + $0xa28] sm:$0xf0] }
 0x28a   :  { %v13172_v10 = vld [vmem:[#allocation5 + $0xc0c] sm:$0xf]  ;;  %v9850_v34 = vor.u32 %v13108_v7, %v9847_v8 }
 0x28b   :  { %v10103_v11 = vld [vmem:[#allocation5 + $0xc28] sm:$0xf0]  ;;  %5427 = vmatmul.bf16.vlgmr.msra.gmra.mxu3 %v14153_v41 }
 0x28c   :  { %v13236_v12 = vld [vmem:[#allocation5 + $0xe0c] sm:$0xf]  ;;  %v10106_v40 = vor.u32 %v13172_v10, %v10103_v11  ;;  %5471 = vmatpush.bf16.msrb.mxu3 %v10842_v22  ;;  %5439 = vmatpush.bf16.msrb.mxu0 %v9850_v34 }
 0x28d   :  { %v10359_v16 = vld [vmem:[#allocation5 + $0xe28] sm:$0xf0] }
 0x28e   :  { %v13420_v36 = vld [vmem:[#allocation5 + $0x13cc] sm:$0xf]  ;;  %v10362_v25 = vor.u32 %v13236_v12, %v10359_v16  ;;  %5452 = vmatpush.bf16.msrb.mxu1 %v10106_v40 }
 0x28f   :  { %v11095_v17 = vld [vmem:[#allocation5 + $0x13e8] sm:$0xf0]  ;;  %5440 = vmatmul.bf16.vlgmr.msrb.gmra.mxu0 %v14157_v44 }
 0x290   :  { %v13484_v23 = vld [vmem:[#allocation5 + $0x15cc] sm:$0xf]  ;;  %v11098_v43 = vor.u32 %v13420_v36, %v11095_v17  ;;  %5465 = vmatpush.bf16.msrb.mxu2 %v10362_v25 }
 0x291   :  { %v11351_v28 = vld [vmem:[#allocation5 + $0x15e8] sm:$0xf0]  ;;  %5453 = vmatmul.bf16.vlgmr.msrb.gmra.mxu1 %v14151_v38 }
 0x292   :  { %v13548_v50 = vld [vmem:[#allocation5 + $0x17cc] sm:$0xf]  ;;  %v11354_v45 = vor.u32 %v13484_v23, %v11351_v28  ;;  %5484 = vmatpush.bf16.msra.mxu0 %v11098_v43 }
 0x293   :  { %v11607_v35 = vld [vmem:[#allocation5 + $0x17e8] sm:$0xf0]  ;;  %5466 = vmatmul.bf16.vlgmr.msrb.gmra.mxu2 %v14155_v42 }
 0x294   :  { %v13348_v37 = vld [vmem:[#allocation5 + $0x118c] sm:$0xf]  ;;  %v11610_v52 = vor.u32 %v13548_v50, %v11607_v35  ;;  %5497 = vmatpush.bf16.msra.mxu1 %v11354_v45  ;;  %v5233_v45 = vpop.f32.mrf.mxu0 }
 0x295   :  { %v10807_v39 = vld [vmem:[#allocation5 + $0x11a8] sm:$0xf0] }
 0x296   :  { %v13412_v46 = vld [vmem:[#allocation5 + $0x138c] sm:$0xf]  ;;  %v10810_v51 = vor.u32 %v13348_v37, %v10807_v39  ;;  %5510 = vmatpush.bf16.msra.mxu2 %v11610_v52  ;;  %v5246_v52 = vpop.f32.mrf.mxu1 }
 0x297   :  { %v11063_v47 = vld [vmem:[#allocation5 + $0x13a8] sm:$0xf0] }
 0x298   :  { %v13476_v53 = vld [vmem:[#allocation5 + $0x158c] sm:$0xf]  ;;  %v11066_v59 = vor.u32 %v13412_v46, %v11063_v47  ;;  %5472 = vmatpush.bf16.msrb.mxu3 %v10810_v51  ;;  %v14242_v46 = vld [vmem:[#allocation7] sm:$0xff] }
 0x299   :  { %v11319_v54 = vld [vmem:[#allocation5 + $0x15a8] sm:$0xf0]  ;;  %v957_v47 = vperm.slane %v14242_v46, 2 }
 0x29a   :  { %v13540_v55 = vld [vmem:[#allocation5 + $0x178c] sm:$0xf]  ;;  %v11322_v60 = vor.u32 %v13476_v53, %v11319_v54  ;;  %5485 = vmatpush.bf16.msra.mxu0 %v11066_v59 }
 0x29b   :  { %v11575_v56 = vld [vmem:[#allocation5 + $0x17a8] sm:$0xf0] }
 0x29c   :  { %v13340_v57 = vld [vmem:[#allocation5 + $0x114c] sm:$0xf]  ;;  %v11578_v63 = vor.u32 %v13540_v55, %v11575_v56  ;;  %5498 = vmatpush.bf16.msra.mxu1 %v11322_v60 }
 0x29d   :  { %v10775_v58 = vld [vmem:[#allocation5 + $0x1168] sm:$0xf0] }
 0x29e   :  { %v13404_v61 = vld [vmem:[#allocation5 + $0x134c] sm:$0xf]  ;;  %v10778_v0 = vor.u32 %v13340_v57, %v10775_v58  ;;  %5511 = vmatpush.bf16.msra.mxu2 %v11578_v63 }
 0x29f   :  { %v11031_v62 = vld [vmem:[#allocation5 + $0x1368] sm:$0xf0] }
 0x2a0   :  { %v13468_v13 = vld [vmem:[#allocation5 + $0x154c] sm:$0xf]  ;;  %v11034_v8 = vor.u32 %v13404_v61, %v11031_v62  ;;  %5473 = vmatpush.bf16.msrb.mxu3 %v10778_v0  ;;  %v3282_v0 = vunpack.c.h.b16 %v14216_v3 }
 0x2a1   :  { %v11287_v1 = vld [vmem:[#allocation5 + $0x1568] sm:$0xf0] }
 0x2a2   :  { %v13532_v2 = vld [vmem:[#allocation5 + $0x174c] sm:$0xf]  ;;  %v11290_v9 = vor.u32 %v13468_v13, %v11287_v1  ;;  %5486 = vmatpush.bf16.msra.mxu0 %v11034_v8  ;;  %v5207_v13 = vpop.f32.mrf.mxu2 }
 0x2a3   :  { %v11543_v5 = vld [vmem:[#allocation5 + $0x1768] sm:$0xf0]  ;;  %v5208_v1 = vadd.f32 %v5207_v13, %v957_v47  ;;  %v12849_v47 = vld [vmem:[#allocation5 + $0x1ec] sm:$0xf0] }
 0x2a4   :  { %v13332_v6 = vld [vmem:[#allocation5 + $0x110c] sm:$0xf]  ;;  %v11546_v11 = vor.u32 %v13532_v2, %v11543_v5  ;;  %5499 = vmatpush.bf16.msra.mxu1 %v11290_v9  ;;  %v12841_v13 = vld [vmem:[#allocation5 + $0x1ac] sm:$0xf0] }
 0x2a5   :  { %v10743_v7 = vld [vmem:[#allocation5 + $0x1128] sm:$0xf0] }
 0x2a6   :  { %v13396_v49 = vld [vmem:[#allocation5 + $0x130c] sm:$0xf]  ;;  %v10746_v12 = vor.u32 %v13332_v6, %v10743_v7  ;;  %5512 = vmatpush.bf16.msra.mxu2 %v11546_v11  ;;  %v5220_v7 = vpop.f32.mrf.mxu3 }
 0x2a7   :  { %v10999_v10 = vld [vmem:[#allocation5 + $0x1328] sm:$0xf0] }
 0x2a8   :  { %v13460_v14 = vld [vmem:[#allocation5 + $0x150c] sm:$0xf]  ;;  %v11002_v22 = vor.u32 %v13396_v49, %v10999_v10  ;;  %5474 = vmatpush.bf16.msrb.mxu3 %v10746_v12  ;;  %v5221_v12 = vadd.f32 %v5220_v7, %v5208_v1  ;;  %v12969_v7 = vld [vmem:[#allocation5 + $0x5ac] sm:$0xf0] }
 0x2a9   :  { %v11255_v15 = vld [vmem:[#allocation5 + $0x1528] sm:$0xf0] }
 0x2aa   :  { %v13524_v16 = vld [vmem:[#allocation5 + $0x170c] sm:$0xf]  ;;  %v11258_v23 = vor.u32 %v13460_v14, %v11255_v15  ;;  %5487 = vmatpush.bf16.msra.mxu0 %v11002_v22 }
 0x2ab   :  { %v11511_v36 = vld [vmem:[#allocation5 + $0x1728] sm:$0xf0] }
 0x2ac   :  { %v13324_v17 = vld [vmem:[#allocation5 + $0x10cc] sm:$0xf]  ;;  %v11514_v29 = vor.u32 %v13524_v16, %v11511_v36  ;;  %5500 = vmatpush.bf16.msra.mxu1 %v11258_v23  ;;  %v4058_v16 = vpack.c.b16 %v3282_v0, %v3282_v0  ;;  %v5235_v36 = vpop.f32.mrf.mxu0  ;;  %v8765_v0 = vld [vmem:[#allocation5 + $0x190] sm:$0xf] }
 0x2ad   :  { %v10711_v21 = vld [vmem:[#allocation5 + $0x10e8] sm:$0xf0]  ;;  %v9245_v36 = vld [vmem:[#allocation5 + $0x550] sm:$0xf] }
 0x2ae   :  { %v13388_v28 = vld [vmem:[#allocation5 + $0x12cc] sm:$0xf]  ;;  %v10714_v34 = vor.u32 %v13324_v17, %v10711_v21  ;;  %5513 = vmatpush.bf16.msra.mxu2 %v11514_v29  ;;  %v5234_v17 = vadd.f32 %v5233_v45, %v5221_v12  ;;  %v5248_v21 = vpop.f32.mrf.mxu1  ;;  %v8797_v45 = vld [vmem:[#allocation5 + $0x1d0] sm:$0xf] }
 0x2af   :  { %v10967_v50 = vld [vmem:[#allocation5 + $0x12e8] sm:$0xf0]  ;;  %v12833_v12 = vld [vmem:[#allocation5 + $0x16c] sm:$0xf0] }
 0x2b0   :  { %v13452_v35 = vld [vmem:[#allocation5 + $0x14cc] sm:$0xf]  ;;  %v10970_v51 = vor.u32 %v13388_v28, %v10967_v50  ;;  %5475 = vmatpush.bf16.msrb.mxu3 %v10714_v34  ;;  %v9501_v21 = vld [vmem:[#allocation5 + $0x750] sm:$0xf] }
 0x2b1   :  { %v11223_v37 = vld [vmem:[#allocation5 + $0x14e8] sm:$0xf0] }
 0x2b2   :  { %v13516_v39 = vld [vmem:[#allocation5 + $0x16cc] sm:$0xf]  ;;  %v11226_v53 = vor.u32 %v13452_v35, %v11223_v37  ;;  %5488 = vmatpush.bf16.msra.mxu0 %v10970_v51  ;;  %v5209_v51 = vpop.f32.mrf.mxu2 }
 0x2b3   :  { %v11479_v40 = vld [vmem:[#allocation5 + $0x16e8] sm:$0xf0] }
 0x2b4   :  { %v13316_v25 = vld [vmem:[#allocation5 + $0x108c] sm:$0xf]  ;;  %v11482_v56 = vor.u32 %v13516_v39, %v11479_v40  ;;  %5501 = vmatpush.bf16.msra.mxu1 %v11226_v53  ;;  %v9053_v53 = vld [vmem:[#allocation5 + $0x3d0] sm:$0xf] }
 0x2b5   :  { %v10679_v43 = vld [vmem:[#allocation5 + $0x10a8] sm:$0xf0] }
 0x2b6   :  { %v13380_v54 = vld [vmem:[#allocation5 + $0x128c] sm:$0xf]  ;;  %v10682_v57 = vor.u32 %v13316_v25, %v10679_v43  ;;  %5514 = vmatpush.bf16.msra.mxu2 %v11482_v56  ;;  %v14246_v25 = vadd.f32 %v5246_v52, %v5234_v17  ;;  %v4846_v43 = vsel %vm4835_vm0, %v4058_v16, 0  ;;  %v12897_v16 = vld [vmem:[#allocation5 + $0x36c] sm:$0xf0] }
 0x2b7   :  { %v10935_v55 = vld [vmem:[#allocation5 + $0x12a8] sm:$0xf0]  ;;  %v12961_v17 = vld [vmem:[#allocation5 + $0x56c] sm:$0xf0] }
 0x2b8   :  { %v13444_v58 = vld [vmem:[#allocation5 + $0x148c] sm:$0xf]  ;;  %v10938_v2 = vor.u32 %v13380_v54, %v10935_v55  ;;  %5476 = vmatpush.bf16.msrb.mxu3 %v10682_v57  ;;  %v12913_v54 = vld [vmem:[#allocation5 + $0x3ec] sm:$0xf0] }
 0x2b9   :  { %v11191_v59 = vld [vmem:[#allocation5 + $0x14a8] sm:$0xf0]  ;;  %v9309_v55 = vld [vmem:[#allocation5 + $0x5d0] sm:$0xf] }
 0x2ba   :  { %v13508_v60 = vld [vmem:[#allocation5 + $0x168c] sm:$0xf]  ;;  %v11194_v4 = vor.u32 %v13444_v58, %v11191_v59  ;;  %5489 = vmatpush.bf16.msra.mxu0 %v10938_v2  ;;  %v12977_v57 = vld [vmem:[#allocation5 + $0x5ec] sm:$0xf0] }
 0x2bb   :  { %v11447_v61 = vld [vmem:[#allocation5 + $0x16a8] sm:$0xf0]  ;;  %v9565_v58 = vld [vmem:[#allocation5 + $0x7d0] sm:$0xf]  ;;  %v9310_v1 = vor.u32 %v12977_v57, %v9309_v55 }
 0x2bc   :  { %v13308_v62 = vld [vmem:[#allocation5 + $0x104c] sm:$0xf]  ;;  %v11450_v8 = vor.u32 %v13508_v60, %v11447_v61  ;;  %5502 = vmatpush.bf16.msra.mxu1 %v11194_v4  ;;  %v13041_v59 = vld [vmem:[#allocation5 + $0x7ec] sm:$0xf0]  ;;  %v5222_v60 = vpop.f32.mrf.mxu3 }
 0x2bd   :  { %v10647_v63 = vld [vmem:[#allocation5 + $0x1068] sm:$0xf0]  ;;  %v9566_v2 = vor.u32 %v13041_v59, %v9565_v58  ;;  %v9021_v4 = vld [vmem:[#allocation5 + $0x390] sm:$0xf] }
 0x2be   :  { %v13372_v5 = vld [vmem:[#allocation5 + $0x124c] sm:$0xf]  ;;  %v10650_v9 = vor.u32 %v13308_v62, %v10647_v63  ;;  %5515 = vmatpush.bf16.msra.mxu2 %v11450_v8  ;;  %v8798_v62 = vor.u32 %v12849_v47, %v8797_v45  ;;  %v9054_v63 = vor.u32 %v12913_v54, %v9053_v53  ;;  %v9533_v8 = vld [vmem:[#allocation5 + $0x790] sm:$0xf] }
 0x2bf   :  { %v10903_v6 = vld [vmem:[#allocation5 + $0x1268] sm:$0xf0]  ;;  %v9469_v45 = vld [vmem:[#allocation5 + $0x710] sm:$0xf] }
 0x2c0   :  { %v13436_v49 = vld [vmem:[#allocation5 + $0x144c] sm:$0xf]  ;;  %v10906_v22 = vor.u32 %v13372_v5, %v10903_v6  ;;  %5477 = vmatpush.bf16.msrb.mxu3 %v10650_v9  ;;  %v12905_v5 = vld [vmem:[#allocation5 + $0x3ac] sm:$0xf0] }
 0x2c1   :  { %v11159_v10 = vld [vmem:[#allocation5 + $0x1468] sm:$0xf0]  ;;  %v9277_v6 = vld [vmem:[#allocation5 + $0x590] sm:$0xf] }
 0x2c2   :  { %v13500_v11 = vld [vmem:[#allocation5 + $0x164c] sm:$0xf]  ;;  %v11162_v23 = vor.u32 %v13436_v49, %v11159_v10  ;;  %5490 = vmatpush.bf16.msra.mxu0 %v10906_v22  ;;  %v13033_v9 = vld [vmem:[#allocation5 + $0x7ac] sm:$0xf0]  ;;  %v8766_v49 = vor.u32 %v12841_v13, %v8765_v0  ;;  %v9022_v10 = vor.u32 %v12905_v5, %v9021_v4  ;;  %v5298_v0 = vpop.f32.mrf.mxu1 }
 0x2c3   :  { %v11415_v14 = vld [vmem:[#allocation5 + $0x1668] sm:$0xf0]  ;;  %v13025_v22 = vld [vmem:[#allocation5 + $0x76c] sm:$0xf0] }
 0x2c4   :  { %v13300_v15 = vld [vmem:[#allocation5 + $0x100c] sm:$0xf]  ;;  %v11418_v34 = vor.u32 %v13500_v11, %v11415_v14  ;;  %5503 = vmatpush.bf16.msra.mxu1 %v11162_v23  ;;  %v8733_v11 = vld [vmem:[#allocation5 + $0x150] sm:$0xf]  ;;  %v9278_v14 = vor.u32 %v12969_v7, %v9277_v6  ;;  %v5259_v7 = vpop.f32.mrf.mxu2 }
 0x2c5   :  { %v10615_v3 = vld [vmem:[#allocation5 + $0x1028] sm:$0xf0]  ;;  %v8734_v23 = vor.u32 %v12833_v12, %v8733_v11  ;;  %v13017_v47 = vld [vmem:[#allocation5 + $0x72c] sm:$0xf0] }
 0x2c6   :  { %v13364_v28 = vld [vmem:[#allocation5 + $0x120c] sm:$0xf]  ;;  %v10618_v35 = vor.u32 %v13300_v15, %v10615_v3  ;;  %5516 = vmatpush.bf16.msra.mxu2 %v11418_v34  ;;  %v9534_v15 = vor.u32 %v13033_v9, %v9533_v8  ;;  %v8989_v3 = vld [vmem:[#allocation5 + $0x350] sm:$0xf]  ;;  %v9246_v34 = vor.u32 %v12961_v17, %v9245_v36  ;;  %v9470_v57 = vor.u32 %v13017_v47, %v9469_v45 }
 0x2c7   :  { %v10871_v50 = vld [vmem:[#allocation5 + $0x1228] sm:$0xf0]  ;;  %v8669_v54 = vld [vmem:[#allocation5 + $0xd0] sm:$0xf] }
 0x2c8   :  { %v13428_v29 = vld [vmem:[#allocation5 + $0x140c] sm:$0xf]  ;;  %v10874_v56 = vor.u32 %v13364_v28, %v10871_v50  ;;  %5478 = vmatpush.bf16.msrb.mxu3 %v10618_v35  ;;  %v8990_v28 = vor.u32 %v12897_v16, %v8989_v3  ;;  %v8701_v50 = vld [vmem:[#allocation5 + $0x110] sm:$0xf]  ;;  %v9502_v35 = vor.u32 %v13025_v22, %v9501_v21 }
 0x2c9   :  { %v11127_v37 = vld [vmem:[#allocation5 + $0x1428] sm:$0xf0]  ;;  %v12817_v55 = vld [vmem:[#allocation5 + $0xec] sm:$0xf0] }
 0x2ca   :  { %v13492_v39 = vld [vmem:[#allocation5 + $0x160c] sm:$0xf]  ;;  %v11130_v61 = vor.u32 %v13428_v29, %v11127_v37  ;;  %5491 = vmatpush.bf16.msra.mxu0 %v10874_v56  ;;  %v12825_v29 = vld [vmem:[#allocation5 + $0x12c] sm:$0xf0]  ;;  %v8670_v13 = vor.u32 %v12817_v55, %v8669_v54 }
 0x2cb   :  { %v11383_v40 = vld [vmem:[#allocation5 + $0x1628] sm:$0xf0]  ;;  %5479 = vmatmul.bf16.vlgmr.msrb.gmra.mxu3 %v14166_v19  ;;  %v8957_v37 = vld [vmem:[#allocation5 + $0x310] sm:$0xf]  ;;  %v8702_v51 = vor.u32 %v12825_v29, %v8701_v50 }
 0x2cc   :  { %v11386_v52 = vor.u32 %v13492_v39, %v11383_v40  ;;  %5530 = vmatpush.bf16.msra.mxu3 %v4846_v43  ;;  %5504 = vmatpush.bf16.msra.mxu1 %v11130_v61  ;;  %v12889_v39 = vld [vmem:[#allocation5 + $0x32c] sm:$0xf0]  ;;  %v5285_v61 = vpop.f32.mrf.mxu0 }
 0x2cd   :  { %5492 = vmatmul.bf16.vlgmr.msra.gmra.mxu0 %v14170_v24  ;;  %v9213_v40 = vld [vmem:[#allocation5 + $0x510] sm:$0xf]  ;;  %v8958_v53 = vor.u32 %v12889_v39, %v8957_v37 }
 0x2ce   :  { %5517 = vmatpush.bf16.msra.mxu2 %v11386_v52  ;;  %5536 = vmatpush.bf16.msrb.mxu0 %v8798_v62  ;;  %v12953_v43 = vld [vmem:[#allocation5 + $0x52c] sm:$0xf0] }
 0x2cf   :  { %5505 = vmatmul.bf16.vlgmr.msra.gmra.mxu1 %v14168_v20  ;;  %v9214_v56 = vor.u32 %v12953_v43, %v9213_v40  ;;  %v8925_v58 = vld [vmem:[#allocation5 + $0x2d0] sm:$0xf]  ;;  %v5300_v40 = vpop.f32.mrf.mxu1 }
 0x2d0   :  { %5549 = vmatpush.bf16.msrb.mxu1 %v9054_v63  ;;  %5575 = vmatpush.bf16.msrb.mxu3 %v9566_v2  ;;  %v12881_v59 = vld [vmem:[#allocation5 + $0x2ec] sm:$0xf0] }
 0x2d1   :  { %5518 = vmatmul.bf16.vlgmr.msra.gmra.mxu2 %v14173_v31  ;;  %v9181_v60 = vld [vmem:[#allocation5 + $0x4d0] sm:$0xf] }
 0x2d2   :  { %5562 = vmatpush.bf16.msrb.mxu2 %v9310_v1  ;;  %5537 = vmatpush.bf16.msrb.mxu0 %v8766_v49  ;;  %v12945_v52 = vld [vmem:[#allocation5 + $0x4ec] sm:$0xf0]  ;;  %v8926_v1 = vor.u32 %v12881_v59, %v8925_v58 }
 0x2d3   :  { %v9437_v62 = vld [vmem:[#allocation5 + $0x6d0] sm:$0xf]  ;;  %v9182_v5 = vor.u32 %v12945_v52, %v9181_v60 }
 0x2d4   :  { %5550 = vmatpush.bf16.msrb.mxu1 %v9022_v10  ;;  %5576 = vmatpush.bf16.msrb.mxu3 %v9534_v15  ;;  %v13009_v63 = vld [vmem:[#allocation5 + $0x6ec] sm:$0xf0]  ;;  %v5260_v10 = vadd.f32 %v5259_v7, %v14246_v25  ;;  %v5272_v15 = vpop.f32.mrf.mxu3 }
 0x2d5   :  { %v8637_v2 = vld [vmem:[#allocation5 + $0x90] sm:$0xf]  ;;  %v9438_v6 = vor.u32 %v13009_v63, %v9437_v62 }
 0x2d6   :  { %5563 = vmatpush.bf16.msrb.mxu2 %v9278_v14  ;;  %5538 = vmatpush.bf16.msrb.mxu0 %v8734_v23  ;;  %v12809_v4 = vld [vmem:[#allocation5 + $0xac] sm:$0xf0]  ;;  %v5273_v3 = vadd.f32 %v5272_v15, %v5260_v10 }
 0x2d7   :  { %v8893_v8 = vld [vmem:[#allocation5 + $0x290] sm:$0xf]  ;;  %v8638_v16 = vor.u32 %v12809_v4, %v8637_v2 }
 0x2d8   :  { %5551 = vmatpush.bf16.msrb.mxu1 %v8990_v28  ;;  %5577 = vmatpush.bf16.msrb.mxu3 %v9502_v35  ;;  %v12873_v9 = vld [vmem:[#allocation5 + $0x2ac] sm:$0xf0]  ;;  %v5286_v25 = vadd.f32 %v5285_v61, %v5273_v3  ;;  %v5261_v61 = vpop.f32.mrf.mxu2 }
 0x2d9   :  { %v9149_v49 = vld [vmem:[#allocation5 + $0x490] sm:$0xf]  ;;  %v8894_v36 = vor.u32 %v12873_v9, %v8893_v8 }
 0x2da   :  { %5564 = vmatpush.bf16.msrb.mxu2 %v9246_v34  ;;  %5539 = vmatpush.bf16.msrb.mxu0 %v8702_v51  ;;  %v12937_v11 = vld [vmem:[#allocation5 + $0x4ac] sm:$0xf0]  ;;  %v5287_v34 = vpop.f32.mrf.mxu0  ;;  %v14256_v45 = vadd.f32 %v5298_v0, %v5286_v25 }
 0x2db   :  { %11630 = vmatmul.msk.bf16.vlgmr.msra.gmra.mxu3 %vm4831_vm1, %v14179_v18  ;;  %v9405_v12 = vld [vmem:[#allocation5 + $0x690] sm:$0xf]  ;;  %v9150_v22 = vor.u32 %v12937_v11, %v9149_v49 }
 0x2dc   :  { %5552 = vmatpush.bf16.msrb.mxu1 %v8958_v53  ;;  %5578 = vmatpush.bf16.msrb.mxu3 %v9470_v57  ;;  %v13001_v14 = vld [vmem:[#allocation5 + $0x6ac] sm:$0xf0]  ;;  %v5274_v2 = vpop.f32.mrf.mxu3 }
 0x2dd   :  { %v8605_v17 = vld [vmem:[#allocation5 + $0x50] sm:$0xf]  ;;  %v9406_v23 = vor.u32 %v13001_v14, %v9405_v12 }
 0x2de   :  { %5565 = vmatpush.bf16.msrb.mxu2 %v9214_v56  ;;  %5540 = vmatpush.bf16.msrb.mxu0 %v8670_v13  ;;  %v12801_v21 = vld [vmem:[#allocation5 + $0x6c] sm:$0xf0] }
 0x2df   :  { %v8861_v28 = vld [vmem:[#allocation5 + $0x250] sm:$0xf]  ;;  %v8606_v47 = vor.u32 %v12801_v21, %v8605_v17 }
 0x2e0   :  { %5553 = vmatpush.bf16.msrb.mxu1 %v8926_v1  ;;  %5579 = vmatpush.bf16.msrb.mxu3 %v9438_v6  ;;  %v12865_v50 = vld [vmem:[#allocation5 + $0x26c] sm:$0xf0] }
 0x2e1   :  { %v9117_v29 = vld [vmem:[#allocation5 + $0x450] sm:$0xf]  ;;  %v8862_v51 = vor.u32 %v12865_v50, %v8861_v28 }
 0x2e2   :  { %5566 = vmatpush.bf16.msrb.mxu2 %v9182_v5  ;;  %v12929_v35 = vld [vmem:[#allocation5 + $0x46c] sm:$0xf0]  ;;  %5541 = vmatpush.bf16.msrb.mxu0 %v8638_v16 }
 0x2e3   :  { %v9373_v37 = vld [vmem:[#allocation5 + $0x650] sm:$0xf]  ;;  %v9118_v56 = vor.u32 %v12929_v35, %v9117_v29 }
 0x2e4   :  { %v12993_v39 = vld [vmem:[#allocation5 + $0x66c] sm:$0xf0]  ;;  %5554 = vmatpush.bf16.msrb.mxu1 %v8894_v36  ;;  %5580 = vmatpush.bf16.msrb.mxu3 %v9406_v23 }
 0x2e5   :  { %v8573_v43 = vld [vmem:[#allocation5 + $0x10] sm:$0xf]  ;;  %v9374_v57 = vor.u32 %v12993_v39, %v9373_v37 }
 0x2e6   :  { %v12793_v53 = vld [vmem:[#allocation5 + $0x2c] sm:$0xf0]  ;;  %5567 = vmatpush.bf16.msrb.mxu2 %v9150_v22  ;;  %5542 = vmatpush.bf16.msrb.mxu0 %v8606_v47 }
 0x2e7   :  { %v8829_v54 = vld [vmem:[#allocation5 + $0x210] sm:$0xf]  ;;  %v8574_v4 = vor.u32 %v12793_v53, %v8573_v43 }
 0x2e8   :  { %v12857_v55 = vld [vmem:[#allocation5 + $0x22c] sm:$0xf0]  ;;  %5555 = vmatpush.bf16.msrb.mxu1 %v8862_v51  ;;  %5581 = vmatpush.bf16.msrb.mxu3 %v9374_v57 }
 0x2e9   :  { %v9085_v58 = vld [vmem:[#allocation5 + $0x410] sm:$0xf]  ;;  %v8830_v5 = vor.u32 %v12857_v55, %v8829_v54 }
 0x2ea   :  { %v12921_v59 = vld [vmem:[#allocation5 + $0x42c] sm:$0xf0]  ;;  %5568 = vmatpush.bf16.msrb.mxu2 %v9118_v56  ;;  %5543 = vmatpush.bf16.msrb.mxu0 %v8574_v4  ;;  %v5337_v4 = vpop.f32.mrf.mxu0 }
 0x2eb   :  { %v9341_v60 = vld [vmem:[#allocation5 + $0x610] sm:$0xf]  ;;  %v9086_v9 = vor.u32 %v12921_v59, %v9085_v58 }
 0x2ec   :  { %v12985_v52 = vld [vmem:[#allocation5 + $0x62c] sm:$0xf0]  ;;  %5556 = vmatpush.bf16.msrb.mxu1 %v8830_v5 }
 0x2ed   :  { %v9821_v62 = vld [vmem:[#allocation5 + $0x9d0] sm:$0xf]  ;;  %v9342_v49 = vor.u32 %v12985_v52, %v9341_v60  ;;  %5544 = vmatmul.bf16.vlgmr.msrb.gmra.mxu0 %v14141_v27 }
 0x2ee   :  { %v13105_v63 = vld [vmem:[#allocation5 + $0x9ec] sm:$0xf0]  ;;  %5569 = vmatpush.bf16.msrb.mxu2 %v9086_v9 }
 0x2ef   :  { %v10077_v13 = vld [vmem:[#allocation5 + $0xbd0] sm:$0xf]  ;;  %v9822_v10 = vor.u32 %v13105_v63, %v9821_v62  ;;  %5582 = vmatpush.bf16.msrb.mxu3 %v9342_v49  ;;  %5557 = vmatmul.bf16.vlgmr.msrb.gmra.mxu1 %v14145_v33  ;;  %v5350_v49 = vpop.f32.mrf.mxu1 }
 0x2f0   :  { %v13169_v1 = vld [vmem:[#allocation5 + $0xbec] sm:$0xf0] }
 0x2f1   :  { %v10333_v0 = vld [vmem:[#allocation5 + $0xdd0] sm:$0xf]  ;;  %v10078_v11 = vor.u32 %v13169_v1, %v10077_v13  ;;  %5588 = vmatpush.bf16.msra.mxu0 %v9822_v10  ;;  %5570 = vmatmul.bf16.vlgmr.msrb.gmra.mxu2 %v14139_v26 }
 0x2f2   :  { %v13233_v6 = vld [vmem:[#allocation5 + $0xdec] sm:$0xf0]  ;;  %5583 = vmatmul.bf16.vlgmr.msrb.gmra.mxu3 %v14143_v32 }
 0x2f3   :  { %v10589_v7 = vld [vmem:[#allocation5 + $0xfd0] sm:$0xf]  ;;  %v10334_v15 = vor.u32 %v13233_v6, %v10333_v0  ;;  %5601 = vmatpush.bf16.msra.mxu1 %v10078_v11 }
 0x2f4   :  { %v13297_v8 = vld [vmem:[#allocation5 + $0xfec] sm:$0xf0] }
 0x2f5   :  { %v9789_v12 = vld [vmem:[#allocation5 + $0x990] sm:$0xf]  ;;  %v10590_v3 = vor.u32 %v13297_v8, %v10589_v7  ;;  %5614 = vmatpush.bf16.msra.mxu2 %v10334_v15 }
 0x2f6   :  { %v13097_v14 = vld [vmem:[#allocation5 + $0x9ac] sm:$0xf0] }
 0x2f7   :  { %v10045_v16 = vld [vmem:[#allocation5 + $0xb90] sm:$0xf]  ;;  %v9790_v28 = vor.u32 %v13097_v14, %v9789_v12  ;;  %5627 = vmatpush.bf16.msra.mxu3 %v10590_v3  ;;  %v5311_v14 = vpop.f32.mrf.mxu2 }
 0x2f8   :  { %v13161_v36 = vld [vmem:[#allocation5 + $0xbac] sm:$0xf0]  ;;  %v5312_v15 = vadd.f32 %v5311_v14, %v14256_v45 }
 0x2f9   :  { %v10301_v17 = vld [vmem:[#allocation5 + $0xd90] sm:$0xf]  ;;  %v10046_v50 = vor.u32 %v13161_v36, %v10045_v16  ;;  %5589 = vmatpush.bf16.msra.mxu0 %v9790_v28 }
 0x2fa   :  { %v13225_v21 = vld [vmem:[#allocation5 + $0xdac] sm:$0xf0] }
 0x2fb   :  { %v10557_v22 = vld [vmem:[#allocation5 + $0xf90] sm:$0xf]  ;;  %v10302_v25 = vor.u32 %v13225_v21, %v10301_v17  ;;  %5602 = vmatpush.bf16.msra.mxu1 %v10046_v50  ;;  %v5324_v21 = vpop.f32.mrf.mxu3 }
 0x2fc   :  { %v13289_v23 = vld [vmem:[#allocation5 + $0xfac] sm:$0xf0] }
 0x2fd   :  { %v9757_v29 = vld [vmem:[#allocation5 + $0x950] sm:$0xf]  ;;  %v10558_v35 = vor.u32 %v13289_v23, %v10557_v22  ;;  %5615 = vmatpush.bf16.msra.mxu2 %v10302_v25 }
 0x2fe   :  { %v13089_v34 = vld [vmem:[#allocation5 + $0x96c] sm:$0xf0] }
 0x2ff   :  { %v10013_v37 = vld [vmem:[#allocation5 + $0xb50] sm:$0xf]  ;;  %v9758_v53 = vor.u32 %v13089_v34, %v9757_v29  ;;  %5628 = vmatpush.bf16.msra.mxu3 %v10558_v35  ;;  %v5325_v34 = vadd.f32 %v5324_v21, %v5312_v15 }
 0x300   :  { %v13153_v39 = vld [vmem:[#allocation5 + $0xb6c] sm:$0xf0] }
 0x301   :  { %v10269_v40 = vld [vmem:[#allocation5 + $0xd50] sm:$0xf]  ;;  %v10014_v54 = vor.u32 %v13153_v39, %v10013_v37  ;;  %5590 = vmatpush.bf16.msra.mxu0 %v9758_v53  ;;  %v5338_v39 = vadd.f32 %v5337_v4, %v5325_v34 }
 0x302   :  { %v13217_v43 = vld [vmem:[#allocation5 + $0xd6c] sm:$0xf0] }
 0x303   :  { %v10525_v47 = vld [vmem:[#allocation5 + $0xf50] sm:$0xf]  ;;  %v10270_v57 = vor.u32 %v13217_v43, %v10269_v40  ;;  %5603 = vmatpush.bf16.msra.mxu1 %v10014_v54 }
 0x304   :  { %v13281_v51 = vld [vmem:[#allocation5 + $0xf6c] sm:$0xf0] }
 0x305   :  { %v9725_v55 = vld [vmem:[#allocation5 + $0x910] sm:$0xf]  ;;  %v10526_v58 = vor.u32 %v13281_v51, %v10525_v47  ;;  %5616 = vmatpush.bf16.msra.mxu2 %v10270_v57  ;;  %v5339_v51 = vpop.f32.mrf.mxu0 }
 0x306   :  { %v13081_v56 = vld [vmem:[#allocation5 + $0x92c] sm:$0xf0] }
 0x307   :  { %v9981_v59 = vld [vmem:[#allocation5 + $0xb10] sm:$0xf]  ;;  %v9726_v13 = vor.u32 %v13081_v56, %v9725_v55  ;;  %5629 = vmatpush.bf16.msra.mxu3 %v10526_v58  ;;  %v5352_v58 = vpop.f32.mrf.mxu1 }
 0x308   :  { %v13145_v60 = vld [vmem:[#allocation5 + $0xb2c] sm:$0xf0] }
 0x309   :  { %v10237_v61 = vld [vmem:[#allocation5 + $0xd10] sm:$0xf]  ;;  %v9982_v1 = vor.u32 %v13145_v60, %v9981_v59  ;;  %5591 = vmatpush.bf16.msra.mxu0 %v9726_v13  ;;  %v5351_v59 = vadd.f32 %v5350_v49, %v5338_v39  ;;  %v5326_v49 = vpop.f32.mrf.mxu3 }
 0x30a   :  { %v13209_v52 = vld [vmem:[#allocation5 + $0xd2c] sm:$0xf0] }
 0x30b   :  { %v10493_v62 = vld [vmem:[#allocation5 + $0xf10] sm:$0xf]  ;;  %v10238_v5 = vor.u32 %v13209_v52, %v10237_v61  ;;  %5604 = vmatpush.bf16.msra.mxu1 %v9982_v1 }
 0x30c   :  { %v13273_v63 = vld [vmem:[#allocation5 + $0xf2c] sm:$0xf0] }
 0x30d   :  { %v9693_v0 = vld [vmem:[#allocation5 + $0x8d0] sm:$0xf]  ;;  %v10494_v6 = vor.u32 %v13273_v63, %v10493_v62  ;;  %5617 = vmatpush.bf16.msra.mxu2 %v10238_v5  ;;  %v5313_v62 = vpop.f32.mrf.mxu2 }
 0x30e   :  { %v13073_v2 = vld [vmem:[#allocation5 + $0x8ec] sm:$0xf0] }
 0x30f   :  { %v9949_v7 = vld [vmem:[#allocation5 + $0xad0] sm:$0xf]  ;;  %v9694_v3 = vor.u32 %v13073_v2, %v9693_v0  ;;  %5630 = vmatpush.bf16.msra.mxu3 %v10494_v6 }
 0x310   :  { %v13137_v8 = vld [vmem:[#allocation5 + $0xaec] sm:$0xf0] }
 0x311   :  { %v10205_v9 = vld [vmem:[#allocation5 + $0xcd0] sm:$0xf]  ;;  %v9950_v16 = vor.u32 %v13137_v8, %v9949_v7  ;;  %5592 = vmatpush.bf16.msra.mxu0 %v9694_v3 }
 0x312   :  { %v13201_v10 = vld [vmem:[#allocation5 + $0xcec] sm:$0xf0] }
 0x313   :  { %v10461_v11 = vld [vmem:[#allocation5 + $0xed0] sm:$0xf]  ;;  %v10206_v22 = vor.u32 %v13201_v10, %v10205_v9  ;;  %5605 = vmatpush.bf16.msra.mxu1 %v9950_v16 }
 0x314   :  { %v13265_v12 = vld [vmem:[#allocation5 + $0xeec] sm:$0xf0] }
 0x315   :  { %v9661_v36 = vld [vmem:[#allocation5 + $0x890] sm:$0xf]  ;;  %v10462_v23 = vor.u32 %v13265_v12, %v10461_v11  ;;  %5618 = vmatpush.bf16.msra.mxu2 %v10206_v22  ;;  %v5363_v39 = vpop.f32.mrf.mxu2 }
 0x316   :  { %v13065_v17 = vld [vmem:[#allocation5 + $0x8ac] sm:$0xf0] }
 0x317   :  { %v9917_v28 = vld [vmem:[#allocation5 + $0xa90] sm:$0xf]  ;;  %v9662_v45 = vor.u32 %v13065_v17, %v9661_v36  ;;  %5631 = vmatpush.bf16.msra.mxu3 %v10462_v23 }
 0x318   :  { %v13129_v50 = vld [vmem:[#allocation5 + $0xaac] sm:$0xf0] }
 0x319   :  { %v10173_v29 = vld [vmem:[#allocation5 + $0xc90] sm:$0xf]  ;;  %v9918_v40 = vor.u32 %v13129_v50, %v9917_v28  ;;  %5593 = vmatpush.bf16.msra.mxu0 %v9662_v45 }
 0x31a   :  { %v13193_v25 = vld [vmem:[#allocation5 + $0xcac] sm:$0xf0] }
 0x31b   :  { %v10429_v35 = vld [vmem:[#allocation5 + $0xe90] sm:$0xf]  ;;  %v10174_v53 = vor.u32 %v13193_v25, %v10173_v29  ;;  %5606 = vmatpush.bf16.msra.mxu1 %v9918_v40 }
 0x31c   :  { %v13257_v37 = vld [vmem:[#allocation5 + $0xeac] sm:$0xf0] }
 0x31d   :  { %v9629_v43 = vld [vmem:[#allocation5 + $0x850] sm:$0xf]  ;;  %v10430_v54 = vor.u32 %v13257_v37, %v10429_v35  ;;  %5619 = vmatpush.bf16.msra.mxu2 %v10174_v53 }
 0x31e   :  { %v13057_v47 = vld [vmem:[#allocation5 + $0x86c] sm:$0xf0] }
 0x31f   :  { %v9885_v55 = vld [vmem:[#allocation5 + $0xa50] sm:$0xf]  ;;  %v9630_v13 = vor.u32 %v13057_v47, %v9629_v43  ;;  %5632 = vmatpush.bf16.msra.mxu3 %v10430_v54  ;;  %v14263_v47 = vadd.f32 %v5363_v39, %v5351_v59 }
 0x320   :  { %v13121_v56 = vld [vmem:[#allocation5 + $0xa6c] sm:$0xf0] }
 0x321   :  { %v10141_v57 = vld [vmem:[#allocation5 + $0xc50] sm:$0xf]  ;;  %v9886_v1 = vor.u32 %v13121_v56, %v9885_v55  ;;  %5594 = vmatpush.bf16.msra.mxu0 %v9630_v13  ;;  %vm6214_vm4 = vcmp.ge.f32.partialorder %v14263_v47, 0.0 }
 0x322   :  { %v13185_v60 = vld [vmem:[#allocation5 + $0xc6c] sm:$0xf0] }
 0x323   :  { %v10397_v61 = vld [vmem:[#allocation5 + $0xe50] sm:$0xf]  ;;  %v10142_v5 = vor.u32 %v13185_v60, %v10141_v57  ;;  %5607 = vmatpush.bf16.msra.mxu1 %v9886_v1 }
 0x324   :  { %v13249_v52 = vld [vmem:[#allocation5 + $0xe6c] sm:$0xf0] }
 0x325   :  { %v9597_v63 = vld [vmem:[#allocation5 + $0x810] sm:$0xf]  ;;  %v10398_v6 = vor.u32 %v13249_v52, %v10397_v61  ;;  %5620 = vmatpush.bf16.msra.mxu2 %v10142_v5 }
 0x326   :  { %v13049_v0 = vld [vmem:[#allocation5 + $0x82c] sm:$0xf0] }
 0x327   :  { %v9853_v2 = vld [vmem:[#allocation5 + $0xa10] sm:$0xf]  ;;  %v9598_v16 = vor.u32 %v13049_v0, %v9597_v63  ;;  %5633 = vmatpush.bf16.msra.mxu3 %v10398_v6 }
 0x328   :  { %v13113_v4 = vld [vmem:[#allocation5 + $0xa2c] sm:$0xf0] }
 0x329   :  { %v10109_v7 = vld [vmem:[#allocation5 + $0xc10] sm:$0xf]  ;;  %v9854_v36 = vor.u32 %v13113_v4, %v9853_v2  ;;  %5595 = vmatpush.bf16.msra.mxu0 %v9598_v16 }
 0x32a   :  { %v13177_v8 = vld [vmem:[#allocation5 + $0xc2c] sm:$0xf0] }
 0x32b   :  { %v10365_v9 = vld [vmem:[#allocation5 + $0xe10] sm:$0xf]  ;;  %v10110_v23 = vor.u32 %v13177_v8, %v10109_v7  ;;  %5608 = vmatpush.bf16.msra.mxu1 %v9854_v36 }
 0x32c   :  { %v13241_v10 = vld [vmem:[#allocation5 + $0xe2c] sm:$0xf0]  ;;  %5596 = vmatmul.bf16.vlgmr.msra.gmra.mxu0 %v14153_v41 }
 0x32d   :  { %v10845_v11 = vld [vmem:[#allocation5 + $0x11d0] sm:$0xf]  ;;  %v10366_v28 = vor.u32 %v13241_v10, %v10365_v9  ;;  %5621 = vmatpush.bf16.msra.mxu2 %v10110_v23  ;;  %v5365_v10 = vpop.f32.mrf.mxu2 }
 0x32e   :  { %v13361_v12 = vld [vmem:[#allocation5 + $0x11ec] sm:$0xf0]  ;;  %5609 = vmatmul.bf16.vlgmr.msra.gmra.mxu1 %v14157_v44 }
 0x32f   :  { %v11101_v14 = vld [vmem:[#allocation5 + $0x13d0] sm:$0xf]  ;;  %v10846_v50 = vor.u32 %v13361_v12, %v10845_v11  ;;  %5634 = vmatpush.bf16.msra.mxu3 %v10366_v28 }
 0x330   :  { %v13425_v15 = vld [vmem:[#allocation5 + $0x13ec] sm:$0xf0]  ;;  %5622 = vmatmul.bf16.vlgmr.msra.gmra.mxu2 %v14151_v38 }
 0x331   :  { %v11357_v3 = vld [vmem:[#allocation5 + $0x15d0] sm:$0xf]  ;;  %v11102_v29 = vor.u32 %v13425_v15, %v11101_v14  ;;  %5640 = vmatpush.bf16.msrb.mxu0 %v10846_v50  ;;  %v5389_v15 = vpop.f32.mrf.mxu0 }
 0x332   :  { %v13489_v17 = vld [vmem:[#allocation5 + $0x15ec] sm:$0xf0]  ;;  %5635 = vmatmul.bf16.vlgmr.msra.gmra.mxu3 %v14155_v42 }
 0x333   :  { %v11613_v21 = vld [vmem:[#allocation5 + $0x17d0] sm:$0xf]  ;;  %v11358_v35 = vor.u32 %v13489_v17, %v11357_v3  ;;  %5653 = vmatpush.bf16.msrb.mxu1 %v11102_v29  ;;  %v5402_v29 = vpop.f32.mrf.mxu1 }
 0x334   :  { %v13553_v22 = vld [vmem:[#allocation5 + $0x17ec] sm:$0xf0] }
 0x335   :  { %v10813_v34 = vld [vmem:[#allocation5 + $0x1190] sm:$0xf]  ;;  %v11614_v37 = vor.u32 %v13553_v22, %v11613_v21  ;;  %5666 = vmatpush.bf16.msrb.mxu2 %v11358_v35 }
 0x336   :  { %v13353_v25 = vld [vmem:[#allocation5 + $0x11ac] sm:$0xf0] }
 0x337   :  { %v11069_v45 = vld [vmem:[#allocation5 + $0x1390] sm:$0xf]  ;;  %v10814_v55 = vor.u32 %v13353_v25, %v10813_v34  ;;  %5679 = vmatpush.bf16.msrb.mxu3 %v11614_v37  ;;  %v958_v37 = vperm.slane %v14242_v46, 3 }
 0x338   :  { %v13417_v40 = vld [vmem:[#allocation5 + $0x13ac] sm:$0xf0] }
 0x339   :  { %v11325_v43 = vld [vmem:[#allocation5 + $0x1590] sm:$0xf]  ;;  %v11070_v56 = vor.u32 %v13417_v40, %v11069_v45  ;;  %5641 = vmatpush.bf16.msrb.mxu0 %v10814_v55  ;;  %v5391_v46 = vpop.f32.mrf.mxu0 }
 0x33a   :  { %v13481_v51 = vld [vmem:[#allocation5 + $0x15ac] sm:$0xf0] }
 0x33b   :  { %v11581_v53 = vld [vmem:[#allocation5 + $0x1790] sm:$0xf]  ;;  %v11326_v60 = vor.u32 %v13481_v51, %v11325_v43  ;;  %5654 = vmatpush.bf16.msrb.mxu1 %v11070_v56 }
 0x33c   :  { %v13545_v54 = vld [vmem:[#allocation5 + $0x17ac] sm:$0xf0] }
 0x33d   :  { %v10781_v57 = vld [vmem:[#allocation5 + $0x1150] sm:$0xf]  ;;  %v11582_v61 = vor.u32 %v13545_v54, %v11581_v53  ;;  %5667 = vmatpush.bf16.msrb.mxu2 %v11326_v60 }
 0x33e   :  { %v13345_v58 = vld [vmem:[#allocation5 + $0x116c] sm:$0xf0] }
 0x33f   :  { %v11037_v52 = vld [vmem:[#allocation5 + $0x1350] sm:$0xf]  ;;  %v10782_v0 = vor.u32 %v13345_v58, %v10781_v57  ;;  %5680 = vmatpush.bf16.msrb.mxu3 %v11582_v61  ;;  %v5376_v61 = vpop.f32.mrf.mxu3 }
 0x340   :  { %v13409_v62 = vld [vmem:[#allocation5 + $0x136c] sm:$0xf0] }
 0x341   :  { %v11293_v63 = vld [vmem:[#allocation5 + $0x1550] sm:$0xf]  ;;  %v11038_v2 = vor.u32 %v13409_v62, %v11037_v52  ;;  %5642 = vmatpush.bf16.msrb.mxu0 %v10782_v0  ;;  %v5415_v52 = vpop.f32.mrf.mxu2  ;;  %v5377_v62 = vadd.f32 %v5376_v61, %v958_v37 }
 0x342   :  { %v13473_v59 = vld [vmem:[#allocation5 + $0x156c] sm:$0xf0] }
 0x343   :  { %v11549_v13 = vld [vmem:[#allocation5 + $0x1750] sm:$0xf]  ;;  %v11294_v6 = vor.u32 %v13473_v59, %v11293_v63  ;;  %5655 = vmatpush.bf16.msrb.mxu1 %v11038_v2 }
 0x344   :  { %v13537_v1 = vld [vmem:[#allocation5 + $0x176c] sm:$0xf0] }
 0x345   :  { %v10749_v4 = vld [vmem:[#allocation5 + $0x1110] sm:$0xf]  ;;  %v11550_v7 = vor.u32 %v13537_v1, %v11549_v13  ;;  %5668 = vmatpush.bf16.msrb.mxu2 %v11294_v6 }
 0x346   :  { %v13337_v5 = vld [vmem:[#allocation5 + $0x112c] sm:$0xf0] }
 0x347   :  { %v11005_v8 = vld [vmem:[#allocation5 + $0x1310] sm:$0xf]  ;;  %v10750_v3 = vor.u32 %v13337_v5, %v10749_v4  ;;  %5681 = vmatpush.bf16.msrb.mxu3 %v11550_v7  ;;  %v5378_v37 = vpop.f32.mrf.mxu3 }
 0x348   :  { %v13401_v9 = vld [vmem:[#allocation5 + $0x132c] sm:$0xf0]  ;;  %v12949_v37 = vld [vmem:[#allocation5 + $0x514] sm:$0xf] }
 0x349   :  { %v11261_v49 = vld [vmem:[#allocation5 + $0x1510] sm:$0xf]  ;;  %v11006_v16 = vor.u32 %v13401_v9, %v11005_v8  ;;  %5643 = vmatpush.bf16.msrb.mxu0 %v10750_v3  ;;  %v5390_v8 = vadd.f32 %v5389_v15, %v5377_v62  ;;  %v5404_v9 = vpop.f32.mrf.mxu1  ;;  %v9567_v62 = vld [vmem:[#allocation5 + $0x7f0] sm:$0xf0] }
 0x34a   :  { %v13465_v11 = vld [vmem:[#allocation5 + $0x152c] sm:$0xf0] }
 0x34b   :  { %v11517_v12 = vld [vmem:[#allocation5 + $0x1710] sm:$0xf]  ;;  %v11262_v21 = vor.u32 %v13465_v11, %v11261_v49  ;;  %5656 = vmatpush.bf16.msrb.mxu1 %v11006_v16 }
 0x34c   :  { %v13529_v14 = vld [vmem:[#allocation5 + $0x172c] sm:$0xf0] }
 0x34d   :  { %v10717_v36 = vld [vmem:[#allocation5 + $0x10d0] sm:$0xf]  ;;  %v11518_v22 = vor.u32 %v13529_v14, %v11517_v12  ;;  %5669 = vmatpush.bf16.msrb.mxu2 %v11262_v21  ;;  %v5403_v12 = vadd.f32 %v5402_v29, %v5390_v8  ;;  %v9535_v8 = vld [vmem:[#allocation5 + $0x7b0] sm:$0xf0] }
 0x34e   :  { %v13329_v17 = vld [vmem:[#allocation5 + $0x10ec] sm:$0xf0] }
 0x34f   :  { %v10973_v23 = vld [vmem:[#allocation5 + $0x12d0] sm:$0xf]  ;;  %v10718_v39 = vor.u32 %v13329_v17, %v10717_v36  ;;  %5682 = vmatpush.bf16.msrb.mxu3 %v11518_v22 }
 0x350   :  { %v13393_v28 = vld [vmem:[#allocation5 + $0x12ec] sm:$0xf0] }
 0x351   :  { %v11229_v50 = vld [vmem:[#allocation5 + $0x14d0] sm:$0xf]  ;;  %v10974_v45 = vor.u32 %v13393_v28, %v10973_v23  ;;  %5644 = vmatpush.bf16.msrb.mxu0 %v10718_v39  ;;  %v5417_v39 = vpop.f32.mrf.mxu2 }
 0x352   :  { %v13457_v34 = vld [vmem:[#allocation5 + $0x14ec] sm:$0xf0]  ;;  %v9215_v39 = vld [vmem:[#allocation5 + $0x530] sm:$0xf0] }
 0x353   :  { %v11485_v25 = vld [vmem:[#allocation5 + $0x16d0] sm:$0xf]  ;;  %v11230_v51 = vor.u32 %v13457_v34, %v11229_v50  ;;  %5657 = vmatpush.bf16.msrb.mxu1 %v10974_v45  ;;  %v14273_v34 = vadd.f32 %v5415_v52, %v5403_v12  ;;  %v8799_v45 = vld [vmem:[#allocation5 + $0x1f0] sm:$0xf0] }
 0x354   :  { %v13521_v35 = vld [vmem:[#allocation5 + $0x16ec] sm:$0xf0]  ;;  %v13037_v52 = vld [vmem:[#allocation5 + $0x7d4] sm:$0xf] }
 0x355   :  { %v10685_v40 = vld [vmem:[#allocation5 + $0x1090] sm:$0xf]  ;;  %v11486_v53 = vor.u32 %v13521_v35, %v11485_v25  ;;  %5670 = vmatpush.bf16.msrb.mxu2 %v11230_v51  ;;  %v12845_v35 = vld [vmem:[#allocation5 + $0x1d4] sm:$0xf] }
 0x356   :  { %v13321_v43 = vld [vmem:[#allocation5 + $0x10ac] sm:$0xf0]  ;;  %v8735_v12 = vld [vmem:[#allocation5 + $0x170] sm:$0xf0] }
 0x357   :  { %v10941_v54 = vld [vmem:[#allocation5 + $0x1290] sm:$0xf]  ;;  %v10686_v63 = vor.u32 %v13321_v43, %v10685_v40  ;;  %5683 = vmatpush.bf16.msrb.mxu3 %v11486_v53  ;;  %v12909_v40 = vld [vmem:[#allocation5 + $0x3d4] sm:$0xf] }
 0x358   :  { %v13385_v55 = vld [vmem:[#allocation5 + $0x12ac] sm:$0xf0]  ;;  %v9055_v43 = vld [vmem:[#allocation5 + $0x3f0] sm:$0xf0] }
 0x359   :  { %v11197_v56 = vld [vmem:[#allocation5 + $0x1490] sm:$0xf]  ;;  %v10942_v59 = vor.u32 %v13385_v55, %v10941_v54  ;;  %5645 = vmatpush.bf16.msrb.mxu0 %v10686_v63  ;;  %v12973_v54 = vld [vmem:[#allocation5 + $0x5d4] sm:$0xf]  ;;  %v9058_v61 = vor.u32 %v12909_v40, %v9055_v43 }
 0x35a   :  { %v13449_v57 = vld [vmem:[#allocation5 + $0x14ac] sm:$0xf0]  ;;  %v9311_v55 = vld [vmem:[#allocation5 + $0x5f0] sm:$0xf0] }
 0x35b   :  { %v11453_v58 = vld [vmem:[#allocation5 + $0x1690] sm:$0xf]  ;;  %v11198_v2 = vor.u32 %v13449_v57, %v11197_v56  ;;  %5658 = vmatpush.bf16.msrb.mxu1 %v10942_v59  ;;  %v9314_v46 = vor.u32 %v12973_v54, %v9311_v55  ;;  %v12837_v63 = vld [vmem:[#allocation5 + $0x194] sm:$0xf]  ;;  %v5454_v54 = vpop.f32.mrf.mxu1 }
 0x35c   :  { %v13513_v60 = vld [vmem:[#allocation5 + $0x16ac] sm:$0xf0]  ;;  %v8767_v59 = vld [vmem:[#allocation5 + $0x1b0] sm:$0xf0] }
 0x35d   :  { %v10653_v13 = vld [vmem:[#allocation5 + $0x1050] sm:$0xf]  ;;  %v11454_v4 = vor.u32 %v13513_v60, %v11453_v58  ;;  %5671 = vmatpush.bf16.msrb.mxu2 %v11198_v2  ;;  %v8802_v60 = vor.u32 %v12845_v35, %v8799_v45  ;;  %v9279_v2 = vld [vmem:[#allocation5 + $0x5b0] sm:$0xf0] }
 0x35e   :  { %v13313_v1 = vld [vmem:[#allocation5 + $0x106c] sm:$0xf0]  ;;  %v8959_v35 = vld [vmem:[#allocation5 + $0x330] sm:$0xf0] }
 0x35f   :  { %v10909_v0 = vld [vmem:[#allocation5 + $0x1250] sm:$0xf]  ;;  %v10654_v14 = vor.u32 %v13313_v1, %v10653_v13  ;;  %5684 = vmatpush.bf16.msrb.mxu3 %v11454_v4  ;;  %v12901_v13 = vld [vmem:[#allocation5 + $0x394] sm:$0xf] }
 0x360   :  { %v13377_v5 = vld [vmem:[#allocation5 + $0x126c] sm:$0xf0]  ;;  %v9023_v1 = vld [vmem:[#allocation5 + $0x3b0] sm:$0xf0] }
 0x361   :  { %v11165_v6 = vld [vmem:[#allocation5 + $0x1450] sm:$0xf]  ;;  %v10910_v3 = vor.u32 %v13377_v5, %v10909_v0  ;;  %5646 = vmatpush.bf16.msrb.mxu0 %v10654_v14  ;;  %v12965_v0 = vld [vmem:[#allocation5 + $0x594] sm:$0xf]  ;;  %v9570_v5 = vor.u32 %v13037_v52, %v9567_v62  ;;  %v9026_v9 = vor.u32 %v12901_v13, %v9023_v1 }
 0x362   :  { %v13441_v7 = vld [vmem:[#allocation5 + $0x146c] sm:$0xf0]  ;;  %v12893_v14 = vld [vmem:[#allocation5 + $0x354] sm:$0xf] }
 0x363   :  { %v11421_v49 = vld [vmem:[#allocation5 + $0x1650] sm:$0xf]  ;;  %v11166_v21 = vor.u32 %v13441_v7, %v11165_v6  ;;  %5659 = vmatpush.bf16.msrb.mxu1 %v10910_v3  ;;  %v8770_v6 = vor.u32 %v12837_v63, %v8767_v59  ;;  %v13029_v7 = vld [vmem:[#allocation5 + $0x794] sm:$0xf] }
 0x364   :  { %v13505_v10 = vld [vmem:[#allocation5 + $0x166c] sm:$0xf0]  ;;  %v8991_v3 = vld [vmem:[#allocation5 + $0x370] sm:$0xf0] }
 0x365   :  { %v14270_v11 = vld [vmem:[#allocation5 + $0x1810] sm:$0x11]  ;;  %v11422_v22 = vor.u32 %v13505_v10, %v11421_v49  ;;  %5672 = vmatpush.bf16.msrb.mxu2 %v11166_v21  ;;  %v9282_v49 = vor.u32 %v12965_v0, %v9279_v2  ;;  %v5428_v2 = vpop.f32.mrf.mxu3 }
 0x366   :  { %v10621_v16 = vld [vmem:[#allocation5 + $0x1010] sm:$0xf]  ;;  %v3283_v50 = vunpack.c.l.b16 %v14270_v11  ;;  %v12829_v10 = vld [vmem:[#allocation5 + $0x154] sm:$0xf] }
 0x367   :  { %v13305_v36 = vld [vmem:[#allocation5 + $0x102c] sm:$0xf0]  ;;  %5685 = vmatpush.bf16.msrb.mxu3 %v11422_v22  ;;  %v8738_v21 = vor.u32 %v12829_v10, %v8735_v12  ;;  %v13021_v22 = vld [vmem:[#allocation5 + $0x754] sm:$0xf] }
 0x368   :  { %v10877_v17 = vld [vmem:[#allocation5 + $0x1210] sm:$0xf]  ;;  %v10622_v51 = vor.u32 %v13305_v36, %v10621_v16  ;;  %v4059_v58 = vpack.c.b16 %v3283_v50, %v3283_v50  ;;  %v12957_v16 = vld [vmem:[#allocation5 + $0x554] sm:$0xf] }
 0x369   :  { %v13369_v23 = vld [vmem:[#allocation5 + $0x122c] sm:$0xf0]  ;;  %v9247_v36 = vld [vmem:[#allocation5 + $0x570] sm:$0xf0] }
 0x36a   :  { %v11133_v28 = vld [vmem:[#allocation5 + $0x1410] sm:$0xf]  ;;  %v10878_v53 = vor.u32 %v13369_v23, %v10877_v17  ;;  %5647 = vmatpush.bf16.msrb.mxu0 %v10622_v51  ;;  %v4849_v4 = vsel %vm4835_vm0, %v4059_v58, 0  ;;  %v9538_v17 = vor.u32 %v13029_v7, %v9535_v8  ;;  %v9503_v23 = vld [vmem:[#allocation5 + $0x770] sm:$0xf0]  ;;  %v5467_v7 = vpop.f32.mrf.mxu2  ;;  %v5429_v8 = vadd.f32 %v5428_v2, %v14273_v34 }
 0x36b   :  { %v13433_v15 = vld [vmem:[#allocation5 + $0x142c] sm:$0xf0]  ;;  %v12821_v50 = vld [vmem:[#allocation5 + $0x114] sm:$0xf]  ;;  %v9506_v45 = vor.u32 %v13021_v22, %v9503_v23 }
 0x36c   :  { %v11389_v25 = vld [vmem:[#allocation5 + $0x1610] sm:$0xf]  ;;  %v11134_v56 = vor.u32 %v13433_v15, %v11133_v28  ;;  %5660 = vmatpush.bf16.msrb.mxu1 %v10878_v53  ;;  %v8994_v28 = vor.u32 %v12893_v14, %v8991_v3  ;;  %v9250_v15 = vor.u32 %v12957_v16, %v9247_v36  ;;  %v13013_v43 = vld [vmem:[#allocation5 + $0x714] sm:$0xf]  ;;  %v5441_v53 = vpop.f32.mrf.mxu0 }
 0x36d   :  { %v13497_v29 = vld [vmem:[#allocation5 + $0x162c] sm:$0xf0]  ;;  %5648 = vmatmul.bf16.vlgmr.msrb.gmra.mxu0 %v14166_v19  ;;  %v9471_v51 = vld [vmem:[#allocation5 + $0x730] sm:$0xf0]  ;;  %v5442_v3 = vadd.f32 %v5441_v53, %v5429_v8 }
 0x36e   :  { %v11390_v57 = vor.u32 %v13497_v29, %v11389_v25  ;;  %5673 = vmatpush.bf16.msrb.mxu2 %v11134_v56  ;;  %5699 = vmatpush.bf16.msra.mxu0 %v4849_v4  ;;  %v8703_v25 = vld [vmem:[#allocation5 + $0x130] sm:$0xf0]  ;;  %v9218_v56 = vor.u32 %v12949_v37, %v9215_v39 }
 0x36f   :  { %5661 = vmatmul.bf16.vlgmr.msrb.gmra.mxu1 %v14170_v24  ;;  %v12885_v29 = vld [vmem:[#allocation5 + $0x314] sm:$0xf]  ;;  %v8706_v40 = vor.u32 %v12821_v50, %v8703_v25  ;;  %v5455_v34 = vadd.f32 %v5454_v54, %v5442_v3 }
 0x370   :  { %5686 = vmatpush.bf16.msrb.mxu3 %v11390_v57  ;;  %5705 = vmatpush.bf16.msra.mxu1 %v8802_v60  ;;  %v8962_v55 = vor.u32 %v12885_v29, %v8959_v35  ;;  %v12813_v57 = vld [vmem:[#allocation5 + $0xd4] sm:$0xf] }
 0x371   :  { %5674 = vmatmul.bf16.vlgmr.msrb.gmra.mxu2 %v14168_v20  ;;  %v8671_v58 = vld [vmem:[#allocation5 + $0xf0] sm:$0xf0] }
 0x372   :  { %5718 = vmatpush.bf16.msra.mxu2 %v9058_v61  ;;  %5744 = vmatpush.bf16.msrb.mxu0 %v9570_v5  ;;  %v12877_v60 = vld [vmem:[#allocation5 + $0x2d4] sm:$0xf]  ;;  %v8674_v63 = vor.u32 %v12813_v57, %v8671_v58  ;;  %v5430_v57 = vpop.f32.mrf.mxu3 }
 0x373   :  { %5687 = vmatmul.bf16.vlgmr.msrb.gmra.mxu3 %v14173_v31  ;;  %v8927_v61 = vld [vmem:[#allocation5 + $0x2f0] sm:$0xf0] }
 0x374   :  { %5731 = vmatpush.bf16.msra.mxu3 %v9314_v46  ;;  %5706 = vmatpush.bf16.msra.mxu1 %v8770_v6  ;;  %v12941_v52 = vld [vmem:[#allocation5 + $0x4d4] sm:$0xf]  ;;  %v9474_v46 = vor.u32 %v13013_v43, %v9471_v51  ;;  %v8930_v1 = vor.u32 %v12877_v60, %v8927_v61  ;;  %v5469_v61 = vpop.f32.mrf.mxu2 }
 0x375   :  { %v9183_v62 = vld [vmem:[#allocation5 + $0x4f0] sm:$0xf0] }
 0x376   :  { %5719 = vmatpush.bf16.msra.mxu2 %v9026_v9  ;;  %5745 = vmatpush.bf16.msrb.mxu0 %v9538_v17  ;;  %v13005_v59 = vld [vmem:[#allocation5 + $0x6d4] sm:$0xf]  ;;  %v9186_v0 = vor.u32 %v12941_v52, %v9183_v62  ;;  %v5443_v17 = vpop.f32.mrf.mxu0 }
 0x377   :  { %v9439_v13 = vld [vmem:[#allocation5 + $0x6f0] sm:$0xf0] }
 0x378   :  { %5732 = vmatpush.bf16.msra.mxu3 %v9282_v49  ;;  %5707 = vmatpush.bf16.msra.mxu1 %v8738_v21  ;;  %v12805_v4 = vld [vmem:[#allocation5 + $0x94] sm:$0xf]  ;;  %v9442_v12 = vor.u32 %v13005_v59, %v9439_v13  ;;  %v5456_v21 = vpop.f32.mrf.mxu1 }
 0x379   :  { %v8639_v5 = vld [vmem:[#allocation5 + $0xb0] sm:$0xf0] }
 0x37a   :  { %5720 = vmatpush.bf16.msra.mxu2 %v8994_v28  ;;  %5746 = vmatpush.bf16.msrb.mxu0 %v9506_v45  ;;  %v12869_v6 = vld [vmem:[#allocation5 + $0x294] sm:$0xf]  ;;  %v8642_v14 = vor.u32 %v12805_v4, %v8639_v5 }
 0x37b   :  { %v8895_v9 = vld [vmem:[#allocation5 + $0x2b0] sm:$0xf0] }
 0x37c   :  { %5733 = vmatpush.bf16.msra.mxu3 %v9250_v15  ;;  %5708 = vmatpush.bf16.msra.mxu1 %v8706_v40  ;;  %v12933_v49 = vld [vmem:[#allocation5 + $0x494] sm:$0xf]  ;;  %v8898_v22 = vor.u32 %v12869_v6, %v8895_v9  ;;  %v14283_v40 = vadd.f32 %v5467_v7, %v5455_v34 }
 0x37d   :  { %v9151_v10 = vld [vmem:[#allocation5 + $0x4b0] sm:$0xf0]  ;;  %11631 = vmatmul.msk.bf16.vlgmr.msra.gmra.mxu0 %vm4831_vm1, %v14179_v18 }
 0x37e   :  { %5721 = vmatpush.bf16.msra.mxu2 %v8962_v55  ;;  %5747 = vmatpush.bf16.msrb.mxu0 %v9474_v46  ;;  %v12997_v16 = vld [vmem:[#allocation5 + $0x694] sm:$0xf]  ;;  %v9154_v23 = vor.u32 %v12933_v49, %v9151_v10 }
 0x37f   :  { %v9407_v36 = vld [vmem:[#allocation5 + $0x6b0] sm:$0xf0] }
 0x380   :  { %5734 = vmatpush.bf16.msra.mxu3 %v9218_v56  ;;  %5709 = vmatpush.bf16.msra.mxu1 %v8674_v63  ;;  %v12797_v28 = vld [vmem:[#allocation5 + $0x54] sm:$0xf]  ;;  %v9410_v37 = vor.u32 %v12997_v16, %v9407_v36 }
 0x381   :  { %v8607_v15 = vld [vmem:[#allocation5 + $0x70] sm:$0xf0] }
 0x382   :  { %5722 = vmatpush.bf16.msra.mxu2 %v8930_v1  ;;  %v12861_v50 = vld [vmem:[#allocation5 + $0x254] sm:$0xf]  ;;  %5748 = vmatpush.bf16.msrb.mxu0 %v9442_v12  ;;  %v8610_v45 = vor.u32 %v12797_v28, %v8607_v15 }
 0x383   :  { %v8863_v25 = vld [vmem:[#allocation5 + $0x270] sm:$0xf0] }
 0x384   :  { %5735 = vmatpush.bf16.msra.mxu3 %v9186_v0  ;;  %v12925_v29 = vld [vmem:[#allocation5 + $0x454] sm:$0xf]  ;;  %5710 = vmatpush.bf16.msra.mxu1 %v8642_v14  ;;  %v8866_v55 = vor.u32 %v12861_v50, %v8863_v25 }
 0x385   :  { %v9119_v35 = vld [vmem:[#allocation5 + $0x470] sm:$0xf0] }
 0x386   :  { %v12989_v39 = vld [vmem:[#allocation5 + $0x654] sm:$0xf]  ;;  %5723 = vmatpush.bf16.msra.mxu2 %v8898_v22  ;;  %v9122_v56 = vor.u32 %v12925_v29, %v9119_v35  ;;  %5749 = vmatpush.bf16.msrb.mxu0 %v9410_v37 }
 0x387   :  { %v9375_v43 = vld [vmem:[#allocation5 + $0x670] sm:$0xf0] }
 0x388   :  { %v12789_v51 = vld [vmem:[#allocation5 + $0x14] sm:$0xf]  ;;  %5736 = vmatpush.bf16.msra.mxu3 %v9154_v23  ;;  %v9378_v63 = vor.u32 %v12989_v39, %v9375_v43  ;;  %5711 = vmatpush.bf16.msra.mxu1 %v8610_v45 }
 0x389   :  { %v8575_v53 = vld [vmem:[#allocation5 + $0x30] sm:$0xf0] }
 0x38a   :  { %v12853_v58 = vld [vmem:[#allocation5 + $0x214] sm:$0xf]  ;;  %v8578_v0 = vor.u32 %v12789_v51, %v8575_v53  ;;  %5724 = vmatpush.bf16.msra.mxu2 %v8866_v55  ;;  %5750 = vmatpush.bf16.msrb.mxu0 %v9378_v63 }
 0x38b   :  { %v8831_v54 = vld [vmem:[#allocation5 + $0x230] sm:$0xf0] }
 0x38c   :  { %v12917_v60 = vld [vmem:[#allocation5 + $0x414] sm:$0xf]  ;;  %5737 = vmatpush.bf16.msra.mxu3 %v9122_v56  ;;  %v8834_v6 = vor.u32 %v12853_v58, %v8831_v54  ;;  %5712 = vmatpush.bf16.msra.mxu1 %v8578_v0 }
 0x38d   :  { %v9087_v52 = vld [vmem:[#allocation5 + $0x430] sm:$0xf0] }
 0x38e   :  { %v13101_v62 = vld [vmem:[#allocation5 + $0x9d4] sm:$0xf]  ;;  %v9090_v7 = vor.u32 %v12917_v60, %v9087_v52  ;;  %5725 = vmatpush.bf16.msra.mxu2 %v8834_v6 }
 0x38f   :  { %v9823_v46 = vld [vmem:[#allocation5 + $0x9f0] sm:$0xf0]  ;;  %5713 = vmatmul.bf16.vlgmr.msra.gmra.mxu1 %v14141_v27 }
 0x390   :  { %v13165_v59 = vld [vmem:[#allocation5 + $0xbd4] sm:$0xf]  ;;  %v9826_v49 = vor.u32 %v13101_v62, %v9823_v46  ;;  %5738 = vmatpush.bf16.msra.mxu3 %v9090_v7  ;;  %v5480_v7 = vpop.f32.mrf.mxu3 }
 0x391   :  { %v10079_v13 = vld [vmem:[#allocation5 + $0xbf0] sm:$0xf0]  ;;  %5726 = vmatmul.bf16.vlgmr.msra.gmra.mxu2 %v14145_v33 }
 0x392   :  { %v13229_v1 = vld [vmem:[#allocation5 + $0xdd4] sm:$0xf]  ;;  %v10082_v10 = vor.u32 %v13165_v59, %v10079_v13  ;;  %5757 = vmatpush.bf16.msrb.mxu1 %v9826_v49 }
 0x393   :  { %v10335_v2 = vld [vmem:[#allocation5 + $0xdf0] sm:$0xf0]  ;;  %5739 = vmatmul.bf16.vlgmr.msra.gmra.mxu3 %v14139_v26 }
 0x394   :  { %v12981_v4 = vld [vmem:[#allocation5 + $0x614] sm:$0xf]  ;;  %v10338_v14 = vor.u32 %v13229_v1, %v10335_v2  ;;  %5770 = vmatpush.bf16.msrb.mxu2 %v10082_v10  ;;  %v5493_v1 = vpop.f32.mrf.mxu0  ;;  %v5481_v10 = vadd.f32 %v5480_v7, %v14283_v40 }
 0x395   :  { %v9343_v5 = vld [vmem:[#allocation5 + $0x630] sm:$0xf0] }
 0x396   :  { %v13293_v8 = vld [vmem:[#allocation5 + $0xfd4] sm:$0xf]  ;;  %v9346_v3 = vor.u32 %v12981_v4, %v9343_v5  ;;  %5783 = vmatpush.bf16.msrb.mxu3 %v10338_v14  ;;  %v5506_v5 = vpop.f32.mrf.mxu1 }
 0x397   :  { %v10591_v9 = vld [vmem:[#allocation5 + $0xff0] sm:$0xf0] }
 0x398   :  { %v13093_v12 = vld [vmem:[#allocation5 + $0x994] sm:$0xf]  ;;  %v10594_v21 = vor.u32 %v13293_v8, %v10591_v9  ;;  %5751 = vmatpush.bf16.msrb.mxu0 %v9346_v3 }
 0x399   :  { %v9791_v16 = vld [vmem:[#allocation5 + $0x9b0] sm:$0xf0] }
 0x39a   :  { %v13157_v36 = vld [vmem:[#allocation5 + $0xb94] sm:$0xf]  ;;  %v9794_v50 = vor.u32 %v13093_v12, %v9791_v16 }
 0x39b   :  { %v10047_v17 = vld [vmem:[#allocation5 + $0xbb0] sm:$0xf0]  ;;  %5752 = vmatmul.bf16.vlgmr.msrb.gmra.mxu0 %v14143_v32 }
 0x39c   :  { %v13221_v22 = vld [vmem:[#allocation5 + $0xd94] sm:$0xf]  ;;  %v10050_v34 = vor.u32 %v13157_v36, %v10047_v17  ;;  %5796 = vmatpush.bf16.msra.mxu0 %v10594_v21  ;;  %5758 = vmatpush.bf16.msrb.mxu1 %v9794_v50  ;;  %v5494_v17 = vadd.f32 %v5493_v1, %v5481_v10 }
 0x39d   :  { %v10303_v23 = vld [vmem:[#allocation5 + $0xdb0] sm:$0xf0] }
 0x39e   :  { %v13285_v28 = vld [vmem:[#allocation5 + $0xf94] sm:$0xf]  ;;  %v10306_v29 = vor.u32 %v13221_v22, %v10303_v23  ;;  %5771 = vmatpush.bf16.msrb.mxu2 %v10050_v34 }
 0x39f   :  { %v10559_v15 = vld [vmem:[#allocation5 + $0xfb0] sm:$0xf0] }
 0x3a0   :  { %v13085_v25 = vld [vmem:[#allocation5 + $0x954] sm:$0xf]  ;;  %v10562_v45 = vor.u32 %v13285_v28, %v10559_v15  ;;  %5784 = vmatpush.bf16.msrb.mxu3 %v10306_v29  ;;  %v5519_v15 = vpop.f32.mrf.mxu2  ;;  %v5507_v29 = vadd.f32 %v5506_v5, %v5494_v17 }
 0x3a1   :  { %v9759_v35 = vld [vmem:[#allocation5 + $0x970] sm:$0xf0] }
 0x3a2   :  { %v13149_v37 = vld [vmem:[#allocation5 + $0xb54] sm:$0xf]  ;;  %v9762_v56 = vor.u32 %v13085_v25, %v9759_v35  ;;  %5797 = vmatpush.bf16.msra.mxu0 %v10562_v45 }
 0x3a3   :  { %v10015_v39 = vld [vmem:[#allocation5 + $0xb70] sm:$0xf0] }
 0x3a4   :  { %v13213_v43 = vld [vmem:[#allocation5 + $0xd54] sm:$0xf]  ;;  %v10018_v57 = vor.u32 %v13149_v37, %v10015_v39  ;;  %5759 = vmatpush.bf16.msrb.mxu1 %v9762_v56 }
 0x3a5   :  { %v10271_v51 = vld [vmem:[#allocation5 + $0xd70] sm:$0xf0] }
 0x3a6   :  { %v13277_v53 = vld [vmem:[#allocation5 + $0xf54] sm:$0xf]  ;;  %v10274_v54 = vor.u32 %v13213_v43, %v10271_v51  ;;  %5772 = vmatpush.bf16.msrb.mxu2 %v10018_v57  ;;  %v5495_v43 = vpop.f32.mrf.mxu0  ;;  %v5520_v51 = vadd.f32 %v5519_v15, %v5507_v29  ;;  %v5508_v57 = vpop.f32.mrf.mxu1 }
 0x3a7   :  { %v10527_v55 = vld [vmem:[#allocation5 + $0xf70] sm:$0xf0] }
 0x3a8   :  { %v13077_v58 = vld [vmem:[#allocation5 + $0x914] sm:$0xf]  ;;  %v10530_v62 = vor.u32 %v13277_v53, %v10527_v55  ;;  %5785 = vmatpush.bf16.msrb.mxu3 %v10274_v54  ;;  %v5482_v54 = vpop.f32.mrf.mxu3 }
 0x3a9   :  { %v9727_v60 = vld [vmem:[#allocation5 + $0x930] sm:$0xf0] }
 0x3aa   :  { %v13141_v61 = vld [vmem:[#allocation5 + $0xb14] sm:$0xf]  ;;  %v9730_v0 = vor.u32 %v13077_v58, %v9727_v60  ;;  %5798 = vmatpush.bf16.msra.mxu0 %v10530_v62 }
 0x3ab   :  { %v9983_v52 = vld [vmem:[#allocation5 + $0xb30] sm:$0xf0] }
 0x3ac   :  { %v13205_v46 = vld [vmem:[#allocation5 + $0xd14] sm:$0xf]  ;;  %v9986_v2 = vor.u32 %v13141_v61, %v9983_v52  ;;  %5760 = vmatpush.bf16.msrb.mxu1 %v9730_v0 }
 0x3ad   :  { %v10239_v63 = vld [vmem:[#allocation5 + $0xd30] sm:$0xf0] }
 0x3ae   :  { %v13269_v59 = vld [vmem:[#allocation5 + $0xf14] sm:$0xf]  ;;  %v10242_v6 = vor.u32 %v13205_v46, %v10239_v63  ;;  %5773 = vmatpush.bf16.msrb.mxu2 %v9986_v2 }
 0x3af   :  { %v10495_v13 = vld [vmem:[#allocation5 + $0xf30] sm:$0xf0] }
 0x3b0   :  { %v13069_v4 = vld [vmem:[#allocation5 + $0x8d4] sm:$0xf]  ;;  %v10498_v12 = vor.u32 %v13269_v59, %v10495_v13  ;;  %5786 = vmatpush.bf16.msrb.mxu3 %v10242_v6 }
 0x3b1   :  { %v9695_v8 = vld [vmem:[#allocation5 + $0x8f0] sm:$0xf0] }
 0x3b2   :  { %v13133_v9 = vld [vmem:[#allocation5 + $0xad4] sm:$0xf]  ;;  %v9698_v21 = vor.u32 %v13069_v4, %v9695_v8  ;;  %5799 = vmatpush.bf16.msra.mxu0 %v10498_v12 }
 0x3b3   :  { %v9951_v49 = vld [vmem:[#allocation5 + $0xaf0] sm:$0xf0] }
 0x3b4   :  { %v13197_v14 = vld [vmem:[#allocation5 + $0xcd4] sm:$0xf]  ;;  %v9954_v22 = vor.u32 %v13133_v9, %v9951_v49  ;;  %5761 = vmatpush.bf16.msrb.mxu1 %v9698_v21  ;;  %v5521_v49 = vpop.f32.mrf.mxu2 }
 0x3b5   :  { %v10207_v3 = vld [vmem:[#allocation5 + $0xcf0] sm:$0xf0] }
 0x3b6   :  { %v13261_v16 = vld [vmem:[#allocation5 + $0xed4] sm:$0xf]  ;;  %v10210_v28 = vor.u32 %v13197_v14, %v10207_v3  ;;  %5774 = vmatpush.bf16.msrb.mxu2 %v9954_v22 }
 0x3b7   :  { %v10463_v36 = vld [vmem:[#allocation5 + $0xef0] sm:$0xf0] }
 0x3b8   :  { %v13061_v23 = vld [vmem:[#allocation5 + $0x894] sm:$0xf]  ;;  %v10466_v40 = vor.u32 %v13261_v16, %v10463_v36  ;;  %5787 = vmatpush.bf16.msrb.mxu3 %v10210_v28 }
 0x3b9   :  { %v9663_v50 = vld [vmem:[#allocation5 + $0x8b0] sm:$0xf0] }
 0x3ba   :  { %v13125_v34 = vld [vmem:[#allocation5 + $0xa94] sm:$0xf]  ;;  %v9666_v53 = vor.u32 %v13061_v23, %v9663_v50  ;;  %5800 = vmatpush.bf16.msra.mxu0 %v10466_v40 }
 0x3bb   :  { %v9919_v25 = vld [vmem:[#allocation5 + $0xab0] sm:$0xf0] }
 0x3bc   :  { %v13189_v35 = vld [vmem:[#allocation5 + $0xc94] sm:$0xf]  ;;  %v9922_v55 = vor.u32 %v13125_v34, %v9919_v25  ;;  %5762 = vmatpush.bf16.msrb.mxu1 %v9666_v53  ;;  %v5532_v34 = vpop.f32.mrf.mxu3 }
 0x3bd   :  { %v10175_v37 = vld [vmem:[#allocation5 + $0xcb0] sm:$0xf0] }
 0x3be   :  { %v13253_v39 = vld [vmem:[#allocation5 + $0xe94] sm:$0xf]  ;;  %v10178_v58 = vor.u32 %v13189_v35, %v10175_v37  ;;  %5775 = vmatpush.bf16.msrb.mxu2 %v9922_v55  ;;  %v14290_v37 = vadd.f32 %v5532_v34, %v5520_v51 }
 0x3bf   :  { %v10431_v45 = vld [vmem:[#allocation5 + $0xeb0] sm:$0xf0] }
 0x3c0   :  { %v13053_v56 = vld [vmem:[#allocation5 + $0x854] sm:$0xf]  ;;  %v10434_v62 = vor.u32 %v13253_v39, %v10431_v45  ;;  %5788 = vmatpush.bf16.msrb.mxu3 %v10178_v58  ;;  %vm6215_vm5 = vcmp.ge.f32.partialorder %v14290_v37, 0.0 }
 0x3c1   :  { %v9631_v60 = vld [vmem:[#allocation5 + $0x870] sm:$0xf0] }
 0x3c2   :  { %v13117_v61 = vld [vmem:[#allocation5 + $0xa54] sm:$0xf]  ;;  %v9634_v1 = vor.u32 %v13053_v56, %v9631_v60  ;;  %5801 = vmatpush.bf16.msra.mxu0 %v10434_v62 }
 0x3c3   :  { %v9887_v52 = vld [vmem:[#allocation5 + $0xa70] sm:$0xf0] }
 0x3c4   :  { %v13181_v46 = vld [vmem:[#allocation5 + $0xc54] sm:$0xf]  ;;  %v9890_v0 = vor.u32 %v13117_v61, %v9887_v52  ;;  %5763 = vmatpush.bf16.msrb.mxu1 %v9634_v1 }
 0x3c5   :  { %v10143_v63 = vld [vmem:[#allocation5 + $0xc70] sm:$0xf0] }
 0x3c6   :  { %v13245_v59 = vld [vmem:[#allocation5 + $0xe54] sm:$0xf]  ;;  %v10146_v6 = vor.u32 %v13181_v46, %v10143_v63  ;;  %5776 = vmatpush.bf16.msrb.mxu2 %v9890_v0 }
 0x3c7   :  { %v10399_v13 = vld [vmem:[#allocation5 + $0xe70] sm:$0xf0] }
 0x3c8   :  { %v13045_v2 = vld [vmem:[#allocation5 + $0x814] sm:$0xf]  ;;  %v10402_v10 = vor.u32 %v13245_v59, %v10399_v13  ;;  %5789 = vmatpush.bf16.msrb.mxu3 %v10146_v6 }
 0x3c9   :  { %v9599_v4 = vld [vmem:[#allocation5 + $0x830] sm:$0xf0] }
 0x3ca   :  { %v13109_v5 = vld [vmem:[#allocation5 + $0xa14] sm:$0xf]  ;;  %v9602_v21 = vor.u32 %v13045_v2, %v9599_v4  ;;  %5802 = vmatpush.bf16.msra.mxu0 %v10402_v10 }
 0x3cb   :  { %v9855_v7 = vld [vmem:[#allocation5 + $0xa30] sm:$0xf0] }
 0x3cc   :  { %v13173_v8 = vld [vmem:[#allocation5 + $0xc14] sm:$0xf]  ;;  %v9858_v22 = vor.u32 %v13109_v5, %v9855_v7  ;;  %5764 = vmatpush.bf16.msrb.mxu1 %v9602_v21  ;;  %v5534_v7 = vpop.f32.mrf.mxu3 }
 0x3cd   :  { %v10111_v9 = vld [vmem:[#allocation5 + $0xc30] sm:$0xf0] }
 0x3ce   :  { %v13357_v12 = vld [vmem:[#allocation5 + $0x11d4] sm:$0xf]  ;;  %v10114_v15 = vor.u32 %v13173_v8, %v10111_v9  ;;  %5777 = vmatpush.bf16.msrb.mxu2 %v9858_v22 }
 0x3cf   :  { %v10847_v14 = vld [vmem:[#allocation5 + $0x11f0] sm:$0xf0]  ;;  %5765 = vmatmul.bf16.vlgmr.msrb.gmra.mxu1 %v14153_v41 }
 0x3d0   :  { %v13421_v3 = vld [vmem:[#allocation5 + $0x13d4] sm:$0xf]  ;;  %v10850_v50 = vor.u32 %v13357_v12, %v10847_v14  ;;  %5790 = vmatpush.bf16.msrb.mxu3 %v10114_v15  ;;  %v14294_v12 = vld [vmem:[#allocation7] sm:$0xff] }
 0x3d1   :  { %v11103_v16 = vld [vmem:[#allocation5 + $0x13f0] sm:$0xf0]  ;;  %5778 = vmatmul.bf16.vlgmr.msrb.gmra.mxu2 %v14157_v44  ;;  %v959_v14 = vperm.slane %v14294_v12, 4 }
 0x3d2   :  { %v13485_v36 = vld [vmem:[#allocation5 + $0x15d4] sm:$0xf]  ;;  %v11106_v40 = vor.u32 %v13421_v3, %v11103_v16  ;;  %5809 = vmatpush.bf16.msra.mxu1 %v10850_v50 }
 0x3d3   :  { %v11359_v17 = vld [vmem:[#allocation5 + $0x15f0] sm:$0xf0]  ;;  %5791 = vmatmul.bf16.vlgmr.msrb.gmra.mxu3 %v14151_v38 }
 0x3d4   :  { %v13237_v23 = vld [vmem:[#allocation5 + $0xe14] sm:$0xf]  ;;  %v11362_v35 = vor.u32 %v13485_v36, %v11359_v17  ;;  %5822 = vmatpush.bf16.msra.mxu2 %v11106_v40 }
 0x3d5   :  { %v10367_v28 = vld [vmem:[#allocation5 + $0xe30] sm:$0xf0] }
 0x3d6   :  { %v13549_v25 = vld [vmem:[#allocation5 + $0x17d4] sm:$0xf]  ;;  %v10370_v53 = vor.u32 %v13237_v23, %v10367_v28  ;;  %5835 = vmatpush.bf16.msra.mxu3 %v11362_v35  ;;  %v5545_v28 = vpop.f32.mrf.mxu0  ;;  %v5558_v35 = vpop.f32.mrf.mxu1 }
 0x3d7   :  { %v11615_v29 = vld [vmem:[#allocation5 + $0x17f0] sm:$0xf0]  ;;  %v5546_v40 = vadd.f32 %v5545_v28, %v959_v14 }
 0x3d8   :  { %v13349_v39 = vld [vmem:[#allocation5 + $0x1194] sm:$0xf]  ;;  %v11618_v58 = vor.u32 %v13549_v25, %v11615_v29  ;;  %5803 = vmatpush.bf16.msra.mxu0 %v10370_v53 }
 0x3d9   :  { %v10815_v45 = vld [vmem:[#allocation5 + $0x11b0] sm:$0xf0] }
 0x3da   :  { %v13413_v43 = vld [vmem:[#allocation5 + $0x1394] sm:$0xf]  ;;  %v10818_v54 = vor.u32 %v13349_v39, %v10815_v45 }
 0x3db   :  { %v11071_v55 = vld [vmem:[#allocation5 + $0x13b0] sm:$0xf0]  ;;  %5804 = vmatmul.bf16.vlgmr.msra.gmra.mxu0 %v14155_v42 }
 0x3dc   :  { %v13477_v56 = vld [vmem:[#allocation5 + $0x1594] sm:$0xf]  ;;  %v11074_v52 = vor.u32 %v13413_v43, %v11071_v55  ;;  %5848 = vmatpush.bf16.msrb.mxu0 %v11618_v58  ;;  %5810 = vmatpush.bf16.msra.mxu1 %v10818_v54  ;;  %v5559_v55 = vadd.f32 %v5558_v35, %v5546_v40  ;;  %v3284_v35 = vunpack.c.h.b16 %v14270_v11  ;;  %v9317_v11 = vld [vmem:[#allocation5 + $0x5d8] sm:$0xf] }
 0x3dd   :  { %v11327_v57 = vld [vmem:[#allocation5 + $0x15b0] sm:$0xf0] }
 0x3de   :  { %v13541_v60 = vld [vmem:[#allocation5 + $0x1794] sm:$0xf]  ;;  %v11330_v51 = vor.u32 %v13477_v56, %v11327_v57  ;;  %5823 = vmatpush.bf16.msra.mxu2 %v11074_v52 }
 0x3df   :  { %v11583_v61 = vld [vmem:[#allocation5 + $0x17b0] sm:$0xf0] }
 0x3e0   :  { %v13341_v62 = vld [vmem:[#allocation5 + $0x1154] sm:$0xf]  ;;  %v11586_v0 = vor.u32 %v13541_v60, %v11583_v61  ;;  %5836 = vmatpush.bf16.msra.mxu3 %v11330_v51 }
 0x3e1   :  { %v10783_v46 = vld [vmem:[#allocation5 + $0x1170] sm:$0xf0] }
 0x3e2   :  { %v13405_v63 = vld [vmem:[#allocation5 + $0x1354] sm:$0xf]  ;;  %v10786_v2 = vor.u32 %v13341_v62, %v10783_v46  ;;  %5849 = vmatpush.bf16.msrb.mxu0 %v11586_v0  ;;  %v5584_v0 = vpop.f32.mrf.mxu3 }
 0x3e3   :  { %v11039_v59 = vld [vmem:[#allocation5 + $0x1370] sm:$0xf0] }
 0x3e4   :  { %v13469_v13 = vld [vmem:[#allocation5 + $0x1554] sm:$0xf]  ;;  %v11042_v8 = vor.u32 %v13405_v63, %v11039_v59  ;;  %5811 = vmatpush.bf16.msra.mxu1 %v10786_v2  ;;  %v5571_v59 = vpop.f32.mrf.mxu2 }
 0x3e5   :  { %v11295_v1 = vld [vmem:[#allocation5 + $0x1570] sm:$0xf0] }
 0x3e6   :  { %v13533_v4 = vld [vmem:[#allocation5 + $0x1754] sm:$0xf]  ;;  %v11298_v9 = vor.u32 %v13469_v13, %v11295_v1  ;;  %5824 = vmatpush.bf16.msra.mxu2 %v11042_v8  ;;  %v5572_v1 = vadd.f32 %v5571_v59, %v5559_v55 }
 0x3e7   :  { %v11551_v5 = vld [vmem:[#allocation5 + $0x1770] sm:$0xf0] }
 0x3e8   :  { %v13333_v6 = vld [vmem:[#allocation5 + $0x1114] sm:$0xf]  ;;  %v11554_v17 = vor.u32 %v13533_v4, %v11551_v5  ;;  %5837 = vmatpush.bf16.msra.mxu3 %v11298_v9  ;;  %v14299_v14 = vadd.f32 %v5584_v0, %v5572_v1  ;;  %v9573_v1 = vld [vmem:[#allocation5 + $0x7d8] sm:$0xf] }
 0x3e9   :  { %v10751_v49 = vld [vmem:[#allocation5 + $0x1130] sm:$0xf0]  ;;  %v13042_v0 = vld [vmem:[#allocation5 + $0x7f4] sm:$0xf0] }
 0x3ea   :  { %v13397_v10 = vld [vmem:[#allocation5 + $0x1314] sm:$0xf]  ;;  %v10754_v21 = vor.u32 %v13333_v6, %v10751_v49  ;;  %5850 = vmatpush.bf16.msrb.mxu0 %v11554_v17  ;;  %v5547_v6 = vpop.f32.mrf.mxu0 }
 0x3eb   :  { %v11007_v3 = vld [vmem:[#allocation5 + $0x1330] sm:$0xf0]  ;;  %v9029_v6 = vld [vmem:[#allocation5 + $0x398] sm:$0xf] }
 0x3ec   :  { %v13461_v16 = vld [vmem:[#allocation5 + $0x1514] sm:$0xf]  ;;  %v11010_v15 = vor.u32 %v13397_v10, %v11007_v3  ;;  %5812 = vmatpush.bf16.msra.mxu1 %v10754_v21  ;;  %v5560_v3 = vpop.f32.mrf.mxu1 }
 0x3ed   :  { %v11263_v36 = vld [vmem:[#allocation5 + $0x1530] sm:$0xf0] }
 0x3ee   :  { %v13525_v22 = vld [vmem:[#allocation5 + $0x1714] sm:$0xf]  ;;  %v11266_v50 = vor.u32 %v13461_v16, %v11263_v36  ;;  %5825 = vmatpush.bf16.msra.mxu2 %v11010_v15 }
 0x3ef   :  { %v11519_v23 = vld [vmem:[#allocation5 + $0x1730] sm:$0xf0] }
 0x3f0   :  { %v13325_v34 = vld [vmem:[#allocation5 + $0x10d4] sm:$0xf]  ;;  %v11522_v53 = vor.u32 %v13525_v22, %v11519_v23  ;;  %5838 = vmatpush.bf16.msra.mxu3 %v11266_v50 }
 0x3f1   :  { %v10719_v25 = vld [vmem:[#allocation5 + $0x10f0] sm:$0xf0] }
 0x3f2   :  { %v13389_v29 = vld [vmem:[#allocation5 + $0x12d4] sm:$0xf]  ;;  %v10722_v56 = vor.u32 %v13325_v34, %v10719_v25  ;;  %5851 = vmatpush.bf16.msrb.mxu0 %v11522_v53  ;;  %v5573_v53 = vpop.f32.mrf.mxu2 }
 0x3f3   :  { %v10975_v39 = vld [vmem:[#allocation5 + $0x12f0] sm:$0xf0]  ;;  %v12826_v53 = vld [vmem:[#allocation5 + $0x134] sm:$0xf0] }
 0x3f4   :  { %v13453_v45 = vld [vmem:[#allocation5 + $0x14d4] sm:$0xf]  ;;  %v10978_v54 = vor.u32 %v13389_v29, %v10975_v39  ;;  %5813 = vmatpush.bf16.msra.mxu1 %v10722_v56  ;;  %v12850_v56 = vld [vmem:[#allocation5 + $0x1f4] sm:$0xf0] }
 0x3f5   :  { %v11231_v43 = vld [vmem:[#allocation5 + $0x14f0] sm:$0xf0] }
 0x3f6   :  { %v13517_v57 = vld [vmem:[#allocation5 + $0x16d4] sm:$0xf]  ;;  %v11234_v60 = vor.u32 %v13453_v45, %v11231_v43  ;;  %5826 = vmatpush.bf16.msra.mxu2 %v10978_v54  ;;  %v8805_v43 = vld [vmem:[#allocation5 + $0x1d8] sm:$0xf]  ;;  %v5586_v54 = vpop.f32.mrf.mxu3 }
 0x3f7   :  { %v11487_v58 = vld [vmem:[#allocation5 + $0x16f0] sm:$0xf0]  ;;  %v9221_v54 = vld [vmem:[#allocation5 + $0x518] sm:$0xf] }
 0x3f8   :  { %v13317_v61 = vld [vmem:[#allocation5 + $0x1094] sm:$0xf]  ;;  %v11490_v13 = vor.u32 %v13517_v57, %v11487_v58  ;;  %5839 = vmatpush.bf16.msra.mxu3 %v11234_v60  ;;  %v9061_v57 = vld [vmem:[#allocation5 + $0x3d8] sm:$0xf] }
 0x3f9   :  { %v10687_v52 = vld [vmem:[#allocation5 + $0x10b0] sm:$0xf0]  ;;  %v12914_v58 = vld [vmem:[#allocation5 + $0x3f4] sm:$0xf0] }
 0x3fa   :  { %v13381_v51 = vld [vmem:[#allocation5 + $0x1294] sm:$0xf]  ;;  %v10690_v2 = vor.u32 %v13317_v61, %v10687_v52  ;;  %5852 = vmatpush.bf16.msrb.mxu0 %v11490_v13  ;;  %v9062_v59 = vor.u32 %v12914_v58, %v9061_v57  ;;  %v12978_v13 = vld [vmem:[#allocation5 + $0x5f4] sm:$0xf0] }
 0x3fb   :  { %v10943_v62 = vld [vmem:[#allocation5 + $0x12b0] sm:$0xf0] }
 0x3fc   :  { %v13445_v46 = vld [vmem:[#allocation5 + $0x1494] sm:$0xf]  ;;  %v10946_v7 = vor.u32 %v13381_v51, %v10943_v62  ;;  %5814 = vmatpush.bf16.msra.mxu1 %v10690_v2 }
 0x3fd   :  { %v11199_v63 = vld [vmem:[#allocation5 + $0x14b0] sm:$0xf0] }
 0x3fe   :  { %v13509_v4 = vld [vmem:[#allocation5 + $0x1694] sm:$0xf]  ;;  %v11202_v8 = vor.u32 %v13445_v46, %v11199_v63  ;;  %5827 = vmatpush.bf16.msra.mxu2 %v10946_v7  ;;  %v4060_v46 = vpack.c.b16 %v3284_v35, %v3284_v35  ;;  %v8806_v63 = vor.u32 %v12850_v56, %v8805_v43  ;;  %v12906_v7 = vld [vmem:[#allocation5 + $0x3b4] sm:$0xf0] }
 0x3ff   :  { %v11455_v5 = vld [vmem:[#allocation5 + $0x16b0] sm:$0xf0]  ;;  %v9509_v35 = vld [vmem:[#allocation5 + $0x758] sm:$0xf] }
 0x400   :  { %v13309_v9 = vld [vmem:[#allocation5 + $0x1054] sm:$0xf]  ;;  %v11458_v21 = vor.u32 %v13509_v4, %v11455_v5  ;;  %5840 = vmatpush.bf16.msra.mxu3 %v11202_v8  ;;  %v8773_v4 = vld [vmem:[#allocation5 + $0x198] sm:$0xf]  ;;  %v4852_v8 = vsel %vm4835_vm0, %v4060_v46, 0 }
 0x401   :  { %v10655_v49 = vld [vmem:[#allocation5 + $0x1070] sm:$0xf0]  ;;  %v12842_v5 = vld [vmem:[#allocation5 + $0x1b4] sm:$0xf0] }
 0x402   :  { %v13373_v10 = vld [vmem:[#allocation5 + $0x1254] sm:$0xf]  ;;  %v10658_v22 = vor.u32 %v13309_v9, %v10655_v49  ;;  %5853 = vmatpush.bf16.msrb.mxu0 %v11458_v21  ;;  %v9318_v9 = vor.u32 %v12978_v13, %v9317_v11  ;;  %v9574_v49 = vor.u32 %v13042_v0, %v9573_v1  ;;  %v8774_v3 = vor.u32 %v12842_v5, %v8773_v4  ;;  %v8709_v43 = vld [vmem:[#allocation5 + $0x118] sm:$0xf]  ;;  %v5610_v13 = vpop.f32.mrf.mxu1 }
 0x403   :  { %v10911_v16 = vld [vmem:[#allocation5 + $0x1270] sm:$0xf0]  ;;  %v9030_v21 = vor.u32 %v12906_v7, %v9029_v6  ;;  %v12890_v56 = vld [vmem:[#allocation5 + $0x334] sm:$0xf0] }
 0x404   :  { %v13437_v36 = vld [vmem:[#allocation5 + $0x1454] sm:$0xf]  ;;  %v10914_v50 = vor.u32 %v13373_v10, %v10911_v16  ;;  %5815 = vmatpush.bf16.msra.mxu1 %v10658_v22  ;;  %v9285_v10 = vld [vmem:[#allocation5 + $0x598] sm:$0xf] }
 0x405   :  { %v11167_v17 = vld [vmem:[#allocation5 + $0x1470] sm:$0xf0]  ;;  %v12970_v16 = vld [vmem:[#allocation5 + $0x5b4] sm:$0xf0] }
 0x406   :  { %v13501_v23 = vld [vmem:[#allocation5 + $0x1654] sm:$0xf]  ;;  %v11170_v34 = vor.u32 %v13437_v36, %v11167_v17  ;;  %5828 = vmatpush.bf16.msra.mxu2 %v10914_v50  ;;  %v9541_v36 = vld [vmem:[#allocation5 + $0x798] sm:$0xf]  ;;  %v9286_v50 = vor.u32 %v12970_v16, %v9285_v10 }
 0x407   :  { %v11423_v28 = vld [vmem:[#allocation5 + $0x1670] sm:$0xf0]  ;;  %v13034_v17 = vld [vmem:[#allocation5 + $0x7b4] sm:$0xf0] }
 0x408   :  { %v13301_v15 = vld [vmem:[#allocation5 + $0x1014] sm:$0xf]  ;;  %v11426_v55 = vor.u32 %v13501_v23, %v11423_v28  ;;  %5841 = vmatpush.bf16.msra.mxu3 %v11170_v34  ;;  %v8741_v22 = vld [vmem:[#allocation5 + $0x158] sm:$0xf]  ;;  %v9542_v34 = vor.u32 %v13034_v17, %v9541_v36  ;;  %v5623_v17 = vpop.f32.mrf.mxu2 }
 0x409   :  { %v10623_v25 = vld [vmem:[#allocation5 + $0x1030] sm:$0xf0]  ;;  %v12834_v23 = vld [vmem:[#allocation5 + $0x174] sm:$0xf0] }
 0x40a   :  { %v13365_v29 = vld [vmem:[#allocation5 + $0x1214] sm:$0xf]  ;;  %v10626_v60 = vor.u32 %v13301_v15, %v10623_v25  ;;  %5854 = vmatpush.bf16.msrb.mxu0 %v11426_v55  ;;  %v8997_v28 = vld [vmem:[#allocation5 + $0x358] sm:$0xf] }
 0x40b   :  { %v10879_v40 = vld [vmem:[#allocation5 + $0x1230] sm:$0xf0]  ;;  %v12898_v15 = vld [vmem:[#allocation5 + $0x374] sm:$0xf0] }
 0x40c   :  { %v13429_v39 = vld [vmem:[#allocation5 + $0x1414] sm:$0xf]  ;;  %v10882_v51 = vor.u32 %v13365_v29, %v10879_v40  ;;  %5816 = vmatpush.bf16.msra.mxu1 %v10626_v60  ;;  %v9253_v25 = vld [vmem:[#allocation5 + $0x558] sm:$0xf]  ;;  %v8742_v29 = vor.u32 %v12834_v23, %v8741_v22  ;;  %v8710_v60 = vor.u32 %v12826_v53, %v8709_v43  ;;  %v5612_v53 = vpop.f32.mrf.mxu1 }
 0x40d   :  { %v11135_v45 = vld [vmem:[#allocation5 + $0x1430] sm:$0xf0]  ;;  %v12962_v40 = vld [vmem:[#allocation5 + $0x574] sm:$0xf0] }
 0x40e   :  { %v13493_v61 = vld [vmem:[#allocation5 + $0x1614] sm:$0xf]  ;;  %v11138_v62 = vor.u32 %v13429_v39, %v11135_v45  ;;  %5829 = vmatpush.bf16.msra.mxu2 %v10882_v51  ;;  %v13026_v39 = vld [vmem:[#allocation5 + $0x774] sm:$0xf0]  ;;  %v8998_v45 = vor.u32 %v12898_v15, %v8997_v28  ;;  %v9254_v57 = vor.u32 %v12962_v40, %v9253_v25  ;;  %v5636_v28 = vpop.f32.mrf.mxu3 }
 0x40f   :  { %v11391_v52 = vld [vmem:[#allocation5 + $0x1630] sm:$0xf0]  ;;  %5817 = vmatmul.bf16.vlgmr.msra.gmra.mxu1 %v14166_v19  ;;  %v8965_v55 = vld [vmem:[#allocation5 + $0x318] sm:$0xf]  ;;  %v9510_v58 = vor.u32 %v13026_v39, %v9509_v35 }
 0x410   :  { %v11394_v2 = vor.u32 %v13493_v61, %v11391_v52  ;;  %5842 = vmatpush.bf16.msra.mxu3 %v11138_v62  ;;  %5868 = vmatpush.bf16.msrb.mxu1 %v4852_v8  ;;  %v12954_v61 = vld [vmem:[#allocation5 + $0x534] sm:$0xf0]  ;;  %v5597_v62 = vpop.f32.mrf.mxu0  ;;  %v8966_v46 = vor.u32 %v12890_v56, %v8965_v55 }
 0x411   :  { %5830 = vmatmul.bf16.vlgmr.msra.gmra.mxu2 %v14170_v24  ;;  %v9477_v52 = vld [vmem:[#allocation5 + $0x718] sm:$0xf] }
 0x412   :  { %5874 = vmatpush.bf16.msrb.mxu2 %v8806_v63  ;;  %5855 = vmatpush.bf16.msrb.mxu0 %v11394_v2  ;;  %v13018_v51 = vld [vmem:[#allocation5 + $0x734] sm:$0xf0]  ;;  %v9222_v2 = vor.u32 %v12954_v61, %v9221_v54 }
 0x413   :  { %5843 = vmatmul.bf16.vlgmr.msra.gmra.mxu3 %v14168_v20  ;;  %v8677_v11 = vld [vmem:[#allocation5 + $0xd8] sm:$0xf]  ;;  %v9478_v4 = vor.u32 %v13018_v51, %v9477_v52 }
 0x414   :  { %5887 = vmatpush.bf16.msrb.mxu3 %v9062_v59  ;;  %5913 = vmatpush.bf16.msra.mxu1 %v9574_v49  ;;  %v12818_v63 = vld [vmem:[#allocation5 + $0xf4] sm:$0xf0]  ;;  %v5598_v59 = vadd.f32 %v5597_v62, %v14299_v14 }
 0x415   :  { %5856 = vmatmul.bf16.vlgmr.msrb.gmra.mxu0 %v14173_v31  ;;  %v8933_v1 = vld [vmem:[#allocation5 + $0x2d8] sm:$0xf]  ;;  %v8678_v7 = vor.u32 %v12818_v63, %v8677_v11 }
 0x416   :  { %5900 = vmatpush.bf16.msra.mxu0 %v9318_v9  ;;  %5875 = vmatpush.bf16.msrb.mxu2 %v8774_v3  ;;  %v12882_v0 = vld [vmem:[#allocation5 + $0x2f4] sm:$0xf0]  ;;  %v5611_v5 = vadd.f32 %v5610_v13, %v5598_v59 }
 0x417   :  { %v9189_v6 = vld [vmem:[#allocation5 + $0x4d8] sm:$0xf]  ;;  %v8934_v10 = vor.u32 %v12882_v0, %v8933_v1 }
 0x418   :  { %5888 = vmatpush.bf16.msrb.mxu3 %v9030_v21  ;;  %5914 = vmatpush.bf16.msra.mxu1 %v9542_v34  ;;  %v12946_v8 = vld [vmem:[#allocation5 + $0x4f4] sm:$0xf0]  ;;  %v5624_v23 = vadd.f32 %v5623_v17, %v5611_v5  ;;  %v5599_v40 = vpop.f32.mrf.mxu0 }
 0x419   :  { %v9445_v9 = vld [vmem:[#allocation5 + $0x6d8] sm:$0xf]  ;;  %v9190_v21 = vor.u32 %v12946_v8, %v9189_v6 }
 0x41a   :  { %5901 = vmatpush.bf16.msra.mxu0 %v9286_v50  ;;  %5876 = vmatpush.bf16.msrb.mxu2 %v8742_v29  ;;  %v13010_v49 = vld [vmem:[#allocation5 + $0x6f4] sm:$0xf0]  ;;  %v14310_v39 = vadd.f32 %v5636_v28, %v5624_v23 }
 0x41b   :  { %v8645_v3 = vld [vmem:[#allocation5 + $0x98] sm:$0xf]  ;;  %v9446_v22 = vor.u32 %v13010_v49, %v9445_v9  ;;  %v5638_v9 = vpop.f32.mrf.mxu3 }
 0x41c   :  { %5889 = vmatpush.bf16.msrb.mxu3 %v8998_v45  ;;  %5915 = vmatpush.bf16.msra.mxu1 %v9510_v58  ;;  %v12810_v16 = vld [vmem:[#allocation5 + $0xb4] sm:$0xf0] }
 0x41d   :  { %v8901_v36 = vld [vmem:[#allocation5 + $0x298] sm:$0xf]  ;;  %v8646_v50 = vor.u32 %v12810_v16, %v8645_v3 }
 0x41e   :  { %5902 = vmatpush.bf16.msra.mxu0 %v9254_v57  ;;  %5877 = vmatpush.bf16.msrb.mxu2 %v8710_v60  ;;  %v12874_v14 = vld [vmem:[#allocation5 + $0x2b4] sm:$0xf0] }
 0x41f   :  { %v9157_v15 = vld [vmem:[#allocation5 + $0x498] sm:$0xf]  ;;  %11632 = vmatmul.msk.bf16.vlgmr.msrb.gmra.mxu1 %vm4831_vm1, %v14179_v18  ;;  %v8902_v35 = vor.u32 %v12874_v14, %v8901_v36 }
 0x420   :  { %5890 = vmatpush.bf16.msrb.mxu3 %v8966_v46  ;;  %5916 = vmatpush.bf16.msra.mxu1 %v9478_v4  ;;  %v12938_v34 = vld [vmem:[#allocation5 + $0x4b4] sm:$0xf0] }
 0x421   :  { %v9413_v25 = vld [vmem:[#allocation5 + $0x698] sm:$0xf]  ;;  %v9158_v57 = vor.u32 %v12938_v34, %v9157_v15 }
 0x422   :  { %5903 = vmatpush.bf16.msra.mxu0 %v9222_v2  ;;  %5878 = vmatpush.bf16.msrb.mxu2 %v8678_v7  ;;  %v13002_v29 = vld [vmem:[#allocation5 + $0x6b4] sm:$0xf0]  ;;  %v5625_v2 = vpop.f32.mrf.mxu2 }
 0x423   :  { %v8613_v45 = vld [vmem:[#allocation5 + $0x58] sm:$0xf]  ;;  %v9414_v58 = vor.u32 %v13002_v29, %v9413_v25 }
 0x424   :  { %5891 = vmatpush.bf16.msrb.mxu3 %v8934_v10  ;;  %v12802_v43 = vld [vmem:[#allocation5 + $0x74] sm:$0xf0]  ;;  %5917 = vmatpush.bf16.msra.mxu1 %v9446_v22 }
 0x425   :  { %v8869_v55 = vld [vmem:[#allocation5 + $0x258] sm:$0xf]  ;;  %v8614_v61 = vor.u32 %v12802_v43, %v8613_v45 }
 0x426   :  { %v12866_v56 = vld [vmem:[#allocation5 + $0x274] sm:$0xf0]  ;;  %5904 = vmatpush.bf16.msra.mxu0 %v9190_v21  ;;  %5879 = vmatpush.bf16.msrb.mxu2 %v8646_v50 }
 0x427   :  { %v9125_v54 = vld [vmem:[#allocation5 + $0x458] sm:$0xf]  ;;  %v8870_v46 = vor.u32 %v12866_v56, %v8869_v55 }
 0x428   :  { %v12930_v60 = vld [vmem:[#allocation5 + $0x474] sm:$0xf0]  ;;  %5892 = vmatpush.bf16.msrb.mxu3 %v8902_v35  ;;  %5918 = vmatpush.bf16.msra.mxu1 %v9414_v58 }
 0x429   :  { %v9381_v52 = vld [vmem:[#allocation5 + $0x658] sm:$0xf]  ;;  %v9126_v4 = vor.u32 %v12930_v60, %v9125_v54 }
 0x42a   :  { %v12994_v51 = vld [vmem:[#allocation5 + $0x674] sm:$0xf0]  ;;  %5905 = vmatpush.bf16.msra.mxu0 %v9158_v57  ;;  %5880 = vmatpush.bf16.msrb.mxu2 %v8614_v61 }
 0x42b   :  { %v8581_v62 = vld [vmem:[#allocation5 + $0x18] sm:$0xf]  ;;  %v9382_v5 = vor.u32 %v12994_v51, %v9381_v52 }
 0x42c   :  { %v12794_v11 = vld [vmem:[#allocation5 + $0x34] sm:$0xf0]  ;;  %5893 = vmatpush.bf16.msrb.mxu3 %v8870_v46 }
 0x42d   :  { %v8837_v63 = vld [vmem:[#allocation5 + $0x218] sm:$0xf]  ;;  %v8582_v49 = vor.u32 %v12794_v11, %v8581_v62  ;;  %5919 = vmatpush.bf16.msra.mxu1 %v9382_v5 }
 0x42e   :  { %v12858_v59 = vld [vmem:[#allocation5 + $0x234] sm:$0xf0]  ;;  %5906 = vmatpush.bf16.msra.mxu0 %v9126_v4 }
 0x42f   :  { %v9829_v13 = vld [vmem:[#allocation5 + $0x9d8] sm:$0xf]  ;;  %v8838_v36 = vor.u32 %v12858_v59, %v8837_v63  ;;  %5881 = vmatpush.bf16.msrb.mxu2 %v8582_v49 }
 0x430   :  { %v13106_v1 = vld [vmem:[#allocation5 + $0x9f4] sm:$0xf0] }
 0x431   :  { %v10085_v0 = vld [vmem:[#allocation5 + $0xbd8] sm:$0xf]  ;;  %v9830_v14 = vor.u32 %v13106_v1, %v9829_v13  ;;  %5894 = vmatpush.bf16.msrb.mxu3 %v8838_v36 }
 0x432   :  { %v13170_v6 = vld [vmem:[#allocation5 + $0xbf4] sm:$0xf0]  ;;  %5882 = vmatmul.bf16.vlgmr.msrb.gmra.mxu2 %v14141_v27 }
 0x433   :  { %v9093_v7 = vld [vmem:[#allocation5 + $0x418] sm:$0xf]  ;;  %v10086_v23 = vor.u32 %v13170_v6, %v10085_v0  ;;  %5926 = vmatpush.bf16.msra.mxu2 %v9830_v14 }
 0x434   :  { %v12922_v8 = vld [vmem:[#allocation5 + $0x434] sm:$0xf0]  ;;  %5895 = vmatmul.bf16.vlgmr.msrb.gmra.mxu3 %v14145_v33 }
 0x435   :  { %v9349_v10 = vld [vmem:[#allocation5 + $0x618] sm:$0xf]  ;;  %v9094_v50 = vor.u32 %v12922_v8, %v9093_v7  ;;  %5939 = vmatpush.bf16.msra.mxu3 %v10086_v23  ;;  %v5649_v8 = vpop.f32.mrf.mxu0 }
 0x436   :  { %v12986_v3 = vld [vmem:[#allocation5 + $0x634] sm:$0xf0] }
 0x437   :  { %v10341_v16 = vld [vmem:[#allocation5 + $0xdd8] sm:$0xf]  ;;  %v9350_v34 = vor.u32 %v12986_v3, %v9349_v10  ;;  %5907 = vmatpush.bf16.msra.mxu0 %v9094_v50 }
 0x438   :  { %v13234_v17 = vld [vmem:[#allocation5 + $0xdf4] sm:$0xf0] }
 0x439   :  { %v10597_v21 = vld [vmem:[#allocation5 + $0xfd8] sm:$0xf]  ;;  %v10342_v40 = vor.u32 %v13234_v17, %v10341_v16  ;;  %5920 = vmatpush.bf16.msra.mxu1 %v9350_v34  ;;  %v5650_v16 = vadd.f32 %v5649_v8, %v14310_v39 }
 0x43a   :  { %v13298_v22 = vld [vmem:[#allocation5 + $0xff4] sm:$0xf0]  ;;  %5908 = vmatmul.bf16.vlgmr.msra.gmra.mxu0 %v14139_v26 }
 0x43b   :  { %v9797_v28 = vld [vmem:[#allocation5 + $0x998] sm:$0xf]  ;;  %v10598_v35 = vor.u32 %v13298_v22, %v10597_v21  ;;  %5952 = vmatpush.bf16.msrb.mxu0 %v10342_v40  ;;  %v5662_v21 = vpop.f32.mrf.mxu1 }
 0x43c   :  { %v13098_v15 = vld [vmem:[#allocation5 + $0x9b4] sm:$0xf0]  ;;  %5921 = vmatmul.bf16.vlgmr.msra.gmra.mxu1 %v14143_v32 }
 0x43d   :  { %v10053_v25 = vld [vmem:[#allocation5 + $0xb98] sm:$0xf]  ;;  %v9798_v43 = vor.u32 %v13098_v15, %v9797_v28  ;;  %5965 = vmatpush.bf16.msrb.mxu1 %v10598_v35  ;;  %v5663_v28 = vadd.f32 %v5662_v21, %v5650_v16 }
 0x43e   :  { %v13162_v29 = vld [vmem:[#allocation5 + $0xbb4] sm:$0xf0] }
 0x43f   :  { %v10309_v45 = vld [vmem:[#allocation5 + $0xd98] sm:$0xf]  ;;  %v10054_v57 = vor.u32 %v13162_v29, %v10053_v25  ;;  %5927 = vmatpush.bf16.msra.mxu2 %v9798_v43 }
 0x440   :  { %v13226_v53 = vld [vmem:[#allocation5 + $0xdb4] sm:$0xf0] }
 0x441   :  { %v10565_v55 = vld [vmem:[#allocation5 + $0xf98] sm:$0xf]  ;;  %v10310_v52 = vor.u32 %v13226_v53, %v10309_v45  ;;  %5940 = vmatpush.bf16.msra.mxu3 %v10054_v57 }
 0x442   :  { %v13290_v56 = vld [vmem:[#allocation5 + $0xfb4] sm:$0xf0] }
 0x443   :  { %v9765_v58 = vld [vmem:[#allocation5 + $0x958] sm:$0xf]  ;;  %v10566_v51 = vor.u32 %v13290_v56, %v10565_v55  ;;  %5953 = vmatpush.bf16.msrb.mxu0 %v10310_v52  ;;  %v5675_v56 = vpop.f32.mrf.mxu2 }
 0x444   :  { %v13090_v54 = vld [vmem:[#allocation5 + $0x974] sm:$0xf0] }
 0x445   :  { %v10021_v60 = vld [vmem:[#allocation5 + $0xb58] sm:$0xf]  ;;  %v9766_v46 = vor.u32 %v13090_v54, %v9765_v58  ;;  %5966 = vmatpush.bf16.msrb.mxu1 %v10566_v51 }
 0x446   :  { %v13154_v61 = vld [vmem:[#allocation5 + $0xb74] sm:$0xf0] }
 0x447   :  { %v10277_v62 = vld [vmem:[#allocation5 + $0xd58] sm:$0xf]  ;;  %v10022_v13 = vor.u32 %v13154_v61, %v10021_v60  ;;  %5928 = vmatpush.bf16.msra.mxu2 %v9766_v46  ;;  %v5676_v60 = vadd.f32 %v5675_v56, %v5663_v28  ;;  %v5651_v61 = vpop.f32.mrf.mxu0 }
 0x448   :  { %v13218_v11 = vld [vmem:[#allocation5 + $0xd74] sm:$0xf0] }
 0x449   :  { %v10533_v63 = vld [vmem:[#allocation5 + $0xf58] sm:$0xf]  ;;  %v10278_v5 = vor.u32 %v13218_v11, %v10277_v62  ;;  %5941 = vmatpush.bf16.msra.mxu3 %v10022_v13  ;;  %v5688_v11 = vpop.f32.mrf.mxu3 }
 0x44a   :  { %v13282_v59 = vld [vmem:[#allocation5 + $0xf74] sm:$0xf0] }
 0x44b   :  { %v9733_v1 = vld [vmem:[#allocation5 + $0x918] sm:$0xf]  ;;  %v10534_v6 = vor.u32 %v13282_v59, %v10533_v63  ;;  %5954 = vmatpush.bf16.msrb.mxu0 %v10278_v5 }
 0x44c   :  { %v13082_v0 = vld [vmem:[#allocation5 + $0x934] sm:$0xf0] }
 0x44d   :  { %v9989_v2 = vld [vmem:[#allocation5 + $0xb18] sm:$0xf]  ;;  %v9734_v9 = vor.u32 %v13082_v0, %v9733_v1  ;;  %5967 = vmatpush.bf16.msrb.mxu1 %v10534_v6  ;;  %v5689_v1 = vadd.f32 %v5688_v11, %v5676_v60 }
 0x44e   :  { %v13146_v4 = vld [vmem:[#allocation5 + $0xb34] sm:$0xf0] }
 0x44f   :  { %v10245_v7 = vld [vmem:[#allocation5 + $0xd18] sm:$0xf]  ;;  %v9990_v36 = vor.u32 %v13146_v4, %v9989_v2  ;;  %5929 = vmatpush.bf16.msra.mxu2 %v9734_v9  ;;  %v5664_v4 = vpop.f32.mrf.mxu1 }
 0x450   :  { %v13210_v49 = vld [vmem:[#allocation5 + $0xd34] sm:$0xf0] }
 0x451   :  { %v10501_v10 = vld [vmem:[#allocation5 + $0xf18] sm:$0xf]  ;;  %v10246_v15 = vor.u32 %v13210_v49, %v10245_v7  ;;  %5942 = vmatpush.bf16.msra.mxu3 %v9990_v36 }
 0x452   :  { %v13274_v3 = vld [vmem:[#allocation5 + $0xf34] sm:$0xf0] }
 0x453   :  { %v9701_v14 = vld [vmem:[#allocation5 + $0x8d8] sm:$0xf]  ;;  %v10502_v50 = vor.u32 %v13274_v3, %v10501_v10  ;;  %5955 = vmatpush.bf16.msrb.mxu0 %v10246_v15 }
 0x454   :  { %v13074_v17 = vld [vmem:[#allocation5 + $0x8f4] sm:$0xf0] }
 0x455   :  { %v9957_v22 = vld [vmem:[#allocation5 + $0xad8] sm:$0xf]  ;;  %v9702_v25 = vor.u32 %v13074_v17, %v9701_v14  ;;  %5968 = vmatpush.bf16.msrb.mxu1 %v10502_v50 }
 0x456   :  { %v13138_v23 = vld [vmem:[#allocation5 + $0xaf4] sm:$0xf0] }
 0x457   :  { %v10213_v34 = vld [vmem:[#allocation5 + $0xcd8] sm:$0xf]  ;;  %v9958_v45 = vor.u32 %v13138_v23, %v9957_v22  ;;  %5930 = vmatpush.bf16.msra.mxu2 %v9702_v25 }
 0x458   :  { %v13202_v29 = vld [vmem:[#allocation5 + $0xcf4] sm:$0xf0] }
 0x459   :  { %v10469_v40 = vld [vmem:[#allocation5 + $0xed8] sm:$0xf]  ;;  %v10214_v57 = vor.u32 %v13202_v29, %v10213_v34  ;;  %5943 = vmatpush.bf16.msra.mxu3 %v9958_v45  ;;  %v5677_v29 = vpop.f32.mrf.mxu2 }
 0x45a   :  { %v13266_v35 = vld [vmem:[#allocation5 + $0xef4] sm:$0xf0] }
 0x45b   :  { %v9669_v39 = vld [vmem:[#allocation5 + $0x898] sm:$0xf]  ;;  %v10470_v58 = vor.u32 %v13266_v35, %v10469_v40  ;;  %5956 = vmatpush.bf16.msrb.mxu0 %v10214_v57 }
 0x45c   :  { %v13066_v43 = vld [vmem:[#allocation5 + $0x8b4] sm:$0xf0] }
 0x45d   :  { %v9925_v53 = vld [vmem:[#allocation5 + $0xa98] sm:$0xf]  ;;  %v9670_v52 = vor.u32 %v13066_v43, %v9669_v39  ;;  %5969 = vmatpush.bf16.msrb.mxu1 %v10470_v58  ;;  %v5701_v43 = vpop.f32.mrf.mxu0 }
 0x45e   :  { %v13130_v55 = vld [vmem:[#allocation5 + $0xab4] sm:$0xf0]  ;;  %v14317_v60 = vadd.f32 %v5701_v43, %v5689_v1 }
 0x45f   :  { %v10181_v54 = vld [vmem:[#allocation5 + $0xc98] sm:$0xf]  ;;  %v9926_v63 = vor.u32 %v13130_v55, %v9925_v53  ;;  %5931 = vmatpush.bf16.msra.mxu2 %v9670_v52 }
 0x460   :  { %v13194_v51 = vld [vmem:[#allocation5 + $0xcb4] sm:$0xf0]  ;;  %vm6216_vm6 = vcmp.ge.f32.partialorder %v14317_v60, 0.0 }
 0x461   :  { %v10437_v62 = vld [vmem:[#allocation5 + $0xe98] sm:$0xf]  ;;  %v10182_v5 = vor.u32 %v13194_v51, %v10181_v54  ;;  %5944 = vmatpush.bf16.msra.mxu3 %v9926_v63  ;;  %v5690_v54 = vpop.f32.mrf.mxu3 }
 0x462   :  { %v13258_v46 = vld [vmem:[#allocation5 + $0xeb4] sm:$0xf0] }
 0x463   :  { %v9637_v59 = vld [vmem:[#allocation5 + $0x858] sm:$0xf]  ;;  %v10438_v6 = vor.u32 %v13258_v46, %v10437_v62  ;;  %5957 = vmatpush.bf16.msrb.mxu0 %v10182_v5 }
 0x464   :  { %v13058_v13 = vld [vmem:[#allocation5 + $0x874] sm:$0xf0] }
 0x465   :  { %v9893_v0 = vld [vmem:[#allocation5 + $0xa58] sm:$0xf]  ;;  %v9638_v9 = vor.u32 %v13058_v13, %v9637_v59  ;;  %5970 = vmatpush.bf16.msrb.mxu1 %v10438_v6 }
 0x466   :  { %v13122_v2 = vld [vmem:[#allocation5 + $0xa74] sm:$0xf0] }
 0x467   :  { %v10149_v7 = vld [vmem:[#allocation5 + $0xc58] sm:$0xf]  ;;  %v9894_v16 = vor.u32 %v13122_v2, %v9893_v0  ;;  %5932 = vmatpush.bf16.msra.mxu2 %v9638_v9 }
 0x468   :  { %v13186_v8 = vld [vmem:[#allocation5 + $0xc74] sm:$0xf0] }
 0x469   :  { %v10405_v49 = vld [vmem:[#allocation5 + $0xe58] sm:$0xf]  ;;  %v10150_v28 = vor.u32 %v13186_v8, %v10149_v7  ;;  %5945 = vmatpush.bf16.msra.mxu3 %v9894_v16 }
 0x46a   :  { %v13250_v10 = vld [vmem:[#allocation5 + $0xe74] sm:$0xf0] }
 0x46b   :  { %v9605_v3 = vld [vmem:[#allocation5 + $0x818] sm:$0xf]  ;;  %v10406_v15 = vor.u32 %v13250_v10, %v10405_v49  ;;  %5958 = vmatpush.bf16.msrb.mxu0 %v10150_v28 }
 0x46c   :  { %v13050_v36 = vld [vmem:[#allocation5 + $0x834] sm:$0xf0] }
 0x46d   :  { %v9861_v14 = vld [vmem:[#allocation5 + $0xa18] sm:$0xf]  ;;  %v9606_v40 = vor.u32 %v13050_v36, %v9605_v3  ;;  %5971 = vmatpush.bf16.msrb.mxu1 %v10406_v15 }
 0x46e   :  { %v13114_v17 = vld [vmem:[#allocation5 + $0xa34] sm:$0xf0] }
 0x46f   :  { %v10853_v21 = vld [vmem:[#allocation5 + $0x11d8] sm:$0xf]  ;;  %v9862_v53 = vor.u32 %v13114_v17, %v9861_v14  ;;  %5933 = vmatpush.bf16.msra.mxu2 %v9606_v40 }
 0x470   :  { %v13362_v22 = vld [vmem:[#allocation5 + $0x11f4] sm:$0xf0] }
 0x471   :  { %v11109_v23 = vld [vmem:[#allocation5 + $0x13d8] sm:$0xf]  ;;  %v10854_v55 = vor.u32 %v13362_v22, %v10853_v21  ;;  %5946 = vmatpush.bf16.msra.mxu3 %v9862_v53  ;;  %v5703_v22 = vpop.f32.mrf.mxu0 }
 0x472   :  { %v13426_v50 = vld [vmem:[#allocation5 + $0x13f4] sm:$0xf0]  ;;  %5934 = vmatmul.bf16.vlgmr.msra.gmra.mxu2 %v14153_v41 }
 0x473   :  { %v10117_v34 = vld [vmem:[#allocation5 + $0xc18] sm:$0xf]  ;;  %v11110_v61 = vor.u32 %v13426_v50, %v11109_v23  ;;  %5978 = vmatpush.bf16.msrb.mxu2 %v10854_v55 }
 0x474   :  { %v13178_v25 = vld [vmem:[#allocation5 + $0xc34] sm:$0xf0]  ;;  %5947 = vmatmul.bf16.vlgmr.msra.gmra.mxu3 %v14157_v44 }
 0x475   :  { %v10373_v35 = vld [vmem:[#allocation5 + $0xe18] sm:$0xf]  ;;  %v10118_v62 = vor.u32 %v13178_v25, %v10117_v34  ;;  %5991 = vmatpush.bf16.msrb.mxu3 %v11110_v61 }
 0x476   :  { %v13242_v45 = vld [vmem:[#allocation5 + $0xe34] sm:$0xf0] }
 0x477   :  { %v11365_v39 = vld [vmem:[#allocation5 + $0x15d8] sm:$0xf]  ;;  %v10374_v46 = vor.u32 %v13242_v45, %v10373_v35  ;;  %5959 = vmatpush.bf16.msrb.mxu0 %v10118_v62  ;;  %v5714_v62 = vpop.f32.mrf.mxu1 }
 0x478   :  { %v13490_v56 = vld [vmem:[#allocation5 + $0x15f4] sm:$0xf0] }
 0x479   :  { %v11621_v57 = vld [vmem:[#allocation5 + $0x17d8] sm:$0xf]  ;;  %v11366_v59 = vor.u32 %v13490_v56, %v11365_v39  ;;  %5972 = vmatpush.bf16.msrb.mxu1 %v10374_v46 }
 0x47a   :  { %v13554_v58 = vld [vmem:[#allocation5 + $0x17f4] sm:$0xf0]  ;;  %5960 = vmatmul.bf16.vlgmr.msrb.gmra.mxu0 %v14151_v38 }
 0x47b   :  { %v10821_v52 = vld [vmem:[#allocation5 + $0x1198] sm:$0xf]  ;;  %v11622_v13 = vor.u32 %v13554_v58, %v11621_v57  ;;  %6004 = vmatpush.bf16.msra.mxu0 %v11366_v59  ;;  %v960_v57 = vperm.slane %v14294_v12, 5 }
 0x47c   :  { %v13354_v51 = vld [vmem:[#allocation5 + $0x11b4] sm:$0xf0]  ;;  %5973 = vmatmul.bf16.vlgmr.msrb.gmra.mxu1 %v14155_v42 }
 0x47d   :  { %v11077_v11 = vld [vmem:[#allocation5 + $0x1398] sm:$0xf]  ;;  %v10822_v2 = vor.u32 %v13354_v51, %v10821_v52  ;;  %6017 = vmatpush.bf16.msra.mxu1 %v11622_v13 }
 0x47e   :  { %v13418_v63 = vld [vmem:[#allocation5 + $0x13b4] sm:$0xf0] }
 0x47f   :  { %v11333_v0 = vld [vmem:[#allocation5 + $0x1598] sm:$0xf]  ;;  %v11078_v6 = vor.u32 %v13418_v63, %v11077_v11  ;;  %5979 = vmatpush.bf16.msrb.mxu2 %v10822_v2 }
 0x480   :  { %v13482_v4 = vld [vmem:[#allocation5 + $0x15b4] sm:$0xf0] }
 0x481   :  { %v11589_v5 = vld [vmem:[#allocation5 + $0x1798] sm:$0xf]  ;;  %v11334_v10 = vor.u32 %v13482_v4, %v11333_v0  ;;  %5992 = vmatpush.bf16.msrb.mxu3 %v11078_v6  ;;  %v5715_v4 = vadd.f32 %v5714_v62, %v960_v57 }
 0x482   :  { %v13546_v1 = vld [vmem:[#allocation5 + $0x17b4] sm:$0xf0] }
 0x483   :  { %v10789_v7 = vld [vmem:[#allocation5 + $0x1158] sm:$0xf]  ;;  %v11590_v3 = vor.u32 %v13546_v1, %v11589_v5  ;;  %6005 = vmatpush.bf16.msra.mxu0 %v11334_v10  ;;  %v5753_v5 = vpop.f32.mrf.mxu0 }
 0x484   :  { %v13346_v8 = vld [vmem:[#allocation5 + $0x1174] sm:$0xf0] }
 0x485   :  { %v11045_v9 = vld [vmem:[#allocation5 + $0x1358] sm:$0xf]  ;;  %v10790_v36 = vor.u32 %v13346_v8, %v10789_v7  ;;  %6018 = vmatpush.bf16.msra.mxu1 %v11590_v3 }
 0x486   :  { %v13410_v49 = vld [vmem:[#allocation5 + $0x1374] sm:$0xf0] }
 0x487   :  { %v11301_v16 = vld [vmem:[#allocation5 + $0x1558] sm:$0xf]  ;;  %v11046_v23 = vor.u32 %v13410_v49, %v11045_v9  ;;  %5980 = vmatpush.bf16.msrb.mxu2 %v10790_v36  ;;  %v5727_v36 = vpop.f32.mrf.mxu2 }
 0x488   :  { %v13474_v14 = vld [vmem:[#allocation5 + $0x1574] sm:$0xf0]  ;;  %v5728_v22 = vadd.f32 %v5727_v36, %v5715_v4  ;;  %v9575_v36 = vld [vmem:[#allocation5 + $0x7f8] sm:$0xf0] }
 0x489   :  { %v11557_v17 = vld [vmem:[#allocation5 + $0x1758] sm:$0xf]  ;;  %v11302_v25 = vor.u32 %v13474_v14, %v11301_v16  ;;  %5993 = vmatpush.bf16.msrb.mxu3 %v11046_v23  ;;  %v5740_v23 = vpop.f32.mrf.mxu3 }
 0x48a   :  { %v13538_v21 = vld [vmem:[#allocation5 + $0x1774] sm:$0xf0] }
 0x48b   :  { %v10757_v28 = vld [vmem:[#allocation5 + $0x1118] sm:$0xf]  ;;  %v11558_v29 = vor.u32 %v13538_v21, %v11557_v17  ;;  %6006 = vmatpush.bf16.msra.mxu0 %v11302_v25 }
 0x48c   :  { %v13338_v15 = vld [vmem:[#allocation5 + $0x1134] sm:$0xf0] }
 0x48d   :  { %v11013_v50 = vld [vmem:[#allocation5 + $0x1318] sm:$0xf]  ;;  %v10758_v35 = vor.u32 %v13338_v15, %v10757_v28  ;;  %6019 = vmatpush.bf16.msra.mxu1 %v11558_v29 }
 0x48e   :  { %v13402_v34 = vld [vmem:[#allocation5 + $0x1334] sm:$0xf0] }
 0x48f   :  { %v11269_v40 = vld [vmem:[#allocation5 + $0x1518] sm:$0xf]  ;;  %v11014_v53 = vor.u32 %v13402_v34, %v11013_v50  ;;  %5981 = vmatpush.bf16.msrb.mxu2 %v10758_v35  ;;  %v5716_v35 = vpop.f32.mrf.mxu1 }
 0x490   :  { %v13466_v45 = vld [vmem:[#allocation5 + $0x1534] sm:$0xf0]  ;;  %v9543_v35 = vld [vmem:[#allocation5 + $0x7b8] sm:$0xf0] }
 0x491   :  { %v11525_v39 = vld [vmem:[#allocation5 + $0x1718] sm:$0xf]  ;;  %v11270_v61 = vor.u32 %v13466_v45, %v11269_v40  ;;  %5994 = vmatpush.bf16.msrb.mxu3 %v11014_v53  ;;  %v5741_v40 = vadd.f32 %v5740_v23, %v5728_v22  ;;  %v12838_v22 = vld [vmem:[#allocation5 + $0x19c] sm:$0xf] }
 0x492   :  { %v13530_v43 = vld [vmem:[#allocation5 + $0x1734] sm:$0xf0]  ;;  %v8775_v23 = vld [vmem:[#allocation5 + $0x1b8] sm:$0xf0] }
 0x493   :  { %v10725_v55 = vld [vmem:[#allocation5 + $0x10d8] sm:$0xf]  ;;  %v11526_v52 = vor.u32 %v13530_v43, %v11525_v39  ;;  %6007 = vmatpush.bf16.msra.mxu0 %v11270_v61 }
 0x494   :  { %v13330_v56 = vld [vmem:[#allocation5 + $0x10f4] sm:$0xf0] }
 0x495   :  { %v10981_v58 = vld [vmem:[#allocation5 + $0x12d8] sm:$0xf]  ;;  %v10726_v46 = vor.u32 %v13330_v56, %v10725_v55  ;;  %6020 = vmatpush.bf16.msra.mxu1 %v11526_v52 }
 0x496   :  { %v13394_v54 = vld [vmem:[#allocation5 + $0x12f4] sm:$0xf0] }
 0x497   :  { %v11237_v51 = vld [vmem:[#allocation5 + $0x14d8] sm:$0xf]  ;;  %v10982_v13 = vor.u32 %v13394_v54, %v10981_v58  ;;  %5982 = vmatpush.bf16.msrb.mxu2 %v10726_v46  ;;  %v14327_v58 = vadd.f32 %v5753_v5, %v5741_v40  ;;  %v5755_v54 = vpop.f32.mrf.mxu0  ;;  %v13030_v40 = vld [vmem:[#allocation5 + $0x79c] sm:$0xf] }
 0x498   :  { %v13458_v11 = vld [vmem:[#allocation5 + $0x14f4] sm:$0xf0]  ;;  %v8999_v54 = vld [vmem:[#allocation5 + $0x378] sm:$0xf0] }
 0x499   :  { %v11493_v63 = vld [vmem:[#allocation5 + $0x16d8] sm:$0xf]  ;;  %v11238_v6 = vor.u32 %v13458_v11, %v11237_v51  ;;  %5995 = vmatpush.bf16.msrb.mxu3 %v10982_v13  ;;  %v12846_v51 = vld [vmem:[#allocation5 + $0x1dc] sm:$0xf] }
 0x49a   :  { %v13522_v59 = vld [vmem:[#allocation5 + $0x16f4] sm:$0xf0] }
 0x49b   :  { %v10693_v0 = vld [vmem:[#allocation5 + $0x1098] sm:$0xf]  ;;  %v11494_v7 = vor.u32 %v13522_v59, %v11493_v63  ;;  %6008 = vmatpush.bf16.msra.mxu0 %v11238_v6  ;;  %v8807_v63 = vld [vmem:[#allocation5 + $0x1f8] sm:$0xf0] }
 0x49c   :  { %v13322_v2 = vld [vmem:[#allocation5 + $0x10b4] sm:$0xf0]  ;;  %v9063_v6 = vld [vmem:[#allocation5 + $0x3f8] sm:$0xf0] }
 0x49d   :  { %v10949_v12 = vld [vmem:[#allocation5 + $0x1298] sm:$0xf]  ;;  %v10694_v49 = vor.u32 %v13322_v2, %v10693_v0  ;;  %6021 = vmatpush.bf16.msra.mxu1 %v11494_v7  ;;  %v12974_v7 = vld [vmem:[#allocation5 + $0x5dc] sm:$0xf] }
 0x49e   :  { %v13386_v1 = vld [vmem:[#allocation5 + $0x12b4] sm:$0xf0] }
 0x49f   :  { %v11205_v8 = vld [vmem:[#allocation5 + $0x1498] sm:$0xf]  ;;  %v10950_v14 = vor.u32 %v13386_v1, %v10949_v12  ;;  %5983 = vmatpush.bf16.msrb.mxu2 %v10694_v49  ;;  %v12910_v12 = vld [vmem:[#allocation5 + $0x3dc] sm:$0xf]  ;;  %v5729_v1 = vpop.f32.mrf.mxu2  ;;  %v5742_v49 = vpop.f32.mrf.mxu3 }
 0x4a0   :  { %v14324_v9 = vld [vmem:[#allocation5 + $0x1818] sm:$0x11] }
 0x4a1   :  { %v13450_v10 = vld [vmem:[#allocation5 + $0x14b4] sm:$0xf0]  ;;  %v3285_v50 = vunpack.c.l.b16 %v14324_v9  ;;  %5996 = vmatpush.bf16.msrb.mxu3 %v10950_v14  ;;  %v9223_v1 = vld [vmem:[#allocation5 + $0x538] sm:$0xf0] }
 0x4a2   :  { %v11461_v3 = vld [vmem:[#allocation5 + $0x1698] sm:$0xf]  ;;  %v11206_v34 = vor.u32 %v13450_v10, %v11205_v8  ;;  %v9319_v8 = vld [vmem:[#allocation5 + $0x5f8] sm:$0xf0]  ;;  %v8810_v10 = vor.u32 %v12846_v51, %v8807_v63 }
 0x4a3   :  { %v13514_v16 = vld [vmem:[#allocation5 + $0x16b4] sm:$0xf0]  ;;  %v4061_v62 = vpack.c.b16 %v3285_v50, %v3285_v50  ;;  %v12902_v50 = vld [vmem:[#allocation5 + $0x39c] sm:$0xf] }
 0x4a4   :  { %v10661_v17 = vld [vmem:[#allocation5 + $0x1058] sm:$0xf]  ;;  %v11462_v25 = vor.u32 %v13514_v16, %v11461_v3  ;;  %6009 = vmatpush.bf16.msra.mxu0 %v11206_v34  ;;  %v13038_v16 = vld [vmem:[#allocation5 + $0x7dc] sm:$0xf] }
 0x4a5   :  { %v13314_v21 = vld [vmem:[#allocation5 + $0x1074] sm:$0xf0]  ;;  %v4855_v3 = vsel %vm4835_vm0, %v4061_v62, 0  ;;  %v9031_v34 = vld [vmem:[#allocation5 + $0x3b8] sm:$0xf0] }
 0x4a6   :  { %v10917_v28 = vld [vmem:[#allocation5 + $0x1258] sm:$0xf]  ;;  %v10662_v45 = vor.u32 %v13314_v21, %v10661_v17  ;;  %6022 = vmatpush.bf16.msra.mxu1 %v11462_v25  ;;  %v9066_v21 = vor.u32 %v12910_v12, %v9063_v6  ;;  %v12966_v25 = vld [vmem:[#allocation5 + $0x59c] sm:$0xf] }
 0x4a7   :  { %v13378_v15 = vld [vmem:[#allocation5 + $0x1274] sm:$0xf0]  ;;  %v13022_v51 = vld [vmem:[#allocation5 + $0x75c] sm:$0xf] }
 0x4a8   :  { %v11173_v29 = vld [vmem:[#allocation5 + $0x1458] sm:$0xf]  ;;  %v10918_v55 = vor.u32 %v13378_v15, %v10917_v28  ;;  %5984 = vmatpush.bf16.msrb.mxu2 %v10662_v45  ;;  %v9322_v28 = vor.u32 %v12974_v7, %v9319_v8  ;;  %v9578_v15 = vor.u32 %v13038_v16, %v9575_v36  ;;  %v8778_v45 = vor.u32 %v12838_v22, %v8775_v23  ;;  %v9511_v62 = vld [vmem:[#allocation5 + $0x778] sm:$0xf0] }
 0x4a9   :  { %v13442_v39 = vld [vmem:[#allocation5 + $0x1474] sm:$0xf0]  ;;  %v12822_v63 = vld [vmem:[#allocation5 + $0x11c] sm:$0xf] }
 0x4aa   :  { %v11429_v43 = vld [vmem:[#allocation5 + $0x1658] sm:$0xf]  ;;  %v11174_v46 = vor.u32 %v13442_v39, %v11173_v29  ;;  %5997 = vmatpush.bf16.msrb.mxu3 %v10918_v55  ;;  %v9287_v29 = vld [vmem:[#allocation5 + $0x5b8] sm:$0xf0]  ;;  %v9034_v39 = vor.u32 %v12902_v50, %v9031_v34  ;;  %v5805_v50 = vpop.f32.mrf.mxu0 }
 0x4ab   :  { %v13506_v53 = vld [vmem:[#allocation5 + $0x1674] sm:$0xf0]  ;;  %v9290_v55 = vor.u32 %v12966_v25, %v9287_v29  ;;  %v12950_v12 = vld [vmem:[#allocation5 + $0x51c] sm:$0xf] }
 0x4ac   :  { %v10629_v56 = vld [vmem:[#allocation5 + $0x1018] sm:$0xf]  ;;  %v11430_v11 = vor.u32 %v13506_v53, %v11429_v43  ;;  %6010 = vmatpush.bf16.msra.mxu0 %v11174_v46  ;;  %v12830_v43 = vld [vmem:[#allocation5 + $0x15c] sm:$0xf] }
 0x4ad   :  { %v13306_v57 = vld [vmem:[#allocation5 + $0x1034] sm:$0xf0]  ;;  %v8743_v53 = vld [vmem:[#allocation5 + $0x178] sm:$0xf0] }
 0x4ae   :  { %v10885_v61 = vld [vmem:[#allocation5 + $0x1218] sm:$0xf]  ;;  %v10630_v0 = vor.u32 %v13306_v57, %v10629_v56  ;;  %6023 = vmatpush.bf16.msra.mxu1 %v11430_v11  ;;  %v9546_v56 = vor.u32 %v13030_v40, %v9543_v35  ;;  %v12894_v57 = vld [vmem:[#allocation5 + $0x35c] sm:$0xf]  ;;  %v8746_v46 = vor.u32 %v12830_v43, %v8743_v53 }
 0x4af   :  { %v13370_v52 = vld [vmem:[#allocation5 + $0x1234] sm:$0xf0]  ;;  %v9002_v11 = vor.u32 %v12894_v57, %v8999_v54  ;;  %v9479_v6 = vld [vmem:[#allocation5 + $0x738] sm:$0xf0]  ;;  %v5792_v57 = vpop.f32.mrf.mxu3 }
 0x4b0   :  { %v11141_v59 = vld [vmem:[#allocation5 + $0x1418] sm:$0xf]  ;;  %v10886_v5 = vor.u32 %v13370_v52, %v10885_v61  ;;  %5985 = vmatpush.bf16.msrb.mxu2 %v10630_v0  ;;  %v12958_v61 = vld [vmem:[#allocation5 + $0x55c] sm:$0xf]  ;;  %v9514_v0 = vor.u32 %v13022_v51, %v9511_v62 }
 0x4b1   :  { %v13434_v13 = vld [vmem:[#allocation5 + $0x1434] sm:$0xf0]  ;;  %v9255_v52 = vld [vmem:[#allocation5 + $0x578] sm:$0xf0] }
 0x4b2   :  { %v11397_v2 = vld [vmem:[#allocation5 + $0x1618] sm:$0xf]  ;;  %v11142_v14 = vor.u32 %v13434_v13, %v11141_v59  ;;  %5998 = vmatpush.bf16.msrb.mxu3 %v10886_v5  ;;  %v8711_v59 = vld [vmem:[#allocation5 + $0x138] sm:$0xf0]  ;;  %v9258_v13 = vor.u32 %v12958_v61, %v9255_v52 }
 0x4b3   :  { %v13498_v4 = vld [vmem:[#allocation5 + $0x1634] sm:$0xf0]  ;;  %5986 = vmatmul.bf16.vlgmr.msrb.gmra.mxu2 %v14166_v19  ;;  %v13014_v5 = vld [vmem:[#allocation5 + $0x71c] sm:$0xf]  ;;  %v8714_v7 = vor.u32 %v12822_v63, %v8711_v59 }
 0x4b4   :  { %v11398_v17 = vor.u32 %v13498_v4, %v11397_v2  ;;  %6037 = vmatpush.bf16.msra.mxu2 %v4855_v3  ;;  %6011 = vmatpush.bf16.msra.mxu0 %v11142_v14  ;;  %v12886_v2 = vld [vmem:[#allocation5 + $0x31c] sm:$0xf]  ;;  %v9226_v3 = vor.u32 %v12950_v12, %v9223_v1  ;;  %v9482_v16 = vor.u32 %v13014_v5, %v9479_v6 }
 0x4b5   :  { %5999 = vmatmul.bf16.vlgmr.msrb.gmra.mxu3 %v14170_v24  ;;  %v8967_v4 = vld [vmem:[#allocation5 + $0x338] sm:$0xf0] }
 0x4b6   :  { %6043 = vmatpush.bf16.msra.mxu3 %v8810_v10  ;;  %6024 = vmatpush.bf16.msra.mxu1 %v11398_v17  ;;  %v8970_v8 = vor.u32 %v12886_v2, %v8967_v4  ;;  %v12814_v49 = vld [vmem:[#allocation5 + $0xdc] sm:$0xf] }
 0x4b7   :  { %6012 = vmatmul.bf16.vlgmr.msra.gmra.mxu0 %v14168_v20  ;;  %v8679_v10 = vld [vmem:[#allocation5 + $0xf8] sm:$0xf0] }
 0x4b8   :  { %6056 = vmatpush.bf16.msrb.mxu0 %v9066_v21  ;;  %6082 = vmatpush.bf16.msrb.mxu2 %v9578_v15  ;;  %v12878_v36 = vld [vmem:[#allocation5 + $0x2dc] sm:$0xf]  ;;  %v5766_v15 = vpop.f32.mrf.mxu1 }
 0x4b9   :  { %6025 = vmatmul.bf16.vlgmr.msra.gmra.mxu1 %v14173_v31  ;;  %v8935_v14 = vld [vmem:[#allocation5 + $0x2f8] sm:$0xf0]  ;;  %v5767_v34 = vadd.f32 %v5766_v15, %v14327_v58 }
 0x4ba   :  { %6069 = vmatpush.bf16.msrb.mxu1 %v9322_v28  ;;  %6044 = vmatpush.bf16.msra.mxu3 %v8778_v45  ;;  %v12942_v17 = vld [vmem:[#allocation5 + $0x4dc] sm:$0xf]  ;;  %v8682_v28 = vor.u32 %v12814_v49, %v8679_v10  ;;  %v8938_v25 = vor.u32 %v12878_v36, %v8935_v14  ;;  %v5807_v10 = vpop.f32.mrf.mxu0 }
 0x4bb   :  { %v9191_v21 = vld [vmem:[#allocation5 + $0x4f8] sm:$0xf0] }
 0x4bc   :  { %6057 = vmatpush.bf16.msrb.mxu0 %v9034_v39  ;;  %6083 = vmatpush.bf16.msrb.mxu2 %v9546_v56  ;;  %v13006_v22 = vld [vmem:[#allocation5 + $0x6dc] sm:$0xf]  ;;  %v9194_v35 = vor.u32 %v12942_v17, %v9191_v21  ;;  %v5779_v39 = vpop.f32.mrf.mxu2 }
 0x4bd   :  { %v9447_v23 = vld [vmem:[#allocation5 + $0x6f8] sm:$0xf0]  ;;  %v5780_v56 = vadd.f32 %v5779_v39, %v5767_v34 }
 0x4be   :  { %6070 = vmatpush.bf16.msrb.mxu1 %v9290_v55  ;;  %6045 = vmatpush.bf16.msra.mxu3 %v8746_v46  ;;  %v12806_v29 = vld [vmem:[#allocation5 + $0x9c] sm:$0xf]  ;;  %v9450_v45 = vor.u32 %v13006_v22, %v9447_v23 }
 0x4bf   :  { %v8647_v40 = vld [vmem:[#allocation5 + $0xb8] sm:$0xf0]  ;;  %v5793_v51 = vadd.f32 %v5792_v57, %v5780_v56 }
 0x4c0   :  { %6058 = vmatpush.bf16.msrb.mxu0 %v9002_v11  ;;  %6084 = vmatpush.bf16.msrb.mxu2 %v9514_v0  ;;  %v12870_v43 = vld [vmem:[#allocation5 + $0x29c] sm:$0xf]  ;;  %v8650_v58 = vor.u32 %v12806_v29, %v8647_v40  ;;  %v5768_v49 = vpop.f32.mrf.mxu1  ;;  %v5794_v29 = vpop.f32.mrf.mxu3 }
 0x4c1   :  { %v8903_v53 = vld [vmem:[#allocation5 + $0x2b8] sm:$0xf0]  ;;  %v14337_v4 = vadd.f32 %v5805_v50, %v5793_v51 }
 0x4c2   :  { %6071 = vmatpush.bf16.msrb.mxu1 %v9258_v13  ;;  %6046 = vmatpush.bf16.msra.mxu3 %v8714_v7  ;;  %v12934_v55 = vld [vmem:[#allocation5 + $0x49c] sm:$0xf]  ;;  %v8906_v62 = vor.u32 %v12870_v43, %v8903_v53 }
 0x4c3   :  { %v9159_v54 = vld [vmem:[#allocation5 + $0x4b8] sm:$0xf0]  ;;  %11633 = vmatmul.msk.bf16.vlgmr.msra.gmra.mxu2 %vm4831_vm1, %v14179_v18 }
 0x4c4   :  { %6059 = vmatpush.bf16.msrb.mxu0 %v8970_v8  ;;  %6085 = vmatpush.bf16.msrb.mxu2 %v9482_v16  ;;  %v12998_v61 = vld [vmem:[#allocation5 + $0x69c] sm:$0xf]  ;;  %v9162_v63 = vor.u32 %v12934_v55, %v9159_v54  ;;  %v5781_v15 = vpop.f32.mrf.mxu2 }
 0x4c5   :  { %v9415_v52 = vld [vmem:[#allocation5 + $0x6b8] sm:$0xf0] }
 0x4c6   :  { %6072 = vmatpush.bf16.msrb.mxu1 %v9226_v3  ;;  %6047 = vmatpush.bf16.msra.mxu3 %v8682_v28  ;;  %v12798_v46 = vld [vmem:[#allocation5 + $0x5c] sm:$0xf]  ;;  %v9418_v59 = vor.u32 %v12998_v61, %v9415_v52 }
 0x4c7   :  { %v8615_v11 = vld [vmem:[#allocation5 + $0x78] sm:$0xf0] }
 0x4c8   :  { %6060 = vmatpush.bf16.msrb.mxu0 %v8938_v25  ;;  %6086 = vmatpush.bf16.msrb.mxu2 %v9450_v45  ;;  %v12862_v13 = vld [vmem:[#allocation5 + $0x25c] sm:$0xf]  ;;  %v8618_v6 = vor.u32 %v12798_v46, %v8615_v11 }
 0x4c9   :  { %v8871_v0 = vld [vmem:[#allocation5 + $0x278] sm:$0xf0] }
 0x4ca   :  { %6073 = vmatpush.bf16.msrb.mxu1 %v9194_v35  ;;  %v12926_v2 = vld [vmem:[#allocation5 + $0x45c] sm:$0xf]  ;;  %6048 = vmatpush.bf16.msra.mxu3 %v8650_v58  ;;  %v8874_v3 = vor.u32 %v12862_v13, %v8871_v0 }
 0x4cb   :  { %v9127_v12 = vld [vmem:[#allocation5 + $0x478] sm:$0xf0] }
 0x4cc   :  { %v12990_v1 = vld [vmem:[#allocation5 + $0x65c] sm:$0xf]  ;;  %6061 = vmatpush.bf16.msrb.mxu0 %v8906_v62  ;;  %6087 = vmatpush.bf16.msrb.mxu2 %v9418_v59  ;;  %v9130_v17 = vor.u32 %v12926_v2, %v9127_v12 }
 0x4cd   :  { %v9383_v5 = vld [vmem:[#allocation5 + $0x678] sm:$0xf0] }
 0x4ce   :  { %v12790_v7 = vld [vmem:[#allocation5 + $0x1c] sm:$0xf]  ;;  %6074 = vmatpush.bf16.msrb.mxu1 %v9162_v63  ;;  %v9386_v21 = vor.u32 %v12990_v1, %v9383_v5  ;;  %6049 = vmatpush.bf16.msra.mxu3 %v8618_v6 }
 0x4cf   :  { %v8583_v8 = vld [vmem:[#allocation5 + $0x38] sm:$0xf0] }
 0x4d0   :  { %v13102_v16 = vld [vmem:[#allocation5 + $0x9dc] sm:$0xf]  ;;  %v8586_v40 = vor.u32 %v12790_v7, %v8583_v8  ;;  %6062 = vmatpush.bf16.msrb.mxu0 %v8874_v3  ;;  %6088 = vmatpush.bf16.msrb.mxu2 %v9386_v21 }
 0x4d1   :  { %v9831_v36 = vld [vmem:[#allocation5 + $0x9f8] sm:$0xf0] }
 0x4d2   :  { %v12854_v14 = vld [vmem:[#allocation5 + $0x21c] sm:$0xf]  ;;  %v9834_v43 = vor.u32 %v13102_v16, %v9831_v36  ;;  %6075 = vmatpush.bf16.msrb.mxu1 %v9130_v17  ;;  %6050 = vmatpush.bf16.msra.mxu3 %v8586_v40 }
 0x4d3   :  { %v8839_v22 = vld [vmem:[#allocation5 + $0x238] sm:$0xf0] }
 0x4d4   :  { %v12918_v23 = vld [vmem:[#allocation5 + $0x41c] sm:$0xf]  ;;  %v8842_v53 = vor.u32 %v12854_v14, %v8839_v22 }
 0x4d5   :  { %v9095_v28 = vld [vmem:[#allocation5 + $0x438] sm:$0xf0]  ;;  %6051 = vmatmul.bf16.vlgmr.msra.gmra.mxu3 %v14141_v27 }
 0x4d6   :  { %v12982_v50 = vld [vmem:[#allocation5 + $0x61c] sm:$0xf]  ;;  %v9098_v57 = vor.u32 %v12918_v23, %v9095_v28  ;;  %6095 = vmatpush.bf16.msrb.mxu3 %v9834_v43  ;;  %6063 = vmatpush.bf16.msrb.mxu0 %v8842_v53 }
 0x4d7   :  { %v9351_v34 = vld [vmem:[#allocation5 + $0x638] sm:$0xf0] }
 0x4d8   :  { %v13166_v25 = vld [vmem:[#allocation5 + $0xbdc] sm:$0xf]  ;;  %v9354_v54 = vor.u32 %v12982_v50, %v9351_v34  ;;  %6076 = vmatpush.bf16.msrb.mxu1 %v9098_v57 }
 0x4d9   :  { %v10087_v35 = vld [vmem:[#allocation5 + $0xbf8] sm:$0xf0]  ;;  %6064 = vmatmul.bf16.vlgmr.msrb.gmra.mxu0 %v14145_v33 }
 0x4da   :  { %v13230_v45 = vld [vmem:[#allocation5 + $0xddc] sm:$0xf]  ;;  %v10090_v58 = vor.u32 %v13166_v25, %v10087_v35  ;;  %6089 = vmatpush.bf16.msrb.mxu2 %v9354_v54  ;;  %v5818_v25 = vpop.f32.mrf.mxu1 }
 0x4db   :  { %v10343_v39 = vld [vmem:[#allocation5 + $0xdf8] sm:$0xf0]  ;;  %6077 = vmatmul.bf16.vlgmr.msrb.gmra.mxu1 %v14139_v26  ;;  %v5819_v35 = vadd.f32 %v5818_v25, %v14337_v4 }
 0x4dc   :  { %v13294_v55 = vld [vmem:[#allocation5 + $0xfdc] sm:$0xf]  ;;  %v10346_v51 = vor.u32 %v13230_v45, %v10343_v39  ;;  %6108 = vmatpush.bf16.msra.mxu0 %v10090_v58  ;;  %v5857_v58 = vpop.f32.mrf.mxu0 }
 0x4dd   :  { %v10599_v56 = vld [vmem:[#allocation5 + $0xff8] sm:$0xf0]  ;;  %6090 = vmatmul.bf16.vlgmr.msrb.gmra.mxu2 %v14143_v32 }
 0x4de   :  { %v13094_v61 = vld [vmem:[#allocation5 + $0x99c] sm:$0xf]  ;;  %v10602_v46 = vor.u32 %v13294_v55, %v10599_v56  ;;  %6121 = vmatpush.bf16.msra.mxu1 %v10346_v51 }
 0x4df   :  { %v9799_v52 = vld [vmem:[#allocation5 + $0x9b8] sm:$0xf0] }
 0x4e0   :  { %v13158_v62 = vld [vmem:[#allocation5 + $0xb9c] sm:$0xf]  ;;  %v9802_v13 = vor.u32 %v13094_v61, %v9799_v52  ;;  %6134 = vmatpush.bf16.msra.mxu2 %v10602_v46 }
 0x4e1   :  { %v10055_v11 = vld [vmem:[#allocation5 + $0xbb8] sm:$0xf0] }
 0x4e2   :  { %v13222_v63 = vld [vmem:[#allocation5 + $0xd9c] sm:$0xf]  ;;  %v10058_v5 = vor.u32 %v13158_v62, %v10055_v11  ;;  %6096 = vmatpush.bf16.msrb.mxu3 %v9802_v13 }
 0x4e3   :  { %v10311_v59 = vld [vmem:[#allocation5 + $0xdb8] sm:$0xf0] }
 0x4e4   :  { %v13286_v0 = vld [vmem:[#allocation5 + $0xf9c] sm:$0xf]  ;;  %v10314_v6 = vor.u32 %v13222_v63, %v10311_v59  ;;  %6109 = vmatpush.bf16.msra.mxu0 %v10058_v5  ;;  %v5831_v63 = vpop.f32.mrf.mxu2  ;;  %v5859_v25 = vpop.f32.mrf.mxu0 }
 0x4e5   :  { %v10567_v2 = vld [vmem:[#allocation5 + $0xfb8] sm:$0xf0] }
 0x4e6   :  { %v13086_v12 = vld [vmem:[#allocation5 + $0x95c] sm:$0xf]  ;;  %v10570_v8 = vor.u32 %v13286_v0, %v10567_v2  ;;  %6122 = vmatpush.bf16.msra.mxu1 %v10314_v6 }
 0x4e7   :  { %v9767_v1 = vld [vmem:[#allocation5 + $0x978] sm:$0xf0] }
 0x4e8   :  { %v13150_v7 = vld [vmem:[#allocation5 + $0xb5c] sm:$0xf]  ;;  %v9770_v16 = vor.u32 %v13086_v12, %v9767_v1  ;;  %6135 = vmatpush.bf16.msra.mxu2 %v10570_v8  ;;  %v5832_v12 = vadd.f32 %v5831_v63, %v5819_v35  ;;  %v5820_v1 = vpop.f32.mrf.mxu1  ;;  %v5844_v8 = vpop.f32.mrf.mxu3 }
 0x4e9   :  { %v10023_v49 = vld [vmem:[#allocation5 + $0xb78] sm:$0xf0] }
 0x4ea   :  { %v13214_v10 = vld [vmem:[#allocation5 + $0xd5c] sm:$0xf]  ;;  %v10026_v22 = vor.u32 %v13150_v7, %v10023_v49  ;;  %6097 = vmatpush.bf16.msrb.mxu3 %v9770_v16 }
 0x4eb   :  { %v10279_v3 = vld [vmem:[#allocation5 + $0xd78] sm:$0xf0] }
 0x4ec   :  { %v13278_v36 = vld [vmem:[#allocation5 + $0xf5c] sm:$0xf]  ;;  %v10282_v23 = vor.u32 %v13214_v10, %v10279_v3  ;;  %6110 = vmatpush.bf16.msra.mxu0 %v10026_v22  ;;  %v5845_v3 = vadd.f32 %v5844_v8, %v5832_v12 }
 0x4ed   :  { %v10535_v14 = vld [vmem:[#allocation5 + $0xf78] sm:$0xf0] }
 0x4ee   :  { %v13078_v17 = vld [vmem:[#allocation5 + $0x91c] sm:$0xf]  ;;  %v10538_v15 = vor.u32 %v13278_v36, %v10535_v14  ;;  %6123 = vmatpush.bf16.msra.mxu1 %v10282_v23 }
 0x4ef   :  { %v9735_v21 = vld [vmem:[#allocation5 + $0x938] sm:$0xf0] }
 0x4f0   :  { %v13142_v28 = vld [vmem:[#allocation5 + $0xb1c] sm:$0xf]  ;;  %v9738_v29 = vor.u32 %v13078_v17, %v9735_v21  ;;  %6136 = vmatpush.bf16.msra.mxu2 %v10538_v15 }
 0x4f1   :  { %v9991_v27 = vld [vmem:[#allocation5 + $0xb38] sm:$0xf0] }
 0x4f2   :  { %v13206_v50 = vld [vmem:[#allocation5 + $0xd1c] sm:$0xf]  ;;  %v9994_v26 = vor.u32 %v13142_v28, %v9991_v27  ;;  %6098 = vmatpush.bf16.msrb.mxu3 %v9738_v29  ;;  %v5858_v28 = vadd.f32 %v5857_v58, %v5845_v3 }
 0x4f3   :  { %v10247_v34 = vld [vmem:[#allocation5 + $0xd38] sm:$0xf0] }
 0x4f4   :  { %v13270_v32 = vld [vmem:[#allocation5 + $0xf1c] sm:$0xf]  ;;  %v10250_v39 = vor.u32 %v13206_v50, %v10247_v34  ;;  %6111 = vmatpush.bf16.msra.mxu0 %v9994_v26 }
 0x4f5   :  { %v10503_v40 = vld [vmem:[#allocation5 + $0xf38] sm:$0xf0] }
 0x4f6   :  { %v13070_v33 = vld [vmem:[#allocation5 + $0x8dc] sm:$0xf]  ;;  %v10506_v53 = vor.u32 %v13270_v32, %v10503_v40  ;;  %6124 = vmatpush.bf16.msra.mxu1 %v10250_v39 }
 0x4f7   :  { %v9703_v45 = vld [vmem:[#allocation5 + $0x8f8] sm:$0xf0] }
 0x4f8   :  { %v13134_v43 = vld [vmem:[#allocation5 + $0xadc] sm:$0xf]  ;;  %v9706_v54 = vor.u32 %v13070_v33, %v9703_v45  ;;  %6137 = vmatpush.bf16.msra.mxu2 %v10506_v53 }
 0x4f9   :  { %v9959_v55 = vld [vmem:[#allocation5 + $0xaf8] sm:$0xf0] }
 0x4fa   :  { %v13198_v56 = vld [vmem:[#allocation5 + $0xcdc] sm:$0xf]  ;;  %v9962_v4 = vor.u32 %v13134_v43, %v9959_v55  ;;  %6099 = vmatpush.bf16.msrb.mxu3 %v9706_v54  ;;  %v5870_v54 = vpop.f32.mrf.mxu1 }
 0x4fb   :  { %v10215_v57 = vld [vmem:[#allocation5 + $0xcf8] sm:$0xf0] }
 0x4fc   :  { %v13262_v61 = vld [vmem:[#allocation5 + $0xedc] sm:$0xf]  ;;  %v10218_v46 = vor.u32 %v13198_v56, %v10215_v57  ;;  %6112 = vmatpush.bf16.msra.mxu0 %v9962_v4  ;;  %v5833_v57 = vpop.f32.mrf.mxu2 }
 0x4fd   :  { %v10471_v52 = vld [vmem:[#allocation5 + $0xef8] sm:$0xf0] }
 0x4fe   :  { %v13062_v51 = vld [vmem:[#allocation5 + $0x89c] sm:$0xf]  ;;  %v10474_v59 = vor.u32 %v13262_v61, %v10471_v52  ;;  %6125 = vmatpush.bf16.msra.mxu1 %v10218_v46 }
 0x4ff   :  { %v9671_v62 = vld [vmem:[#allocation5 + $0x8b8] sm:$0xf0] }
 0x500   :  { %v13126_v11 = vld [vmem:[#allocation5 + $0xa9c] sm:$0xf]  ;;  %v9674_v5 = vor.u32 %v13062_v51, %v9671_v62  ;;  %6138 = vmatpush.bf16.msra.mxu2 %v10474_v59  ;;  %v14344_v62 = vadd.f32 %v5870_v54, %v5858_v28  ;;  %v5846_v59 = vpop.f32.mrf.mxu3 }
 0x501   :  { %v9927_v13 = vld [vmem:[#allocation5 + $0xab8] sm:$0xf0] }
 0x502   :  { %v13190_v0 = vld [vmem:[#allocation5 + $0xc9c] sm:$0xf]  ;;  %v9930_v16 = vor.u32 %v13126_v11, %v9927_v13  ;;  %6100 = vmatpush.bf16.msrb.mxu3 %v9674_v5  ;;  %vm6217_vm7 = vcmp.ge.f32.partialorder %v14344_v62, 0.0 }
 0x503   :  { %v10183_v2 = vld [vmem:[#allocation5 + $0xcb8] sm:$0xf0] }
 0x504   :  { %v13254_v6 = vld [vmem:[#allocation5 + $0xe9c] sm:$0xf]  ;;  %v10186_v36 = vor.u32 %v13190_v0, %v10183_v2  ;;  %6113 = vmatpush.bf16.msra.mxu0 %v9930_v16 }
 0x505   :  { %v10439_v7 = vld [vmem:[#allocation5 + $0xeb8] sm:$0xf0] }
 0x506   :  { %v13054_v49 = vld [vmem:[#allocation5 + $0x85c] sm:$0xf]  ;;  %v10442_v17 = vor.u32 %v13254_v6, %v10439_v7  ;;  %6126 = vmatpush.bf16.msra.mxu1 %v10186_v36 }
 0x507   :  { %v9639_v10 = vld [vmem:[#allocation5 + $0x878] sm:$0xf0] }
 0x508   :  { %v13118_v14 = vld [vmem:[#allocation5 + $0xa5c] sm:$0xf]  ;;  %v9642_v15 = vor.u32 %v13054_v49, %v9639_v10  ;;  %6139 = vmatpush.bf16.msra.mxu2 %v10442_v17 }
 0x509   :  { %v9895_v21 = vld [vmem:[#allocation5 + $0xa78] sm:$0xf0] }
 0x50a   :  { %v13182_v22 = vld [vmem:[#allocation5 + $0xc5c] sm:$0xf]  ;;  %v9898_v35 = vor.u32 %v13118_v14, %v9895_v21  ;;  %6101 = vmatpush.bf16.msrb.mxu3 %v9642_v15 }
 0x50b   :  { %v10151_v23 = vld [vmem:[#allocation5 + $0xc78] sm:$0xf0] }
 0x50c   :  { %v13246_v27 = vld [vmem:[#allocation5 + $0xe5c] sm:$0xf]  ;;  %v10154_v33 = vor.u32 %v13182_v22, %v10151_v23  ;;  %6114 = vmatpush.bf16.msra.mxu0 %v9898_v35 }
 0x50d   :  { %v10407_v50 = vld [vmem:[#allocation5 + $0xe78] sm:$0xf0] }
 0x50e   :  { %v13046_v34 = vld [vmem:[#allocation5 + $0x81c] sm:$0xf]  ;;  %v10410_v43 = vor.u32 %v13246_v27, %v10407_v50  ;;  %6127 = vmatpush.bf16.msra.mxu1 %v10154_v33 }
 0x50f   :  { %v9607_v29 = vld [vmem:[#allocation5 + $0x838] sm:$0xf0] }
 0x510   :  { %v13358_v32 = vld [vmem:[#allocation5 + $0x11dc] sm:$0xf]  ;;  %v9610_v61 = vor.u32 %v13046_v34, %v9607_v29  ;;  %6140 = vmatpush.bf16.msra.mxu2 %v10410_v43  ;;  %v5872_v34 = vpop.f32.mrf.mxu1 }
 0x511   :  { %v10855_v40 = vld [vmem:[#allocation5 + $0x11f8] sm:$0xf0] }
 0x512   :  { %v13110_v45 = vld [vmem:[#allocation5 + $0xa1c] sm:$0xf]  ;;  %v10858_v4 = vor.u32 %v13358_v32, %v10855_v40  ;;  %6102 = vmatpush.bf16.msrb.mxu3 %v9610_v61 }
 0x513   :  { %v9863_v26 = vld [vmem:[#allocation5 + $0xa38] sm:$0xf0] }
 0x514   :  { %v13174_v39 = vld [vmem:[#allocation5 + $0xc1c] sm:$0xf]  ;;  %v9866_v13 = vor.u32 %v13110_v45, %v9863_v26 }
 0x515   :  { %v10119_v53 = vld [vmem:[#allocation5 + $0xc38] sm:$0xf0]  ;;  %6103 = vmatmul.bf16.vlgmr.msrb.gmra.mxu3 %v14153_v41 }
 0x516   :  { %v13238_v55 = vld [vmem:[#allocation5 + $0xe1c] sm:$0xf]  ;;  %v10122_v0 = vor.u32 %v13174_v39, %v10119_v53  ;;  %6147 = vmatpush.bf16.msra.mxu3 %v10858_v4  ;;  %6115 = vmatpush.bf16.msra.mxu0 %v9866_v13 }
 0x517   :  { %v10375_v56 = vld [vmem:[#allocation5 + $0xe38] sm:$0xf0] }
 0x518   :  { %v13422_v52 = vld [vmem:[#allocation5 + $0x13dc] sm:$0xf]  ;;  %v10378_v1 = vor.u32 %v13238_v55, %v10375_v56  ;;  %6128 = vmatpush.bf16.msra.mxu1 %v10122_v0 }
 0x519   :  { %v11111_v58 = vld [vmem:[#allocation5 + $0x13f8] sm:$0xf0]  ;;  %6116 = vmatmul.bf16.vlgmr.msra.gmra.mxu0 %v14157_v44 }
 0x51a   :  { %v13486_v51 = vld [vmem:[#allocation5 + $0x15dc] sm:$0xf]  ;;  %v11114_v5 = vor.u32 %v13422_v52, %v11111_v58  ;;  %6141 = vmatpush.bf16.msra.mxu2 %v10378_v1 }
 0x51b   :  { %v11367_v46 = vld [vmem:[#allocation5 + $0x15f8] sm:$0xf0]  ;;  %6129 = vmatmul.bf16.vlgmr.msra.gmra.mxu1 %v14151_v38 }
 0x51c   :  { %v13550_v11 = vld [vmem:[#allocation5 + $0x17dc] sm:$0xf]  ;;  %v11370_v6 = vor.u32 %v13486_v51, %v11367_v46  ;;  %6160 = vmatpush.bf16.msrb.mxu0 %v11114_v5 }
 0x51d   :  { %v11623_v63 = vld [vmem:[#allocation5 + $0x17f8] sm:$0xf0]  ;;  %6142 = vmatmul.bf16.vlgmr.msra.gmra.mxu2 %v14155_v42 }
 0x51e   :  { %v13350_v2 = vld [vmem:[#allocation5 + $0x119c] sm:$0xf]  ;;  %v11626_v7 = vor.u32 %v13550_v11, %v11623_v63  ;;  %6173 = vmatpush.bf16.msrb.mxu1 %v11370_v6 }
 0x51f   :  { %v10823_v12 = vld [vmem:[#allocation5 + $0x11b8] sm:$0xf0] }
 0x520   :  { %v13414_v8 = vld [vmem:[#allocation5 + $0x139c] sm:$0xf]  ;;  %v10826_v3 = vor.u32 %v13350_v2, %v10823_v12  ;;  %6186 = vmatpush.bf16.msrb.mxu2 %v11626_v7  ;;  %v14350_v2 = vpop.f32.mrf.mxu0  ;;  %v14352_v12 = vpop.f32.mrf.mxu1 }
 0x521   :  { %v11079_v49 = vld [vmem:[#allocation5 + $0x13b8] sm:$0xf0] }
 0x522   :  { %v13478_v10 = vld [vmem:[#allocation5 + $0x159c] sm:$0xf]  ;;  %v11082_v22 = vor.u32 %v13414_v8, %v11079_v49  ;;  %6148 = vmatpush.bf16.msra.mxu3 %v10826_v3 }
 0x523   :  { %v11335_v16 = vld [vmem:[#allocation5 + $0x15b8] sm:$0xf0] }
 0x524   :  { %v13542_v36 = vld [vmem:[#allocation5 + $0x179c] sm:$0xf]  ;;  %v11338_v23 = vor.u32 %v13478_v10, %v11335_v16  ;;  %6161 = vmatpush.bf16.msrb.mxu0 %v11082_v22  ;;  %v14355_v22 = vpop.f32.mrf.mxu3 }
 0x525   :  { %v11591_v14 = vld [vmem:[#allocation5 + $0x17b8] sm:$0xf0] }
 0x526   :  { %v13342_v17 = vld [vmem:[#allocation5 + $0x115c] sm:$0xf]  ;;  %v11594_v28 = vor.u32 %v13542_v36, %v11591_v14  ;;  %6174 = vmatpush.bf16.msrb.mxu1 %v11338_v23 }
 0x527   :  { %v10791_v21 = vld [vmem:[#allocation5 + $0x1178] sm:$0xf0] }
 0x528   :  { %v13406_v15 = vld [vmem:[#allocation5 + $0x135c] sm:$0xf]  ;;  %v10794_v25 = vor.u32 %v13342_v17, %v10791_v21  ;;  %6187 = vmatpush.bf16.msrb.mxu2 %v11594_v28  ;;  %v3286_v21 = vunpack.c.h.b16 %v14324_v9  ;;  %v14357_v28 = vpop.f32.mrf.mxu2 }
 0x529   :  { %v11047_v27 = vld [vmem:[#allocation5 + $0x1378] sm:$0xf0] }
 0x52a   :  { %v13470_v50 = vld [vmem:[#allocation5 + $0x155c] sm:$0xf]  ;;  %v11050_v45 = vor.u32 %v13406_v15, %v11047_v27  ;;  %6149 = vmatpush.bf16.msra.mxu3 %v10794_v25 }
 0x52b   :  { %v11303_v29 = vld [vmem:[#allocation5 + $0x1578] sm:$0xf0] }
 0x52c   :  { %v13534_v32 = vld [vmem:[#allocation5 + $0x175c] sm:$0xf]  ;;  %v11306_v26 = vor.u32 %v13470_v50, %v11303_v29  ;;  %6162 = vmatpush.bf16.msrb.mxu0 %v11050_v45  ;;  %v4062_v45 = vpack.c.b16 %v3286_v21, %v3286_v21  ;;  %v13645_v21 = vld [vmem:[#allocation8 + $0x2cc] sm:$0xf0] }
 0x52d   :  { %v11559_v40 = vld [vmem:[#allocation5 + $0x1778] sm:$0xf0] }
 0x52e   :  { %v13334_v35 = vld [vmem:[#allocation5 + $0x111c] sm:$0xf]  ;;  %v11562_v39 = vor.u32 %v13534_v32, %v11559_v40  ;;  %6175 = vmatpush.bf16.msrb.mxu1 %v11306_v26  ;;  %v5911_v26 = vpop.f32.mrf.mxu0 }
 0x52f   :  { %v10759_v33 = vld [vmem:[#allocation5 + $0x1138] sm:$0xf0] }
 0x530   :  { %v13398_v43 = vld [vmem:[#allocation5 + $0x131c] sm:$0xf]  ;;  %v10762_v56 = vor.u32 %v13334_v35, %v10759_v33  ;;  %6188 = vmatpush.bf16.msrb.mxu2 %v11562_v39  ;;  %v5924_v39 = vpop.f32.mrf.mxu1 }
 0x531   :  { %v11015_v53 = vld [vmem:[#allocation5 + $0x1338] sm:$0xf0] }
 0x532   :  { %v13462_v55 = vld [vmem:[#allocation5 + $0x151c] sm:$0xf]  ;;  %v11018_v42 = vor.u32 %v13398_v43, %v11015_v53  ;;  %6150 = vmatpush.bf16.msra.mxu3 %v10762_v56 }
 0x533   :  { %v11271_v44 = vld [vmem:[#allocation5 + $0x1538] sm:$0xf0] }
 0x534   :  { %v13526_v57 = vld [vmem:[#allocation5 + $0x171c] sm:$0xf]  ;;  %v11274_v52 = vor.u32 %v13462_v55, %v11271_v44  ;;  %6163 = vmatpush.bf16.msrb.mxu0 %v11018_v42 }
 0x535   :  { %v11527_v41 = vld [vmem:[#allocation5 + $0x1738] sm:$0xf0] }
 0x536   :  { %v13326_v54 = vld [vmem:[#allocation5 + $0x10dc] sm:$0xf]  ;;  %v11530_v38 = vor.u32 %v13526_v57, %v11527_v41  ;;  %6176 = vmatpush.bf16.msrb.mxu1 %v11274_v52  ;;  %v11749_v52 = vld [vmem:[#allocation8 + $0xe0] sm:$0xf] }
 0x537   :  { %v10727_v61 = vld [vmem:[#allocation5 + $0x10f8] sm:$0xf0] }
 0x538   :  { %v13390_v58 = vld [vmem:[#allocation5 + $0x12dc] sm:$0xf]  ;;  %v10730_v46 = vor.u32 %v13326_v54, %v10727_v61  ;;  %6189 = vmatpush.bf16.msrb.mxu2 %v11530_v38  ;;  %v4858_v38 = vsel %vm4835_vm0, %v4062_v45, 0  ;;  %v13673_v45 = vld [vmem:[#allocation8 + $0x3ac] sm:$0xf0] }
 0x539   :  { %v10983_v51 = vld [vmem:[#allocation5 + $0x12f8] sm:$0xf0] }
 0x53a   :  { %v13454_v4 = vld [vmem:[#allocation5 + $0x14dc] sm:$0xf]  ;;  %v10986_v1 = vor.u32 %v13390_v58, %v10983_v51  ;;  %6151 = vmatpush.bf16.msra.mxu3 %v10730_v46  ;;  %v13585_v58 = vld [vmem:[#allocation8 + $0xec] sm:$0xf0]  ;;  %v11877_v51 = vld [vmem:[#allocation8 + $0x1e0] sm:$0xf] }
 0x53b   :  { %v11239_v11 = vld [vmem:[#allocation5 + $0x14f8] sm:$0xf0] }
 0x53c   :  { %v13518_v63 = vld [vmem:[#allocation5 + $0x16dc] sm:$0xf]  ;;  %v11242_v5 = vor.u32 %v13454_v4, %v11239_v11  ;;  %6164 = vmatpush.bf16.msrb.mxu0 %v10986_v1  ;;  %v5898_v4 = vpop.f32.mrf.mxu3  ;;  %v13617_v11 = vld [vmem:[#allocation8 + $0x1ec] sm:$0xf0]  ;;  %v12133_v1 = vld [vmem:[#allocation8 + $0x3e0] sm:$0xf] }
 0x53d   :  { %v11495_v59 = vld [vmem:[#allocation5 + $0x16f8] sm:$0xf0]  ;;  %v11813_v4 = vld [vmem:[#allocation8 + $0x160] sm:$0xf] }
 0x53e   :  { %v13318_v13 = vld [vmem:[#allocation5 + $0x109c] sm:$0xf]  ;;  %v11498_v6 = vor.u32 %v13518_v63, %v11495_v59  ;;  %6177 = vmatpush.bf16.msrb.mxu1 %v11242_v5  ;;  %v12005_v63 = vld [vmem:[#allocation8 + $0x2e0] sm:$0xf]  ;;  %v13649_v59 = vld [vmem:[#allocation8 + $0x2ec] sm:$0xf0] }
 0x53f   :  { %v10695_v0 = vld [vmem:[#allocation5 + $0x10b8] sm:$0xf0]  ;;  %v13681_v5 = vld [vmem:[#allocation8 + $0x3ec] sm:$0xf0] }
 0x540   :  { %v13382_v7 = vld [vmem:[#allocation5 + $0x129c] sm:$0xf]  ;;  %v10698_v10 = vor.u32 %v13318_v13, %v10695_v0  ;;  %6190 = vmatpush.bf16.msrb.mxu2 %v11498_v6  ;;  %v5885_v13 = vpop.f32.mrf.mxu2 }
 0x541   :  { %v10951_v8 = vld [vmem:[#allocation5 + $0x12b8] sm:$0xf0]  ;;  %v14367_v13 = vpop.f32.mrf.mxu0 }
 0x542   :  { %v13446_v49 = vld [vmem:[#allocation5 + $0x149c] sm:$0xf]  ;;  %v10954_v23 = vor.u32 %v13382_v7, %v10951_v8  ;;  %6152 = vmatpush.bf16.msra.mxu3 %v10698_v10  ;;  %v11750_v7 = vor.u32 %v13585_v58, %v11749_v52  ;;  %v11878_v8 = vor.u32 %v13617_v11, %v11877_v51  ;;  %v11733_v10 = vld [vmem:[#allocation8 + $0xc0] sm:$0xf]  ;;  %v13569_v51 = vld [vmem:[#allocation8 + $0x6c] sm:$0xf0] }
 0x543   :  { %v11207_v3 = vld [vmem:[#allocation5 + $0x14b8] sm:$0xf0]  ;;  %v11685_v58 = vld [vmem:[#allocation8 + $0x60] sm:$0xf]  ;;  %v13601_v11 = vld [vmem:[#allocation8 + $0x16c] sm:$0xf0] }
 0x544   :  { %v13510_v16 = vld [vmem:[#allocation5 + $0x169c] sm:$0xf]  ;;  %v11210_v15 = vor.u32 %v13446_v49, %v11207_v3  ;;  %6165 = vmatpush.bf16.msrb.mxu0 %v10954_v23  ;;  %v12006_v49 = vor.u32 %v13649_v59, %v12005_v63  ;;  %v13581_v3 = vld [vmem:[#allocation8 + $0xcc] sm:$0xf0]  ;;  %v12117_v23 = vld [vmem:[#allocation8 + $0x3c0] sm:$0xf] }
 0x545   :  { %v11463_v36 = vld [vmem:[#allocation5 + $0x16b8] sm:$0xf0]  ;;  %v11941_v63 = vld [vmem:[#allocation8 + $0x260] sm:$0xf]  ;;  %v13633_v59 = vld [vmem:[#allocation8 + $0x26c] sm:$0xf0] }
 0x546   :  { %v13310_v14 = vld [vmem:[#allocation5 + $0x105c] sm:$0xf]  ;;  %v11466_v27 = vor.u32 %v13510_v16, %v11463_v36  ;;  %6178 = vmatpush.bf16.msrb.mxu1 %v11210_v15  ;;  %v11861_v16 = vld [vmem:[#allocation8 + $0x1c0] sm:$0xf]  ;;  %v12134_v36 = vor.u32 %v13681_v5, %v12133_v1  ;;  %v13677_v15 = vld [vmem:[#allocation8 + $0x3cc] sm:$0xf0] }
 0x547   :  { %v10663_v17 = vld [vmem:[#allocation5 + $0x1078] sm:$0xf0]  ;;  %v12069_v1 = vld [vmem:[#allocation8 + $0x360] sm:$0xf]  ;;  %v13665_v5 = vld [vmem:[#allocation8 + $0x36c] sm:$0xf0] }
 0x548   :  { %v13374_v50 = vld [vmem:[#allocation5 + $0x125c] sm:$0xf]  ;;  %v10666_v29 = vor.u32 %v13310_v14, %v10663_v17  ;;  %6191 = vmatpush.bf16.msrb.mxu2 %v11466_v27  ;;  %v13613_v14 = vld [vmem:[#allocation8 + $0x1cc] sm:$0xf0]  ;;  %v11989_v17 = vld [vmem:[#allocation8 + $0x2c0] sm:$0xf]  ;;  %v11734_v27 = vor.u32 %v13581_v3, %v11733_v10 }
 0x549   :  { %v10919_v34 = vld [vmem:[#allocation5 + $0x1278] sm:$0xf0]  ;;  %v13565_v10 = vld [vmem:[#allocation8 + $0x4c] sm:$0xf0]  ;;  %v11797_v3 = vld [vmem:[#allocation8 + $0x140] sm:$0xf] }
 0x54a   :  { %v13438_v25 = vld [vmem:[#allocation5 + $0x145c] sm:$0xf]  ;;  %v10922_v43 = vor.u32 %v13374_v50, %v10919_v34  ;;  %6153 = vmatpush.bf16.msra.mxu3 %v10666_v29  ;;  %v11862_v50 = vor.u32 %v13613_v14, %v11861_v16  ;;  %v11990_v34 = vor.u32 %v13645_v21, %v11989_v17  ;;  %v13577_v29 = vld [vmem:[#allocation8 + $0xac] sm:$0xf0]  ;;  %v14373_v14 = vpop.f32.mrf.mxu3  ;;  %v11925_v21 = vld [vmem:[#allocation8 + $0x240] sm:$0xf] }
 0x54b   :  { %v11175_v32 = vld [vmem:[#allocation5 + $0x1478] sm:$0xf0]  ;;  %v13597_v17 = vld [vmem:[#allocation8 + $0x14c] sm:$0xf0] }
 0x54c   :  { %v13502_v40 = vld [vmem:[#allocation5 + $0x165c] sm:$0xf]  ;;  %v11178_v55 = vor.u32 %v13438_v25, %v11175_v32  ;;  %6166 = vmatpush.bf16.msrb.mxu0 %v10922_v43  ;;  %v11717_v25 = vld [vmem:[#allocation8 + $0xa0] sm:$0xf] }
 0x54d   :  { %v11431_v35 = vld [vmem:[#allocation5 + $0x1678] sm:$0xf0]  ;;  %v11845_v32 = vld [vmem:[#allocation8 + $0x1a0] sm:$0xf]  ;;  %v11718_v26 = vor.u32 %v13577_v29, %v11717_v25  ;;  %v11798_v29 = vor.u32 %v13597_v17, %v11797_v3 }
 0x54e   :  { %v13302_v33 = vld [vmem:[#allocation5 + $0x101c] sm:$0xf]  ;;  %v11434_v56 = vor.u32 %v13502_v40, %v11431_v35  ;;  %6179 = vmatpush.bf16.msrb.mxu1 %v11178_v55  ;;  %v12118_v40 = vor.u32 %v13677_v15, %v12117_v23  ;;  %v13609_v35 = vld [vmem:[#allocation8 + $0x1ac] sm:$0xf0]  ;;  %v6220_v15 = vmul.f32 0.01, %v14209_v48 }
 0x54f   :  { %v10631_v9 = vld [vmem:[#allocation5 + $0x1038] sm:$0xf0]  ;;  %v11846_v39 = vor.u32 %v13609_v35, %v11845_v32  ;;  %v13573_v55 = vld [vmem:[#allocation8 + $0x8c] sm:$0xf0] }
 0x550   :  { %v13366_v53 = vld [vmem:[#allocation5 + $0x121c] sm:$0xf]  ;;  %v10634_v54 = vor.u32 %v13302_v33, %v10631_v9  ;;  %6192 = vmatpush.bf16.msrb.mxu2 %v11434_v56  ;;  %v11973_v33 = vld [vmem:[#allocation8 + $0x2a0] sm:$0xf]  ;;  %v13629_v23 = vld [vmem:[#allocation8 + $0x24c] sm:$0xf0] }
 0x551   :  { %v10887_v44 = vld [vmem:[#allocation5 + $0x1238] sm:$0xf0]  ;;  %v12101_v9 = vld [vmem:[#allocation8 + $0x3a0] sm:$0xf]  ;;  %v11926_v32 = vor.u32 %v13629_v23, %v11925_v21  ;;  %v13561_v35 = vld [vmem:[#allocation8 + $0x2c] sm:$0xf0] }
 0x552   :  { %v13430_v57 = vld [vmem:[#allocation5 + $0x141c] sm:$0xf]  ;;  %v10890_v46 = vor.u32 %v13366_v53, %v10887_v44  ;;  %6154 = vmatpush.bf16.msra.mxu3 %v10634_v54  ;;  %v11701_v53 = vld [vmem:[#allocation8 + $0x80] sm:$0xf]  ;;  %v13605_v44 = vld [vmem:[#allocation8 + $0x18c] sm:$0xf0] }
 0x553   :  { %v11143_v41 = vld [vmem:[#allocation5 + $0x1438] sm:$0xf0]  ;;  %v11829_v56 = vld [vmem:[#allocation8 + $0x180] sm:$0xf] }
 0x554   :  { %v13494_v61 = vld [vmem:[#allocation5 + $0x161c] sm:$0xf]  ;;  %v11146_v0 = vor.u32 %v13430_v57, %v11143_v41  ;;  %6167 = vmatpush.bf16.msrb.mxu0 %v10890_v46  ;;  %v11957_v57 = vld [vmem:[#allocation8 + $0x280] sm:$0xf]  ;;  %v13637_v41 = vld [vmem:[#allocation8 + $0x28c] sm:$0xf0]  ;;  %v11830_v52 = vor.u32 %v13605_v44, %v11829_v56 }
 0x555   :  { %v11399_v42 = vld [vmem:[#allocation5 + $0x1638] sm:$0xf0]  ;;  %6155 = vmatmul.bf16.vlgmr.msra.gmra.mxu3 %v14166_v19  ;;  %v13641_v19 = vld [vmem:[#allocation8 + $0x2ac] sm:$0xf0]  ;;  %v12085_v54 = vld [vmem:[#allocation8 + $0x380] sm:$0xf] }
 0x556   :  { %v11402_v6 = vor.u32 %v13494_v61, %v11399_v42  ;;  %6206 = vmatpush.bf16.msrb.mxu3 %v4858_v38  ;;  %6180 = vmatpush.bf16.msrb.mxu1 %v11146_v0  ;;  %v11974_v43 = vor.u32 %v13641_v19, %v11973_v33  ;;  %v14364_v61 = vld [vmem:[#allocation7] sm:$0xff]  ;;  %v11702_v42 = vor.u32 %v13573_v55, %v11701_v53  ;;  %v14369_v0 = vpop.f32.mrf.mxu1  ;;  %v11781_v33 = vld [vmem:[#allocation8 + $0x120] sm:$0xf]  ;;  %v6222_v53 = vmul.f32 0.01, %v14263_v47 }
 0x557   :  { %6168 = vmatmul.bf16.vlgmr.msrb.gmra.mxu0 %v14170_v24  ;;  %v12102_v24 = vor.u32 %v13673_v45, %v12101_v9  ;;  %v11958_v38 = vor.u32 %v13637_v41, %v11957_v57  ;;  %v13593_v9 = vld [vmem:[#allocation8 + $0x12c] sm:$0xf0]  ;;  %v11909_v45 = vld [vmem:[#allocation8 + $0x220] sm:$0xf] }
 0x558   :  { %6193 = vmatpush.bf16.msrb.mxu2 %v11402_v6  ;;  %7790 = vmatpush.bf16.msra.mxu0 %v11750_v7  ;;  %v11686_v6 = vor.u32 %v13569_v51, %v11685_v58  ;;  %v11814_v7 = vor.u32 %v13601_v11, %v11813_v4  ;;  %v12037_v55 = vld [vmem:[#allocation8 + $0x320] sm:$0xf]  ;;  %v13657_v56 = vld [vmem:[#allocation8 + $0x32c] sm:$0xf0]  ;;  %v6230_v21 = vsel %vm6214_vm4, %v14263_v47, %v6222_v53 }
 0x559   :  { %6181 = vmatmul.bf16.vlgmr.msrb.gmra.mxu1 %v14168_v20  ;;  %v961_v20 = vperm.slane %v14364_v61, 6  ;;  %v11637_v57 = vld [vmem:[#allocation8] sm:$0xf]  ;;  %v13557_v41 = vld [vmem:[#allocation8 + $0xc] sm:$0xf0]  ;;  %v14405_v47 = vpack.c.bf16 %v6230_v21, %v6230_v21 }
 0x55a   :  { %7803 = vmatpush.bf16.msra.mxu1 %v11878_v8  ;;  %7829 = vmatpush.bf16.msra.mxu3 %v12134_v36  ;;  %v11942_v8 = vor.u32 %v13633_v59, %v11941_v63  ;;  %v12070_v36 = vor.u32 %v13665_v5, %v12069_v1  ;;  %v13621_v58 = vld [vmem:[#allocation8 + $0x20c] sm:$0xf0]  ;;  %v12021_v51 = vld [vmem:[#allocation8 + $0x300] sm:$0xf]  ;;  %v11638_v5 = vor.u32 %v13557_v41, %v11637_v57 }
 0x55b   :  { %6194 = vmatmul.bf16.vlgmr.msrb.gmra.mxu2 %v14173_v31  ;;  %v13669_v31 = vld [vmem:[#allocation8 + $0x38c] sm:$0xf0]  ;;  %v5884_v16 = vadd.f32 %v14357_v28, %v961_v20  ;;  %v6221_v28 = vmul.f32 0.01, %v14236_v30  ;;  %v12261_v11 = vld [vmem:[#allocation8 + $0x4e0] sm:$0xf] }
 0x55c   :  { %7816 = vmatpush.bf16.msra.mxu2 %v12006_v49  ;;  %7791 = vmatpush.bf16.msra.mxu0 %v11734_v27  ;;  %v12086_v46 = vor.u32 %v13669_v31, %v12085_v54  ;;  %v11669_v49 = vld [vmem:[#allocation8 + $0x40] sm:$0xf]  ;;  %v14378_v27 = vpop.f32.mrf.mxu2  ;;  %v13589_v20 = vld [vmem:[#allocation8 + $0x10c] sm:$0xf0] }
 0x55d   :  { %v11670_v25 = vor.u32 %v13565_v10, %v11669_v49  ;;  %v11765_v31 = vld [vmem:[#allocation8 + $0x100] sm:$0xf]  ;;  %v13653_v4 = vld [vmem:[#allocation8 + $0x30c] sm:$0xf0]  ;;  %v6228_v49 = vsel %vm6212_vm2, %v14209_v48, %v6220_v15  ;;  %v6229_v3 = vsel %vm6213_vm3, %v14236_v30, %v6221_v28 }
 0x55e   :  { %7804 = vmatpush.bf16.msra.mxu1 %v11862_v50  ;;  %7830 = vmatpush.bf16.msra.mxu3 %v12118_v40  ;;  %v12053_v50 = vld [vmem:[#allocation8 + $0x340] sm:$0xf]  ;;  %v13713_v63 = vld [vmem:[#allocation8 + $0x4ec] sm:$0xf0] }
 0x55f   :  { %v11653_v40 = vld [vmem:[#allocation8 + $0x20] sm:$0xf]  ;;  %v12262_v17 = vor.u32 %v13713_v63, %v12261_v11  ;;  %v13741_v30 = vld [vmem:[#allocation8 + $0x5cc] sm:$0xf0] }
 0x560   :  { %7817 = vmatpush.bf16.msra.mxu2 %v11990_v34  ;;  %7792 = vmatpush.bf16.msra.mxu0 %v11718_v26  ;;  %v13661_v34 = vld [vmem:[#allocation8 + $0x34c] sm:$0xf0]  ;;  %v11654_v44 = vor.u32 %v13561_v35, %v11653_v40  ;;  %v12389_v59 = vld [vmem:[#allocation8 + $0x5e0] sm:$0xf] }
 0x561   :  { %v12054_v19 = vor.u32 %v13661_v34, %v12053_v50  ;;  %v13625_v26 = vld [vmem:[#allocation8 + $0x22c] sm:$0xf0]  ;;  %v12245_v15 = vld [vmem:[#allocation8 + $0x4c0] sm:$0xf] }
 0x562   :  { %7805 = vmatpush.bf16.msra.mxu1 %v11846_v39  ;;  %7831 = vmatpush.bf16.msra.mxu3 %v12102_v24  ;;  %v5963_v39 = vpop.f32.mrf.mxu0  ;;  %v6223_v24 = vmul.f32 0.01, %v14290_v37  ;;  %v11910_v54 = vor.u32 %v13625_v26, %v11909_v45  ;;  %v13709_v50 = vld [vmem:[#allocation8 + $0x4cc] sm:$0xf0]  ;;  %v12373_v34 = vld [vmem:[#allocation8 + $0x5c0] sm:$0xf] }
 0x563   :  { %v12501_v28 = vld [vmem:[#allocation8 + $0x6c0] sm:$0xf]  ;;  %v12246_v35 = vor.u32 %v13709_v50, %v12245_v15  ;;  %v13737_v26 = vld [vmem:[#allocation8 + $0x5ac] sm:$0xf0] }
 0x564   :  { %7818 = vmatpush.bf16.msra.mxu2 %v11974_v43  ;;  %7793 = vmatpush.bf16.msra.mxu0 %v11702_v42  ;;  %v5976_v43 = vpop.f32.mrf.mxu1  ;;  %v11893_v42 = vld [vmem:[#allocation8 + $0x200] sm:$0xf]  ;;  %v5937_v1 = vpop.f32.mrf.mxu2  ;;  %v13733_v41 = vld [vmem:[#allocation8 + $0x58c] sm:$0xf0] }
 0x565   :  { %11634 = vmatmul.msk.bf16.vlgmr.msrb.gmra.mxu3 %vm4831_vm1, %v14179_v18  ;;  %v5897_v18 = vadd.f32 %v14355_v22, %v5884_v16  ;;  %v11782_v22 = vor.u32 %v13593_v9, %v11781_v33  ;;  %v11894_v10 = vor.u32 %v13621_v58, %v11893_v42  ;;  %v13705_v9 = vld [vmem:[#allocation8 + $0x4ac] sm:$0xf0]  ;;  %v12357_v45 = vld [vmem:[#allocation8 + $0x5a0] sm:$0xf] }
 0x566   :  { %7806 = vmatpush.bf16.msra.mxu1 %v11830_v52  ;;  %7832 = vmatpush.bf16.msra.mxu3 %v12086_v46  ;;  %v5950_v46 = vpop.f32.mrf.mxu3  ;;  %v12485_v39 = vld [vmem:[#allocation8 + $0x6a0] sm:$0xf]  ;;  %v13769_v43 = vld [vmem:[#allocation8 + $0x6ac] sm:$0xf0] }
 0x567   :  { %v5910_v52 = vadd.f32 %v14350_v2, %v5897_v18  ;;  %v11766_v2 = vor.u32 %v13589_v20, %v11765_v31  ;;  %v12341_v57 = vld [vmem:[#allocation8 + $0x580] sm:$0xf]  ;;  %v13697_v58 = vld [vmem:[#allocation8 + $0x46c] sm:$0xf0] }
 0x568   :  { %7819 = vmatpush.bf16.msra.mxu2 %v11958_v38  ;;  %7794 = vmatpush.bf16.msra.mxu0 %v11686_v6  ;;  %v12038_v38 = vor.u32 %v13657_v56, %v12037_v55  ;;  %v13745_v6 = vld [vmem:[#allocation8 + $0x5ec] sm:$0xf0]  ;;  %v12358_v55 = vor.u32 %v13737_v26, %v12357_v45  ;;  %v12486_v56 = vor.u32 %v13769_v43, %v12485_v39  ;;  %v12453_v11 = vld [vmem:[#allocation8 + $0x660] sm:$0xf] }
 0x569   :  { %v5923_v16 = vadd.f32 %v14352_v12, %v5910_v52  ;;  %v12390_v48 = vor.u32 %v13745_v6, %v12389_v59  ;;  %v13773_v12 = vld [vmem:[#allocation8 + $0x6cc] sm:$0xf0]  ;;  %v12293_v50 = vld [vmem:[#allocation8 + $0x520] sm:$0xf] }
 0x56a   :  { %7807 = vmatpush.bf16.msra.mxu1 %v11814_v7  ;;  %7833 = vmatpush.bf16.msra.mxu3 %v12070_v36  ;;  %v12517_v7 = vld [vmem:[#allocation8 + $0x6e0] sm:$0xf]  ;;  %v12022_v36 = vor.u32 %v13653_v4, %v12021_v51  ;;  %v12502_v18 = vor.u32 %v13773_v12, %v12501_v28  ;;  %v6013_v42 = vpop.f32.mrf.mxu0  ;;  %v13729_v46 = vld [vmem:[#allocation8 + $0x56c] sm:$0xf0] }
 0x56b   :  { %v5936_v40 = vadd.f32 %v14378_v27, %v5923_v16  ;;  %v12325_v51 = vld [vmem:[#allocation8 + $0x560] sm:$0xf]  ;;  %v13761_v63 = vld [vmem:[#allocation8 + $0x66c] sm:$0xf0] }
 0x56c   :  { %7820 = vmatpush.bf16.msra.mxu2 %v11942_v8  ;;  %7795 = vmatpush.bf16.msra.mxu0 %v11670_v25  ;;  %v13777_v8 = vld [vmem:[#allocation8 + $0x6ec] sm:$0xf0]  ;;  %v6231_v25 = vsel %vm6215_vm5, %v14290_v37, %v6223_v24  ;;  %v12374_v37 = vor.u32 %v13741_v30, %v12373_v34  ;;  %v12213_v24 = vld [vmem:[#allocation8 + $0x480] sm:$0xf]  ;;  %v14416_v4 = vpop.f32.mrf.mxu1  ;;  %v5987_v59 = vpop.f32.mrf.mxu2  ;;  %v12454_v6 = vor.u32 %v13761_v63, %v12453_v11 }
 0x56d   :  { %v12518_v23 = vor.u32 %v13777_v8, %v12517_v7  ;;  %v14408_v33 = vpack.c.bf16 %v6231_v25, %v6231_v25  ;;  %v5949_v27 = vadd.f32 %v14373_v14, %v5936_v40  ;;  %v12342_v14 = vor.u32 %v13733_v41, %v12341_v57  ;;  %v12181_v7 = vld [vmem:[#allocation8 + $0x440] sm:$0xf]  ;;  %v13693_v8 = vld [vmem:[#allocation8 + $0x44c] sm:$0xf0]  ;;  %v13615_v57 = vld [vmem:[#allocation8 + $0x1e4] sm:$0xf] }
 0x56e   :  { %7808 = vmatpush.bf16.msra.mxu1 %v11798_v29  ;;  %7834 = vmatpush.bf16.msra.mxu3 %v12054_v19  ;;  %v14401_v29 = vpack.c.bf16 %v6228_v49, %v6228_v49  ;;  %v12229_v19 = vld [vmem:[#allocation8 + $0x4a0] sm:$0xf]  ;;  %v13689_v15 = vld [vmem:[#allocation8 + $0x42c] sm:$0xf0]  ;;  %v6224_v40 = vmul.f32 0.01, %v14317_v60 }
 0x56f   :  { %v12230_v53 = vor.u32 %v13705_v9, %v12229_v19  ;;  %v5962_v31 = vadd.f32 %v14367_v13, %v5949_v27  ;;  %v12309_v49 = vld [vmem:[#allocation8 + $0x540] sm:$0xf]  ;;  %v13721_v30 = vld [vmem:[#allocation8 + $0x52c] sm:$0xf0]  ;;  %v11879_v41 = vld [vmem:[#allocation8 + $0x1f0] sm:$0xf0] }
 0x570   :  { %7821 = vmatpush.bf16.msra.mxu2 %v11926_v32  ;;  %7796 = vmatpush.bf16.msra.mxu0 %v11654_v44  ;;  %v14403_v32 = vpack.c.bf16 %v6229_v3, %v6229_v3  ;;  %v13701_v44 = vld [vmem:[#allocation8 + $0x48c] sm:$0xf0]  ;;  %v12437_v16 = vld [vmem:[#allocation8 + $0x640] sm:$0xf]  ;;  %v12294_v9 = vor.u32 %v13721_v30, %v12293_v50  ;;  %v13571_v50 = vld [vmem:[#allocation8 + $0x84] sm:$0xf] }
 0x571   :  { %v12214_v20 = vor.u32 %v13701_v44, %v12213_v24  ;;  %v5975_v1 = vadd.f32 %v14369_v0, %v5962_v31  ;;  %v13725_v3 = vld [vmem:[#allocation8 + $0x54c] sm:$0xf0]  ;;  %v12421_v28 = vld [vmem:[#allocation8 + $0x620] sm:$0xf]  ;;  %v11751_v44 = vld [vmem:[#allocation8 + $0xf0] sm:$0xf0] }
 0x572   :  { %7809 = vmatpush.bf16.msra.mxu1 %v11782_v22  ;;  %7835 = vmatpush.bf16.msra.mxu3 %v12038_v38  ;;  %v12469_v22 = vld [vmem:[#allocation8 + $0x680] sm:$0xf]  ;;  %v6015_v21 = vpop.f32.mrf.mxu0  ;;  %v12310_v0 = vor.u32 %v13725_v3, %v12309_v49  ;;  %v13753_v12 = vld [vmem:[#allocation8 + $0x62c] sm:$0xf0]  ;;  %v12007_v31 = vld [vmem:[#allocation8 + $0x2f0] sm:$0xf0] }
 0x573   :  { %v12197_v38 = vld [vmem:[#allocation8 + $0x460] sm:$0xf]  ;;  %v12422_v45 = vor.u32 %v13753_v12, %v12421_v28  ;;  %v13685_v26 = vld [vmem:[#allocation8 + $0x40c] sm:$0xf0]  ;;  %v11719_v3 = vld [vmem:[#allocation8 + $0xb0] sm:$0xf0] }
 0x574   :  { %7822 = vmatpush.bf16.msra.mxu2 %v11910_v54  ;;  %7797 = vmatpush.bf16.msra.mxu0 %v11638_v5  ;;  %v13765_v54 = vld [vmem:[#allocation8 + $0x68c] sm:$0xf0]  ;;  %v12198_v13 = vor.u32 %v13697_v58, %v12197_v38  ;;  %v12326_v5 = vor.u32 %v13729_v46, %v12325_v51  ;;  %v6028_v34 = vpop.f32.mrf.mxu1  ;;  %v12149_v19 = vld [vmem:[#allocation8 + $0x400] sm:$0xf]  ;;  %v11882_v51 = vor.u32 %v13615_v57, %v11879_v41  ;;  %v13579_v46 = vld [vmem:[#allocation8 + $0xc4] sm:$0xf] }
 0x575   :  { %v12470_v52 = vor.u32 %v13765_v54, %v12469_v22  ;;  %v12277_v39 = vld [vmem:[#allocation8 + $0x500] sm:$0xf]  ;;  %v13717_v43 = vld [vmem:[#allocation8 + $0x50c] sm:$0xf0]  ;;  %v12150_v22 = vor.u32 %v13685_v26, %v12149_v19  ;;  %v13647_v54 = vld [vmem:[#allocation8 + $0x2e4] sm:$0xf] }
 0x576   :  { %7810 = vmatpush.bf16.msra.mxu1 %v11766_v2  ;;  %7836 = vmatpush.bf16.msra.mxu3 %v12022_v36  ;;  %v5988_v2 = vadd.f32 %v5987_v59, %v5975_v1  ;;  %v13757_v36 = vld [vmem:[#allocation8 + $0x64c] sm:$0xf0]  ;;  %v12010_v11 = vor.u32 %v13647_v54, %v12007_v31  ;;  %v11735_v59 = vld [vmem:[#allocation8 + $0xd0] sm:$0xf0]  ;;  %v13611_v1 = vld [vmem:[#allocation8 + $0x1c4] sm:$0xf] }
 0x577   :  { %7798 = vmatmul.bf16.vlgmr.msra.gmra.mxu0 %v14401_v29  ;;  %v13639_v21 = vld [vmem:[#allocation8 + $0x2a4] sm:$0xf]  ;;  %v12645_v34 = vld [vmem:[#allocation8 + $0x7e0] sm:$0xf]  ;;  %v11703_v28 = vld [vmem:[#allocation8 + $0x90] sm:$0xf0] }
 0x578   :  { %7823 = vmatpush.bf16.msra.mxu2 %v11894_v10  ;;  %7842 = vmatpush.bf16.msrb.mxu0 %v12262_v17  ;;  %v6000_v10 = vpop.f32.mrf.mxu3  ;;  %v12182_v17 = vor.u32 %v13693_v8, %v12181_v7  ;;  %v13603_v12 = vld [vmem:[#allocation8 + $0x184] sm:$0xf]  ;;  %v11959_v19 = vld [vmem:[#allocation8 + $0x290] sm:$0xf0] }
 0x579   :  { %7811 = vmatmul.bf16.vlgmr.msra.gmra.mxu1 %v14403_v32  ;;  %7837 = vmatmul.bf16.vlgmr.msra.gmra.mxu3 %v14408_v33  ;;  %v6001_v25 = vadd.f32 %v6000_v10, %v5988_v2  ;;  %v13575_v2 = vld [vmem:[#allocation8 + $0xa4] sm:$0xf] }
 0x57a   :  { %7855 = vmatpush.bf16.msrb.mxu1 %v12390_v48  ;;  %v12438_v48 = vor.u32 %v13757_v36, %v12437_v16  ;;  %v13607_v16 = vld [vmem:[#allocation8 + $0x1a4] sm:$0xf]  ;;  %v11847_v36 = vld [vmem:[#allocation8 + $0x1b0] sm:$0xf0] }
 0x57b   :  { %7824 = vmatmul.bf16.vlgmr.msra.gmra.mxu2 %v14405_v47  ;;  %v6014_v27 = vadd.f32 %v6013_v42, %v6001_v25  ;;  %v13809_v25 = vld [vmem:[#allocation8 + $0x7ec] sm:$0xf0]  ;;  %v13567_v26 = vld [vmem:[#allocation8 + $0x64] sm:$0xf] }
 0x57c   :  { %7868 = vmatpush.bf16.msrb.mxu2 %v12518_v23  ;;  %7843 = vmatpush.bf16.msrb.mxu0 %v12246_v35  ;;  %v12165_v23 = vld [vmem:[#allocation8 + $0x420] sm:$0xf]  ;;  %v5989_v35 = vpop.f32.mrf.mxu2  ;;  %v13631_v41 = vld [vmem:[#allocation8 + $0x264] sm:$0xf] }
 0x57d   :  { %v6027_v38 = vadd.f32 %v14416_v4, %v6014_v27  ;;  %v11738_v4 = vor.u32 %v13579_v46, %v11735_v59  ;;  %v11927_v59 = vld [vmem:[#allocation8 + $0x250] sm:$0xf0] }
 0x57e   :  { %7856 = vmatpush.bf16.msrb.mxu1 %v12374_v37  ;;  %v6225_v37 = vmul.f32 0.01, %v14344_v62 }
 0x580   :  { %7869 = vmatpush.bf16.msrb.mxu2 %v12502_v18  ;;  %7844 = vmatpush.bf16.msrb.mxu0 %v12230_v53  ;;  %v12166_v18 = vor.u32 %v13689_v15, %v12165_v23  ;;  %v12405_v53 = vld [vmem:[#allocation8 + $0x600] sm:$0xf]  ;;  %v6002_v24 = vpop.f32.mrf.mxu3  ;;  %v6233_v42 = vsel %vm6217_vm7, %v14344_v62, %v6225_v37  ;;  %v11722_v23 = vor.u32 %v13575_v2, %v11719_v3  ;;  %v13591_v2 = vld [vmem:[#allocation8 + $0x124] sm:$0xf] }
 0x581   :  { %v14432_v8 = vpack.c.bf16 %v6233_v42, %v6233_v42  ;;  %v11850_v15 = vor.u32 %v13607_v16, %v11847_v36  ;;  %v12646_v37 = vor.u32 %v13809_v25, %v12645_v34  ;;  %v14439_v24 = vpop.f32.mrf.mxu0  ;;  %v13587_v34 = vld [vmem:[#allocation8 + $0x104] sm:$0xf]  ;;  %v12581_v25 = vld [vmem:[#allocation8 + $0x760] sm:$0xf] }
 0x582   :  { %7857 = vmatpush.bf16.msrb.mxu1 %v12358_v55  ;;  %v13749_v55 = vld [vmem:[#allocation8 + $0x60c] sm:$0xf0] }
 0x583   :  { %7881 = vmatpush.bf16.msrb.mxu3 %v12646_v37 }
 0x584   :  { %7870 = vmatpush.bf16.msrb.mxu2 %v12486_v56  ;;  %7845 = vmatpush.bf16.msrb.mxu0 %v12214_v20  ;;  %v13583_v56 = vld [vmem:[#allocation8 + $0xe4] sm:$0xf]  ;;  %v6232_v20 = vsel %vm6216_vm6, %v14317_v60, %v6224_v40  ;;  %v6039_v63 = vpop.f32.mrf.mxu2  ;;  %v11831_v40 = vld [vmem:[#allocation8 + $0x190] sm:$0xf0] }
 0x585   :  { %v11754_v58 = vor.u32 %v13583_v56, %v11751_v44  ;;  %v6040_v60 = vadd.f32 %v6039_v63, %v6027_v38  ;;  %v14430_v7 = vpack.c.bf16 %v6232_v20, %v6232_v20  ;;  %v11815_v56 = vld [vmem:[#allocation8 + $0x170] sm:$0xf0]  ;;  %v14441_v44 = vpop.f32.mrf.mxu1  ;;  %v13563_v20 = vld [vmem:[#allocation8 + $0x44] sm:$0xf] }
 0x586   :  { %7858 = vmatpush.bf16.msrb.mxu1 %v12342_v14  ;;  %v12278_v14 = vor.u32 %v13717_v43, %v12277_v39  ;;  %v12629_v39 = vld [vmem:[#allocation8 + $0x7c0] sm:$0xf]  ;;  %v13805_v43 = vld [vmem:[#allocation8 + $0x7cc] sm:$0xf0]  ;;  %v11671_v38 = vld [vmem:[#allocation8 + $0x50] sm:$0xf0] }
 0x587   :  { %vm6218_vm8 = vcmp.ge.f32.partialorder %v6040_v60, 0.0  ;;  %v6226_v62 = vmul.f32 0.01, %v6040_v60  ;;  %v12630_v57 = vor.u32 %v13805_v43, %v12629_v39  ;;  %v13627_v63 = vld [vmem:[#allocation8 + $0x244] sm:$0xf] }
 0x588   :  { %7871 = vmatpush.bf16.msrb.mxu2 %v12470_v52  ;;  %7846 = vmatpush.bf16.msrb.mxu0 %v12198_v13  ;;  %v12406_v52 = vor.u32 %v13749_v55, %v12405_v53  ;;  %v11863_v13 = vld [vmem:[#allocation8 + $0x1d0] sm:$0xf0]  ;;  %v13599_v55 = vld [vmem:[#allocation8 + $0x164] sm:$0xf]  ;;  %v14443_v46 = vpop.f32.mrf.mxu3 }
 0x589   :  { %v11866_v49 = vor.u32 %v13611_v1, %v11863_v13  ;;  %v11687_v53 = vld [vmem:[#allocation8 + $0x70] sm:$0xf0]  ;;  %7882 = vmatpush.bf16.msrb.mxu3 %v12630_v57  ;;  %v11818_v31 = vor.u32 %v13599_v55, %v11815_v56  ;;  %v11674_v13 = vor.u32 %v13563_v20, %v11671_v38  ;;  %v6067_v3 = vpop.f32.mrf.mxu0  ;;  %v13775_v43 = vld [vmem:[#allocation8 + $0x6e4] sm:$0xf]  ;;  %v12565_v56 = vld [vmem:[#allocation8 + $0x740] sm:$0xf] }
 0x58a   :  { %7859 = vmatpush.bf16.msrb.mxu1 %v12326_v5  ;;  %v13643_v5 = vld [vmem:[#allocation8 + $0x2c4] sm:$0xf]  ;;  %v11690_v54 = vor.u32 %v13567_v26, %v11687_v53  ;;  %v12391_v39 = vld [vmem:[#allocation8 + $0x5f0] sm:$0xf0]  ;;  %v13789_v57 = vld [vmem:[#allocation8 + $0x74c] sm:$0xf0] }
 0x58b   :  { %v12375_v38 = vld [vmem:[#allocation8 + $0x5d0] sm:$0xf0]  ;;  %v12533_v3 = vld [vmem:[#allocation8 + $0x700] sm:$0xf] }
 0x58c   :  { %7872 = vmatpush.bf16.msrb.mxu2 %v12454_v6  ;;  %7847 = vmatpush.bf16.msrb.mxu0 %v12182_v17  ;;  %v11991_v6 = vld [vmem:[#allocation8 + $0x2d0] sm:$0xf0]  ;;  %v6234_v17 = vsel %vm6218_vm8, %v6040_v60, %v6226_v62  ;;  %v6041_v35 = vpop.f32.mrf.mxu2  ;;  %v13797_v62 = vld [vmem:[#allocation8 + $0x78c] sm:$0xf0] }
 0x58d   :  { %v11994_v10 = vor.u32 %v13643_v5, %v11991_v6  ;;  %v13559_v5 = vld [vmem:[#allocation8 + $0x24] sm:$0xf]  ;;  %v12597_v6 = vld [vmem:[#allocation8 + $0x780] sm:$0xf]  ;;  %v6080_v16 = vpop.f32.mrf.mxu1  ;;  %v11895_v35 = vld [vmem:[#allocation8 + $0x210] sm:$0xf0] }
 0x58e   :  { %7860 = vmatpush.bf16.msrb.mxu1 %v12310_v0  ;;  %v11975_v0 = vld [vmem:[#allocation8 + $0x2b0] sm:$0xf0]  ;;  %v12598_v36 = vor.u32 %v13797_v62, %v12597_v6  ;;  %v13735_v62 = vld [vmem:[#allocation8 + $0x5a4] sm:$0xf]  ;;  %v13781_v16 = vld [vmem:[#allocation8 + $0x70c] sm:$0xf0] }
 0x58f   :  { %v11978_v30 = vor.u32 %v13639_v21, %v11975_v0  ;;  %v11911_v21 = vld [vmem:[#allocation8 + $0x230] sm:$0xf0]  ;;  %v13555_v0 = vld [vmem:[#allocation8 + $0x4] sm:$0xf] }
 0x590   :  { %7873 = vmatpush.bf16.msrb.mxu2 %v12438_v48  ;;  %7848 = vmatpush.bf16.msrb.mxu0 %v12166_v18  ;;  %v14436_v48 = vpack.c.bf16 %v6234_v17, %v6234_v17  ;;  %v13635_v18 = vld [vmem:[#allocation8 + $0x284] sm:$0xf]  ;;  %v6054_v37 = vpop.f32.mrf.mxu3  ;;  %v12231_v6 = vld [vmem:[#allocation8 + $0x4b0] sm:$0xf0] }
 0x591   :  { %v11962_v27 = vor.u32 %v13635_v18, %v11959_v19  ;;  %v13623_v17 = vld [vmem:[#allocation8 + $0x224] sm:$0xf] }
 0x592   :  { %7861 = vmatpush.bf16.msrb.mxu1 %v12294_v9  ;;  %v11706_v9 = vor.u32 %v13571_v50, %v11703_v28  ;;  %v11914_v28 = vor.u32 %v13623_v17, %v11911_v21  ;;  %v13711_v19 = vld [vmem:[#allocation8 + $0x4e4] sm:$0xf]  ;;  %v12215_v21 = vld [vmem:[#allocation8 + $0x490] sm:$0xf0] }
 0x593   :  { %v13699_v17 = vld [vmem:[#allocation8 + $0x484] sm:$0xf] }
 0x594   :  { %7874 = vmatpush.bf16.msrb.mxu2 %v12422_v45  ;;  %7849 = vmatpush.bf16.msrb.mxu0 %v12150_v22  ;;  %v11834_v45 = vor.u32 %v13603_v12, %v11831_v40  ;;  %v11943_v22 = vld [vmem:[#allocation8 + $0x270] sm:$0xf0]  ;;  %v14445_v1 = vpop.f32.mrf.mxu2  ;;  %v13619_v40 = vld [vmem:[#allocation8 + $0x204] sm:$0xf]  ;;  %v12218_v37 = vor.u32 %v13699_v17, %v12215_v21 }
 0x595   :  { %v11946_v42 = vor.u32 %v13631_v41, %v11943_v22  ;;  %v11767_v12 = vld [vmem:[#allocation8 + $0x110] sm:$0xf0]  ;;  %v11898_v41 = vor.u32 %v13619_v40, %v11895_v35  ;;  %v962_v35 = vperm.slane %v14364_v61, 7  ;;  %v13667_v17 = vld [vmem:[#allocation8 + $0x384] sm:$0xf] }
 0x596   :  { %7862 = vmatpush.bf16.msrb.mxu1 %v12278_v14  ;;  %v12613_v14 = vld [vmem:[#allocation8 + $0x7a0] sm:$0xf]  ;;  %v11770_v55 = vor.u32 %v13587_v34, %v11767_v12  ;;  %v12343_v34 = vld [vmem:[#allocation8 + $0x590] sm:$0xf0] }
 0x597   :  { %7850 = vmatmul.bf16.vlgmr.msrb.gmra.mxu0 %v14430_v7  ;;  %v12135_v12 = vld [vmem:[#allocation8 + $0x3f0] sm:$0xf0] }
 0x598   :  { %7875 = vmatpush.bf16.msrb.mxu2 %v12406_v52  ;;  %7894 = vmatpush.bf16.msra.mxu0 %v11754_v58  ;;  %v13801_v52 = vld [vmem:[#allocation8 + $0x7ac] sm:$0xf0]  ;;  %v13595_v58 = vld [vmem:[#allocation8 + $0x144] sm:$0xf]  ;;  %v12087_v21 = vld [vmem:[#allocation8 + $0x390] sm:$0xf0] }
 0x599   :  { %7863 = vmatmul.bf16.vlgmr.msrb.gmra.mxu1 %v14432_v8 }
 0x59a   :  { %7907 = vmatpush.bf16.msra.mxu1 %v11882_v51  ;;  %v11799_v51 = vld [vmem:[#allocation8 + $0x150] sm:$0xf0] }
 0x59b   :  { %7876 = vmatmul.bf16.vlgmr.msrb.gmra.mxu2 %v14436_v48  ;;  %v11802_v60 = vor.u32 %v13595_v58, %v11799_v51  ;;  %v13771_v58 = vld [vmem:[#allocation8 + $0x6c4] sm:$0xf]  ;;  %v12503_v51 = vld [vmem:[#allocation8 + $0x6d0] sm:$0xf0] }
 0x59c   :  { %7920 = vmatpush.bf16.msra.mxu2 %v12010_v11  ;;  %7895 = vmatpush.bf16.msra.mxu0 %v11738_v4  ;;  %v12614_v11 = vor.u32 %v13801_v52, %v12613_v14  ;;  %v11930_v4 = vor.u32 %v13627_v63, %v11927_v59  ;;  %v6093_v26 = vpop.f32.mrf.mxu2  ;;  %v13707_v14 = vld [vmem:[#allocation8 + $0x4c4] sm:$0xf]  ;;  %v12247_v52 = vld [vmem:[#allocation8 + $0x4d0] sm:$0xf0]  ;;  %v12549_v63 = vld [vmem:[#allocation8 + $0x720] sm:$0xf] }
 0x59d   :  { %v13785_v59 = vld [vmem:[#allocation8 + $0x72c] sm:$0xf0] }
 0x59e   :  { %7908 = vmatpush.bf16.msra.mxu1 %v11866_v49  ;;  %7883 = vmatpush.bf16.msrb.mxu3 %v12614_v11  ;;  %v11655_v49 = vld [vmem:[#allocation8 + $0x30] sm:$0xf0]  ;;  %v12250_v11 = vor.u32 %v13707_v14, %v12247_v52  ;;  %v13723_v14 = vld [vmem:[#allocation8 + $0x544] sm:$0xf] }
 0x59f   :  { %v12311_v52 = vld [vmem:[#allocation8 + $0x550] sm:$0xf0] }
 0x5a0   :  { %7921 = vmatpush.bf16.msra.mxu2 %v11994_v10  ;;  %7896 = vmatpush.bf16.msra.mxu0 %v11722_v23  ;;  %v11783_v10 = vld [vmem:[#allocation8 + $0x130] sm:$0xf0] }
 0x5a1   :  { %v11639_v23 = vld [vmem:[#allocation8 + $0x10] sm:$0xf0]  ;;  %v11786_v50 = vor.u32 %v13591_v2, %v11783_v10  ;;  %v13767_v2 = vld [vmem:[#allocation8 + $0x6a4] sm:$0xf] }
 0x5a2   :  { %7909 = vmatpush.bf16.msra.mxu1 %v11850_v15  ;;  %7884 = vmatpush.bf16.msrb.mxu3 %v12598_v36  ;;  %v11658_v15 = vor.u32 %v13559_v5, %v11655_v49  ;;  %v11642_v53 = vor.u32 %v13555_v0, %v11639_v23  ;;  %v13703_v5 = vld [vmem:[#allocation8 + $0x4a4] sm:$0xf]  ;;  %v12359_v49 = vld [vmem:[#allocation8 + $0x5b0] sm:$0xf0]  ;;  %v12534_v0 = vor.u32 %v13781_v16, %v12533_v3 }
 0x5a3   :  { %v12487_v10 = vld [vmem:[#allocation8 + $0x6b0] sm:$0xf0]  ;;  %v12234_v36 = vor.u32 %v13703_v5, %v12231_v6  ;;  %v12362_v23 = vor.u32 %v13735_v62, %v12359_v49  ;;  %v13687_v5 = vld [vmem:[#allocation8 + $0x424] sm:$0xf] }
 0x5a4   :  { %7922 = vmatpush.bf16.msra.mxu2 %v11978_v30  ;;  %7897 = vmatpush.bf16.msra.mxu0 %v11706_v9  ;;  %v13793_v30 = vld [vmem:[#allocation8 + $0x76c] sm:$0xf0]  ;;  %v12263_v9 = vld [vmem:[#allocation8 + $0x4f0] sm:$0xf0] }
 0x5a5   :  { %v12582_v18 = vor.u32 %v13793_v30, %v12581_v25  ;;  %v12266_v22 = vor.u32 %v13711_v19, %v12263_v9  ;;  %v13679_v25 = vld [vmem:[#allocation8 + $0x3e4] sm:$0xf]  ;;  %v12199_v19 = vld [vmem:[#allocation8 + $0x470] sm:$0xf0]  ;;  %v14451_v9 = vpop.f32.mrf.mxu0 }
 0x5a6   :  { %7910 = vmatpush.bf16.msra.mxu1 %v11834_v45  ;;  %v13743_v45 = vld [vmem:[#allocation8 + $0x5e4] sm:$0xf]  ;;  %v12138_v40 = vor.u32 %v13679_v25, %v12135_v12  ;;  %v12167_v6 = vld [vmem:[#allocation8 + $0x430] sm:$0xf0] }
 0x5a7   :  { %7885 = vmatpush.bf16.msrb.mxu3 %v12582_v18  ;;  %v13763_v30 = vld [vmem:[#allocation8 + $0x684] sm:$0xf]  ;;  %v12423_v16 = vld [vmem:[#allocation8 + $0x630] sm:$0xf0] }
 0x5a8   :  { %7923 = vmatpush.bf16.msra.mxu2 %v11962_v27  ;;  %7898 = vmatpush.bf16.msra.mxu0 %v11690_v54  ;;  %v12519_v27 = vld [vmem:[#allocation8 + $0x6f0] sm:$0xf0]  ;;  %v12566_v54 = vor.u32 %v13789_v57, %v12565_v56  ;;  %v13695_v18 = vld [vmem:[#allocation8 + $0x464] sm:$0xf]  ;;  %v14453_v57 = vpop.f32.mrf.mxu1 }
 0x5a9   :  { %v12522_v20 = vor.u32 %v13775_v43, %v12519_v27  ;;  %v13675_v43 = vld [vmem:[#allocation8 + $0x3c4] sm:$0xf]  ;;  %v12119_v27 = vld [vmem:[#allocation8 + $0x3d0] sm:$0xf0] }
 0x5aa   :  { %7911 = vmatpush.bf16.msra.mxu1 %v11818_v31  ;;  %v12394_v31 = vor.u32 %v13743_v45, %v12391_v39  ;;  %v13727_v39 = vld [vmem:[#allocation8 + $0x564] sm:$0xf]  ;;  %v12455_v56 = vld [vmem:[#allocation8 + $0x670] sm:$0xf0]  ;;  %v12122_v61 = vor.u32 %v13675_v43, %v12119_v27  ;;  %v13618_v43 = vld [vmem:[#allocation8 + $0x1f4] sm:$0xf0] }
 0x5ab   :  { %7886 = vmatpush.bf16.msrb.mxu3 %v12566_v54  ;;  %v12183_v54 = vld [vmem:[#allocation8 + $0x450] sm:$0xf0]  ;;  %v13663_v12 = vld [vmem:[#allocation8 + $0x364] sm:$0xf] }
 0x5ac   :  { %7924 = vmatpush.bf16.msra.mxu2 %v11946_v42  ;;  %7899 = vmatpush.bf16.msra.mxu0 %v11674_v13  ;;  %v13739_v42 = vld [vmem:[#allocation8 + $0x5c4] sm:$0xf] }
 0x5ad   :  { %v12378_v13 = vor.u32 %v13739_v42, %v12375_v38  ;;  %v13755_v42 = vld [vmem:[#allocation8 + $0x644] sm:$0xf]  ;;  %v6053_v38 = vadd.f32 %v14443_v46, %v962_v35  ;;  %v6119_v62 = vpop.f32.mrf.mxu0  ;;  %v12295_v46 = vld [vmem:[#allocation8 + $0x530] sm:$0xf0] }
 0x5ae   :  { %7912 = vmatpush.bf16.msra.mxu1 %v11802_v60  ;;  %v12506_v60 = vor.u32 %v13771_v58, %v12503_v51  ;;  %v12439_v58 = vld [vmem:[#allocation8 + $0x650] sm:$0xf0]  ;;  %v13671_v51 = vld [vmem:[#allocation8 + $0x3a4] sm:$0xf] }
 0x5af   :  { %v12442_v49 = vor.u32 %v13755_v42, %v12439_v58  ;;  %v6066_v3 = vadd.f32 %v14439_v24, %v6053_v38  ;;  %v13747_v35 = vld [vmem:[#allocation8 + $0x604] sm:$0xf]  ;;  %v13582_v42 = vld [vmem:[#allocation8 + $0xd4] sm:$0xf0]  ;;  %v11869_v38 = vld [vmem:[#allocation8 + $0x1c8] sm:$0xf] }
 0x5b0   :  { %7925 = vmatpush.bf16.msra.mxu2 %v11930_v4  ;;  %7900 = vmatpush.bf16.msra.mxu0 %v11658_v15  ;;  %v12550_v4 = vor.u32 %v13785_v59, %v12549_v63  ;;  %v12490_v15 = vor.u32 %v13767_v2, %v12487_v10  ;;  %v14456_v63 = vpop.f32.mrf.mxu3  ;;  %v14458_v59 = vpop.f32.mrf.mxu2  ;;  %v13719_v2 = vld [vmem:[#allocation8 + $0x524] sm:$0xf]  ;;  %v13614_v58 = vld [vmem:[#allocation8 + $0x1d4] sm:$0xf0] }
 0x5b1   :  { %v13751_v10 = vld [vmem:[#allocation8 + $0x624] sm:$0xf]  ;;  %v12298_v25 = vor.u32 %v13719_v2, %v12295_v46  ;;  %v6079_v24 = vadd.f32 %v14441_v44, %v6066_v3  ;;  %v13578_v2 = vld [vmem:[#allocation8 + $0xb4] sm:$0xf0]  ;;  %v11853_v46 = vld [vmem:[#allocation8 + $0x1a8] sm:$0xf] }
 0x5b2   :  { %7913 = vmatpush.bf16.msra.mxu1 %v11786_v50  ;;  %7887 = vmatpush.bf16.msrb.mxu3 %v12550_v4  ;;  %v13731_v50 = vld [vmem:[#allocation8 + $0x584] sm:$0xf]  ;;  %v12314_v4 = vor.u32 %v13723_v14, %v12311_v52  ;;  %v12055_v14 = vld [vmem:[#allocation8 + $0x350] sm:$0xf0]  ;;  %v11981_v3 = vld [vmem:[#allocation8 + $0x2a8] sm:$0xf] }
 0x5b3   :  { %v12346_v45 = vor.u32 %v13731_v50, %v12343_v34  ;;  %v12151_v50 = vld [vmem:[#allocation8 + $0x410] sm:$0xf0]  ;;  %v13715_v34 = vld [vmem:[#allocation8 + $0x504] sm:$0xf]  ;;  %v6092_v44 = vadd.f32 %v14445_v1, %v6079_v24 }
 0x5b4   :  { %7926 = vmatpush.bf16.msra.mxu2 %v11914_v28  ;;  %7901 = vmatpush.bf16.msra.mxu0 %v11642_v53  ;;  %v12471_v28 = vld [vmem:[#allocation8 + $0x690] sm:$0xf0]  ;;  %v13655_v62 = vld [vmem:[#allocation8 + $0x324] sm:$0xf] }
 0x5b5   :  { %v12474_v26 = vor.u32 %v13763_v30, %v12471_v28  ;;  %v12327_v53 = vld [vmem:[#allocation8 + $0x570] sm:$0xf0]  ;;  %v12426_v30 = vor.u32 %v13751_v10, %v12423_v16  ;;  %v13610_v10 = vld [vmem:[#allocation8 + $0x1b4] sm:$0xf0] }
 0x5b6   :  { %7914 = vmatpush.bf16.msra.mxu1 %v11770_v55  ;;  %7888 = vmatpush.bf16.msrb.mxu3 %v12534_v0  ;;  %v13759_v55 = vld [vmem:[#allocation8 + $0x664] sm:$0xf]  ;;  %v12090_v0 = vor.u32 %v13667_v17, %v12087_v21  ;;  %v12279_v28 = vld [vmem:[#allocation8 + $0x510] sm:$0xf0]  ;;  %v11854_v21 = vor.u32 %v13610_v10, %v11853_v46  ;;  %v11645_v10 = vld [vmem:[#allocation8 + $0x8] sm:$0xf] }
 0x5b7   :  { %7902 = vmatmul.bf16.vlgmr.msra.gmra.mxu0 %v14401_v29 }
 0x5b8   :  { %7927 = vmatpush.bf16.msra.mxu2 %v11898_v41  ;;  %7946 = vmatpush.bf16.msrb.mxu0 %v12266_v22  ;;  %v12202_v41 = vor.u32 %v13695_v18, %v12199_v19  ;;  %v13691_v22 = vld [vmem:[#allocation8 + $0x444] sm:$0xf]  ;;  %v11757_v18 = vld [vmem:[#allocation8 + $0xe8] sm:$0xf]  ;;  %v6145_v27 = vpop.f32.mrf.mxu2 }
 0x5b9   :  { %7915 = vmatmul.bf16.vlgmr.msra.gmra.mxu1 %v14403_v32  ;;  %v11949_v27 = vld [vmem:[#allocation8 + $0x268] sm:$0xf] }
 0x5ba   :  { %7959 = vmatpush.bf16.msrb.mxu1 %v12394_v31  ;;  %7933 = vmatpush.bf16.msra.mxu3 %v12138_v40  ;;  %v12330_v31 = vor.u32 %v13727_v39, %v12327_v53  ;;  %v12071_v40 = vld [vmem:[#allocation8 + $0x370] sm:$0xf0]  ;;  %v11885_v39 = vld [vmem:[#allocation8 + $0x1e8] sm:$0xf] }
 0x5bb   :  { %7928 = vmatmul.bf16.vlgmr.msra.gmra.mxu2 %v14405_v47  ;;  %v12074_v19 = vor.u32 %v13663_v12, %v12071_v40  ;;  %v13638_v12 = vld [vmem:[#allocation8 + $0x294] sm:$0xf0] }
 0x5bc   :  { %7972 = vmatpush.bf16.msrb.mxu2 %v12522_v20  ;;  %7947 = vmatpush.bf16.msrb.mxu0 %v12250_v11  ;;  %v12458_v20 = vor.u32 %v13759_v55, %v12455_v56  ;;  %v12103_v11 = vld [vmem:[#allocation8 + $0x3b0] sm:$0xf0]  ;;  %v12013_v55 = vld [vmem:[#allocation8 + $0x2e8] sm:$0xf]  ;;  %v13650_v56 = vld [vmem:[#allocation8 + $0x2f4] sm:$0xf0] }
 0x5bd   :  { %v12014_v52 = vor.u32 %v13650_v56, %v12013_v55 }
 0x5be   :  { %7960 = vmatpush.bf16.msrb.mxu1 %v12378_v13  ;;  %7934 = vmatpush.bf16.msra.mxu3 %v12122_v61  ;;  %v12106_v13 = vor.u32 %v13671_v51, %v12103_v11  ;;  %v12282_v61 = vor.u32 %v13715_v34, %v12279_v28  ;;  %v11997_v51 = vld [vmem:[#allocation8 + $0x2c8] sm:$0xf]  ;;  %v13646_v11 = vld [vmem:[#allocation8 + $0x2d4] sm:$0xf0] }
 0x5bf   :  { %v13574_v34 = vld [vmem:[#allocation8 + $0x94] sm:$0xf0]  ;;  %v11965_v28 = vld [vmem:[#allocation8 + $0x288] sm:$0xf] }
 0x5c0   :  { %7973 = vmatpush.bf16.msrb.mxu2 %v12506_v60  ;;  %7948 = vmatpush.bf16.msrb.mxu0 %v12234_v36  ;;  %v12186_v60 = vor.u32 %v13691_v22, %v12183_v54  ;;  %v6132_v36 = vpop.f32.mrf.mxu1  ;;  %v11886_v54 = vor.u32 %v13618_v43, %v11885_v39  ;;  %v13602_v39 = vld [vmem:[#allocation8 + $0x174] sm:$0xf0] }
 0x5c2   :  { %7961 = vmatpush.bf16.msrb.mxu1 %v12362_v23  ;;  %7935 = vmatpush.bf16.msra.mxu3 %v12106_v13  ;;  %v12170_v23 = vor.u32 %v13687_v5, %v12167_v6  ;;  %v11870_v5 = vor.u32 %v13614_v58, %v11869_v38  ;;  %v11725_v6 = vld [vmem:[#allocation8 + $0xa8] sm:$0xf] }
 0x5c3   :  { %v11726_v17 = vor.u32 %v13578_v2, %v11725_v6 }
 0x5c4   :  { %7974 = vmatpush.bf16.msrb.mxu2 %v12490_v15  ;;  %7949 = vmatpush.bf16.msrb.mxu0 %v12218_v37  ;;  %v13683_v15 = vld [vmem:[#allocation8 + $0x404] sm:$0xf]  ;;  %v12407_v37 = vld [vmem:[#allocation8 + $0x610] sm:$0xf0] }
 0x5c5   :  { %v12154_v53 = vor.u32 %v13683_v15, %v12151_v50  ;;  %v12023_v15 = vld [vmem:[#allocation8 + $0x310] sm:$0xf0] }
 0x5c6   :  { %7962 = vmatpush.bf16.msrb.mxu1 %v12346_v45  ;;  %7936 = vmatpush.bf16.msra.mxu3 %v12090_v0  ;;  %v6106_v45 = vpop.f32.mrf.mxu3  ;;  %v11709_v0 = vld [vmem:[#allocation8 + $0x88] sm:$0xf] }
 0x5c7   :  { %v13570_v45 = vld [vmem:[#allocation8 + $0x74] sm:$0xf0] }
 0x5c8   :  { %7975 = vmatpush.bf16.msrb.mxu2 %v12474_v26  ;;  %7950 = vmatpush.bf16.msrb.mxu0 %v12202_v41  ;;  %v13586_v26 = vld [vmem:[#allocation8 + $0xf4] sm:$0xf0]  ;;  %v12410_v41 = vor.u32 %v13747_v35, %v12407_v37 }
 0x5c9   :  { %v11758_v22 = vor.u32 %v13586_v26, %v11757_v18  ;;  %v11693_v18 = vld [vmem:[#allocation8 + $0x68] sm:$0xf] }
 0x5ca   :  { %7963 = vmatpush.bf16.msrb.mxu1 %v12330_v31  ;;  %v11741_v31 = vld [vmem:[#allocation8 + $0xc8] sm:$0xf]  ;;  %7937 = vmatpush.bf16.msra.mxu3 %v12074_v19  ;;  %v11966_v19 = vor.u32 %v13638_v12, %v11965_v28  ;;  %v13778_v28 = vld [vmem:[#allocation8 + $0x6f4] sm:$0xf0] }
 0x5cb   :  { %v11742_v1 = vor.u32 %v13582_v42, %v11741_v31  ;;  %v11821_v26 = vld [vmem:[#allocation8 + $0x168] sm:$0xf]  ;;  %v13598_v31 = vld [vmem:[#allocation8 + $0x154] sm:$0xf0] }
 0x5cc   :  { %7976 = vmatpush.bf16.msrb.mxu2 %v12458_v20  ;;  %7951 = vmatpush.bf16.msrb.mxu0 %v12186_v60  ;;  %v13659_v20 = vld [vmem:[#allocation8 + $0x344] sm:$0xf]  ;;  %v6105_v60 = vadd.f32 %v14456_v63, %v6092_v44  ;;  %v13642_v63 = vld [vmem:[#allocation8 + $0x2b4] sm:$0xf0] }
 0x5cd   :  { %v12058_v13 = vor.u32 %v13659_v20, %v12055_v14  ;;  %v11982_v50 = vor.u32 %v13642_v63, %v11981_v3  ;;  %v11933_v14 = vld [vmem:[#allocation8 + $0x248] sm:$0xf]  ;;  %v13558_v3 = vld [vmem:[#allocation8 + $0x14] sm:$0xf0] }
 0x5ce   :  { %7964 = vmatpush.bf16.msrb.mxu1 %v12314_v4  ;;  %v12039_v4 = vld [vmem:[#allocation8 + $0x330] sm:$0xf0]  ;;  %v6118_v36 = vadd.f32 %v14451_v9, %v6105_v60  ;;  %v11710_v9 = vor.u32 %v13574_v34, %v11709_v0  ;;  %v11789_v60 = vld [vmem:[#allocation8 + $0x128] sm:$0xf]  ;;  %v11646_v12 = vor.u32 %v13558_v3, %v11645_v10  ;;  %v13766_v3 = vld [vmem:[#allocation8 + $0x694] sm:$0xf0] }
 0x5cf   :  { %7938 = vmatpush.bf16.msra.mxu3 %v12058_v13  ;;  %v12042_v16 = vor.u32 %v13655_v62, %v12039_v4  ;;  %v13562_v13 = vld [vmem:[#allocation8 + $0x34] sm:$0xf0]  ;;  %v11917_v62 = vld [vmem:[#allocation8 + $0x228] sm:$0xf] }
 0x5d0   :  { %7977 = vmatpush.bf16.msrb.mxu2 %v12442_v49  ;;  %7952 = vmatpush.bf16.msrb.mxu0 %v12170_v23  ;;  %v11998_v49 = vor.u32 %v13646_v11, %v11997_v51  ;;  %v13651_v23 = vld [vmem:[#allocation8 + $0x304] sm:$0xf]  ;;  %v6131_v24 = vadd.f32 %v14453_v57, %v6118_v36  ;;  %v11694_v57 = vor.u32 %v13570_v45, %v11693_v18  ;;  %v13626_v4 = vld [vmem:[#allocation8 + $0x234] sm:$0xf0]  ;;  %v11773_v63 = vld [vmem:[#allocation8 + $0x108] sm:$0xf] }
 0x5d1   :  { %v12026_v40 = vor.u32 %v13651_v23, %v12023_v15  ;;  %v13590_v36 = vld [vmem:[#allocation8 + $0x114] sm:$0xf0]  ;;  %v12269_v23 = vld [vmem:[#allocation8 + $0x4e8] sm:$0xf] }
 0x5d2   :  { %7965 = vmatpush.bf16.msrb.mxu1 %v12298_v25  ;;  %v11837_v25 = vld [vmem:[#allocation8 + $0x188] sm:$0xf]  ;;  %v6144_v56 = vadd.f32 %v14458_v59, %v6131_v24  ;;  %v13714_v15 = vld [vmem:[#allocation8 + $0x4f4] sm:$0xf0] }
 0x5d3   :  { %7939 = vmatpush.bf16.msra.mxu3 %v12042_v16  ;;  %v11661_v59 = vld [vmem:[#allocation8 + $0x28] sm:$0xf]  ;;  %v11918_v16 = vor.u32 %v13626_v4, %v11917_v62  ;;  %v13710_v45 = vld [vmem:[#allocation8 + $0x4d4] sm:$0xf0] }
 0x5d4   :  { %7978 = vmatpush.bf16.msrb.mxu2 %v12426_v30  ;;  %7953 = vmatpush.bf16.msrb.mxu0 %v12154_v53  ;;  %v13606_v30 = vld [vmem:[#allocation8 + $0x194] sm:$0xf0]  ;;  %v6169_v37 = vpop.f32.mrf.mxu0  ;;  %v11662_v2 = vor.u32 %v13562_v13, %v11661_v59  ;;  %v12221_v62 = vld [vmem:[#allocation8 + $0x488] sm:$0xf] }
 0x5d5   :  { %v11838_v35 = vor.u32 %v13606_v30, %v11837_v25  ;;  %v13634_v53 = vld [vmem:[#allocation8 + $0x274] sm:$0xf0]  ;;  %v12525_v30 = vld [vmem:[#allocation8 + $0x6e8] sm:$0xf] }
 0x5d6   :  { %7966 = vmatpush.bf16.msrb.mxu1 %v12282_v61  ;;  %v6182_v43 = vpop.f32.mrf.mxu1  ;;  %v11822_v61 = vor.u32 %v13602_v39, %v11821_v26  ;;  %v11950_v44 = vor.u32 %v13634_v53, %v11949_v27  ;;  %v13746_v25 = vld [vmem:[#allocation8 + $0x5f4] sm:$0xf0]  ;;  %v12526_v18 = vor.u32 %v13778_v28, %v12525_v30  ;;  %v12381_v26 = vld [vmem:[#allocation8 + $0x5c8] sm:$0xf] }
 0x5d7   :  { %7954 = vmatmul.bf16.vlgmr.msrb.gmra.mxu0 %v14430_v7  ;;  %7940 = vmatpush.bf16.msra.mxu3 %v12026_v40  ;;  %v11774_v40 = vor.u32 %v13590_v36, %v11773_v63  ;;  %v12509_v27 = vld [vmem:[#allocation8 + $0x6c8] sm:$0xf]  ;;  %v13774_v53 = vld [vmem:[#allocation8 + $0x6d4] sm:$0xf0]  ;;  %v13799_v36 = vld [vmem:[#allocation8 + $0x7a4] sm:$0xf] }
 0x5d8   :  { %7979 = vmatpush.bf16.msrb.mxu2 %v12410_v41  ;;  %7998 = vmatpush.bf16.msra.mxu0 %v11758_v22  ;;  %v6156_v55 = vpop.f32.mrf.mxu3  ;;  %v11677_v41 = vld [vmem:[#allocation8 + $0x48] sm:$0xf]  ;;  %v13566_v22 = vld [vmem:[#allocation8 + $0x54] sm:$0xf0] }
 0x5d9   :  { %7967 = vmatmul.bf16.vlgmr.msrb.gmra.mxu1 %v14432_v8  ;;  %v6157_v20 = vadd.f32 %v6156_v55, %v6144_v56  ;;  %v11678_v38 = vor.u32 %v13566_v22, %v11677_v41  ;;  %v12237_v56 = vld [vmem:[#allocation8 + $0x4a8] sm:$0xf]  ;;  %v12647_v22 = vld [vmem:[#allocation8 + $0x7f0] sm:$0xf0]  ;;  %v13702_v4 = vld [vmem:[#allocation8 + $0x494] sm:$0xf0] }
 0x5da   :  { %8011 = vmatpush.bf16.msra.mxu1 %v11886_v54  ;;  %v11805_v54 = vld [vmem:[#allocation8 + $0x148] sm:$0xf]  ;;  %v13730_v28 = vld [vmem:[#allocation8 + $0x574] sm:$0xf0] }
 0x5db   :  { %7980 = vmatmul.bf16.vlgmr.msrb.gmra.mxu2 %v14436_v48  ;;  %v11806_v58 = vor.u32 %v13598_v31, %v11805_v54  ;;  %v6170_v6 = vadd.f32 %v6169_v37, %v6157_v20  ;;  %v12365_v41 = vld [vmem:[#allocation8 + $0x5a8] sm:$0xf]  ;;  %v12510_v20 = vor.u32 %v13774_v53, %v12509_v27  ;;  %v13726_v27 = vld [vmem:[#allocation8 + $0x554] sm:$0xf0] }
 0x5dc   :  { %8024 = vmatpush.bf16.msra.mxu2 %v12014_v52  ;;  %7999 = vmatpush.bf16.msra.mxu0 %v11742_v1  ;;  %v13630_v52 = vld [vmem:[#allocation8 + $0x254] sm:$0xf0]  ;;  %v6171_v51 = vpop.f32.mrf.mxu0  ;;  %v12477_v10 = vld [vmem:[#allocation8 + $0x688] sm:$0xf] }
 0x5dd   :  { %v11934_v11 = vor.u32 %v13630_v52, %v11933_v14  ;;  %v13594_v1 = vld [vmem:[#allocation8 + $0x134] sm:$0xf0]  ;;  %v6183_v0 = vadd.f32 %v6182_v43, %v6170_v6  ;;  %v14470_v14 = vld [vmem:[#allocation10] sm:$0xf]  ;;  %v12445_v53 = vld [vmem:[#allocation8 + $0x648] sm:$0xf] }
 0x5de   :  { %8012 = vmatpush.bf16.msra.mxu1 %v11870_v5  ;;  %v6195_v42 = vpop.f32.mrf.mxu2  ;;  %v6184_v5 = vpop.f32.mrf.mxu1  ;;  %v11790_v46 = vor.u32 %v13594_v1, %v11789_v60  ;;  %v13742_v43 = vld [vmem:[#allocation8 + $0x5d4] sm:$0xf0]  ;;  %v6502_v13 = vperm.slane %v14470_v14, 0  ;;  %v13803_v60 = vld [vmem:[#allocation8 + $0x7c4] sm:$0xf] }
 0x5df   :  { %v12382_v31 = vor.u32 %v13742_v43, %v12381_v26  ;;  %v13738_v52 = vld [vmem:[#allocation8 + $0x5b4] sm:$0xf0]  ;;  %v12631_v1 = vld [vmem:[#allocation8 + $0x7d0] sm:$0xf0]  ;;  %v12189_v26 = vld [vmem:[#allocation8 + $0x448] sm:$0xf] }
 0x5e0   :  { %8025 = vmatpush.bf16.msra.mxu2 %v11998_v49  ;;  %8000 = vmatpush.bf16.msra.mxu0 %v11726_v17  ;;  %v6158_v49 = vpop.f32.mrf.mxu3  ;;  %v11901_v17 = vld [vmem:[#allocation8 + $0x208] sm:$0xf]  ;;  %v12366_v5 = vor.u32 %v13738_v52, %v12365_v41  ;;  %v12634_v63 = vor.u32 %v13803_v60, %v12631_v1  ;;  %v13754_v60 = vld [vmem:[#allocation8 + $0x634] sm:$0xf0] }
 0x5e1   :  { %v12349_v49 = vld [vmem:[#allocation8 + $0x588] sm:$0xf] }
 0x5e2   :  { %8013 = vmatpush.bf16.msra.mxu1 %v11854_v21  ;;  %v13622_v21 = vld [vmem:[#allocation8 + $0x214] sm:$0xf0]  ;;  %v12317_v43 = vld [vmem:[#allocation8 + $0x548] sm:$0xf] }
 0x5e3   :  { %v11902_v24 = vor.u32 %v13622_v21, %v11901_v17  ;;  %v12615_v17 = vld [vmem:[#allocation8 + $0x7b0] sm:$0xf0]  ;;  %v12318_v52 = vor.u32 %v13726_v27, %v12317_v43  ;;  %v13644_v43 = vld [vmem:[#allocation8 + $0x2cc] sm:$0xf]  ;;  %v11999_v27 = vld [vmem:[#allocation8 + $0x2d8] sm:$0xf0] }
 0x5e4   :  { %8026 = vmatpush.bf16.msra.mxu2 %v11982_v50  ;;  %8001 = vmatpush.bf16.msra.mxu0 %v11710_v9  ;;  %v12397_v50 = vld [vmem:[#allocation8 + $0x5e8] sm:$0xf]  ;;  %v12270_v9 = vor.u32 %v13714_v15, %v12269_v23  ;;  %v12478_v15 = vor.u32 %v13766_v3, %v12477_v10  ;;  %v13686_v10 = vld [vmem:[#allocation8 + $0x414] sm:$0xf0] }
 0x5e5   :  { %v12398_v37 = vor.u32 %v13746_v25, %v12397_v50  ;;  %v12205_v50 = vld [vmem:[#allocation8 + $0x468] sm:$0xf] }
 0x5e6   :  { %8014 = vmatpush.bf16.msra.mxu1 %v11838_v35  ;;  %v6197_v34 = vpop.f32.mrf.mxu2  ;;  %v6196_v35 = vadd.f32 %v6195_v42, %v6183_v0  ;;  %v12493_v42 = vld [vmem:[#allocation8 + $0x6a8] sm:$0xf] }
 0x5e7   :  { %v13698_v34 = vld [vmem:[#allocation8 + $0x474] sm:$0xf0]  ;;  %v12333_v25 = vld [vmem:[#allocation8 + $0x568] sm:$0xf] }
 0x5e8   :  { %8027 = vmatpush.bf16.msra.mxu2 %v11966_v19  ;;  %8002 = vmatpush.bf16.msra.mxu0 %v11694_v57  ;;  %v12253_v19 = vld [vmem:[#allocation8 + $0x4c8] sm:$0xf]  ;;  %v6208_v39 = vpop.f32.mrf.mxu3  ;;  %v13706_v57 = vld [vmem:[#allocation8 + $0x4b4] sm:$0xf0] }
 0x5e9   :  { %v6209_v55 = vadd.f32 %v6208_v39, %v6196_v35  ;;  %v12206_v35 = vor.u32 %v13698_v34, %v12205_v50  ;;  %v13694_v39 = vld [vmem:[#allocation8 + $0x454] sm:$0xf0]  ;;  %v12285_v3 = vld [vmem:[#allocation8 + $0x508] sm:$0xf] }
 0x5ea   :  { %8015 = vmatpush.bf16.msra.mxu1 %v11822_v61  ;;  %v12254_v61 = vor.u32 %v13710_v45, %v12253_v19  ;;  %v12334_v19 = vor.u32 %v13730_v28, %v12333_v25  ;;  %v12190_v41 = vor.u32 %v13694_v39, %v12189_v26  ;;  %v12015_v28 = vld [vmem:[#allocation8 + $0x2f8] sm:$0xf0]  ;;  %v13612_v26 = vld [vmem:[#allocation8 + $0x1cc] sm:$0xf] }
 0x5eb   :  { %vm6219_vm9 = vcmp.ge.f32.partialorder %v6209_v55, 0.0  ;;  %v6227_v54 = vmul.f32 0.01, %v6209_v55  ;;  %v11871_v39 = vld [vmem:[#allocation8 + $0x1d8] sm:$0xf0] }
 0x5ec   :  { %8028 = vmatpush.bf16.msra.mxu2 %v11950_v44  ;;  %8003 = vmatpush.bf16.msra.mxu0 %v11678_v38  ;;  %v13807_v44 = vld [vmem:[#allocation8 + $0x7e4] sm:$0xf]  ;;  %v13770_v38 = vld [vmem:[#allocation8 + $0x6b4] sm:$0xf0] }
 0x5ed   :  { %v12650_v51 = vor.u32 %v13807_v44, %v12647_v22  ;;  %v12494_v6 = vor.u32 %v13770_v38, %v12493_v42  ;;  %v13791_v44 = vld [vmem:[#allocation8 + $0x764] sm:$0xf]  ;;  %v12583_v22 = vld [vmem:[#allocation8 + $0x770] sm:$0xf0]  ;;  %v12173_v38 = vld [vmem:[#allocation8 + $0x428] sm:$0xf] }
 0x5ee   :  { %8016 = vmatpush.bf16.msra.mxu1 %v11806_v58  ;;  %v6235_v58 = vsel %vm6219_vm9, %v6209_v55, %v6227_v54  ;;  %v13758_v55 = vld [vmem:[#allocation8 + $0x654] sm:$0xf0] }
 0x5ef   :  { %v14475_v59 = vpack.c.bf16 %v6235_v58, %v6235_v58  ;;  %v12446_v42 = vor.u32 %v13758_v55, %v12445_v53  ;;  %v13690_v58 = vld [vmem:[#allocation8 + $0x434] sm:$0xf0]  ;;  %v13779_v55 = vld [vmem:[#allocation8 + $0x704] sm:$0xf] }
 0x5f0   :  { %8029 = vmatpush.bf16.msra.mxu2 %v11934_v11  ;;  %8004 = vmatpush.bf16.msra.mxu0 %v11662_v2  ;;  %v12238_v11 = vor.u32 %v13706_v57, %v12237_v56  ;;  %v6210_v2 = vpop.f32.mrf.mxu3 }
 0x5f1   :  { %7889 = vmatmul.bf16.vlgmr.msrb.gmra.mxu3 %v14475_v59 }
 0x5f2   :  { %8017 = vmatpush.bf16.msra.mxu1 %v11790_v46  ;;  %v13734_v46 = vld [vmem:[#allocation8 + $0x594] sm:$0xf0]  ;;  %7985 = vmatpush.bf16.msrb.mxu3 %v12650_v51  ;;  %v12301_v51 = vld [vmem:[#allocation8 + $0x528] sm:$0xf] }
 0x5f3   :  { %v12350_v23 = vor.u32 %v13734_v46, %v12349_v49  ;;  %v12567_v49 = vld [vmem:[#allocation8 + $0x750] sm:$0xf0] }
 0x5f4   :  { %8030 = vmatpush.bf16.msra.mxu2 %v11918_v16  ;;  %8005 = vmatpush.bf16.msra.mxu0 %v11646_v12  ;;  %v12222_v16 = vor.u32 %v13702_v4, %v12221_v62  ;;  %v7799_v21 = vpop.f32.mrf.mxu0  ;;  %v12461_v12 = vld [vmem:[#allocation8 + $0x668] sm:$0xf]  ;;  %v13787_v4 = vld [vmem:[#allocation8 + $0x744] sm:$0xf] }
 0x5f5   :  { %v7800_v30 = vadd.f32 %v7799_v21, %v6502_v13  ;;  %v12429_v13 = vld [vmem:[#allocation8 + $0x628] sm:$0xf]  ;;  %v12570_v21 = vor.u32 %v13787_v4, %v12567_v49  ;;  %v11839_v4 = vld [vmem:[#allocation8 + $0x198] sm:$0xf0]  ;;  %v13636_v49 = vld [vmem:[#allocation8 + $0x28c] sm:$0xf] }
 0x5f6   :  { %8018 = vmatpush.bf16.msra.mxu1 %v11774_v40  ;;  %v7812_v0 = vpop.f32.mrf.mxu1  ;;  %v13762_v40 = vld [vmem:[#allocation8 + $0x674] sm:$0xf0]  ;;  %7986 = vmatpush.bf16.msrb.mxu3 %v12634_v63  ;;  %v12157_v62 = vld [vmem:[#allocation8 + $0x408] sm:$0xf]  ;;  %v12430_v46 = vor.u32 %v13754_v60, %v12429_v13  ;;  %v13572_v13 = vld [vmem:[#allocation8 + $0x8c] sm:$0xf] }
 0x5f7   :  { %8006 = vmatmul.bf16.vlgmr.msra.gmra.mxu0 %v14401_v29  ;;  %v12462_v45 = vor.u32 %v13762_v40, %v12461_v12  ;;  %v13718_v63 = vld [vmem:[#allocation8 + $0x514] sm:$0xf0]  ;;  %v12158_v25 = vor.u32 %v13686_v10, %v12157_v62  ;;  %v11711_v60 = vld [vmem:[#allocation8 + $0x98] sm:$0xf0]  ;;  %v13604_v62 = vld [vmem:[#allocation8 + $0x18c] sm:$0xf] }
 0x5f8   :  { %8031 = vmatpush.bf16.msra.mxu2 %v11902_v24  ;;  %8050 = vmatpush.bf16.msrb.mxu0 %v12270_v9  ;;  %v12618_v24 = vor.u32 %v13799_v36, %v12615_v17  ;;  %v7813_v9 = vadd.f32 %v7812_v0, %v7800_v30  ;;  %v13750_v36 = vld [vmem:[#allocation8 + $0x614] sm:$0xf0]  ;;  %v13584_v17 = vld [vmem:[#allocation8 + $0xec] sm:$0xf]  ;;  %v11759_v0 = vld [vmem:[#allocation8 + $0xf8] sm:$0xf0]  ;;  %v12286_v12 = vor.u32 %v13718_v63, %v12285_v3 }
 0x5f9   :  { %8019 = vmatmul.bf16.vlgmr.msra.gmra.mxu1 %v14403_v32  ;;  %v13648_v30 = vld [vmem:[#allocation8 + $0x2ec] sm:$0xf]  ;;  %v13678_v10 = vld [vmem:[#allocation8 + $0x3d4] sm:$0xf0]  ;;  %v11714_v63 = vor.u32 %v13572_v13, %v11711_v60 }
 0x5fa   :  { %8063 = vmatpush.bf16.msrb.mxu1 %v12398_v37  ;;  %v13795_v37 = vld [vmem:[#allocation8 + $0x784] sm:$0xf]  ;;  %7987 = vmatpush.bf16.msrb.mxu3 %v12618_v24  ;;  %v11762_v24 = vor.u32 %v13584_v17, %v11759_v0  ;;  %v11695_v17 = vld [vmem:[#allocation8 + $0x78] sm:$0xf0]  ;;  %v13556_v60 = vld [vmem:[#allocation8 + $0xc] sm:$0xf] }
 0x5fb   :  { %8032 = vmatmul.bf16.vlgmr.msra.gmra.mxu2 %v14405_v47 }
 0x5fc   :  { %8076 = vmatpush.bf16.msrb.mxu2 %v12526_v18  ;;  %8051 = vmatpush.bf16.msrb.mxu0 %v12254_v61  ;;  %v12599_v18 = vld [vmem:[#allocation8 + $0x790] sm:$0xf0]  ;;  %v7838_v61 = vpop.f32.mrf.mxu3 }
 0x5fd   :  { %v12602_v56 = vor.u32 %v13795_v37, %v12599_v18  ;;  %v12551_v37 = vld [vmem:[#allocation8 + $0x730] sm:$0xf0]  ;;  %v13580_v18 = vld [vmem:[#allocation8 + $0xcc] sm:$0xf] }
 0x5fe   :  { %8064 = vmatpush.bf16.msrb.mxu1 %v12382_v31  ;;  %v7825_v57 = vpop.f32.mrf.mxu2  ;;  %v7801_v31 = vpop.f32.mrf.mxu0 }
 0x5ff   :  { %v7826_v54 = vadd.f32 %v7825_v57, %v7813_v9  ;;  %7988 = vmatpush.bf16.msrb.mxu3 %v12602_v56  ;;  %v11874_v57 = vor.u32 %v13612_v26, %v11871_v39  ;;  %v11855_v31 = vld [vmem:[#allocation8 + $0x1b8] sm:$0xf0]  ;;  %v13628_v26 = vld [vmem:[#allocation8 + $0x24c] sm:$0xf] }
 0x600   :  { %8077 = vmatpush.bf16.msrb.mxu2 %v12510_v20  ;;  %8052 = vmatpush.bf16.msrb.mxu0 %v12238_v11  ;;  %v7814_v20 = vpop.f32.mrf.mxu1  ;;  %v13722_v11 = vld [vmem:[#allocation8 + $0x534] sm:$0xf0]  ;;  %v11935_v39 = vld [vmem:[#allocation8 + $0x258] sm:$0xf0] }
 0x601   :  { %v14479_v1 = vadd.f32 %v7838_v61, %v7826_v54  ;;  %v12302_v2 = vor.u32 %v13722_v11, %v12301_v51  ;;  %7941 = vmatmul.bf16.vlgmr.msra.gmra.mxu3 %v14408_v33  ;;  %v12535_v61 = vld [vmem:[#allocation8 + $0x710] sm:$0xf0]  ;;  %v13608_v54 = vld [vmem:[#allocation8 + $0x1ac] sm:$0xf] }
 0x602   :  { %8065 = vmatpush.bf16.msrb.mxu1 %v12366_v5  ;;  %v12586_v5 = vor.u32 %v13791_v44, %v12583_v22  ;;  %v11727_v44 = vld [vmem:[#allocation8 + $0xb8] sm:$0xf0]  ;;  %v12002_v22 = vor.u32 %v13644_v43, %v11999_v27  ;;  %v13640_v20 = vld [vmem:[#allocation8 + $0x2ac] sm:$0xf]  ;;  %v11858_v11 = vor.u32 %v13608_v54, %v11855_v31  ;;  %v12093_v43 = vld [vmem:[#allocation8 + $0x388] sm:$0xf] }
 0x603   :  { %v13670_v27 = vld [vmem:[#allocation8 + $0x394] sm:$0xf0]  ;;  %v13592_v54 = vld [vmem:[#allocation8 + $0x12c] sm:$0xf]  ;;  %v11791_v31 = vld [vmem:[#allocation8 + $0x138] sm:$0xf0] }
 0x604   :  { %8078 = vmatpush.bf16.msrb.mxu2 %v12494_v6  ;;  %8053 = vmatpush.bf16.msrb.mxu0 %v12222_v16  ;;  %v12174_v6 = vor.u32 %v13690_v58, %v12173_v38  ;;  %v12413_v16 = vld [vmem:[#allocation8 + $0x608] sm:$0xf]  ;;  %v7840_v34 = vpop.f32.mrf.mxu3  ;;  %v13682_v38 = vld [vmem:[#allocation8 + $0x3f4] sm:$0xf0]  ;;  %v12538_v58 = vor.u32 %v13779_v55, %v12535_v61  ;;  %v11663_v61 = vld [vmem:[#allocation8 + $0x38] sm:$0xf0]  ;;  %v11794_v13 = vor.u32 %v13592_v54, %v11791_v31 }
 0x605   :  { %7989 = vmatpush.bf16.msrb.mxu3 %v12586_v5  ;;  %v12414_v40 = vor.u32 %v13750_v36, %v12413_v16  ;;  %v11842_v16 = vor.u32 %v13604_v62, %v11839_v4  ;;  %v13568_v36 = vld [vmem:[#allocation8 + $0x6c] sm:$0xf]  ;;  %v11823_v34 = vld [vmem:[#allocation8 + $0x178] sm:$0xf0]  ;;  %v13810_v54 = vld [vmem:[#allocation8 + $0x7f4] sm:$0xf0] }
 0x606   :  { %8066 = vmatpush.bf16.msrb.mxu1 %v12350_v23  ;;  %v13616_v23 = vld [vmem:[#allocation8 + $0x1ec] sm:$0xf]  ;;  %v7827_v50 = vpop.f32.mrf.mxu2 }
 0x607   :  { %v13600_v50 = vld [vmem:[#allocation8 + $0x16c] sm:$0xf] }
 0x608   :  { %8079 = vmatpush.bf16.msrb.mxu2 %v12478_v15  ;;  %8054 = vmatpush.bf16.msrb.mxu0 %v12206_v35  ;;  %v11887_v15 = vld [vmem:[#allocation8 + $0x1f8] sm:$0xf0]  ;;  %v13783_v35 = vld [vmem:[#allocation8 + $0x724] sm:$0xf] }
 0x609   :  { %v11890_v9 = vor.u32 %v13616_v23, %v11887_v15  ;;  %7990 = vmatpush.bf16.msrb.mxu3 %v12570_v21  ;;  %v12554_v53 = vor.u32 %v13783_v35, %v12551_v37  ;;  %v13564_v35 = vld [vmem:[#allocation8 + $0x4c] sm:$0xf]  ;;  %v11679_v37 = vld [vmem:[#allocation8 + $0x58] sm:$0xf0] }
 0x60a   :  { %8067 = vmatpush.bf16.msrb.mxu1 %v12334_v19  ;;  %v12018_v19 = vor.u32 %v13648_v30, %v12015_v28  ;;  %v11951_v30 = vld [vmem:[#allocation8 + $0x278] sm:$0xf0]  ;;  %v12109_v28 = vld [vmem:[#allocation8 + $0x3a8] sm:$0xf]  ;;  %v11682_v55 = vor.u32 %v13564_v35, %v11679_v37  ;;  %v13740_v37 = vld [vmem:[#allocation8 + $0x5cc] sm:$0xf] }
 0x60b   :  { %v12255_v35 = vld [vmem:[#allocation8 + $0x4d8] sm:$0xf0] }
 0x60c   :  { %8080 = vmatpush.bf16.msrb.mxu2 %v12462_v45  ;;  %8055 = vmatpush.bf16.msrb.mxu0 %v12190_v41  ;;  %v11743_v45 = vld [vmem:[#allocation8 + $0xd8] sm:$0xf0]  ;;  %v13576_v41 = vld [vmem:[#allocation8 + $0xac] sm:$0xf] }
 0x60d   :  { %v11746_v56 = vor.u32 %v13580_v18, %v11743_v45  ;;  %7991 = vmatpush.bf16.msrb.mxu3 %v12554_v53  ;;  %v11730_v51 = vor.u32 %v13576_v41, %v11727_v44  ;;  %v11807_v45 = vld [vmem:[#allocation8 + $0x158] sm:$0xf0]  ;;  %v11938_v44 = vor.u32 %v13628_v26, %v11935_v39  ;;  %v12029_v26 = vld [vmem:[#allocation8 + $0x308] sm:$0xf] }
 0x60e   :  { %8068 = vmatpush.bf16.msrb.mxu1 %v12318_v52  ;;  %v11983_v52 = vld [vmem:[#allocation8 + $0x2b8] sm:$0xf0] }
 0x60f   :  { %v11986_v5 = vor.u32 %v13640_v20, %v11983_v52  ;;  %v13624_v20 = vld [vmem:[#allocation8 + $0x22c] sm:$0xf]  ;;  %v11919_v52 = vld [vmem:[#allocation8 + $0x238] sm:$0xf0] }
 0x610   :  { %8081 = vmatpush.bf16.msrb.mxu2 %v12446_v42  ;;  %8056 = vmatpush.bf16.msrb.mxu0 %v12174_v6  ;;  %v12141_v42 = vld [vmem:[#allocation8 + $0x3e8] sm:$0xf]  ;;  %v11922_v62 = vor.u32 %v13624_v20, %v11919_v52 }
 0x611   :  { %v12142_v6 = vor.u32 %v13682_v38, %v12141_v42  ;;  %7992 = vmatpush.bf16.msrb.mxu3 %v12538_v58  ;;  %v12077_v42 = vld [vmem:[#allocation8 + $0x368] sm:$0xf]  ;;  %v13666_v38 = vld [vmem:[#allocation8 + $0x374] sm:$0xf0] }
 0x612   :  { %8069 = vmatpush.bf16.msrb.mxu1 %v12302_v2  ;;  %v11967_v2 = vld [vmem:[#allocation8 + $0x298] sm:$0xf0]  ;;  %v12078_v4 = vor.u32 %v13666_v38, %v12077_v42  ;;  %v6503_v42 = vperm.slane %v14470_v14, 1 }
 0x613   :  { %v11970_v23 = vor.u32 %v13636_v49, %v11967_v2  ;;  %v11775_v49 = vld [vmem:[#allocation8 + $0x118] sm:$0xf0]  ;;  %v13620_v2 = vld [vmem:[#allocation8 + $0x20c] sm:$0xf] }
 0x614   :  { %8082 = vmatpush.bf16.msrb.mxu2 %v12430_v46  ;;  %8057 = vmatpush.bf16.msrb.mxu0 %v12158_v25  ;;  %v12125_v46 = vld [vmem:[#allocation8 + $0x3c8] sm:$0xf]  ;;  %v7851_v3 = vpop.f32.mrf.mxu0  ;;  %v13632_v25 = vld [vmem:[#allocation8 + $0x26c] sm:$0xf]  ;;  %v12223_v38 = vld [vmem:[#allocation8 + $0x498] sm:$0xf0] }
 0x615   :  { %8037 = vmatpush.bf16.msra.mxu3 %v12142_v6  ;;  %v7852_v21 = vadd.f32 %v7851_v3, %v14479_v1  ;;  %v12126_v15 = vor.u32 %v13678_v10, %v12125_v46  ;;  %v11954_v1 = vor.u32 %v13632_v25, %v11951_v30  ;;  %v13588_v6 = vld [vmem:[#allocation8 + $0x10c] sm:$0xf]  ;;  %v11903_v46 = vld [vmem:[#allocation8 + $0x218] sm:$0xf0]  ;;  %v12061_v10 = vld [vmem:[#allocation8 + $0x348] sm:$0xf] }
 0x616   :  { %8070 = vmatpush.bf16.msrb.mxu1 %v12286_v12  ;;  %v7864_v0 = vpop.f32.mrf.mxu1  ;;  %7993 = vmatmul.bf16.vlgmr.msrb.gmra.mxu3 %v14475_v59  ;;  %v13674_v12 = vld [vmem:[#allocation8 + $0x3b4] sm:$0xf0] }
 0x617   :  { %8058 = vmatmul.bf16.vlgmr.msrb.gmra.mxu0 %v14430_v7  ;;  %v12110_v18 = vor.u32 %v13674_v12, %v12109_v28  ;;  %v13662_v3 = vld [vmem:[#allocation8 + $0x354] sm:$0xf0]  ;;  %v12045_v28 = vld [vmem:[#allocation8 + $0x328] sm:$0xf] }
 0x618   :  { %8083 = vmatpush.bf16.msrb.mxu2 %v12414_v40  ;;  %8102 = vmatpush.bf16.msra.mxu0 %v11762_v24  ;;  %v7865_v40 = vadd.f32 %v7864_v0, %v7852_v21  ;;  %v11698_v24 = vor.u32 %v13568_v36, %v11695_v17  ;;  %v13744_v36 = vld [vmem:[#allocation8 + $0x5ec] sm:$0xf]  ;;  %v12399_v17 = vld [vmem:[#allocation8 + $0x5f8] sm:$0xf0]  ;;  %v11778_v0 = vor.u32 %v13588_v6, %v11775_v49  ;;  %v13658_v12 = vld [vmem:[#allocation8 + $0x334] sm:$0xf0] }
 0x619   :  { %8071 = vmatmul.bf16.vlgmr.msrb.gmra.mxu1 %v14432_v8  ;;  %8038 = vmatpush.bf16.msra.mxu3 %v12126_v15  ;;  %v12527_v15 = vld [vmem:[#allocation8 + $0x6f8] sm:$0xf0]  ;;  %v12402_v30 = vor.u32 %v13744_v36, %v12399_v17  ;;  %v13806_v6 = vld [vmem:[#allocation8 + $0x7d4] sm:$0xf0]  ;;  %v13728_v36 = vld [vmem:[#allocation8 + $0x56c] sm:$0xf] }
 0x61a   :  { %8115 = vmatpush.bf16.msra.mxu1 %v11890_v9  ;;  %v11826_v9 = vor.u32 %v13600_v50, %v11823_v34  ;;  %v11906_v50 = vor.u32 %v13620_v2, %v11903_v46  ;;  %v12062_v34 = vor.u32 %v13662_v3, %v12061_v10  ;;  %v13696_v46 = vld [vmem:[#allocation8 + $0x46c] sm:$0xf]  ;;  %v12207_v10 = vld [vmem:[#allocation8 + $0x478] sm:$0xf0] }
 0x61b   :  { %8084 = vmatmul.bf16.vlgmr.msrb.gmra.mxu2 %v14436_v48  ;;  %v12335_v17 = vld [vmem:[#allocation8 + $0x578] sm:$0xf0] }
 0x61c   :  { %8128 = vmatpush.bf16.msra.mxu2 %v12018_v19  ;;  %8103 = vmatpush.bf16.msra.mxu0 %v11746_v56  ;;  %v13596_v19 = vld [vmem:[#allocation8 + $0x14c] sm:$0xf]  ;;  %v7853_v53 = vpop.f32.mrf.mxu0 }
 0x61d   :  { %v11810_v56 = vor.u32 %v13596_v19, %v11807_v45  ;;  %8039 = vmatpush.bf16.msra.mxu3 %v12110_v18  ;;  %v13772_v18 = vld [vmem:[#allocation8 + $0x6cc] sm:$0xf]  ;;  %v12511_v19 = vld [vmem:[#allocation8 + $0x6d8] sm:$0xf0]  ;;  %v12046_v45 = vor.u32 %v13658_v12, %v12045_v28 }
 0x61e   :  { %8116 = vmatpush.bf16.msra.mxu1 %v11874_v57  ;;  %v13560_v57 = vld [vmem:[#allocation8 + $0x2c] sm:$0xf]  ;;  %v7866_v41 = vpop.f32.mrf.mxu1  ;;  %v7877_v58 = vpop.f32.mrf.mxu2  ;;  %v12191_v28 = vld [vmem:[#allocation8 + $0x458] sm:$0xf0] }
 0x61f   :  { %v13704_v53 = vld [vmem:[#allocation8 + $0x4ac] sm:$0xf] }
 0x620   :  { %8129 = vmatpush.bf16.msra.mxu2 %v12002_v22  ;;  %8104 = vmatpush.bf16.msra.mxu0 %v11730_v51  ;;  %v12094_v22 = vor.u32 %v13670_v27, %v12093_v43  ;;  %v14487_v51 = vadd.f32 %v7877_v58, %v7865_v40  ;;  %v13708_v40 = vld [vmem:[#allocation8 + $0x4cc] sm:$0xf]  ;;  %v13654_v27 = vld [vmem:[#allocation8 + $0x314] sm:$0xf0] }
 0x621   :  { %v12258_v39 = vor.u32 %v13708_v40, %v12255_v35  ;;  %v13768_v41 = vld [vmem:[#allocation8 + $0x6ac] sm:$0xf]  ;;  %v12030_v31 = vor.u32 %v13654_v27, %v12029_v26 }
 0x622   :  { %8117 = vmatpush.bf16.msra.mxu1 %v11858_v11  ;;  %v11666_v11 = vor.u32 %v13560_v57, %v11663_v61  ;;  %8040 = vmatpush.bf16.msra.mxu3 %v12094_v22  ;;  %v13736_v57 = vld [vmem:[#allocation8 + $0x5ac] sm:$0xf]  ;;  %v12367_v61 = vld [vmem:[#allocation8 + $0x5b8] sm:$0xf0]  ;;  %v12653_v22 = vld [vmem:[#allocation8 + $0x7e8] sm:$0xf] }
 0x623   :  { %v12370_v52 = vor.u32 %v13736_v57, %v12367_v61  ;;  %v13756_v35 = vld [vmem:[#allocation8 + $0x64c] sm:$0xf] }
 0x624   :  { %8130 = vmatpush.bf16.msra.mxu2 %v11986_v5  ;;  %8105 = vmatpush.bf16.msra.mxu0 %v11714_v63  ;;  %v11647_v5 = vld [vmem:[#allocation8 + $0x18] sm:$0xf0]  ;;  %v13712_v63 = vld [vmem:[#allocation8 + $0x4ec] sm:$0xf] }
 0x625   :  { %v11650_v21 = vor.u32 %v13556_v60, %v11647_v5  ;;  %v13764_v60 = vld [vmem:[#allocation8 + $0x68c] sm:$0xf]  ;;  %v12637_v5 = vld [vmem:[#allocation8 + $0x7c8] sm:$0xf] }
 0x626   :  { %8118 = vmatpush.bf16.msra.mxu1 %v11842_v16  ;;  %v12271_v16 = vld [vmem:[#allocation8 + $0x4f8] sm:$0xf0]  ;;  %8041 = vmatpush.bf16.msra.mxu3 %v12078_v4  ;;  %v13720_v61 = vld [vmem:[#allocation8 + $0x52c] sm:$0xf] }
 0x627   :  { %v12274_v25 = vor.u32 %v13712_v63, %v12271_v16  ;;  %v12638_v16 = vor.u32 %v13806_v6, %v12637_v5  ;;  %v13790_v5 = vld [vmem:[#allocation8 + $0x754] sm:$0xf0] }
 0x628   :  { %8131 = vmatpush.bf16.msra.mxu2 %v11970_v23  ;;  %8106 = vmatpush.bf16.msra.mxu0 %v11698_v24  ;;  %v13776_v23 = vld [vmem:[#allocation8 + $0x6ec] sm:$0xf] }
 0x629   :  { %v12530_v24 = vor.u32 %v13776_v23, %v12527_v15  ;;  %v12621_v23 = vld [vmem:[#allocation8 + $0x7a8] sm:$0xf]  ;;  %v13802_v15 = vld [vmem:[#allocation8 + $0x7b4] sm:$0xf0] }
 0x62a   :  { %8119 = vmatpush.bf16.msra.mxu1 %v11826_v9  ;;  %v7879_v9 = vpop.f32.mrf.mxu2  ;;  %8042 = vmatpush.bf16.msra.mxu3 %v12062_v34  ;;  %v12210_v34 = vor.u32 %v13696_v46, %v12207_v10  ;;  %v12622_v40 = vor.u32 %v13802_v15, %v12621_v23  ;;  %v12557_v46 = vld [vmem:[#allocation8 + $0x728] sm:$0xf]  ;;  %v13786_v10 = vld [vmem:[#allocation8 + $0x734] sm:$0xf0] }
 0x62b   :  { %v12319_v9 = vld [vmem:[#allocation8 + $0x558] sm:$0xf0] }
 0x62c   :  { %8132 = vmatpush.bf16.msra.mxu2 %v11954_v1  ;;  %8107 = vmatpush.bf16.msra.mxu0 %v11682_v55  ;;  %v12383_v1 = vld [vmem:[#allocation8 + $0x5d8] sm:$0xf0] }
 0x62d   :  { %v12386_v43 = vor.u32 %v13740_v37, %v12383_v1  ;;  %v12239_v55 = vld [vmem:[#allocation8 + $0x4b8] sm:$0xf0]  ;;  %v12605_v1 = vld [vmem:[#allocation8 + $0x788] sm:$0xf] }
 0x62e   :  { %8120 = vmatpush.bf16.msra.mxu1 %v11810_v56  ;;  %v12514_v56 = vor.u32 %v13772_v18, %v12511_v19  ;;  %8043 = vmatpush.bf16.msra.mxu3 %v12046_v45  ;;  %v12242_v20 = vor.u32 %v13704_v53, %v12239_v55  ;;  %v12447_v37 = vld [vmem:[#allocation8 + $0x658] sm:$0xf0]  ;;  %v13798_v18 = vld [vmem:[#allocation8 + $0x794] sm:$0xf0]  ;;  %v13688_v53 = vld [vmem:[#allocation8 + $0x42c] sm:$0xf] }
 0x62f   :  { %v12175_v55 = vld [vmem:[#allocation8 + $0x438] sm:$0xf0]  ;;  %v12606_v57 = vor.u32 %v13798_v18, %v12605_v1 }
 0x630   :  { %8133 = vmatpush.bf16.msra.mxu2 %v11938_v44  ;;  %8108 = vmatpush.bf16.msra.mxu0 %v11666_v11  ;;  %v12495_v44 = vld [vmem:[#allocation8 + $0x6b8] sm:$0xf0]  ;;  %v12654_v11 = vor.u32 %v13810_v54, %v12653_v22  ;;  %v12589_v54 = vld [vmem:[#allocation8 + $0x768] sm:$0xf] }
 0x631   :  { %v12498_v58 = vor.u32 %v13768_v41, %v12495_v44  ;;  %v12303_v41 = vld [vmem:[#allocation8 + $0x538] sm:$0xf0]  ;;  %v13752_v44 = vld [vmem:[#allocation8 + $0x62c] sm:$0xf] }
 0x632   :  { %8121 = vmatpush.bf16.msra.mxu1 %v11794_v13  ;;  %v13732_v13 = vld [vmem:[#allocation8 + $0x58c] sm:$0xf]  ;;  %8044 = vmatpush.bf16.msra.mxu3 %v12030_v31  ;;  %v12431_v22 = vld [vmem:[#allocation8 + $0x638] sm:$0xf0]  ;;  %v13794_v31 = vld [vmem:[#allocation8 + $0x774] sm:$0xf0] }
 0x634   :  { %8134 = vmatpush.bf16.msra.mxu2 %v11922_v62  ;;  %8109 = vmatpush.bf16.msra.mxu0 %v11650_v21  ;;  %v7903_v62 = vpop.f32.mrf.mxu0  ;;  %v13760_v21 = vld [vmem:[#allocation8 + $0x66c] sm:$0xf] }
 0x635   :  { %v7904_v3 = vadd.f32 %v7903_v62, %v6503_v42  ;;  %8045 = vmatmul.bf16.vlgmr.msra.gmra.mxu3 %v14408_v33  ;;  %v13684_v42 = vld [vmem:[#allocation8 + $0x40c] sm:$0xf] }
 0x636   :  { %8122 = vmatpush.bf16.msra.mxu1 %v11778_v0  ;;  %v7916_v4 = vpop.f32.mrf.mxu1  ;;  %8089 = vmatpush.bf16.msrb.mxu3 %v12654_v11  ;;  %v12463_v0 = vld [vmem:[#allocation8 + $0x678] sm:$0xf0]  ;;  %v13716_v11 = vld [vmem:[#allocation8 + $0x50c] sm:$0xf] }
 0x637   :  { %8110 = vmatmul.bf16.vlgmr.msra.gmra.mxu0 %v14401_v29  ;;  %v13700_v29 = vld [vmem:[#allocation8 + $0x48c] sm:$0xf]  ;;  %v12466_v12 = vor.u32 %v13760_v21, %v12463_v0  ;;  %v12143_v0 = vld [vmem:[#allocation8 + $0x3f8] sm:$0xf0] }
 0x638   :  { %8135 = vmatpush.bf16.msra.mxu2 %v11906_v50  ;;  %8154 = vmatpush.bf16.msrb.mxu0 %v12274_v25  ;;  %v12226_v49 = vor.u32 %v13700_v29, %v12223_v38  ;;  %v7917_v50 = vadd.f32 %v7916_v4, %v7904_v3  ;;  %v12338_v25 = vor.u32 %v13728_v36, %v12335_v17  ;;  %v12159_v29 = vld [vmem:[#allocation8 + $0x418] sm:$0xf0]  ;;  %v13782_v36 = vld [vmem:[#allocation8 + $0x714] sm:$0xf0]  ;;  %v13680_v21 = vld [vmem:[#allocation8 + $0x3ec] sm:$0xf] }
 0x639   :  { %8123 = vmatmul.bf16.vlgmr.msra.gmra.mxu1 %v14403_v32  ;;  %v12351_v32 = vld [vmem:[#allocation8 + $0x598] sm:$0xf0]  ;;  %v12434_v38 = vor.u32 %v13752_v44, %v12431_v22  ;;  %v12162_v62 = vor.u32 %v13684_v42, %v12159_v29  ;;  %v13817_v17 = vld [vmem:[#allocation11 + $0x30] sm:$0xff]  ;;  %v12146_v15 = vor.u32 %v13680_v21, %v12143_v0  ;;  %v13656_v44 = vld [vmem:[#allocation8 + $0x32c] sm:$0xf] }
 0x63a   :  { %8167 = vmatpush.bf16.msrb.mxu1 %v12402_v30  ;;  %v12354_v2 = vor.u32 %v13732_v13, %v12351_v32  ;;  %v13692_v30 = vld [vmem:[#allocation8 + $0x44c] sm:$0xf]  ;;  %8090 = vmatpush.bf16.msrb.mxu3 %v12638_v16  ;;  %v12287_v13 = vld [vmem:[#allocation8 + $0x518] sm:$0xf0]  ;;  %v12541_v16 = vld [vmem:[#allocation8 + $0x708] sm:$0xf] }
 0x63b   :  { %8136 = vmatmul.bf16.vlgmr.msra.gmra.mxu2 %v14405_v47  ;;  %v12479_v47 = vld [vmem:[#allocation8 + $0x698] sm:$0xf0]  ;;  %v13748_v32 = vld [vmem:[#allocation8 + $0x60c] sm:$0xf]  ;;  %v12290_v4 = vor.u32 %v13716_v11, %v12287_v13  ;;  %v12542_v23 = vor.u32 %v13782_v36, %v12541_v16  ;;  %v6504_v13 = vperm.slane %v14470_v14, 2 }
 0x63c   :  { %8180 = vmatpush.bf16.msrb.mxu2 %v12530_v24  ;;  %8155 = vmatpush.bf16.msrb.mxu0 %v12258_v39  ;;  %v12482_v63 = vor.u32 %v13764_v60, %v12479_v47  ;;  %v13724_v24 = vld [vmem:[#allocation8 + $0x54c] sm:$0xf]  ;;  %v7905_v26 = vpop.f32.mrf.mxu0  ;;  %v12415_v60 = vld [vmem:[#allocation8 + $0x618] sm:$0xf0]  ;;  %v12573_v47 = vld [vmem:[#allocation8 + $0x748] sm:$0xf] }
 0x63d   :  { %v12322_v27 = vor.u32 %v13724_v24, %v12319_v9  ;;  %v13818_v3 = vld [vmem:[#allocation11 + $0x38] sm:$0xff]  ;;  %v13668_v9 = vld [vmem:[#allocation8 + $0x38c] sm:$0xf]  ;;  %v13813_v26 = vld [vmem:[#allocation11 + $0x10] sm:$0xff] }
 0x63e   :  { %8168 = vmatpush.bf16.msrb.mxu1 %v12386_v43  ;;  %v7929_v19 = vpop.f32.mrf.mxu2  ;;  %v7918_v39 = vpop.f32.mrf.mxu1  ;;  %v12194_v43 = vor.u32 %v13692_v30, %v12191_v28  ;;  %8091 = vmatpush.bf16.msrb.mxu3 %v12622_v40  ;;  %v12111_v40 = vld [vmem:[#allocation8 + $0x3b8] sm:$0xf0]  ;;  %v13808_v42 = vld [vmem:[#allocation8 + $0x7ec] sm:$0xf] }
 0x63f   :  { %v14494_v45 = vadd.f32 %v7929_v19, %v7917_v50  ;;  %v13816_v50 = vld [vmem:[#allocation11 + $0x28] sm:$0xff]  ;;  %v13814_v24 = vld [vmem:[#allocation11 + $0x18] sm:$0xff] }
 0x640   :  { %8181 = vmatpush.bf16.msrb.mxu2 %v12514_v56  ;;  %8156 = vmatpush.bf16.msrb.mxu0 %v12242_v20  ;;  %v12450_v56 = vor.u32 %v13756_v35, %v12447_v37  ;;  %v12178_v20 = vor.u32 %v13688_v53, %v12175_v55  ;;  %v12095_v35 = vld [vmem:[#allocation8 + $0x398] sm:$0xf0]  ;;  %v13664_v39 = vld [vmem:[#allocation8 + $0x36c] sm:$0xf] }
 0x641   :  { %v12098_v19 = vor.u32 %v13668_v9, %v12095_v35  ;;  %v13812_v53 = vld [vmem:[#allocation11 + $0x8] sm:$0xff]  ;;  %v12047_v22 = vld [vmem:[#allocation8 + $0x338] sm:$0xf0] }
 0x642   :  { %8169 = vmatpush.bf16.msrb.mxu1 %v12370_v52  ;;  %v12306_v52 = vor.u32 %v13720_v61, %v12303_v41  ;;  %8092 = vmatpush.bf16.msrb.mxu3 %v12606_v57  ;;  %v13660_v55 = vld [vmem:[#allocation8 + $0x34c] sm:$0xf]  ;;  %v13811_v41 = vld [vmem:[#allocation11] sm:$0xff]  ;;  %v12655_v29 = vld [vmem:[#allocation8 + $0x7f8] sm:$0xf0] }
 0x643   :  { %v12658_v11 = vor.u32 %v13808_v42, %v12655_v29  ;;  %v13796_v14 = vld [vmem:[#allocation8 + $0x78c] sm:$0xf]  ;;  %v13822_v16 = vld [vmem:[#allocation11 + $0x58] sm:$0xff] }
 0x644   :  { %8182 = vmatpush.bf16.msrb.mxu2 %v12498_v58  ;;  %8157 = vmatpush.bf16.msrb.mxu0 %v12226_v49  ;;  %v12590_v58 = vor.u32 %v13794_v31, %v12589_v54  ;;  %v12418_v49 = vor.u32 %v13748_v32, %v12415_v60  ;;  %v12050_v54 = vor.u32 %v13656_v44, %v12047_v22  ;;  %v13826_v31 = vld [vmem:[#allocation11 + $0x78] sm:$0xff]  ;;  %v13804_v32 = vld [vmem:[#allocation8 + $0x7cc] sm:$0xf] }
 0x645   :  { %v12639_v60 = vld [vmem:[#allocation8 + $0x7d8] sm:$0xf0]  ;;  %v13820_v9 = vld [vmem:[#allocation11 + $0x48] sm:$0xff] }
 0x646   :  { %8170 = vmatpush.bf16.msrb.mxu1 %v12354_v2  ;;  %v7931_v6 = vpop.f32.mrf.mxu2  ;;  %8093 = vmatpush.bf16.msrb.mxu3 %v12590_v58  ;;  %v12574_v2 = vor.u32 %v13790_v5, %v12573_v47  ;;  %v13825_v58 = vld [vmem:[#allocation11 + $0x70] sm:$0xff]  ;;  %v13824_v47 = vld [vmem:[#allocation11 + $0x68] sm:$0xff] }
 0x648   :  { %8183 = vmatpush.bf16.msrb.mxu2 %v12482_v63  ;;  %8158 = vmatpush.bf16.msrb.mxu0 %v12210_v34  ;;  %v12558_v63 = vor.u32 %v13786_v10, %v12557_v46  ;;  %v13676_v34 = vld [vmem:[#allocation8 + $0x3cc] sm:$0xf]  ;;  %v13823_v46 = vld [vmem:[#allocation11 + $0x60] sm:$0xff] }
 0x64a   :  { %8171 = vmatpush.bf16.msrb.mxu1 %v12338_v25  ;;  %8094 = vmatpush.bf16.msrb.mxu3 %v12574_v2  ;;  %v12127_v25 = vld [vmem:[#allocation8 + $0x3d8] sm:$0xf0] }
 0x64b   :  { %v12623_v2 = vld [vmem:[#allocation8 + $0x7b8] sm:$0xf0] }
 0x64c   :  { %8184 = vmatpush.bf16.msrb.mxu2 %v12466_v12  ;;  %8159 = vmatpush.bf16.msrb.mxu0 %v12194_v43  ;;  %v13672_v12 = vld [vmem:[#allocation8 + $0x3ac] sm:$0xf]  ;;  %v12079_v43 = vld [vmem:[#allocation8 + $0x378] sm:$0xf0] }
 0x64e   :  { %8172 = vmatpush.bf16.msrb.mxu1 %v12322_v27  ;;  %8095 = vmatpush.bf16.msrb.mxu3 %v12558_v63  ;;  %v12082_v27 = vor.u32 %v13664_v39, %v12079_v43  ;;  %v12607_v63 = vld [vmem:[#allocation8 + $0x798] sm:$0xf0]  ;;  %v13819_v39 = vld [vmem:[#allocation11 + $0x40] sm:$0xff]  ;;  %v13780_v43 = vld [vmem:[#allocation8 + $0x70c] sm:$0xf] }
 0x650   :  { %8185 = vmatpush.bf16.msrb.mxu2 %v12450_v56  ;;  %8160 = vmatpush.bf16.msrb.mxu0 %v12178_v20  ;;  %v12063_v56 = vld [vmem:[#allocation8 + $0x358] sm:$0xf0]  ;;  %v13652_v20 = vld [vmem:[#allocation8 + $0x30c] sm:$0xf] }
 0x651   :  { %v12066_v61 = vor.u32 %v13660_v55, %v12063_v56 }
 0x652   :  { %8173 = vmatpush.bf16.msrb.mxu1 %v12306_v52  ;;  %8096 = vmatpush.bf16.msrb.mxu3 %v12542_v23  ;;  %v12031_v52 = vld [vmem:[#allocation8 + $0x318] sm:$0xf0]  ;;  %v12610_v23 = vor.u32 %v13796_v14, %v12607_v63  ;;  %v13828_v14 = vld [vmem:[#allocation11 + $0x88] sm:$0xff] }
 0x654   :  { %8186 = vmatpush.bf16.msrb.mxu2 %v12434_v38  ;;  %8161 = vmatpush.bf16.msrb.mxu0 %v12162_v62  ;;  %v14499_v30 = vpop.f32.mrf.mxu0  ;;  %v12034_v38 = vor.u32 %v13652_v20, %v12031_v52  ;;  %v12642_v62 = vor.u32 %v13804_v32, %v12639_v60  ;;  %v13831_v60 = vld [vmem:[#allocation11 + $0xa0] sm:$0xff] }
 0x655   :  { %8097 = vmatmul.bf16.vlgmr.msrb.gmra.mxu3 %v14475_v59 }
 0x656   :  { %8174 = vmatpush.bf16.msrb.mxu1 %v12290_v4  ;;  %8141 = vmatpush.bf16.msra.mxu3 %v12146_v15  ;;  %v14501_v28 = vpop.f32.mrf.mxu1  ;;  %v13792_v15 = vld [vmem:[#allocation8 + $0x76c] sm:$0xf] }
 0x657   :  { %8162 = vmatmul.bf16.vlgmr.msrb.gmra.mxu0 %v14430_v7  ;;  %v12130_v7 = vor.u32 %v13676_v34, %v12127_v25  ;;  %v13821_v34 = vld [vmem:[#allocation11 + $0x50] sm:$0xff] }
 0x658   :  { %8187 = vmatpush.bf16.msrb.mxu2 %v12418_v49  ;;  %8482 = vmatpush.bf16.msra.mxu0 %v13818_v3  ;;  %v13800_v49 = vld [vmem:[#allocation8 + $0x7ac] sm:$0xf] }
 0x659   :  { %8175 = vmatmul.bf16.vlgmr.msrb.gmra.mxu1 %v14432_v8  ;;  %v13815_v8 = vld [vmem:[#allocation11 + $0x20] sm:$0xff]  ;;  %v12626_v3 = vor.u32 %v13800_v49, %v12623_v2  ;;  %v13829_v2 = vld [vmem:[#allocation11 + $0x90] sm:$0xff] }
 0x65a   :  { %8142 = vmatpush.bf16.msra.mxu3 %v12130_v7  ;;  %8495 = vmatpush.bf16.msra.mxu1 %v13826_v31 }
 0x65b   :  { %8188 = vmatmul.bf16.vlgmr.msrb.gmra.mxu2 %v14436_v48  ;;  %v12114_v48 = vor.u32 %v13672_v12, %v12111_v40  ;;  %v12575_v40 = vld [vmem:[#allocation8 + $0x758] sm:$0xf0] }
 0x65c   :  { %8483 = vmatpush.bf16.msra.mxu0 %v13817_v17  ;;  %v7957_v1 = vpop.f32.mrf.mxu0 }
 0x65e   :  { %v14504_v37 = vpop.f32.mrf.mxu2  ;;  %8143 = vmatpush.bf16.msra.mxu3 %v12114_v48  ;;  %v7970_v18 = vpop.f32.mrf.mxu1  ;;  %8496 = vmatpush.bf16.msra.mxu1 %v13825_v58  ;;  %v13834_v58 = vld [vmem:[#allocation11 + $0xb8] sm:$0xff] }
 0x65f   :  { %v13784_v18 = vld [vmem:[#allocation8 + $0x72c] sm:$0xf]  ;;  %8508 = vmatpush.bf16.msra.mxu2 %v13834_v58 }
 0x660   :  { %8484 = vmatpush.bf16.msra.mxu0 %v13816_v50  ;;  %v12591_v50 = vld [vmem:[#allocation8 + $0x778] sm:$0xf0] }
 0x661   :  { %v12594_v7 = vor.u32 %v13792_v15, %v12591_v50 }
 0x662   :  { %8144 = vmatpush.bf16.msra.mxu3 %v12098_v19  ;;  %8497 = vmatpush.bf16.msra.mxu1 %v13824_v47  ;;  %v12559_v19 = vld [vmem:[#allocation8 + $0x738] sm:$0xf0] }
 0x664   :  { %8485 = vmatpush.bf16.msra.mxu0 %v13815_v8  ;;  %v13788_v8 = vld [vmem:[#allocation8 + $0x74c] sm:$0xf] }
 0x665   :  { %v12578_v1 = vor.u32 %v13788_v8, %v12575_v40 }
 0x666   :  { %v7983_v57 = vpop.f32.mrf.mxu2  ;;  %8145 = vmatpush.bf16.msra.mxu3 %v12082_v27  ;;  %8498 = vmatpush.bf16.msra.mxu1 %v13823_v46  ;;  %v12543_v27 = vld [vmem:[#allocation8 + $0x718] sm:$0xf0] }
 0x668   :  { %8486 = vmatpush.bf16.msra.mxu0 %v13814_v24 }
 0x66a   :  { %8146 = vmatpush.bf16.msra.mxu3 %v12066_v61  ;;  %8499 = vmatpush.bf16.msra.mxu1 %v13822_v16 }
 0x66c   :  { %8487 = vmatpush.bf16.msra.mxu0 %v13813_v26 }
 0x66e   :  { %8147 = vmatpush.bf16.msra.mxu3 %v12050_v54  ;;  %8500 = vmatpush.bf16.msra.mxu1 %v13821_v34 }
 0x670   :  { %8488 = vmatpush.bf16.msra.mxu0 %v13812_v53  ;;  %v12546_v53 = vor.u32 %v13780_v43, %v12543_v27  ;;  %v13836_v43 = vld [vmem:[#allocation11 + $0xc8] sm:$0xff] }
 0x672   :  { %8148 = vmatpush.bf16.msra.mxu3 %v12034_v38  ;;  %8501 = vmatpush.bf16.msra.mxu1 %v13820_v9 }
 0x674   :  { %8489 = vmatpush.bf16.msra.mxu0 %v13811_v41  ;;  %v8007_v5 = vpop.f32.mrf.mxu0  ;;  %v7890_v25 = vpop.f32.mrf.mxu3 }
 0x675   :  { %v8008_v4 = vadd.f32 %v8007_v5, %v6504_v13  ;;  %8149 = vmatmul.bf16.vlgmr.msra.gmra.mxu3 %v14408_v33  ;;  %v7891_v33 = vadd.f32 %v7890_v25, %v14487_v51  ;;  %v12562_v51 = vor.u32 %v13784_v18, %v12559_v19  ;;  %v13833_v13 = vld [vmem:[#allocation11 + $0xb0] sm:$0xff]  ;;  %v13840_v18 = vld [vmem:[#allocation11 + $0xe8] sm:$0xff] }
 0x676   :  { %8193 = vmatpush.bf16.msrb.mxu3 %v12658_v11  ;;  %v8020_v6 = vpop.f32.mrf.mxu1  ;;  %8502 = vmatpush.bf16.msra.mxu1 %v13819_v39  ;;  %v13838_v39 = vld [vmem:[#allocation11 + $0xd8] sm:$0xff] }
 0x677   :  { %v8021_v10 = vadd.f32 %v8020_v6, %v8008_v4  ;;  %vm8206_vm10 = vcmp.ge.f32.partialorder %v7891_v33, 0.0  ;;  %v8210_v12 = vmul.f32 0.01, %v7891_v33  ;;  %8509 = vmatpush.bf16.msra.mxu2 %v13833_v13  ;;  %v13830_v4 = vld [vmem:[#allocation11 + $0x98] sm:$0xff] }
 0x679   :  { %v8214_v48 = vsel %vm8206_vm10, %v7891_v33, %v8210_v12 }
 0x67a   :  { %8194 = vmatpush.bf16.msrb.mxu3 %v12642_v62  ;;  %v8218_v35 = vpack.c.bf16 %v8214_v48, %v8214_v48  ;;  %v13842_v48 = vld [vmem:[#allocation11 + $0xf8] sm:$0xff] }
 0x67c   :  { %v8009_v21 = vpop.f32.mrf.mxu0  ;;  %v7892_v26 = vpop.f32.mrf.mxu3  ;;  %8490 = vmatmul.bf16.vlgmr.msra.gmra.mxu0 %v8218_v35 }
 0x67d   :  { %v13827_v21 = vld [vmem:[#allocation11 + $0x80] sm:$0xff] }
 0x67e   :  { %v8033_v36 = vpop.f32.mrf.mxu2  ;;  %8195 = vmatpush.bf16.msrb.mxu3 %v12626_v3  ;;  %v8022_v0 = vpop.f32.mrf.mxu1  ;;  %v13839_v26 = vld [vmem:[#allocation11 + $0xe0] sm:$0xff] }
 0x67f   :  { %v14508_v17 = vadd.f32 %v8033_v36, %v8021_v10 }
 0x682   :  { %8196 = vmatpush.bf16.msrb.mxu3 %v12610_v23 }
 0x684   :  { %v7942_v55 = vpop.f32.mrf.mxu3 }
 0x685   :  { %v7943_v56 = vadd.f32 %v7942_v55, %v14494_v45  ;;  %v13835_v55 = vld [vmem:[#allocation11 + $0xc0] sm:$0xff] }
 0x686   :  { %v8035_v24 = vpop.f32.mrf.mxu2  ;;  %8197 = vmatpush.bf16.msrb.mxu3 %v12594_v7 }
 0x687   :  { %v7956_v57 = vadd.f32 %v14499_v30, %v7943_v56 }
 0x689   :  { %v7969_v44 = vadd.f32 %v14501_v28, %v7956_v57 }
 0x68a   :  { %8198 = vmatpush.bf16.msrb.mxu3 %v12578_v1 }
 0x68b   :  { %v7982_v22 = vadd.f32 %v14504_v37, %v7969_v44  ;;  %v13832_v37 = vld [vmem:[#allocation11 + $0xa8] sm:$0xff] }
 0x68c   :  { %v7944_v54 = vpop.f32.mrf.mxu3  ;;  %8510 = vmatpush.bf16.msra.mxu2 %v13832_v37 }
 0x68e   :  { %8199 = vmatpush.bf16.msrb.mxu3 %v12562_v51  ;;  %v13837_v51 = vld [vmem:[#allocation11 + $0xd0] sm:$0xff] }
 0x690   :  { %8511 = vmatpush.bf16.msra.mxu2 %v13831_v60 }
 0x692   :  { %8200 = vmatpush.bf16.msrb.mxu3 %v12546_v53 }
 0x694   :  { %v8059_v61 = vpop.f32.mrf.mxu0  ;;  %8512 = vmatpush.bf16.msra.mxu2 %v13830_v4 }
 0x695   :  { %8201 = vmatmul.bf16.vlgmr.msrb.gmra.mxu3 %v14475_v59  ;;  %v13861_v59 = vld [vmem:[#allocation10] sm:$0xf] }
 0x696   :  { %v8072_v41 = vpop.f32.mrf.mxu1  ;;  %v6505_v28 = vperm.slane %v13861_v59, 3  ;;  %8521 = vmatpush.bf16.msra.mxu3 %v13842_v48 }
 0x698   :  { %8513 = vmatpush.bf16.msra.mxu2 %v13829_v2 }
 0x699   :  { %v7994_v29 = vpop.f32.mrf.mxu3 }
 0x69a   :  { %v7995_v38 = vadd.f32 %v7994_v29, %v7982_v22 }
 0x69c   :  { %v8061_v20 = vpop.f32.mrf.mxu0  ;;  %vm8207_vm11 = vcmp.ge.f32.partialorder %v7995_v38, 0.0  ;;  %v8211_v45 = vmul.f32 0.01, %v7995_v38  ;;  %8514 = vmatpush.bf16.msra.mxu2 %v13828_v14 }
 0x69e   :  { %v8085_v31 = vpop.f32.mrf.mxu2  ;;  %v8074_v52 = vpop.f32.mrf.mxu1  ;;  %v8215_v30 = vsel %vm8207_vm11, %v7995_v38, %v8211_v45  ;;  %v13857_v38 = vld [vmem:[#allocation13] ss:$0 sm:$0xff] }
 0x69f   :  { %v8219_v11 = vpack.c.bf16 %v8215_v30, %v8215_v30 }
 0x6a0   :  { %8515 = vmatpush.bf16.msra.mxu2 %v13827_v21 }
 0x6a1   :  { %v7996_v32 = vpop.f32.mrf.mxu3  ;;  %8503 = vmatmul.bf16.vlgmr.msra.gmra.mxu1 %v8219_v11 }
 0x6a6   :  { %v8087_v42 = vpop.f32.mrf.mxu2 }
 0x6b4   :  { %v8111_v47 = vpop.f32.mrf.mxu0 }
 0x6b5   :  { %v8112_v5 = vadd.f32 %v8111_v47, %v6505_v28 }
 0x6b6   :  { %v8124_v6 = vpop.f32.mrf.mxu1 }
 0x6b7   :  { %v8125_v62 = vadd.f32 %v8124_v6, %v8112_v5 }
 0x6b8   :  { %v8046_v16 = vpop.f32.mrf.mxu3 }
 0x6b9   :  { %v8047_v36 = vadd.f32 %v8046_v16, %v14508_v17  ;;  %v13841_v17 = vld [vmem:[#allocation11 + $0xf0] sm:$0xff] }
 0x6ba   :  { %8522 = vmatpush.bf16.msra.mxu3 %v13841_v17 }
 0x6bb   :  { %v8060_v0 = vadd.f32 %v8059_v61, %v8047_v36 }
 0x6bc   :  { %v8113_v10 = vpop.f32.mrf.mxu0 }
 0x6bd   :  { %v8073_v23 = vadd.f32 %v8072_v41, %v8060_v0 }
 0x6be   :  { %v8137_v49 = vpop.f32.mrf.mxu2  ;;  %v8126_v3 = vpop.f32.mrf.mxu1  ;;  %8523 = vmatpush.bf16.msra.mxu3 %v13840_v18 }
 0x6bf   :  { %v8138_v46 = vadd.f32 %v8137_v49, %v8125_v62  ;;  %v8086_v15 = vadd.f32 %v8085_v31, %v8073_v23 }
 0x6c0   :  { %v8048_v50 = vpop.f32.mrf.mxu3 }
 0x6c2   :  { %8524 = vmatpush.bf16.msra.mxu3 %v13839_v26 }
 0x6c6   :  { %v8139_v63 = vpop.f32.mrf.mxu2  ;;  %8525 = vmatpush.bf16.msra.mxu3 %v13838_v39 }
 0x6ca   :  { %8526 = vmatpush.bf16.msra.mxu3 %v13837_v51 }
 0x6ce   :  { %8527 = vmatpush.bf16.msra.mxu3 %v13836_v43 }
 0x6d2   :  { %8528 = vmatpush.bf16.msra.mxu3 %v13835_v55 }
 0x6d4   :  { %v8163_v34 = vpop.f32.mrf.mxu0 }
 0x6d6   :  { %v8176_v25 = vpop.f32.mrf.mxu1 }
 0x6d8   :  { %v8098_v40 = vpop.f32.mrf.mxu3 }
 0x6d9   :  { %v8099_v24 = vadd.f32 %v8098_v40, %v8086_v15 }
 0x6db   :  { %vm8208_vm12 = vcmp.ge.f32.partialorder %v8099_v24, 0.0  ;;  %v8212_v9 = vmul.f32 0.01, %v8099_v24 }
 0x6dc   :  { %v8165_v7 = vpop.f32.mrf.mxu0 }
 0x6dd   :  { %v8216_v35 = vsel %vm8208_vm12, %v8099_v24, %v8212_v9 }
 0x6de   :  { %v8189_v33 = vpop.f32.mrf.mxu2  ;;  %v8178_v8 = vpop.f32.mrf.mxu1  ;;  %v8220_v1 = vpack.c.bf16 %v8216_v35, %v8216_v35 }
 0x6e0   :  { %v8100_v19 = vpop.f32.mrf.mxu3  ;;  %8516 = vmatmul.bf16.vlgmr.msra.gmra.mxu2 %v8220_v1 }
 0x6e6   :  { %v8191_v12 = vpop.f32.mrf.mxu2 }
 0x6f8   :  { %v8150_v27 = vpop.f32.mrf.mxu3 }
 0x6f9   :  { %v8151_v53 = vadd.f32 %v8150_v27, %v8138_v46  ;;  %v8491_v44 = vpop.f32.mrf.mxu0 }
 0x6fa   :  { %v8492_v58 = vadd.f32 %v13857_v38, %v8491_v44 }
 0x6fb   :  { %v8164_v56 = vadd.f32 %v8163_v34, %v8151_v53 }
 0x6fd   :  { %v8177_v57 = vadd.f32 %v8176_v25, %v8164_v56 }
 0x6ff   :  { %v8190_v61 = vadd.f32 %v8189_v33, %v8177_v57 }
 0x700   :  { %v8152_v41 = vpop.f32.mrf.mxu3 }
 0x701   :  { %v8493_v22 = vpop.f32.mrf.mxu0 }
 0x718   :  { %v8202_v54 = vpop.f32.mrf.mxu3 }
 0x719   :  { %v8203_v31 = vadd.f32 %v8202_v54, %v8190_v61 }
 0x71b   :  { %vm8209_vm13 = vcmp.ge.f32.partialorder %v8203_v31, 0.0  ;;  %v8213_v20 = vmul.f32 0.01, %v8203_v31 }
 0x71d   :  { %v8217_v52 = vsel %vm8209_vm13, %v8203_v31, %v8213_v20 }
 0x71e   :  { %v8221_v42 = vpack.c.bf16 %v8217_v52, %v8217_v52  ;;  %v8504_v45 = vpop.f32.mrf.mxu1 }
 0x71f   :  { %v8505_v30 = vadd.f32 %v8504_v45, %v8492_v58 }
 0x720   :  { %v8204_v29 = vpop.f32.mrf.mxu3  ;;  %8529 = vmatmul.bf16.vlgmr.msra.gmra.mxu3 %v8221_v42 }
 0x726   :  { %v8506_v11 = vpop.f32.mrf.mxu1 }
 0x763   :  { %v8517_v13 = vpop.f32.mrf.mxu2 }
 0x764   :  { %v8518_v59 = vadd.f32 %v8517_v13, %v8505_v30 }
 0x76b   :  { %v8519_v32 = vpop.f32.mrf.mxu2 }
 0x7a3   :  { %v8530_v28 = vpop.f32.mrf.mxu3 }
 0x7a4   :  { %v8531_v37 = vadd.f32 %v8530_v28, %v8518_v59 }
 0x7a6   :  { %8534 = vst [vmem:[#allocation14] sm:$0x3] %v8531_v37 }
 0x7a7   :  { %8545 = dma.vmem_to_hbm [thread:$0]  %s8541_s6, 32, %s8543_s15, [#allocation4]  }
 0x7ab   :  { %v8532_v60 = vpop.f32.mrf.mxu3 }
 0x7ac   :  { %14062 = dma.done.wait [#allocation4], 32  }
 0x7ad   :  { %14063 = vsyncadd [#allocation4], 4294967264 }
 0x7ae   :  { %8550 = vsyncpa [#allocation3], 1 }
 0x7af   :  { %8551 = vsyncpa [#allocation6], 1 }
 0x7b0   :  { %8552 = vsyncpa [#allocation9], 1 }
 0x7b1   :  { %8553 = vsyncpa [#allocation12], 1 }
 0x7b2   :  { %8554 = vsyncpa [#allocation4], 1 }

</bundles_post_ra>
